<compile_context>
chip_gen: v6e
topology: v6e:2x2x1
jax: 0.10.0
libtpu: 0.0.40
codegen_flags: <defaults>
</compile_context>

<pallas_src>
import functools
import math

import jax
import jax.numpy as jnp
from jax.experimental import pallas as pl
from jax.experimental.pallas import tpu as pltpu

NEG_INF = -1e30


def _vmem_limit_bytes():
    # ~75% of physical per-core VMEM: v5e/v6e 128 MiB -> 96 MiB, v7x 64 MiB -> 48 MiB.
    try:
        cap = getattr(pltpu.get_tpu_info(), "vmem_capacity_bytes", None)
        if cap:
            return int(cap) * 3 // 4
    except Exception:
        pass
    return 48 * 1024 * 1024


_VMEM_LIMIT = _vmem_limit_bytes()


def _cparams(semantics):
    return pltpu.CompilerParams(dimension_semantics=tuple(semantics),
                                vmem_limit_bytes=_VMEM_LIMIT)


def _pick_chunk(total, candidates):
    """Largest candidate that evenly tiles `total` (else no tiling)."""
    for c in candidates:
        if total > c and total % c == 0:
            return c
    return total


# ----------------------------------------------------------------------------- #
# In-kernel helpers
# ----------------------------------------------------------------------------- #
def _mm(a, b):
    """bf16 MXU matmul with f32 accumulation (no-op cast if already bf16)."""
    return jnp.dot(a.astype(jnp.bfloat16), b.astype(jnp.bfloat16),
                   preferred_element_type=jnp.float32)


def _mm_nt(a, b):
    """a @ b.T (contract last dims), bf16 operands, f32 accumulation."""
    return jax.lax.dot_general(a.astype(jnp.bfloat16), b.astype(jnp.bfloat16),
                               (((1,), (1,)), ((), ())),
                               preferred_element_type=jnp.float32)


def _ln(x, g, b, eps=1e-5):
    mu = jnp.mean(x, axis=-1, keepdims=True)
    var = jnp.mean((x - mu) ** 2, axis=-1, keepdims=True)
    return (x - mu) * jax.lax.rsqrt(var + eps) * g + b


# ----------------------------------------------------------------------------- #
# Small standalone dense kernel (backbone stand-in projections, kv 1x1 conv)
# ----------------------------------------------------------------------------- #
def _dense_kernel(x_ref, w_ref, b_ref, o_ref, *, relu):
    y = _mm(x_ref[...], w_ref[...]) + b_ref[...]
    if relu:
        y = jnp.maximum(y, 0.0)
    o_ref[...] = y


def dense(x, w, b=None, relu=False):
    """x:(M,K) @ w:(K,N) + b.  Row-tiled with padding so odd M never forces a full-M block."""
    M, K = x.shape
    N = w.shape[1]
    if b is None:
        b = jnp.zeros((N,), jnp.float32)
    bm = 256 if M > 256 else M
    Mp = ((M + bm - 1) // bm) * bm
    xp = jnp.pad(x, ((0, Mp - M), (0, 0))) if Mp != M else x
    out = pl.pallas_call(
        functools.partial(_dense_kernel, relu=relu),
        grid=(Mp // bm,),
        in_specs=[pl.BlockSpec((bm, K), lambda i: (i, 0)),
                  pl.BlockSpec((K, N), lambda i: (0, 0)),
                  pl.BlockSpec((1, N), lambda i: (0, 0))],
        out_specs=pl.BlockSpec((bm, N), lambda i: (i, 0)),
        out_shape=jax.ShapeDtypeStruct((Mp, N), jnp.float32),
        compiler_params=_cparams(("parallel",)),
    )(xp.astype(jnp.float32), w.astype(jnp.float32),
      b.reshape(1, N).astype(jnp.float32))
    return out[:M] if Mp != M else out


# ----------------------------------------------------------------------------- #
# Fused bilinear resize:  out = Ah @ X @ Aw^T, g images per grid step
# ----------------------------------------------------------------------------- #
def _resize_kernel(x_ref, ah_ref, awt_ref, o_ref, *, g, merge):
    Hin, Win = x_ref.shape[1], x_ref.shape[2]
    ah = ah_ref[...]
    awt = awt_ref[...]
    if merge:                                        # one big Aw pass for the whole group
        y = _mm(x_ref[...].reshape(g * Hin, Win), awt).reshape(g, Hin, awt.shape[1])
        for i in range(g):
            o_ref[i] = _mm(ah, y[i])
    else:
        for i in range(g):
            o_ref[i] = _mm(ah, _mm(x_ref[i], awt))


def _resize_matrix(in_size, out_size):
    """F.interpolate(mode='bilinear', align_corners=False) as a linear operator."""
    o = jnp.arange(out_size, dtype=jnp.float32)
    scale = in_size / out_size
    src = jnp.maximum((o + 0.5) * scale - 0.5, 0.0)
    i0 = jnp.minimum(jnp.floor(src), in_size - 1).astype(jnp.int32)
    i1 = jnp.minimum(i0 + 1, in_size - 1)
    w1 = src - i0.astype(jnp.float32)
    w0 = 1.0 - w1
    cols = jnp.arange(in_size, dtype=jnp.int32)
    M = ((cols[None, :] == i0[:, None]).astype(jnp.float32) * w0[:, None]
         + (cols[None, :] == i1[:, None]).astype(jnp.float32) * w1[:, None])
    return M                                            # (out_size, in_size)


def bilinear_resize(x, out_h, out_w):
    """x:(N,Hin,Win) -> (N,out_h,out_w); grouped grid steps, both passes fused."""
    N, Hin, Win = x.shape
    g = 1
    for cand in (16, 8, 4, 2):
        if N % cand == 0:
            g = cand
            break
    Ah = _resize_matrix(Hin, out_h)                     # (out_h, Hin)
    AwT = _resize_matrix(Win, out_w).T                  # (Win, out_w)
    return pl.pallas_call(
        functools.partial(_resize_kernel, g=g, merge=(Hin % 8 == 0)),
        grid=(N // g,),
        in_specs=[pl.BlockSpec((g, Hin, Win), lambda i: (i, 0, 0)),
                  pl.BlockSpec((out_h, Hin), lambda i: (0, 0)),
                  pl.BlockSpec((Win, out_w), lambda i: (0, 0))],
        out_specs=pl.BlockSpec((g, out_h, out_w), lambda i: (i, 0, 0)),
        out_shape=jax.ShapeDtypeStruct((N, out_h, out_w), jnp.float32),
        compiler_params=_cparams(("parallel",)),
    )(x.astype(jnp.float32), Ah, AwT)


# ----------------------------------------------------------------------------- #
# Fused Transformer_decoder_block: grid=(B, S_chunks), flash-style cross-attention
# ----------------------------------------------------------------------------- #
def _decoder_block_kernel(
        q_ref, key_ref, val_ref, mask_ref,
        ma_wqkv, ma_bqkv, ma_wo, ma_bo, ma_g, ma_b,
        sa_wqkv, sa_bqkv, sa_wo, sa_bo, sa_g, sa_b,
        ffn_w1, ffn_b1, ffn_w2, ffn_b2, ffn_g, ffn_b,
        out_ref,
        qproj_sc, m_sc, l_sc, acc_sc, *, num_heads):
    D = q_ref.shape[-1]
    dh = D // num_heads
    s_idx = pl.program_id(1)
    n_s = pl.num_programs(1)

    # ---- first kv chunk of this batch element: project (pre-scaled) queries, init stats ----
    @pl.when(s_idx == 0)
    def _():
        x0 = q_ref[0]
        qproj_sc[...] = _mm(x0, ma_wqkv[:, 0:D]) + ma_bqkv[:, 0:D]
        m_sc[...] = jnp.full(m_sc.shape, -jnp.inf, m_sc.dtype)
        l_sc[...] = jnp.zeros(l_sc.shape, l_sc.dtype)
        acc_sc[...] = jnp.zeros(acc_sc.shape, acc_sc.dtype)

    # ---- streamed masked cross-attention chunk (online softmax per head) ----
    key = key_ref[0]                                       # (Sc, D) bf16  (= value + key_pos)
    val = val_ref[0]                                       # (Sc, D) bf16
    k = _mm(key, ma_wqkv[:, D:2 * D]) + ma_bqkv[:, D:2 * D]            # (Sc, D) f32
    v = _mm(val, ma_wqkv[:, 2 * D:3 * D]) + ma_bqkv[:, 2 * D:3 * D]    # (Sc, D) f32
    bias = mask_ref[0].astype(jnp.float32) * NEG_INF       # (Q, Sc), hoisted out of head loop
    q_all = qproj_sc[...]
    for h in range(num_heads):
        sl = slice(h * dh, (h + 1) * dh)
        s = _mm_nt(q_all[:, sl], k[:, sl]) + bias          # (Q, Sc) f32 scores
        m_old = m_sc[h]
        m_new = jnp.maximum(m_old, jnp.max(s, axis=-1, keepdims=True))
        alpha = jnp.exp(m_old - m_new)
        p = jnp.exp(s - m_new)
        l_sc[h] = alpha * l_sc[h] + jnp.sum(p, axis=-1, keepdims=True)
        acc_sc[h] = alpha * acc_sc[h] + _mm(p, v[:, sl])
        m_sc[h] = m_new

    # ---- last chunk: finish cross-attn, then self-attn + FFN (query-only work) ----
    @pl.when(s_idx == n_s - 1)
    def _():
        x = q_ref[0]
        o_all = jnp.concatenate(
            [acc_sc[h] * pl.reciprocal(l_sc[h], approx=True) for h in range(num_heads)],
            axis=-1)                                       # (Q, D), heads in contiguous lanes
        x = _ln(_mm(o_all, ma_wo[...]) + ma_bo[...] + x, ma_g[...], ma_b[...])

        # self-attention (q = k = v, no mask), fused QKV matmul
        qkv = _mm(x, sa_wqkv[...]) + sa_bqkv[...]
        sq, sk, sv = qkv[:, 0:D], qkv[:, D:2 * D], qkv[:, 2 * D:3 * D]
        outs = []
        for h in range(num_heads):
            sl = slice(h * dh, (h + 1) * dh)
            sc = _mm_nt(sq[:, sl], sk[:, sl])
            sc = sc - jnp.max(sc, axis=-1, keepdims=True)
            p = jnp.exp(sc)
            inv = pl.reciprocal(jnp.sum(p, axis=-1, keepdims=True), approx=True)
            outs.append(_mm(p, sv[:, sl]) * inv)
        x = _ln(_mm(jnp.concatenate(outs, axis=-1), sa_wo[...]) + sa_bo[...] + x,
                sa_g[...], sa_b[...])

        # FFN + add & norm
        h1 = jnp.maximum(_mm(x, ffn_w1[...]) + ffn_b1[...], 0.0)
        out_ref[0] = _ln(_mm(h1, ffn_w2[...]) + ffn_b2[...] + x, ffn_g[...], ffn_b[...])


_BLOCK_KEYS = ('ma_wqkv', 'ma_bqkv', 'ma_wo', 'ma_bo', 'ma_g', 'ma_b',
               'sa_wqkv', 'sa_bqkv', 'sa_wo', 'sa_bo', 'sa_g', 'sa_b',
               'ffn_w1', 'ffn_b1', 'ffn_w2', 'ffn_b2', 'ffn_g', 'ffn_b')


def decoder_block(query, key, value, mask, blk, num_heads):
    """query:(B,Q,D) f32; key/value:(B,S,D) bf16; mask:(B,Q,S) int8 (1=masked) -> (B,Q,D)."""
    B, Q, D = query.shape
    S = key.shape[1]
    Sc = _pick_chunk(S, (2048, 1024, 512, 256, 128))
    weights = [blk[k] for k in _BLOCK_KEYS]
    in_specs = [pl.BlockSpec((1, Q, D), lambda b, s: (b, 0, 0)),
                pl.BlockSpec((1, Sc, D), lambda b, s: (b, s, 0)),
                pl.BlockSpec((1, Sc, D), lambda b, s: (b, s, 0)),
                pl.BlockSpec((1, Q, Sc), lambda b, s: (b, 0, s))]
    in_specs += [pl.BlockSpec(w.shape, lambda b, s: (0, 0)) for w in weights]
    return pl.pallas_call(
        functools.partial(_decoder_block_kernel, num_heads=num_heads),
        grid=(B, S // Sc),
        in_specs=in_specs,
        out_specs=pl.BlockSpec((1, Q, D), lambda b, s: (b, 0, 0)),
        out_shape=jax.ShapeDtypeStruct((B, Q, D), jnp.float32),
        scratch_shapes=[pltpu.VMEM((Q, D), jnp.float32),
                        pltpu.VMEM((num_heads, Q, 1), jnp.float32),
                        pltpu.VMEM((num_heads, Q, 1), jnp.float32),
                        pltpu.VMEM((num_heads, Q, D // num_heads), jnp.float32)],
        compiler_params=_cparams(("parallel", "arbitrary")),
    )(query, key, value, mask, *weights)


# ----------------------------------------------------------------------------- #
# Fused forward_prediction_heads: grid=(B, P_chunks), mask_embed cached in VMEM scratch
# ----------------------------------------------------------------------------- #
def _pred_heads_kernel(q_ref, pix_ref, ng, nb, cls_w, cls_b,
                       w0, b0, w1, b1, w2, b2,
                       cls_out_ref, mask_out_ref, me_sc, *, emit_attn_mask):
    p_idx = pl.program_id(1)

    @pl.when(p_idx == 0)
    def _():
        x = _ln(q_ref[0], ng[...], nb[...])                 # decoder_norm
        cls_out_ref[0] = _mm(x, cls_w[...]) + cls_b[...]    # class head (lane-padded to 128)
        me = jnp.maximum(_mm(x, w0[...]) + b0[...], 0.0)    # MLP = (Linear+ReLU) x 3
        me = jnp.maximum(_mm(me, w1[...]) + b1[...], 0.0)
        me = jnp.maximum(_mm(me, w2[...]) + b2[...], 0.0)   # final ReLU per provided module
        me_sc[...] = me

    m = _mm(me_sc[...], pix_ref[0])                         # (Q, Pc)  'qc,cp->qp'
    if emit_attn_mask:
        # sigmoid(m) < 0.5 <=> m < 0 ;  fully-masked rows are unmasked
        # (== attn_mask[attn_mask.sum(-1) == S] = False in the reference).
        masked = m < 0.0
        S = m.shape[-1]
        nmask = jnp.sum(masked.astype(jnp.float32), axis=-1, keepdims=True)
        row_full = nmask >= (S - 0.5)
        mask_out_ref[0] = (masked & jnp.logical_not(row_full)).astype(jnp.int8)
    else:
        mask_out_ref[0] = m


def prediction_heads(query, pix, params, emit_attn_mask):
    """query:(B,Q,D) f32; pix:(B,D,P) bf16.  Returns (lane-padded class logits f32,
    attn mask int8 (1=masked) OR raw mask logits f32)."""
    B, Q, D = query.shape
    P = pix.shape[-1]
    NC = params['cls_w'].shape[1]
    # Attn-mask path needs the full S row for the fully-masked-row fix; final path is P-tiled.
    Pc = P if emit_attn_mask else _pick_chunk(P, (8192, 4096, 2048, 1024, 512, 256, 128))
    weights = [params['dec_norm_g'], params['dec_norm_b'],
               params['cls_w'], params['cls_b'],
               params['seg_w0'], params['seg_b0'],
               params['seg_w1'], params['seg_b1'],
               params['seg_w2'], params['seg_b2']]
    in_specs = [pl.BlockSpec((1, Q, D), lambda b, p: (b, 0, 0)),
                pl.BlockSpec((1, D, Pc), lambda b, p: (b, 0, p))]
    in_specs += [pl.BlockSpec(w.shape, lambda b, p: (0, 0)) for w in weights]
    mask_dtype = jnp.int8 if emit_attn_mask else jnp.float32
    cls_out, mask_out = pl.pallas_call(
        functools.partial(_pred_heads_kernel, emit_attn_mask=emit_attn_mask),
        grid=(B, P // Pc),
        in_specs=in_specs,
        out_specs=[pl.BlockSpec((1, Q, NC), lambda b, p: (b, 0, 0)),
                   pl.BlockSpec((1, Q, Pc), lambda b, p: (b, 0, p))],
        out_shape=[jax.ShapeDtypeStruct((B, Q, NC), jnp.float32),
                   jax.ShapeDtypeStruct((B, Q, P), mask_dtype)],
        scratch_shapes=[pltpu.VMEM((Q, D), jnp.float32)],
        compiler_params=_cparams(("parallel", "arbitrary")),
    )(query, pix, *weights)
    return cls_out, mask_out


# ----------------------------------------------------------------------------- #
# Positional embedding (plain JAX, computed once per feature level)
# ----------------------------------------------------------------------------- #
def pos_embedding_sine(b, h, w, num_pos_feats, temperature=10000.0):
    scale = 2.0 * math.pi
    eps = 1e-6
    ones = jnp.ones((b, h, w), jnp.float32)
    y_embed = jnp.cumsum(ones, axis=1)
    x_embed = jnp.cumsum(ones, axis=2)
    y_embed = y_embed / (y_embed[:, -1:, :] + eps) * scale
    x_embed = x_embed / (x_embed[:, :, -1:] + eps) * scale
    dim_t = jnp.arange(num_pos_feats, dtype=jnp.float32)
    dim_t = temperature ** (2.0 * jnp.floor(dim_t / 2.0) / num_pos_feats)
    pos_x = x_embed[:, :, :, None] / dim_t
    pos_y = y_embed[:, :, :, None] / dim_t
    pos_x = jnp.stack((jnp.sin(pos_x[:, :, :, 0::2]),
                       jnp.cos(pos_x[:, :, :, 1::2])), axis=4).reshape(b, h, w, -1)
    pos_y = jnp.stack((jnp.sin(pos_y[:, :, :, 0::2]),
                       jnp.cos(pos_y[:, :, :, 1::2])), axis=4).reshape(b, h, w, -1)
    return jnp.concatenate((pos_y, pos_x), axis=3)              # (b, h, w, D)


# ----------------------------------------------------------------------------- #
# Full Mask2Former forward (batch-first layouts internally; same math as PyTorch)
# ----------------------------------------------------------------------------- #
def mask2former_forward(imgs, params, cfg):
    B, Cin, Himg, Wimg = imgs.shape
    D = cfg['model_dim']
    H = cfg['num_heads']
    Q = cfg['num_query']

    # TODO(synk): backbone + pixel-decoder stand-in (source not provided): avg-pool + 1x1.
    def project(stride, w_, b_):
        h, ww = Himg // stride, Wimg // stride
        pooled = imgs.reshape(B, Cin, h, stride, ww, stride).mean(axis=(3, 5))
        y = dense(pooled.transpose(0, 2, 3, 1).reshape(B * h * ww, Cin), w_, b_)
        return y.reshape(B, h, ww, D)                           # NHWC

    features = [project(s, params['feat_proj_w'][i], params['feat_proj_b'][i])
                for i, s in enumerate(cfg['feature_strides'])]
    mask_features = project(cfg['mask_stride'], params['mask_proj_w'],
                            params['mask_proj_b']).transpose(0, 3, 1, 2)   # (B, D, Hm, Wm)
    _, _, Hm, Wm = mask_features.shape
    pix_full = mask_features.reshape(B, D, Hm * Wm).astype(jnp.bfloat16)

    # -------- Transformer_decoder.forward --------
    query = jnp.broadcast_to(params['query'][None], (B, Q, D)).astype(jnp.float32)
    predictions_class = []                          # aux outputs are discarded upstream

    for i in range(cfg['num_features']):
        feat = features[i]                                      # (B, h, w, D)
        _, h, w, _ = feat.shape
        S = h * w
        # kv = Conv2d 1x1(feat) + Embedding bias  (1x1 conv == dense over channels)
        kv = dense(feat.reshape(B * S, D), params['feat_lin_w'][i],
                   params['feat_lin_b'][i] + params['feat_emb'][i]).reshape(B, S, D)
        key_pos = pos_embedding_sine(B, h, w, D // 2).reshape(B, S, D)
        key = (kv + key_pos).astype(jnp.bfloat16)               # hoisted out of all 3 layers
        value = kv.astype(jnp.bfloat16)
        # interp(mask_embed @ pix) == mask_embed @ interp(pix): resize once per level.
        pix_small = bilinear_resize(mask_features.reshape(B * D, Hm, Wm),
                                    h, w).reshape(B, D, S).astype(jnp.bfloat16)
        for j in range(3):
            cls_logits, attn_mask = prediction_heads(query, pix_small, params,
                                                     emit_attn_mask=True)
            predictions_class.append(cls_logits[:, :, :cfg['n_class']])
            query = decoder_block(query, key, value, attn_mask,
                                  params['blocks'][i * 3 + j], H)

    # final prediction heads (decoder_layer_size=None): full-resolution masks, P-tiled
    cls_logits, outputs_mask = prediction_heads(query, pix_full, params,
                                                emit_attn_mask=False)
    predictions_class.append(cls_logits[:, :, :cfg['n_class']])

    up = bilinear_resize(outputs_mask.reshape(B * Q, Hm, Wm), Himg, Wimg)  # final interp
    return up.reshape(B, Q, Himg, Wimg)


# ----------------------------------------------------------------------------- #
# Deterministic parameter init (fused / kernel-ready layouts; matmul weights in bf16)
# ----------------------------------------------------------------------------- #
def init_params(key, cfg, in_ch=4):
    D = cfg['model_dim']
    H = cfg['num_heads']
    dh = D // H
    scale = 1.0 / math.sqrt(dh)
    keys = iter(jax.random.split(key, 1024))

    def w(shape, s=0.05):
        return jax.random.normal(next(keys), shape, jnp.float32) * s

    def bf(x):
        return x.astype(jnp.bfloat16)

    zeros = lambda shape: jnp.zeros(shape, jnp.float32)
    ones = lambda shape: jnp.ones(shape, jnp.float32)

    nf = cfg['num_features']
    NCpad = max(128, ((cfg['n_class'] + 127) // 128) * 128)        # lane-dense class head
    cls_w = jnp.zeros((D, NCpad), jnp.float32).at[:, :cfg['n_class']].set(
        w((D, cfg['n_class'])))

    params = {
        'query': jax.random.uniform(next(keys), (cfg['num_query'], D), jnp.float32),
        'feat_proj_w': [w((in_ch, D)) for _ in range(nf)],
        'feat_proj_b': [zeros((D,)) for _ in range(nf)],
        'mask_proj_w': w((in_ch, D)),
        'mask_proj_b': zeros((D,)),
        'feat_lin_w': [w((D, D)) for _ in range(nf)],
        'feat_lin_b': [zeros((D,)) for _ in range(nf)],
        'feat_emb': [w((D,)) for _ in range(nf)],
        'dec_norm_g': ones((1, D)), 'dec_norm_b': zeros((1, D)),
        'cls_w': bf(cls_w), 'cls_b': zeros((1, NCpad)),
        'seg_w0': bf(w((D, D))), 'seg_b0': zeros((1, D)),
        'seg_w1': bf(w((D, D))), 'seg_b1': zeros((1, D)),
        'seg_w2': bf(w((D, D))), 'seg_b2': zeros((1, D)),
    }

    def mha_fused():
        wqkv = w((D, 3 * D))
        bqkv = zeros((1, 3 * D))
        wqkv = wqkv.at[:, :D].multiply(scale)       # fold 1/sqrt(dh) into the q projection
        bqkv = bqkv.at[:, :D].multiply(scale)
        return bf(wqkv), bqkv, bf(w((D, D))), zeros((1, D))

    blocks = []
    for _ in range(cfg['L'] * 3):
        ma_wqkv, ma_bqkv, ma_wo, ma_bo = mha_fused()
        sa_wqkv, sa_bqkv, sa_wo, sa_bo = mha_fused()
        blocks.append(dict(
            ma_wqkv=ma_wqkv, ma_bqkv=ma_bqkv, ma_wo=ma_wo, ma_bo=ma_bo,
            ma_g=ones((1, D)), ma_b=zeros((1, D)),
            sa_wqkv=sa_wqkv, sa_bqkv=sa_bqkv, sa_wo=sa_wo, sa_bo=sa_bo,
            sa_g=ones((1, D)), sa_b=zeros((1, D)),
            ffn_w1=bf(w((D, 2 * D))), ffn_b1=zeros((1, 2 * D)),
            ffn_w2=bf(w((2 * D, D))), ffn_b2=zeros((1, D)),
            ffn_g=ones((1, D)), ffn_b=zeros((1, D))))
    params['blocks'] = blocks
    return params


# ----------------------------------------------------------------------------- #
if __name__ == "__main__":
    cfg = dict(
        model_dim=32,        # PyTorch: 256
        num_heads=4,         # PyTorch: 8
        num_query=8,         # PyTorch: 100
        n_class=6,           # PyTorch: n_class + 1 = 11
        num_features=2,      # PyTorch: 3
        L=2,                 # PyTorch: 3  (L*3 decoder blocks, indexed as in the reference)
        feature_strides=[8, 16],
        mask_stride=4,
    )
    key = jax.random.PRNGKey(0)
    k_param, k_img = jax.random.split(key)
    params = init_params(k_param, cfg, in_ch=4)
    imgs = jax.random.normal(k_img, (2, 4, 32, 32), jnp.float32)   # NCHW

    forward = jax.jit(lambda im, p: mask2former_forward(im, p, cfg))
    out = jax.block_until_ready(forward(imgs, params))
    assert out.shape == (2, cfg['num_query'], 32, 32)
    assert bool(jnp.all(jnp.isfinite(out)))
    print("KERNEL_OK")
</pallas_src>

<mosaic_0001>
module attributes {stable_mosaic.version = 11 : i64} {
  func.func @_dense_kernel(%arg0: i32, %arg1: memref<32x4xf32, #tpu.memory_space<vmem>>, %arg2: memref<4x32xf32, #tpu.memory_space<vmem>>, %arg3: memref<1x32xf32, #tpu.memory_space<vmem>>, %arg4: memref<32x32xf32, #tpu.memory_space<vmem>>) attributes {dimension_semantics = [#tpu.dimension_semantics<parallel>], iteration_bounds = array<i64: 1>, scalar_prefetch = 0 : i64, scratch_operands = 0 : i64, tpu.core_type = #tpu.core_type<tc>, window_params = [{transform_indices = @transform_0, window_bounds = array<i64: 32, 4>}, {pipeline_mode = #tpu.pipeline_mode<synchronous>, transform_indices = @transform_1, window_bounds = array<i64: 4, 32>}, {pipeline_mode = #tpu.pipeline_mode<synchronous>, transform_indices = @transform_2, window_bounds = array<i64: 1, 32>}, {transform_indices = @transform_3, window_bounds = array<i64: 32, 32>}]} {
    %c0 = arith.constant 0 : index
    %c0_0 = arith.constant 0 : index
    %0 = vector.load %arg1[%c0, %c0_0] : memref<32x4xf32, #tpu.memory_space<vmem>>, vector<32x4xf32>
    %c0_1 = arith.constant 0 : index
    %c0_2 = arith.constant 0 : index
    %1 = vector.load %arg2[%c0_1, %c0_2] : memref<4x32xf32, #tpu.memory_space<vmem>>, vector<4x32xf32>
    %2 = arith.truncf %0 : vector<32x4xf32> to vector<32x4xbf16>
    %3 = arith.truncf %1 : vector<4x32xf32> to vector<4x32xbf16>
    %cst = arith.constant dense<0.000000e+00> : vector<32x32xf32>
    %4 = tpu.matmul %2, %3, %cst {dimension_numbers = #tpu.dot_dimension_numbers<[1], [0], [0], [1], [0, 0, 1, 1], [], []>} : vector<32x4xbf16>, vector<4x32xbf16>, vector<32x32xf32> -> vector<32x32xf32>
    %c0_3 = arith.constant 0 : index
    %c0_4 = arith.constant 0 : index
    %5 = vector.load %arg3[%c0_3, %c0_4] : memref<1x32xf32, #tpu.memory_space<vmem>>, vector<1x32xf32>
    %6 = vector.broadcast %5 : vector<1x32xf32> to vector<32x32xf32>
    %7 = arith.addf %4, %6 : vector<32x32xf32>
    %c0_5 = arith.constant 0 : index
    %c0_6 = arith.constant 0 : index
    %8 = vector.load %arg4[%c0_5, %c0_6] : memref<32x32xf32, #tpu.memory_space<vmem>>, vector<32x32xf32>
    tpu.vector_store %arg4[%c0_5, %c0_6], %7 {strides = array<i32>} : memref<32x32xf32, #tpu.memory_space<vmem>>, vector<32x32xf32>,
    return
  }
  func.func @transform_0(%arg0: i32) -> (i32, i32) {
    %c0_i32 = arith.constant 0 : i32
    %c0_i32_0 = arith.constant 0 : i32
    return %arg0, %c0_i32 : i32, i32
  }
  func.func @transform_1(%arg0: i32) -> (i32, i32) {
    %c0_i32 = arith.constant 0 : i32
    %c0_i32_0 = arith.constant 0 : i32
    %c0_i32_1 = arith.constant 0 : i32
    return %c0_i32, %c0_i32_0 : i32, i32
  }
  func.func @transform_2(%arg0: i32) -> (i32, i32) {
    %c0_i32 = arith.constant 0 : i32
    %c0_i32_0 = arith.constant 0 : i32
    %c0_i32_1 = arith.constant 0 : i32
    return %c0_i32, %c0_i32_0 : i32, i32
  }
  func.func @transform_3(%arg0: i32) -> (i32, i32) {
    %c0_i32 = arith.constant 0 : i32
    %c0_i32_0 = arith.constant 0 : i32
    return %arg0, %c0_i32 : i32, i32
  }
}

module attributes {stable_mosaic.version = 11 : i64} {
  func.func @_dense_kernel(%arg0: i32, %arg1: memref<32x32xf32, #tpu.memory_space<vmem>>, %arg2: memref<32x32xf32, #tpu.memory_space<vmem>>, %arg3: memref<1x32xf32, #tpu.memory_space<vmem>>, %arg4: memref<32x32xf32, #tpu.memory_space<vmem>>) attributes {dimension_semantics = [#tpu.dimension_semantics<parallel>], iteration_bounds = array<i64: 1>, scalar_prefetch = 0 : i64, scratch_operands = 0 : i64, tpu.core_type = #tpu.core_type<tc>, window_params = [{transform_indices = @transform_0, window_bounds = array<i64: 32, 32>}, {pipeline_mode = #tpu.pipeline_mode<synchronous>, transform_indices = @transform_1, window_bounds = array<i64: 32, 32>}, {pipeline_mode = #tpu.pipeline_mode<synchronous>, transform_indices = @transform_2, window_bounds = array<i64: 1, 32>}, {transform_indices = @transform_3, window_bounds = array<i64: 32, 32>}]} {
    %c0 = arith.constant 0 : index
    %c0_0 = arith.constant 0 : index
    %0 = vector.load %arg1[%c0, %c0_0] : memref<32x32xf32, #tpu.memory_space<vmem>>, vector<32x32xf32>
    %c0_1 = arith.constant 0 : index
    %c0_2 = arith.constant 0 : index
    %1 = vector.load %arg2[%c0_1, %c0_2] : memref<32x32xf32, #tpu.memory_space<vmem>>, vector<32x32xf32>
    %2 = arith.truncf %0 : vector<32x32xf32> to vector<32x32xbf16>
    %3 = arith.truncf %1 : vector<32x32xf32> to vector<32x32xbf16>
    %cst = arith.constant dense<0.000000e+00> : vector<32x32xf32>
    %4 = tpu.matmul %2, %3, %cst {dimension_numbers = #tpu.dot_dimension_numbers<[1], [0], [0], [1], [0, 0, 1, 1], [], []>} : vector<32x32xbf16>, vector<32x32xbf16>, vector<32x32xf32> -> vector<32x32xf32>
    %c0_3 = arith.constant 0 : index
    %c0_4 = arith.constant 0 : index
    %5 = vector.load %arg3[%c0_3, %c0_4] : memref<1x32xf32, #tpu.memory_space<vmem>>, vector<1x32xf32>
    %6 = vector.broadcast %5 : vector<1x32xf32> to vector<32x32xf32>
    %7 = arith.addf %4, %6 : vector<32x32xf32>
    %c0_5 = arith.constant 0 : index
    %c0_6 = arith.constant 0 : index
    %8 = vector.load %arg4[%c0_5, %c0_6] : memref<32x32xf32, #tpu.memory_space<vmem>>, vector<32x32xf32>
    tpu.vector_store %arg4[%c0_5, %c0_6], %7 {strides = array<i32>} : memref<32x32xf32, #tpu.memory_space<vmem>>, vector<32x32xf32>,
    return
  }
  func.func @transform_0(%arg0: i32) -> (i32, i32) {
    %c0_i32 = arith.constant 0 : i32
    %c0_i32_0 = arith.constant 0 : i32
    return %arg0, %c0_i32 : i32, i32
  }
  func.func @transform_1(%arg0: i32) -> (i32, i32) {
    %c0_i32 = arith.constant 0 : i32
    %c0_i32_0 = arith.constant 0 : i32
    %c0_i32_1 = arith.constant 0 : i32
    return %c0_i32, %c0_i32_0 : i32, i32
  }
  func.func @transform_2(%arg0: i32) -> (i32, i32) {
    %c0_i32 = arith.constant 0 : i32
    %c0_i32_0 = arith.constant 0 : i32
    %c0_i32_1 = arith.constant 0 : i32
    return %c0_i32, %c0_i32_0 : i32, i32
  }
  func.func @transform_3(%arg0: i32) -> (i32, i32) {
    %c0_i32 = arith.constant 0 : i32
    %c0_i32_0 = arith.constant 0 : i32
    return %arg0, %c0_i32 : i32, i32
  }
}

module attributes {stable_mosaic.version = 11 : i64} {
  func.func @_resize_kernel(%arg0: i32, %arg1: memref<16x8x8xf32, #tpu.memory_space<vmem>>, %arg2: memref<4x8xf32, #tpu.memory_space<vmem>>, %arg3: memref<8x4xf32, #tpu.memory_space<vmem>>, %arg4: memref<16x4x4xf32, #tpu.memory_space<vmem>>) attributes {dimension_semantics = [#tpu.dimension_semantics<parallel>], iteration_bounds = array<i64: 4>, scalar_prefetch = 0 : i64, scratch_operands = 0 : i64, tpu.core_type = #tpu.core_type<tc>, window_params = [{transform_indices = @transform_0, window_bounds = array<i64: 16, 8, 8>}, {pipeline_mode = #tpu.pipeline_mode<synchronous>, transform_indices = @transform_1, window_bounds = array<i64: 4, 8>}, {pipeline_mode = #tpu.pipeline_mode<synchronous>, transform_indices = @transform_2, window_bounds = array<i64: 8, 4>}, {transform_indices = @transform_3, window_bounds = array<i64: 16, 4, 4>}]} {
    %c0 = arith.constant 0 : index
    %c0_0 = arith.constant 0 : index
    %0 = vector.load %arg2[%c0, %c0_0] : memref<4x8xf32, #tpu.memory_space<vmem>>, vector<4x8xf32>
    %c0_1 = arith.constant 0 : index
    %c0_2 = arith.constant 0 : index
    %1 = vector.load %arg3[%c0_1, %c0_2] : memref<8x4xf32, #tpu.memory_space<vmem>>, vector<8x4xf32>
    %c0_3 = arith.constant 0 : index
    %c0_4 = arith.constant 0 : index
    %c0_5 = arith.constant 0 : index
    %2 = vector.load %arg1[%c0_3, %c0_4, %c0_5] : memref<16x8x8xf32, #tpu.memory_space<vmem>>, vector<16x8x8xf32>
    %3 = vector.shape_cast %2 : vector<16x8x8xf32> to vector<128x8xf32>
    %4 = arith.truncf %3 : vector<128x8xf32> to vector<128x8xbf16>
    %5 = arith.truncf %1 : vector<8x4xf32> to vector<8x4xbf16>
    %cst = arith.constant dense<0.000000e+00> : vector<128x4xf32>
    %6 = tpu.matmul %4, %5, %cst {dimension_numbers = #tpu.dot_dimension_numbers<[1], [0], [0], [1], [0, 0, 1, 1], [], []>} : vector<128x8xbf16>, vector<8x4xbf16>, vector<128x4xf32> -> vector<128x4xf32>
    %7 = vector.shape_cast %6 : vector<128x4xf32> to vector<16x8x4xf32>
    %8 = vector.extract_strided_slice %7 {offsets = [0, 0, 0], sizes = [1, 8, 4], strides = [1, 1, 1]} : vector<16x8x4xf32> to vector<1x8x4xf32>
    %9 = vector.shape_cast %8 : vector<1x8x4xf32> to vector<8x4xf32>
    %10 = arith.truncf %0 : vector<4x8xf32> to vector<4x8xbf16>
    %11 = arith.truncf %9 : vector<8x4xf32> to vector<8x4xbf16>
    %cst_6 = arith.constant dense<0.000000e+00> : vector<4x4xf32>
    %12 = tpu.matmul %10, %11, %cst_6 {dimension_numbers = #tpu.dot_dimension_numbers<[1], [0], [0], [1], [0, 0, 1, 1], [], []>} : vector<4x8xbf16>, vector<8x4xbf16>, vector<4x4xf32> -> vector<4x4xf32>
    %c0_7 = arith.constant 0 : index
    %c0_8 = arith.constant 0 : index
    %c0_9 = arith.constant 0 : index
    %13 = vector.load %arg4[%c0_7, %c0_8, %c0_9] : memref<16x4x4xf32, #tpu.memory_space<vmem>>, vector<1x4x4xf32>
    %14 = vector.shape_cast %13 : vector<1x4x4xf32> to vector<4x4xf32>
    %15 = vector.shape_cast %12 : vector<4x4xf32> to vector<1x4x4xf32>
    tpu.vector_store %arg4[%c0_7, %c0_8, %c0_9], %15 {strides = array<i32>} : memref<16x4x4xf32, #tpu.memory_space<vmem>>, vector<1x4x4xf32>,
    %16 = vector.extract_strided_slice %7 {offsets = [1, 0, 0], sizes = [1, 8, 4], strides = [1, 1, 1]} : vector<16x8x4xf32> to vector<1x8x4xf32>
    %17 = vector.shape_cast %16 : vector<1x8x4xf32> to vector<8x4xf32>
    %18 = arith.truncf %0 : vector<4x8xf32> to vector<4x8xbf16>
    %19 = arith.truncf %17 : vector<8x4xf32> to vector<8x4xbf16>
    %cst_10 = arith.constant dense<0.000000e+00> : vector<4x4xf32>
    %20 = tpu.matmul %18, %19, %cst_10 {dimension_numbers = #tpu.dot_dimension_numbers<[1], [0], [0], [1], [0, 0, 1, 1], [], []>} : vector<4x8xbf16>, vector<8x4xbf16>, vector<4x4xf32> -> vector<4x4xf32>
    %c1 = arith.constant 1 : index
    %c0_11 = arith.constant 0 : index
    %c0_12 = arith.constant 0 : index
    %21 = vector.load %arg4[%c1, %c0_11, %c0_12] : memref<16x4x4xf32, #tpu.memory_space<vmem>>, vector<1x4x4xf32>
    %22 = vector.shape_cast %21 : vector<1x4x4xf32> to vector<4x4xf32>
    %23 = vector.shape_cast %20 : vector<4x4xf32> to vector<1x4x4xf32>
    tpu.vector_store %arg4[%c1, %c0_11, %c0_12], %23 {strides = array<i32>} : memref<16x4x4xf32, #tpu.memory_space<vmem>>, vector<1x4x4xf32>,
    %24 = vector.extract_strided_slice %7 {offsets = [2, 0, 0], sizes = [1, 8, 4], strides = [1, 1, 1]} : vector<16x8x4xf32> to vector<1x8x4xf32>
    %25 = vector.shape_cast %24 : vector<1x8x4xf32> to vector<8x4xf32>
    %26 = arith.truncf %0 : vector<4x8xf32> to vector<4x8xbf16>
    %27 = arith.truncf %25 : vector<8x4xf32> to vector<8x4xbf16>
    %cst_13 = arith.constant dense<0.000000e+00> : vector<4x4xf32>
    %28 = tpu.matmul %26, %27, %cst_13 {dimension_numbers = #tpu.dot_dimension_numbers<[1], [0], [0], [1], [0, 0, 1, 1], [], []>} : vector<4x8xbf16>, vector<8x4xbf16>, vector<4x4xf32> -> vector<4x4xf32>
    %c2 = arith.constant 2 : index
    %c0_14 = arith.constant 0 : index
    %c0_15 = arith.constant 0 : index
    %29 = vector.load %arg4[%c2, %c0_14, %c0_15] : memref<16x4x4xf32, #tpu.memory_space<vmem>>, vector<1x4x4xf32>
    %30 = vector.shape_cast %29 : vector<1x4x4xf32> to vector<4x4xf32>
    %31 = vector.shape_cast %28 : vector<4x4xf32> to vector<1x4x4xf32>
    tpu.vector_store %arg4[%c2, %c0_14, %c0_15], %31 {strides = array<i32>} : memref<16x4x4xf32, #tpu.memory_space<vmem>>, vector<1x4x4xf32>,
    %32 = vector.extract_strided_slice %7 {offsets = [3, 0, 0], sizes = [1, 8, 4], strides = [1, 1, 1]} : vector<16x8x4xf32> to vector<1x8x4xf32>
    %33 = vector.shape_cast %32 : vector<1x8x4xf32> to vector<8x4xf32>
    %34 = arith.truncf %0 : vector<4x8xf32> to vector<4x8xbf16>
    %35 = arith.truncf %33 : vector<8x4xf32> to vector<8x4xbf16>
    %cst_16 = arith.constant dense<0.000000e+00> : vector<4x4xf32>
    %36 = tpu.matmul %34, %35, %cst_16 {dimension_numbers = #tpu.dot_dimension_numbers<[1], [0], [0], [1], [0, 0, 1, 1], [], []>} : vector<4x8xbf16>, vector<8x4xbf16>, vector<4x4xf32> -> vector<4x4xf32>
    %c3 = arith.constant 3 : index
    %c0_17 = arith.constant 0 : index
    %c0_18 = arith.constant 0 : index
    %37 = vector.load %arg4[%c3, %c0_17, %c0_18] : memref<16x4x4xf32, #tpu.memory_space<vmem>>, vector<1x4x4xf32>
    %38 = vector.shape_cast %37 : vector<1x4x4xf32> to vector<4x4xf32>
    %39 = vector.shape_cast %36 : vector<4x4xf32> to vector<1x4x4xf32>
    tpu.vector_store %arg4[%c3, %c0_17, %c0_18], %39 {strides = array<i32>} : memref<16x4x4xf32, #tpu.memory_space<vmem>>, vector<1x4x4xf32>,
    %40 = vector.extract_strided_slice %7 {offsets = [4, 0, 0], sizes = [1, 8, 4], strides = [1, 1, 1]} : vector<16x8x4xf32> to vector<1x8x4xf32>
    %41 = vector.shape_cast %40 : vector<1x8x4xf32> to vector<8x4xf32>
    %42 = arith.truncf %0 : vector<4x8xf32> to vector<4x8xbf16>
    %43 = arith.truncf %41 : vector<8x4xf32> to vector<8x4xbf16>
    %cst_19 = arith.constant dense<0.000000e+00> : vector<4x4xf32>
    %44 = tpu.matmul %42, %43, %cst_19 {dimension_numbers = #tpu.dot_dimension_numbers<[1], [0], [0], [1], [0, 0, 1, 1], [], []>} : vector<4x8xbf16>, vector<8x4xbf16>, vector<4x4xf32> -> vector<4x4xf32>
    %c4 = arith.constant 4 : index
    %c0_20 = arith.constant 0 : index
    %c0_21 = arith.constant 0 : index
    %45 = vector.load %arg4[%c4, %c0_20, %c0_21] : memref<16x4x4xf32, #tpu.memory_space<vmem>>, vector<1x4x4xf32>
    %46 = vector.shape_cast %45 : vector<1x4x4xf32> to vector<4x4xf32>
    %47 = vector.shape_cast %44 : vector<4x4xf32> to vector<1x4x4xf32>
    tpu.vector_store %arg4[%c4, %c0_20, %c0_21], %47 {strides = array<i32>} : memref<16x4x4xf32, #tpu.memory_space<vmem>>, vector<1x4x4xf32>,
    %48 = vector.extract_strided_slice %7 {offsets = [5, 0, 0], sizes = [1, 8, 4], strides = [1, 1, 1]} : vector<16x8x4xf32> to vector<1x8x4xf32>
    %49 = vector.shape_cast %48 : vector<1x8x4xf32> to vector<8x4xf32>
    %50 = arith.truncf %0 : vector<4x8xf32> to vector<4x8xbf16>
    %51 = arith.truncf %49 : vector<8x4xf32> to vector<8x4xbf16>
    %cst_22 = arith.constant dense<0.000000e+00> : vector<4x4xf32>
    %52 = tpu.matmul %50, %51, %cst_22 {dimension_numbers = #tpu.dot_dimension_numbers<[1], [0], [0], [1], [0, 0, 1, 1], [], []>} : vector<4x8xbf16>, vector<8x4xbf16>, vector<4x4xf32> -> vector<4x4xf32>
    %c5 = arith.constant 5 : index
    %c0_23 = arith.constant 0 : index
    %c0_24 = arith.constant 0 : index
    %53 = vector.load %arg4[%c5, %c0_23, %c0_24] : memref<16x4x4xf32, #tpu.memory_space<vmem>>, vector<1x4x4xf32>
    %54 = vector.shape_cast %53 : vector<1x4x4xf32> to vector<4x4xf32>
    %55 = vector.shape_cast %52 : vector<4x4xf32> to vector<1x4x4xf32>
    tpu.vector_store %arg4[%c5, %c0_23, %c0_24], %55 {strides = array<i32>} : memref<16x4x4xf32, #tpu.memory_space<vmem>>, vector<1x4x4xf32>,
    %56 = vector.extract_strided_slice %7 {offsets = [6, 0, 0], sizes = [1, 8, 4], strides = [1, 1, 1]} : vector<16x8x4xf32> to vector<1x8x4xf32>
    %57 = vector.shape_cast %56 : vector<1x8x4xf32> to vector<8x4xf32>
    %58 = arith.truncf %0 : vector<4x8xf32> to vector<4x8xbf16>
    %59 = arith.truncf %57 : vector<8x4xf32> to vector<8x4xbf16>
    %cst_25 = arith.constant dense<0.000000e+00> : vector<4x4xf32>
    %60 = tpu.matmul %58, %59, %cst_25 {dimension_numbers = #tpu.dot_dimension_numbers<[1], [0], [0], [1], [0, 0, 1, 1], [], []>} : vector<4x8xbf16>, vector<8x4xbf16>, vector<4x4xf32> -> vector<4x4xf32>
    %c6 = arith.constant 6 : index
    %c0_26 = arith.constant 0 : index
    %c0_27 = arith.constant 0 : index
    %61 = vector.load %arg4[%c6, %c0_26, %c0_27] : memref<16x4x4xf32, #tpu.memory_space<vmem>>, vector<1x4x4xf32>
    %62 = vector.shape_cast %61 : vector<1x4x4xf32> to vector<4x4xf32>
    %63 = vector.shape_cast %60 : vector<4x4xf32> to vector<1x4x4xf32>
    tpu.vector_store %arg4[%c6, %c0_26, %c0_27], %63 {strides = array<i32>} : memref<16x4x4xf32, #tpu.memory_space<vmem>>, vector<1x4x4xf32>,
    %64 = vector.extract_strided_slice %7 {offsets = [7, 0, 0], sizes = [1, 8, 4], strides = [1, 1, 1]} : vector<16x8x4xf32> to vector<1x8x4xf32>
    %65 = vector.shape_cast %64 : vector<1x8x4xf32> to vector<8x4xf32>
    %66 = arith.truncf %0 : vector<4x8xf32> to vector<4x8xbf16>
    %67 = arith.truncf %65 : vector<8x4xf32> to vector<8x4xbf16>
    %cst_28 = arith.constant dense<0.000000e+00> : vector<4x4xf32>
    %68 = tpu.matmul %66, %67, %cst_28 {dimension_numbers = #tpu.dot_dimension_numbers<[1], [0], [0], [1], [0, 0, 1, 1], [], []>} : vector<4x8xbf16>, vector<8x4xbf16>, vector<4x4xf32> -> vector<4x4xf32>
    %c7 = arith.constant 7 : index
    %c0_29 = arith.constant 0 : index
    %c0_30 = arith.constant 0 : index
    %69 = vector.load %arg4[%c7, %c0_29, %c0_30] : memref<16x4x4xf32, #tpu.memory_space<vmem>>, vector<1x4x4xf32>
    %70 = vector.shape_cast %69 : vector<1x4x4xf32> to vector<4x4xf32>
    %71 = vector.shape_cast %68 : vector<4x4xf32> to vector<1x4x4xf32>
    tpu.vector_store %arg4[%c7, %c0_29, %c0_30], %71 {strides = array<i32>} : memref<16x4x4xf32, #tpu.memory_space<vmem>>, vector<1x4x4xf32>,
    %72 = vector.extract_strided_slice %7 {offsets = [8, 0, 0], sizes = [1, 8, 4], strides = [1, 1, 1]} : vector<16x8x4xf32> to vector<1x8x4xf32>
    %73 = vector.shape_cast %72 : vector<1x8x4xf32> to vector<8x4xf32>
    %74 = arith.truncf %0 : vector<4x8xf32> to vector<4x8xbf16>
    %75 = arith.truncf %73 : vector<8x4xf32> to vector<8x4xbf16>
    %cst_31 = arith.constant dense<0.000000e+00> : vector<4x4xf32>
    %76 = tpu.matmul %74, %75, %cst_31 {dimension_numbers = #tpu.dot_dimension_numbers<[1], [0], [0], [1], [0, 0, 1, 1], [], []>} : vector<4x8xbf16>, vector<8x4xbf16>, vector<4x4xf32> -> vector<4x4xf32>
    %c8 = arith.constant 8 : index
    %c0_32 = arith.constant 0 : index
    %c0_33 = arith.constant 0 : index
    %77 = vector.load %arg4[%c8, %c0_32, %c0_33] : memref<16x4x4xf32, #tpu.memory_space<vmem>>, vector<1x4x4xf32>
    %78 = vector.shape_cast %77 : vector<1x4x4xf32> to vector<4x4xf32>
    %79 = vector.shape_cast %76 : vector<4x4xf32> to vector<1x4x4xf32>
    tpu.vector_store %arg4[%c8, %c0_32, %c0_33], %79 {strides = array<i32>} : memref<16x4x4xf32, #tpu.memory_space<vmem>>, vector<1x4x4xf32>,
    %80 = vector.extract_strided_slice %7 {offsets = [9, 0, 0], sizes = [1, 8, 4], strides = [1, 1, 1]} : vector<16x8x4xf32> to vector<1x8x4xf32>
    %81 = vector.shape_cast %80 : vector<1x8x4xf32> to vector<8x4xf32>
    %82 = arith.truncf %0 : vector<4x8xf32> to vector<4x8xbf16>
    %83 = arith.truncf %81 : vector<8x4xf32> to vector<8x4xbf16>
    %cst_34 = arith.constant dense<0.000000e+00> : vector<4x4xf32>
    %84 = tpu.matmul %82, %83, %cst_34 {dimension_numbers = #tpu.dot_dimension_numbers<[1], [0], [0], [1], [0, 0, 1, 1], [], []>} : vector<4x8xbf16>, vector<8x4xbf16>, vector<4x4xf32> -> vector<4x4xf32>
    %c9 = arith.constant 9 : index
    %c0_35 = arith.constant 0 : index
    %c0_36 = arith.constant 0 : index
    %85 = vector.load %arg4[%c9, %c0_35, %c0_36] : memref<16x4x4xf32, #tpu.memory_space<vmem>>, vector<1x4x4xf32>
    %86 = vector.shape_cast %85 : vector<1x4x4xf32> to vector<4x4xf32>
    %87 = vector.shape_cast %84 : vector<4x4xf32> to vector<1x4x4xf32>
    tpu.vector_store %arg4[%c9, %c0_35, %c0_36], %87 {strides = array<i32>} : memref<16x4x4xf32, #tpu.memory_space<vmem>>, vector<1x4x4xf32>,
    %88 = vector.extract_strided_slice %7 {offsets = [10, 0, 0], sizes = [1, 8, 4], strides = [1, 1, 1]} : vector<16x8x4xf32> to vector<1x8x4xf32>
    %89 = vector.shape_cast %88 : vector<1x8x4xf32> to vector<8x4xf32>
    %90 = arith.truncf %0 : vector<4x8xf32> to vector<4x8xbf16>
    %91 = arith.truncf %89 : vector<8x4xf32> to vector<8x4xbf16>
    %cst_37 = arith.constant dense<0.000000e+00> : vector<4x4xf32>
    %92 = tpu.matmul %90, %91, %cst_37 {dimension_numbers = #tpu.dot_dimension_numbers<[1], [0], [0], [1], [0, 0, 1, 1], [], []>} : vector<4x8xbf16>, vector<8x4xbf16>, vector<4x4xf32> -> vector<4x4xf32>
    %c10 = arith.constant 10 : index
    %c0_38 = arith.constant 0 : index
    %c0_39 = arith.constant 0 : index
    %93 = vector.load %arg4[%c10, %c0_38, %c0_39] : memref<16x4x4xf32, #tpu.memory_space<vmem>>, vector<1x4x4xf32>
    %94 = vector.shape_cast %93 : vector<1x4x4xf32> to vector<4x4xf32>
    %95 = vector.shape_cast %92 : vector<4x4xf32> to vector<1x4x4xf32>
    tpu.vector_store %arg4[%c10, %c0_38, %c0_39], %95 {strides = array<i32>} : memref<16x4x4xf32, #tpu.memory_space<vmem>>, vector<1x4x4xf32>,
    %96 = vector.extract_strided_slice %7 {offsets = [11, 0, 0], sizes = [1, 8, 4], strides = [1, 1, 1]} : vector<16x8x4xf32> to vector<1x8x4xf32>
    %97 = vector.shape_cast %96 : vector<1x8x4xf32> to vector<8x4xf32>
    %98 = arith.truncf %0 : vector<4x8xf32> to vector<4x8xbf16>
    %99 = arith.truncf %97 : vector<8x4xf32> to vector<8x4xbf16>
    %cst_40 = arith.constant dense<0.000000e+00> : vector<4x4xf32>
    %100 = tpu.matmul %98, %99, %cst_40 {dimension_numbers = #tpu.dot_dimension_numbers<[1], [0], [0], [1], [0, 0, 1, 1], [], []>} : vector<4x8xbf16>, vector<8x4xbf16>, vector<4x4xf32> -> vector<4x4xf32>
    %c11 = arith.constant 11 : index
    %c0_41 = arith.constant 0 : index
    %c0_42 = arith.constant 0 : index
    %101 = vector.load %arg4[%c11, %c0_41, %c0_42] : memref<16x4x4xf32, #tpu.memory_space<vmem>>, vector<1x4x4xf32>
    %102 = vector.shape_cast %101 : vector<1x4x4xf32> to vector<4x4xf32>
    %103 = vector.shape_cast %100 : vector<4x4xf32> to vector<1x4x4xf32>
    tpu.vector_store %arg4[%c11, %c0_41, %c0_42], %103 {strides = array<i32>} : memref<16x4x4xf32, #tpu.memory_space<vmem>>, vector<1x4x4xf32>,
    %104 = vector.extract_strided_slice %7 {offsets = [12, 0, 0], sizes = [1, 8, 4], strides = [1, 1, 1]} : vector<16x8x4xf32> to vector<1x8x4xf32>
    %105 = vector.shape_cast %104 : vector<1x8x4xf32> to vector<8x4xf32>
    %106 = arith.truncf %0 : vector<4x8xf32> to vector<4x8xbf16>
    %107 = arith.truncf %105 : vector<8x4xf32> to vector<8x4xbf16>
    %cst_43 = arith.constant dense<0.000000e+00> : vector<4x4xf32>
    %108 = tpu.matmul %106, %107, %cst_43 {dimension_numbers = #tpu.dot_dimension_numbers<[1], [0], [0], [1], [0, 0, 1, 1], [], []>} : vector<4x8xbf16>, vector<8x4xbf16>, vector<4x4xf32> -> vector<4x4xf32>
    %c12 = arith.constant 12 : index
    %c0_44 = arith.constant 0 : index
    %c0_45 = arith.constant 0 : index
    %109 = vector.load %arg4[%c12, %c0_44, %c0_45] : memref<16x4x4xf32, #tpu.memory_space<vmem>>, vector<1x4x4xf32>
    %110 = vector.shape_cast %109 : vector<1x4x4xf32> to vector<4x4xf32>
    %111 = vector.shape_cast %108 : vector<4x4xf32> to vector<1x4x4xf32>
    tpu.vector_store %arg4[%c12, %c0_44, %c0_45], %111 {strides = array<i32>} : memref<16x4x4xf32, #tpu.memory_space<vmem>>, vector<1x4x4xf32>,
    %112 = vector.extract_strided_slice %7 {offsets = [13, 0, 0], sizes = [1, 8, 4], strides = [1, 1, 1]} : vector<16x8x4xf32> to vector<1x8x4xf32>
    %113 = vector.shape_cast %112 : vector<1x8x4xf32> to vector<8x4xf32>
    %114 = arith.truncf %0 : vector<4x8xf32> to vector<4x8xbf16>
    %115 = arith.truncf %113 : vector<8x4xf32> to vector<8x4xbf16>
    %cst_46 = arith.constant dense<0.000000e+00> : vector<4x4xf32>
    %116 = tpu.matmul %114, %115, %cst_46 {dimension_numbers = #tpu.dot_dimension_numbers<[1], [0], [0], [1], [0, 0, 1, 1], [], []>} : vector<4x8xbf16>, vector<8x4xbf16>, vector<4x4xf32> -> vector<4x4xf32>
    %c13 = arith.constant 13 : index
    %c0_47 = arith.constant 0 : index
    %c0_48 = arith.constant 0 : index
    %117 = vector.load %arg4[%c13, %c0_47, %c0_48] : memref<16x4x4xf32, #tpu.memory_space<vmem>>, vector<1x4x4xf32>
    %118 = vector.shape_cast %117 : vector<1x4x4xf32> to vector<4x4xf32>
    %119 = vector.shape_cast %116 : vector<4x4xf32> to vector<1x4x4xf32>
    tpu.vector_store %arg4[%c13, %c0_47, %c0_48], %119 {strides = array<i32>} : memref<16x4x4xf32, #tpu.memory_space<vmem>>, vector<1x4x4xf32>,
    %120 = vector.extract_strided_slice %7 {offsets = [14, 0, 0], sizes = [1, 8, 4], strides = [1, 1, 1]} : vector<16x8x4xf32> to vector<1x8x4xf32>
    %121 = vector.shape_cast %120 : vector<1x8x4xf32> to vector<8x4xf32>
    %122 = arith.truncf %0 : vector<4x8xf32> to vector<4x8xbf16>
    %123 = arith.truncf %121 : vector<8x4xf32> to vector<8x4xbf16>
    %cst_49 = arith.constant dense<0.000000e+00> : vector<4x4xf32>
    %124 = tpu.matmul %122, %123, %cst_49 {dimension_numbers = #tpu.dot_dimension_numbers<[1], [0], [0], [1], [0, 0, 1, 1], [], []>} : vector<4x8xbf16>, vector<8x4xbf16>, vector<4x4xf32> -> vector<4x4xf32>
    %c14 = arith.constant 14 : index
    %c0_50 = arith.constant 0 : index
    %c0_51 = arith.constant 0 : index
    %125 = vector.load %arg4[%c14, %c0_50, %c0_51] : memref<16x4x4xf32, #tpu.memory_space<vmem>>, vector<1x4x4xf32>
    %126 = vector.shape_cast %125 : vector<1x4x4xf32> to vector<4x4xf32>
    %127 = vector.shape_cast %124 : vector<4x4xf32> to vector<1x4x4xf32>
    tpu.vector_store %arg4[%c14, %c0_50, %c0_51], %127 {strides = array<i32>} : memref<16x4x4xf32, #tpu.memory_space<vmem>>, vector<1x4x4xf32>,
    %128 = vector.extract_strided_slice %7 {offsets = [15, 0, 0], sizes = [1, 8, 4], strides = [1, 1, 1]} : vector<16x8x4xf32> to vector<1x8x4xf32>
    %129 = vector.shape_cast %128 : vector<1x8x4xf32> to vector<8x4xf32>
    %130 = arith.truncf %0 : vector<4x8xf32> to vector<4x8xbf16>
    %131 = arith.truncf %129 : vector<8x4xf32> to vector<8x4xbf16>
    %cst_52 = arith.constant dense<0.000000e+00> : vector<4x4xf32>
    %132 = tpu.matmul %130, %131, %cst_52 {dimension_numbers = #tpu.dot_dimension_numbers<[1], [0], [0], [1], [0, 0, 1, 1], [], []>} : vector<4x8xbf16>, vector<8x4xbf16>, vector<4x4xf32> -> vector<4x4xf32>
    %c15 = arith.constant 15 : index
    %c0_53 = arith.constant 0 : index
    %c0_54 = arith.constant 0 : index
    %133 = vector.load %arg4[%c15, %c0_53, %c0_54] : memref<16x4x4xf32, #tpu.memory_space<vmem>>, vector<1x4x4xf32>
    %134 = vector.shape_cast %133 : vector<1x4x4xf32> to vector<4x4xf32>
    %135 = vector.shape_cast %132 : vector<4x4xf32> to vector<1x4x4xf32>
    tpu.vector_store %arg4[%c15, %c0_53, %c0_54], %135 {strides = array<i32>} : memref<16x4x4xf32, #tpu.memory_space<vmem>>, vector<1x4x4xf32>,
    return
  }
  func.func @transform_0(%arg0: i32) -> (i32, i32, i32) {
    %c0_i32 = arith.constant 0 : i32
    %c0_i32_0 = arith.constant 0 : i32
    %c0_i32_1 = arith.constant 0 : i32
    return %arg0, %c0_i32, %c0_i32_0 : i32, i32, i32
  }
  func.func @transform_1(%arg0: i32) -> (i32, i32) {
    %c0_i32 = arith.constant 0 : i32
    %c0_i32_0 = arith.constant 0 : i32
    %c0_i32_1 = arith.constant 0 : i32
    return %c0_i32, %c0_i32_0 : i32, i32
  }
  func.func @transform_2(%arg0: i32) -> (i32, i32) {
    %c0_i32 = arith.constant 0 : i32
    %c0_i32_0 = arith.constant 0 : i32
    %c0_i32_1 = arith.constant 0 : i32
    return %c0_i32, %c0_i32_0 : i32, i32
  }
  func.func @transform_3(%arg0: i32) -> (i32, i32, i32) {
    %c0_i32 = arith.constant 0 : i32
    %c0_i32_0 = arith.constant 0 : i32
    %c0_i32_1 = arith.constant 0 : i32
    return %arg0, %c0_i32, %c0_i32_0 : i32, i32, i32
  }
}

module attributes {stable_mosaic.version = 11 : i64} {
  func.func @_dense_kernel(%arg0: i32, %arg1: memref<128x4xf32, #tpu.memory_space<vmem>>, %arg2: memref<4x32xf32, #tpu.memory_space<vmem>>, %arg3: memref<1x32xf32, #tpu.memory_space<vmem>>, %arg4: memref<128x32xf32, #tpu.memory_space<vmem>>) attributes {dimension_semantics = [#tpu.dimension_semantics<parallel>], iteration_bounds = array<i64: 1>, scalar_prefetch = 0 : i64, scratch_operands = 0 : i64, tpu.core_type = #tpu.core_type<tc>, window_params = [{transform_indices = @transform_0, window_bounds = array<i64: 128, 4>}, {pipeline_mode = #tpu.pipeline_mode<synchronous>, transform_indices = @transform_1, window_bounds = array<i64: 4, 32>}, {pipeline_mode = #tpu.pipeline_mode<synchronous>, transform_indices = @transform_2, window_bounds = array<i64: 1, 32>}, {transform_indices = @transform_3, window_bounds = array<i64: 128, 32>}]} {
    %c0 = arith.constant 0 : index
    %c0_0 = arith.constant 0 : index
    %0 = vector.load %arg1[%c0, %c0_0] : memref<128x4xf32, #tpu.memory_space<vmem>>, vector<128x4xf32>
    %c0_1 = arith.constant 0 : index
    %c0_2 = arith.constant 0 : index
    %1 = vector.load %arg2[%c0_1, %c0_2] : memref<4x32xf32, #tpu.memory_space<vmem>>, vector<4x32xf32>
    %2 = arith.truncf %0 : vector<128x4xf32> to vector<128x4xbf16>
    %3 = arith.truncf %1 : vector<4x32xf32> to vector<4x32xbf16>
    %cst = arith.constant dense<0.000000e+00> : vector<128x32xf32>
    %4 = tpu.matmul %2, %3, %cst {dimension_numbers = #tpu.dot_dimension_numbers<[1], [0], [0], [1], [0, 0, 1, 1], [], []>} : vector<128x4xbf16>, vector<4x32xbf16>, vector<128x32xf32> -> vector<128x32xf32>
    %c0_3 = arith.constant 0 : index
    %c0_4 = arith.constant 0 : index
    %5 = vector.load %arg3[%c0_3, %c0_4] : memref<1x32xf32, #tpu.memory_space<vmem>>, vector<1x32xf32>
    %6 = vector.broadcast %5 : vector<1x32xf32> to vector<128x32xf32>
    %7 = arith.addf %4, %6 : vector<128x32xf32>
    %c0_5 = arith.constant 0 : index
    %c0_6 = arith.constant 0 : index
    %8 = vector.load %arg4[%c0_5, %c0_6] : memref<128x32xf32, #tpu.memory_space<vmem>>, vector<128x32xf32>
    tpu.vector_store %arg4[%c0_5, %c0_6], %7 {strides = array<i32>} : memref<128x32xf32, #tpu.memory_space<vmem>>, vector<128x32xf32>,
    return
  }
  func.func @transform_0(%arg0: i32) -> (i32, i32) {
    %c0_i32 = arith.constant 0 : i32
    %c0_i32_0 = arith.constant 0 : i32
    return %arg0, %c0_i32 : i32, i32
  }
  func.func @transform_1(%arg0: i32) -> (i32, i32) {
    %c0_i32 = arith.constant 0 : i32
    %c0_i32_0 = arith.constant 0 : i32
    %c0_i32_1 = arith.constant 0 : i32
    return %c0_i32, %c0_i32_0 : i32, i32
  }
  func.func @transform_2(%arg0: i32) -> (i32, i32) {
    %c0_i32 = arith.constant 0 : i32
    %c0_i32_0 = arith.constant 0 : i32
    %c0_i32_1 = arith.constant 0 : i32
    return %c0_i32, %c0_i32_0 : i32, i32
  }
  func.func @transform_3(%arg0: i32) -> (i32, i32) {
    %c0_i32 = arith.constant 0 : i32
    %c0_i32_0 = arith.constant 0 : i32
    return %arg0, %c0_i32 : i32, i32
  }
}

module attributes {stable_mosaic.version = 11 : i64} {
  func.func @_pred_heads_kernel(%arg0: i32, %arg1: i32, %arg2: memref<1x8x32xf32, #tpu.memory_space<vmem>>, %arg3: memref<1x32x16xbf16, #tpu.memory_space<vmem>>, %arg4: memref<1x32xf32, #tpu.memory_space<vmem>>, %arg5: memref<1x32xf32, #tpu.memory_space<vmem>>, %arg6: memref<32x128xbf16, #tpu.memory_space<vmem>>, %arg7: memref<1x128xf32, #tpu.memory_space<vmem>>, %arg8: memref<32x32xbf16, #tpu.memory_space<vmem>>, %arg9: memref<1x32xf32, #tpu.memory_space<vmem>>, %arg10: memref<32x32xbf16, #tpu.memory_space<vmem>>, %arg11: memref<1x32xf32, #tpu.memory_space<vmem>>, %arg12: memref<32x32xbf16, #tpu.memory_space<vmem>>, %arg13: memref<1x32xf32, #tpu.memory_space<vmem>>, %arg14: memref<1x8x128xf32, #tpu.memory_space<vmem>>, %arg15: memref<1x8x16xi8, #tpu.memory_space<vmem>>, %arg16: memref<8x32xf32, #tpu.memory_space<vmem>>) attributes {dimension_semantics = [#tpu.dimension_semantics<parallel>, #tpu.dimension_semantics<arbitrary>], iteration_bounds = array<i64: 2, 1>, scalar_prefetch = 0 : i64, scratch_operands = 1 : i64, tpu.core_type = #tpu.core_type<tc>, window_params = [{transform_indices = @transform_0, window_bounds = array<i64: 1, 8, 32>}, {transform_indices = @transform_1, window_bounds = array<i64: 1, 32, 16>}, {pipeline_mode = #tpu.pipeline_mode<synchronous>, transform_indices = @transform_2, window_bounds = array<i64: 1, 32>}, {pipeline_mode = #tpu.pipeline_mode<synchronous>, transform_indices = @transform_3, window_bounds = array<i64: 1, 32>}, {pipeline_mode = #tpu.pipeline_mode<synchronous>, transform_indices = @transform_4, window_bounds = array<i64: 32, 128>}, {pipeline_mode = #tpu.pipeline_mode<synchronous>, transform_indices = @transform_5, window_bounds = array<i64: 1, 128>}, {pipeline_mode = #tpu.pipeline_mode<synchronous>, transform_indices = @transform_6, window_bounds = array<i64: 32, 32>}, {pipeline_mode = #tpu.pipeline_mode<synchronous>, transform_indices = @transform_7, window_bounds = array<i64: 1, 32>}, {pipeline_mode = #tpu.pipeline_mode<synchronous>, transform_indices = @transform_8, window_bounds = array<i64: 32, 32>}, {pipeline_mode = #tpu.pipeline_mode<synchronous>, transform_indices = @transform_9, window_bounds = array<i64: 1, 32>}, {pipeline_mode = #tpu.pipeline_mode<synchronous>, transform_indices = @transform_10, window_bounds = array<i64: 32, 32>}, {pipeline_mode = #tpu.pipeline_mode<synchronous>, transform_indices = @transform_11, window_bounds = array<i64: 1, 32>}, {transform_indices = @transform_12, window_bounds = array<i64: 1, 8, 128>}, {transform_indices = @transform_13, window_bounds = array<i64: 1, 8, 16>}]} {
    %c0_i32 = arith.constant 0 : i32
    %0 = arith.cmpi eq, %arg1, %c0_i32 : i32
    %1 = arith.extui %0 : i1 to i32
    %c0_i32_0 = arith.constant 0 : i32
    %2 = arith.cmpi ne, %1, %c0_i32_0 : i32
    scf.if %2 {
      %c0_12 = arith.constant 0 : index
      %c0_13 = arith.constant 0 : index
      %c0_14 = arith.constant 0 : index
      %23 = vector.load %arg2[%c0_12, %c0_13, %c0_14] : memref<1x8x32xf32, #tpu.memory_space<vmem>>, vector<1x8x32xf32>
      %24 = vector.shape_cast %23 : vector<1x8x32xf32> to vector<8x32xf32>
      %c0_15 = arith.constant 0 : index
      %c0_16 = arith.constant 0 : index
      %25 = vector.load %arg4[%c0_15, %c0_16] : memref<1x32xf32, #tpu.memory_space<vmem>>, vector<1x32xf32>
      %c0_17 = arith.constant 0 : index
      %c0_18 = arith.constant 0 : index
      %26 = vector.load %arg5[%c0_17, %c0_18] : memref<1x32xf32, #tpu.memory_space<vmem>>, vector<1x32xf32>
      %cst_19 = arith.constant dense<0.000000e+00> : vector<8xf32>
      %27 = vector.multi_reduction <add>, %24, %cst_19 [1] : vector<8x32xf32> to vector<8xf32>
      %28 = vector.shape_cast %27 : vector<8xf32> to vector<8x1xf32>
      %cst_20 = arith.constant 3.200000e+01 : f32
      %29 = vector.broadcast %cst_20 : f32 to vector<8x1xf32>
      %30 = arith.divf %28, %29 : vector<8x1xf32>
      %31 = vector.broadcast %30 : vector<8x1xf32> to vector<8x32xf32>
      %32 = arith.subf %24, %31 : vector<8x32xf32>
      %33 = arith.mulf %32, %32 : vector<8x32xf32>
      %cst_21 = arith.constant dense<0.000000e+00> : vector<8xf32>
      %34 = vector.multi_reduction <add>, %33, %cst_21 [1] : vector<8x32xf32> to vector<8xf32>
      %35 = vector.shape_cast %34 : vector<8xf32> to vector<8x1xf32>
      %cst_22 = arith.constant 3.200000e+01 : f32
      %36 = vector.broadcast %cst_22 : f32 to vector<8x1xf32>
      %37 = arith.divf %35, %36 : vector<8x1xf32>
      %38 = vector.broadcast %30 : vector<8x1xf32> to vector<8x32xf32>
      %39 = arith.subf %24, %38 : vector<8x32xf32>
      %cst_23 = arith.constant 9.99999974E-6 : f32
      %40 = vector.broadcast %cst_23 : f32 to vector<8x1xf32>
      %41 = arith.addf %37, %40 : vector<8x1xf32>
      %42 = math.rsqrt %41 : vector<8x1xf32>
      %43 = vector.broadcast %42 : vector<8x1xf32> to vector<8x32xf32>
      %44 = arith.mulf %39, %43 : vector<8x32xf32>
      %45 = vector.broadcast %25 : vector<1x32xf32> to vector<8x32xf32>
      %46 = arith.mulf %44, %45 : vector<8x32xf32>
      %47 = vector.broadcast %26 : vector<1x32xf32> to vector<8x32xf32>
      %48 = arith.addf %46, %47 : vector<8x32xf32>
      %c0_24 = arith.constant 0 : index
      %c0_25 = arith.constant 0 : index
      %49 = vector.load %arg6[%c0_24, %c0_25] : memref<32x128xbf16, #tpu.memory_space<vmem>>, vector<32x128xbf16>
      %50 = arith.truncf %48 : vector<8x32xf32> to vector<8x32xbf16>
      %cst_26 = arith.constant dense<0.000000e+00> : vector<8x128xf32>
      %51 = tpu.matmul %50, %49, %cst_26 {dimension_numbers = #tpu.dot_dimension_numbers<[1], [0], [0], [1], [0, 0, 1, 1], [], []>} : vector<8x32xbf16>, vector<32x128xbf16>, vector<8x128xf32> -> vector<8x128xf32>
      %c0_27 = arith.constant 0 : index
      %c0_28 = arith.constant 0 : index
      %52 = vector.load %arg7[%c0_27, %c0_28] : memref<1x128xf32, #tpu.memory_space<vmem>>, vector<1x128xf32>
      %53 = vector.broadcast %52 : vector<1x128xf32> to vector<8x128xf32>
      %54 = arith.addf %51, %53 : vector<8x128xf32>
      %c0_29 = arith.constant 0 : index
      %c0_30 = arith.constant 0 : index
      %c0_31 = arith.constant 0 : index
      %55 = vector.load %arg14[%c0_29, %c0_30, %c0_31] : memref<1x8x128xf32, #tpu.memory_space<vmem>>, vector<1x8x128xf32>
      %56 = vector.shape_cast %55 : vector<1x8x128xf32> to vector<8x128xf32>
      %57 = vector.shape_cast %54 : vector<8x128xf32> to vector<1x8x128xf32>
      tpu.vector_store %arg14[%c0_29, %c0_30, %c0_31], %57 {strides = array<i32>} : memref<1x8x128xf32, #tpu.memory_space<vmem>>, vector<1x8x128xf32>,
      %c0_32 = arith.constant 0 : index
      %c0_33 = arith.constant 0 : index
      %58 = vector.load %arg8[%c0_32, %c0_33] : memref<32x32xbf16, #tpu.memory_space<vmem>>, vector<32x32xbf16>
      %59 = arith.truncf %48 : vector<8x32xf32> to vector<8x32xbf16>
      %cst_34 = arith.constant dense<0.000000e+00> : vector<8x32xf32>
      %60 = tpu.matmul %59, %58, %cst_34 {dimension_numbers = #tpu.dot_dimension_numbers<[1], [0], [0], [1], [0, 0, 1, 1], [], []>} : vector<8x32xbf16>, vector<32x32xbf16>, vector<8x32xf32> -> vector<8x32xf32>
      %c0_35 = arith.constant 0 : index
      %c0_36 = arith.constant 0 : index
      %61 = vector.load %arg9[%c0_35, %c0_36] : memref<1x32xf32, #tpu.memory_space<vmem>>, vector<1x32xf32>
      %62 = vector.broadcast %61 : vector<1x32xf32> to vector<8x32xf32>
      %63 = arith.addf %60, %62 : vector<8x32xf32>
      %cst_37 = arith.constant 0.000000e+00 : f32
      %64 = vector.broadcast %cst_37 : f32 to vector<8x32xf32>
      %65 = arith.maximumf %63, %64 : vector<8x32xf32>
      %c0_38 = arith.constant 0 : index
      %c0_39 = arith.constant 0 : index
      %66 = vector.load %arg10[%c0_38, %c0_39] : memref<32x32xbf16, #tpu.memory_space<vmem>>, vector<32x32xbf16>
      %67 = arith.truncf %65 : vector<8x32xf32> to vector<8x32xbf16>
      %cst_40 = arith.constant dense<0.000000e+00> : vector<8x32xf32>
      %68 = tpu.matmul %67, %66, %cst_40 {dimension_numbers = #tpu.dot_dimension_numbers<[1], [0], [0], [1], [0, 0, 1, 1], [], []>} : vector<8x32xbf16>, vector<32x32xbf16>, vector<8x32xf32> -> vector<8x32xf32>
      %c0_41 = arith.constant 0 : index
      %c0_42 = arith.constant 0 : index
      %69 = vector.load %arg11[%c0_41, %c0_42] : memref<1x32xf32, #tpu.memory_space<vmem>>, vector<1x32xf32>
      %70 = vector.broadcast %69 : vector<1x32xf32> to vector<8x32xf32>
      %71 = arith.addf %68, %70 : vector<8x32xf32>
      %cst_43 = arith.constant 0.000000e+00 : f32
      %72 = vector.broadcast %cst_43 : f32 to vector<8x32xf32>
      %73 = arith.maximumf %71, %72 : vector<8x32xf32>
      %c0_44 = arith.constant 0 : index
      %c0_45 = arith.constant 0 : index
      %74 = vector.load %arg12[%c0_44, %c0_45] : memref<32x32xbf16, #tpu.memory_space<vmem>>, vector<32x32xbf16>
      %75 = arith.truncf %73 : vector<8x32xf32> to vector<8x32xbf16>
      %cst_46 = arith.constant dense<0.000000e+00> : vector<8x32xf32>
      %76 = tpu.matmul %75, %74, %cst_46 {dimension_numbers = #tpu.dot_dimension_numbers<[1], [0], [0], [1], [0, 0, 1, 1], [], []>} : vector<8x32xbf16>, vector<32x32xbf16>, vector<8x32xf32> -> vector<8x32xf32>
      %c0_47 = arith.constant 0 : index
      %c0_48 = arith.constant 0 : index
      %77 = vector.load %arg13[%c0_47, %c0_48] : memref<1x32xf32, #tpu.memory_space<vmem>>, vector<1x32xf32>
      %78 = vector.broadcast %77 : vector<1x32xf32> to vector<8x32xf32>
      %79 = arith.addf %76, %78 : vector<8x32xf32>
      %cst_49 = arith.constant 0.000000e+00 : f32
      %80 = vector.broadcast %cst_49 : f32 to vector<8x32xf32>
      %81 = arith.maximumf %79, %80 : vector<8x32xf32>
      %c0_50 = arith.constant 0 : index
      %c0_51 = arith.constant 0 : index
      %82 = vector.load %arg16[%c0_50, %c0_51] : memref<8x32xf32, #tpu.memory_space<vmem>>, vector<8x32xf32>
      tpu.vector_store %arg16[%c0_50, %c0_51], %81 {strides = array<i32>} : memref<8x32xf32, #tpu.memory_space<vmem>>, vector<8x32xf32>,
    } else {
    }
    %c0 = arith.constant 0 : index
    %c0_1 = arith.constant 0 : index
    %3 = vector.load %arg16[%c0, %c0_1] : memref<8x32xf32, #tpu.memory_space<vmem>>, vector<8x32xf32>
    %c0_2 = arith.constant 0 : index
    %c0_3 = arith.constant 0 : index
    %c0_4 = arith.constant 0 : index
    %4 = vector.load %arg3[%c0_2, %c0_3, %c0_4] : memref<1x32x16xbf16, #tpu.memory_space<vmem>>, vector<1x32x16xbf16>
    %5 = vector.shape_cast %4 : vector<1x32x16xbf16> to vector<32x16xbf16>
    %6 = arith.truncf %3 : vector<8x32xf32> to vector<8x32xbf16>
    %cst = arith.constant dense<0.000000e+00> : vector<8x16xf32>
    %7 = tpu.matmul %6, %5, %cst {dimension_numbers = #tpu.dot_dimension_numbers<[1], [0], [0], [1], [0, 0, 1, 1], [], []>} : vector<8x32xbf16>, vector<32x16xbf16>, vector<8x16xf32> -> vector<8x16xf32>
    %cst_5 = arith.constant 0.000000e+00 : f32
    %8 = vector.broadcast %cst_5 : f32 to vector<8x16xf32>
    %9 = arith.cmpf olt, %7, %8 : vector<8x16xf32>
    %10 = arith.extui %9 : vector<8x16xi1> to vector<8x16xi32>
    %11 = arith.sitofp %10 : vector<8x16xi32> to vector<8x16xf32>
    %cst_6 = arith.constant dense<0.000000e+00> : vector<8xf32>
    %12 = vector.multi_reduction <add>, %11, %cst_6 [1] : vector<8x16xf32> to vector<8xf32>
    %13 = vector.shape_cast %12 : vector<8xf32> to vector<8x1xf32>
    %cst_7 = arith.constant 1.550000e+01 : f32
    %14 = vector.broadcast %cst_7 : f32 to vector<8x1xf32>
    %15 = arith.cmpf oge, %13, %14 : vector<8x1xf32>
    %cst_8 = arith.constant dense<true> : vector<8x1xi1>
    %16 = arith.xori %15, %cst_8 : vector<8x1xi1>
    %17 = vector.broadcast %16 : vector<8x1xi1> to vector<8x16xi1>
    %18 = arith.andi %9, %17 : vector<8x16xi1>
    %19 = arith.extui %18 : vector<8x16xi1> to vector<8x16xi8>
    %c0_9 = arith.constant 0 : index
    %c0_10 = arith.constant 0 : index
    %c0_11 = arith.constant 0 : index
    %20 = vector.load %arg15[%c0_9, %c0_10, %c0_11] : memref<1x8x16xi8, #tpu.memory_space<vmem>>, vector<1x8x16xi8>
    %21 = vector.shape_cast %20 : vector<1x8x16xi8> to vector<8x16xi8>
    %22 = vector.shape_cast %19 : vector<8x16xi8> to vector<1x8x16xi8>
    tpu.vector_store %arg15[%c0_9, %c0_10, %c0_11], %22 {strides = array<i32>} : memref<1x8x16xi8, #tpu.memory_space<vmem>>, vector<1x8x16xi8>,
    return
  }
  func.func @transform_0(%arg0: i32, %arg1: i32) -> (i32, i32, i32) {
    %c0_i32 = arith.constant 0 : i32
    %c0_i32_0 = arith.constant 0 : i32
    %c0_i32_1 = arith.constant 0 : i32
    return %arg0, %c0_i32, %c0_i32_0 : i32, i32, i32
  }
  func.func @transform_1(%arg0: i32, %arg1: i32) -> (i32, i32, i32) {
    %c0_i32 = arith.constant 0 : i32
    %c0_i32_0 = arith.constant 0 : i32
    return %arg0, %c0_i32, %arg1 : i32, i32, i32
  }
  func.func @transform_2(%arg0: i32, %arg1: i32) -> (i32, i32) {
    %c0_i32 = arith.constant 0 : i32
    %c0_i32_0 = arith.constant 0 : i32
    %c0_i32_1 = arith.constant 0 : i32
    return %c0_i32, %c0_i32_0 : i32, i32
  }
  func.func @transform_3(%arg0: i32, %arg1: i32) -> (i32, i32) {
    %c0_i32 = arith.constant 0 : i32
    %c0_i32_0 = arith.constant 0 : i32
    %c0_i32_1 = arith.constant 0 : i32
    return %c0_i32, %c0_i32_0 : i32, i32
  }
  func.func @transform_4(%arg0: i32, %arg1: i32) -> (i32, i32) {
    %c0_i32 = arith.constant 0 : i32
    %c0_i32_0 = arith.constant 0 : i32
    %c0_i32_1 = arith.constant 0 : i32
    return %c0_i32, %c0_i32_0 : i32, i32
  }
  func.func @transform_5(%arg0: i32, %arg1: i32) -> (i32, i32) {
    %c0_i32 = arith.constant 0 : i32
    %c0_i32_0 = arith.constant 0 : i32
    %c0_i32_1 = arith.constant 0 : i32
    return %c0_i32, %c0_i32_0 : i32, i32
  }
  func.func @transform_6(%arg0: i32, %arg1: i32) -> (i32, i32) {
    %c0_i32 = arith.constant 0 : i32
    %c0_i32_0 = arith.constant 0 : i32
    %c0_i32_1 = arith.constant 0 : i32
    return %c0_i32, %c0_i32_0 : i32, i32
  }
  func.func @transform_7(%arg0: i32, %arg1: i32) -> (i32, i32) {
    %c0_i32 = arith.constant 0 : i32
    %c0_i32_0 = arith.constant 0 : i32
    %c0_i32_1 = arith.constant 0 : i32
    return %c0_i32, %c0_i32_0 : i32, i32
  }
  func.func @transform_8(%arg0: i32, %arg1: i32) -> (i32, i32) {
    %c0_i32 = arith.constant 0 : i32
    %c0_i32_0 = arith.constant 0 : i32
    %c0_i32_1 = arith.constant 0 : i32
    return %c0_i32, %c0_i32_0 : i32, i32
  }
  func.func @transform_9(%arg0: i32, %arg1: i32) -> (i32, i32) {
    %c0_i32 = arith.constant 0 : i32
    %c0_i32_0 = arith.constant 0 : i32
    %c0_i32_1 = arith.constant 0 : i32
    return %c0_i32, %c0_i32_0 : i32, i32
  }
  func.func @transform_10(%arg0: i32, %arg1: i32) -> (i32, i32) {
    %c0_i32 = arith.constant 0 : i32
    %c0_i32_0 = arith.constant 0 : i32
    %c0_i32_1 = arith.constant 0 : i32
    return %c0_i32, %c0_i32_0 : i32, i32
  }
  func.func @transform_11(%arg0: i32, %arg1: i32) -> (i32, i32) {
    %c0_i32 = arith.constant 0 : i32
    %c0_i32_0 = arith.constant 0 : i32
    %c0_i32_1 = arith.constant 0 : i32
    return %c0_i32, %c0_i32_0 : i32, i32
  }
  func.func @transform_12(%arg0: i32, %arg1: i32) -> (i32, i32, i32) {
    %c0_i32 = arith.constant 0 : i32
    %c0_i32_0 = arith.constant 0 : i32
    %c0_i32_1 = arith.constant 0 : i32
    return %arg0, %c0_i32, %c0_i32_0 : i32, i32, i32
  }
  func.func @transform_13(%arg0: i32, %arg1: i32) -> (i32, i32, i32) {
    %c0_i32 = arith.constant 0 : i32
    %c0_i32_0 = arith.constant 0 : i32
    return %arg0, %c0_i32, %arg1 : i32, i32, i32
  }
}

module attributes {stable_mosaic.version = 11 : i64} {
  func.func @_decoder_block_kernel(%arg0: i32, %arg1: i32, %arg2: memref<1x8x32xf32, #tpu.memory_space<vmem>>, %arg3: memref<1x16x32xbf16, #tpu.memory_space<vmem>>, %arg4: memref<1x16x32xbf16, #tpu.memory_space<vmem>>, %arg5: memref<1x8x16xi8, #tpu.memory_space<vmem>>, %arg6: memref<32x96xbf16, #tpu.memory_space<vmem>>, %arg7: memref<1x96xf32, #tpu.memory_space<vmem>>, %arg8: memref<32x32xbf16, #tpu.memory_space<vmem>>, %arg9: memref<1x32xf32, #tpu.memory_space<vmem>>, %arg10: memref<1x32xf32, #tpu.memory_space<vmem>>, %arg11: memref<1x32xf32, #tpu.memory_space<vmem>>, %arg12: memref<32x96xbf16, #tpu.memory_space<vmem>>, %arg13: memref<1x96xf32, #tpu.memory_space<vmem>>, %arg14: memref<32x32xbf16, #tpu.memory_space<vmem>>, %arg15: memref<1x32xf32, #tpu.memory_space<vmem>>, %arg16: memref<1x32xf32, #tpu.memory_space<vmem>>, %arg17: memref<1x32xf32, #tpu.memory_space<vmem>>, %arg18: memref<32x64xbf16, #tpu.memory_space<vmem>>, %arg19: memref<1x64xf32, #tpu.memory_space<vmem>>, %arg20: memref<64x32xbf16, #tpu.memory_space<vmem>>, %arg21: memref<1x32xf32, #tpu.memory_space<vmem>>, %arg22: memref<1x32xf32, #tpu.memory_space<vmem>>, %arg23: memref<1x32xf32, #tpu.memory_space<vmem>>, %arg24: memref<1x8x32xf32, #tpu.memory_space<vmem>>, %arg25: memref<8x32xf32, #tpu.memory_space<vmem>>, %arg26: memref<4x8x1xf32, #tpu.memory_space<vmem>>, %arg27: memref<4x8x1xf32, #tpu.memory_space<vmem>>, %arg28: memref<4x8x8xf32, #tpu.memory_space<vmem>>) attributes {dimension_semantics = [#tpu.dimension_semantics<parallel>, #tpu.dimension_semantics<arbitrary>], iteration_bounds = array<i64: 2, 1>, scalar_prefetch = 0 : i64, scratch_operands = 4 : i64, tpu.core_type = #tpu.core_type<tc>, window_params = [{transform_indices = @transform_0, window_bounds = array<i64: 1, 8, 32>}, {transform_indices = @transform_1, window_bounds = array<i64: 1, 16, 32>}, {transform_indices = @transform_2, window_bounds = array<i64: 1, 16, 32>}, {transform_indices = @transform_3, window_bounds = array<i64: 1, 8, 16>}, {pipeline_mode = #tpu.pipeline_mode<synchronous>, transform_indices = @transform_4, window_bounds = array<i64: 32, 96>}, {pipeline_mode = #tpu.pipeline_mode<synchronous>, transform_indices = @transform_5, window_bounds = array<i64: 1, 96>}, {pipeline_mode = #tpu.pipeline_mode<synchronous>, transform_indices = @transform_6, window_bounds = array<i64: 32, 32>}, {pipeline_mode = #tpu.pipeline_mode<synchronous>, transform_indices = @transform_7, window_bounds = array<i64: 1, 32>}, {pipeline_mode = #tpu.pipeline_mode<synchronous>, transform_indices = @transform_8, window_bounds = array<i64: 1, 32>}, {pipeline_mode = #tpu.pipeline_mode<synchronous>, transform_indices = @transform_9, window_bounds = array<i64: 1, 32>}, {pipeline_mode = #tpu.pipeline_mode<synchronous>, transform_indices = @transform_10, window_bounds = array<i64: 32, 96>}, {pipeline_mode = #tpu.pipeline_mode<synchronous>, transform_indices = @transform_11, window_bounds = array<i64: 1, 96>}, {pipeline_mode = #tpu.pipeline_mode<synchronous>, transform_indices = @transform_12, window_bounds = array<i64: 32, 32>}, {pipeline_mode = #tpu.pipeline_mode<synchronous>, transform_indices = @transform_13, window_bounds = array<i64: 1, 32>}, {pipeline_mode = #tpu.pipeline_mode<synchronous>, transform_indices = @transform_14, window_bounds = array<i64: 1, 32>}, {pipeline_mode = #tpu.pipeline_mode<synchronous>, transform_indices = @transform_15, window_bounds = array<i64: 1, 32>}, {pipeline_mode = #tpu.pipeline_mode<synchronous>, transform_indices = @transform_16, window_bounds = array<i64: 32, 64>}, {pipeline_mode = #tpu.pipeline_mode<synchronous>, transform_indices = @transform_17, window_bounds = array<i64: 1, 64>}, {pipeline_mode = #tpu.pipeline_mode<synchronous>, transform_indices = @transform_18, window_bounds = array<i64: 64, 32>}, {pipeline_mode = #tpu.pipeline_mode<synchronous>, transform_indices = @transform_19, window_bounds = array<i64: 1, 32>}, {pipeline_mode = #tpu.pipeline_mode<synchronous>, transform_indices = @transform_20, window_bounds = array<i64: 1, 32>}, {pipeline_mode = #tpu.pipeline_mode<synchronous>, transform_indices = @transform_21, window_bounds = array<i64: 1, 32>}, {transform_indices = @transform_22, window_bounds = array<i64: 1, 8, 32>}]} {
    %c0_i32 = arith.constant 0 : i32
    %0 = arith.cmpi eq, %arg1, %c0_i32 : i32
    %1 = arith.extui %0 : i1 to i32
    %c0_i32_0 = arith.constant 0 : i32
    %2 = arith.cmpi ne, %1, %c0_i32_0 : i32
    scf.if %2 {
      %c0_106 = arith.constant 0 : index
      %c0_107 = arith.constant 0 : index
      %c0_108 = arith.constant 0 : index
      %186 = vector.load %arg2[%c0_106, %c0_107, %c0_108] : memref<1x8x32xf32, #tpu.memory_space<vmem>>, vector<1x8x32xf32>
      %187 = vector.shape_cast %186 : vector<1x8x32xf32> to vector<8x32xf32>
      %c0_109 = arith.constant 0 : index
      %c0_110 = arith.constant 0 : index
      %188 = vector.load %arg6[%c0_109, %c0_110] : memref<32x96xbf16, #tpu.memory_space<vmem>>, vector<32x32xbf16>
      %189 = arith.truncf %187 : vector<8x32xf32> to vector<8x32xbf16>
      %cst_111 = arith.constant dense<0.000000e+00> : vector<8x32xf32>
      %190 = tpu.matmul %189, %188, %cst_111 {dimension_numbers = #tpu.dot_dimension_numbers<[1], [0], [0], [1], [0, 0, 1, 1], [], []>} : vector<8x32xbf16>, vector<32x32xbf16>, vector<8x32xf32> -> vector<8x32xf32>
      %c0_112 = arith.constant 0 : index
      %c0_113 = arith.constant 0 : index
      %191 = vector.load %arg7[%c0_112, %c0_113] : memref<1x96xf32, #tpu.memory_space<vmem>>, vector<1x32xf32>
      %192 = vector.broadcast %191 : vector<1x32xf32> to vector<8x32xf32>
      %193 = arith.addf %190, %192 : vector<8x32xf32>
      %c0_114 = arith.constant 0 : index
      %c0_115 = arith.constant 0 : index
      %194 = vector.load %arg25[%c0_114, %c0_115] : memref<8x32xf32, #tpu.memory_space<vmem>>, vector<8x32xf32>
      tpu.vector_store %arg25[%c0_114, %c0_115], %193 {strides = array<i32>} : memref<8x32xf32, #tpu.memory_space<vmem>>, vector<8x32xf32>,
      %cst_116 = arith.constant 0xFF800000 : f32
      %195 = vector.broadcast %cst_116 : f32 to vector<4x8x1xf32>
      %c0_117 = arith.constant 0 : index
      %c0_118 = arith.constant 0 : index
      %c0_119 = arith.constant 0 : index
      %196 = vector.load %arg26[%c0_117, %c0_118, %c0_119] : memref<4x8x1xf32, #tpu.memory_space<vmem>>, vector<4x8x1xf32>
      tpu.vector_store %arg26[%c0_117, %c0_118, %c0_119], %195 {strides = array<i32>} : memref<4x8x1xf32, #tpu.memory_space<vmem>>, vector<4x8x1xf32>,
      %cst_120 = arith.constant 0.000000e+00 : f32
      %197 = vector.broadcast %cst_120 : f32 to vector<4x8x1xf32>
      %c0_121 = arith.constant 0 : index
      %c0_122 = arith.constant 0 : index
      %c0_123 = arith.constant 0 : index
      %198 = vector.load %arg27[%c0_121, %c0_122, %c0_123] : memref<4x8x1xf32, #tpu.memory_space<vmem>>, vector<4x8x1xf32>
      tpu.vector_store %arg27[%c0_121, %c0_122, %c0_123], %197 {strides = array<i32>} : memref<4x8x1xf32, #tpu.memory_space<vmem>>, vector<4x8x1xf32>,
      %cst_124 = arith.constant 0.000000e+00 : f32
      %199 = vector.broadcast %cst_124 : f32 to vector<4x8x8xf32>
      %c0_125 = arith.constant 0 : index
      %c0_126 = arith.constant 0 : index
      %c0_127 = arith.constant 0 : index
      %200 = vector.load %arg28[%c0_125, %c0_126, %c0_127] : memref<4x8x8xf32, #tpu.memory_space<vmem>>, vector<4x8x8xf32>
      tpu.vector_store %arg28[%c0_125, %c0_126, %c0_127], %199 {strides = array<i32>} : memref<4x8x8xf32, #tpu.memory_space<vmem>>, vector<4x8x8xf32>,
    } else {
    }
    %c0 = arith.constant 0 : index
    %c0_1 = arith.constant 0 : index
    %c0_2 = arith.constant 0 : index
    %3 = vector.load %arg3[%c0, %c0_1, %c0_2] : memref<1x16x32xbf16, #tpu.memory_space<vmem>>, vector<1x16x32xbf16>
    %4 = vector.shape_cast %3 : vector<1x16x32xbf16> to vector<16x32xbf16>
    %c0_3 = arith.constant 0 : index
    %c0_4 = arith.constant 0 : index
    %c0_5 = arith.constant 0 : index
    %5 = vector.load %arg4[%c0_3, %c0_4, %c0_5] : memref<1x16x32xbf16, #tpu.memory_space<vmem>>, vector<1x16x32xbf16>
    %6 = vector.shape_cast %5 : vector<1x16x32xbf16> to vector<16x32xbf16>
    %c0_6 = arith.constant 0 : index
    %c32 = arith.constant 32 : index
    %7 = vector.load %arg6[%c0_6, %c32] : memref<32x96xbf16, #tpu.memory_space<vmem>>, vector<32x32xbf16>
    %cst = arith.constant dense<0.000000e+00> : vector<16x32xf32>
    %8 = tpu.matmul %4, %7, %cst {dimension_numbers = #tpu.dot_dimension_numbers<[1], [0], [0], [1], [0, 0, 1, 1], [], []>} : vector<16x32xbf16>, vector<32x32xbf16>, vector<16x32xf32> -> vector<16x32xf32>
    %c0_7 = arith.constant 0 : index
    %c32_8 = arith.constant 32 : index
    %9 = vector.load %arg7[%c0_7, %c32_8] : memref<1x96xf32, #tpu.memory_space<vmem>>, vector<1x32xf32>
    %10 = vector.broadcast %9 : vector<1x32xf32> to vector<16x32xf32>
    %11 = arith.addf %8, %10 : vector<16x32xf32>
    %c0_9 = arith.constant 0 : index
    %c64 = arith.constant 64 : index
    %12 = vector.load %arg6[%c0_9, %c64] : memref<32x96xbf16, #tpu.memory_space<vmem>>, vector<32x32xbf16>
    %cst_10 = arith.constant dense<0.000000e+00> : vector<16x32xf32>
    %13 = tpu.matmul %6, %12, %cst_10 {dimension_numbers = #tpu.dot_dimension_numbers<[1], [0], [0], [1], [0, 0, 1, 1], [], []>} : vector<16x32xbf16>, vector<32x32xbf16>, vector<16x32xf32> -> vector<16x32xf32>
    %c0_11 = arith.constant 0 : index
    %c64_12 = arith.constant 64 : index
    %14 = vector.load %arg7[%c0_11, %c64_12] : memref<1x96xf32, #tpu.memory_space<vmem>>, vector<1x32xf32>
    %15 = vector.broadcast %14 : vector<1x32xf32> to vector<16x32xf32>
    %16 = arith.addf %13, %15 : vector<16x32xf32>
    %c0_13 = arith.constant 0 : index
    %c0_14 = arith.constant 0 : index
    %c0_15 = arith.constant 0 : index
    %17 = vector.load %arg5[%c0_13, %c0_14, %c0_15] : memref<1x8x16xi8, #tpu.memory_space<vmem>>, vector<1x8x16xi8>
    %18 = vector.shape_cast %17 : vector<1x8x16xi8> to vector<8x16xi8>
    %19 = arith.sitofp %18 : vector<8x16xi8> to vector<8x16xf32>
    %cst_16 = arith.constant -1.000000e+30 : f32
    %20 = vector.broadcast %cst_16 : f32 to vector<8x16xf32>
    %21 = arith.mulf %19, %20 : vector<8x16xf32>
    %c0_17 = arith.constant 0 : index
    %c0_18 = arith.constant 0 : index
    %22 = vector.load %arg25[%c0_17, %c0_18] : memref<8x32xf32, #tpu.memory_space<vmem>>, vector<8x32xf32>
    %23 = vector.extract_strided_slice %22 {offsets = [0, 0], sizes = [8, 8], strides = [1, 1]} : vector<8x32xf32> to vector<8x8xf32>
    %24 = vector.extract_strided_slice %11 {offsets = [0, 0], sizes = [16, 8], strides = [1, 1]} : vector<16x32xf32> to vector<16x8xf32>
    %25 = arith.truncf %23 : vector<8x8xf32> to vector<8x8xbf16>
    %26 = arith.truncf %24 : vector<16x8xf32> to vector<16x8xbf16>
    %cst_19 = arith.constant dense<0.000000e+00> : vector<8x16xf32>
    %27 = tpu.matmul %25, %26, %cst_19 {dimension_numbers = #tpu.dot_dimension_numbers<[1], [1], [0], [0], [0, 0, 1, 0], [], []>} : vector<8x8xbf16>, vector<16x8xbf16>, vector<8x16xf32> -> vector<8x16xf32>
    %28 = arith.addf %27, %21 : vector<8x16xf32>
    %c0_20 = arith.constant 0 : index
    %c0_21 = arith.constant 0 : index
    %c0_22 = arith.constant 0 : index
    %29 = vector.load %arg26[%c0_20, %c0_21, %c0_22] : memref<4x8x1xf32, #tpu.memory_space<vmem>>, vector<1x8x1xf32>
    %30 = vector.shape_cast %29 : vector<1x8x1xf32> to vector<8x1xf32>
    %cst_23 = arith.constant dense<0xFF800000> : vector<8xf32>
    %31 = vector.multi_reduction <maximumf>, %28, %cst_23 [1] : vector<8x16xf32> to vector<8xf32>
    %32 = vector.shape_cast %31 : vector<8xf32> to vector<8x1xf32>
    %33 = arith.maximumf %30, %32 : vector<8x1xf32>
    %34 = arith.subf %30, %33 : vector<8x1xf32>
    %35 = math.exp %34 : vector<8x1xf32>
    %36 = vector.broadcast %33 : vector<8x1xf32> to vector<8x16xf32>
    %37 = arith.subf %28, %36 : vector<8x16xf32>
    %38 = math.exp %37 : vector<8x16xf32>
    %c0_24 = arith.constant 0 : index
    %c0_25 = arith.constant 0 : index
    %c0_26 = arith.constant 0 : index
    %39 = vector.load %arg27[%c0_24, %c0_25, %c0_26] : memref<4x8x1xf32, #tpu.memory_space<vmem>>, vector<1x8x1xf32>
    %40 = vector.shape_cast %39 : vector<1x8x1xf32> to vector<8x1xf32>
    %41 = arith.mulf %35, %40 : vector<8x1xf32>
    %cst_27 = arith.constant dense<0.000000e+00> : vector<8xf32>
    %42 = vector.multi_reduction <add>, %38, %cst_27 [1] : vector<8x16xf32> to vector<8xf32>
    %43 = vector.shape_cast %42 : vector<8xf32> to vector<8x1xf32>
    %44 = arith.addf %41, %43 : vector<8x1xf32>
    %c0_28 = arith.constant 0 : index
    %c0_29 = arith.constant 0 : index
    %c0_30 = arith.constant 0 : index
    %45 = vector.load %arg27[%c0_28, %c0_29, %c0_30] : memref<4x8x1xf32, #tpu.memory_space<vmem>>, vector<1x8x1xf32>
    %46 = vector.shape_cast %45 : vector<1x8x1xf32> to vector<8x1xf32>
    %47 = vector.shape_cast %44 : vector<8x1xf32> to vector<1x8x1xf32>
    tpu.vector_store %arg27[%c0_28, %c0_29, %c0_30], %47 {strides = array<i32>} : memref<4x8x1xf32, #tpu.memory_space<vmem>>, vector<1x8x1xf32>,
    %c0_31 = arith.constant 0 : index
    %c0_32 = arith.constant 0 : index
    %c0_33 = arith.constant 0 : index
    %48 = vector.load %arg28[%c0_31, %c0_32, %c0_33] : memref<4x8x8xf32, #tpu.memory_space<vmem>>, vector<1x8x8xf32>
    %49 = vector.shape_cast %48 : vector<1x8x8xf32> to vector<8x8xf32>
    %50 = vector.broadcast %35 : vector<8x1xf32> to vector<8x8xf32>
    %51 = arith.mulf %50, %49 : vector<8x8xf32>
    %52 = vector.extract_strided_slice %16 {offsets = [0, 0], sizes = [16, 8], strides = [1, 1]} : vector<16x32xf32> to vector<16x8xf32>
    %53 = arith.truncf %38 : vector<8x16xf32> to vector<8x16xbf16>
    %54 = arith.truncf %52 : vector<16x8xf32> to vector<16x8xbf16>
    %cst_34 = arith.constant dense<0.000000e+00> : vector<8x8xf32>
    %55 = tpu.matmul %53, %54, %cst_34 {dimension_numbers = #tpu.dot_dimension_numbers<[1], [0], [0], [1], [0, 0, 1, 1], [], []>} : vector<8x16xbf16>, vector<16x8xbf16>, vector<8x8xf32> -> vector<8x8xf32>
    %56 = arith.addf %51, %55 : vector<8x8xf32>
    %c0_35 = arith.constant 0 : index
    %c0_36 = arith.constant 0 : index
    %c0_37 = arith.constant 0 : index
    %57 = vector.load %arg28[%c0_35, %c0_36, %c0_37] : memref<4x8x8xf32, #tpu.memory_space<vmem>>, vector<1x8x8xf32>
    %58 = vector.shape_cast %57 : vector<1x8x8xf32> to vector<8x8xf32>
    %59 = vector.shape_cast %56 : vector<8x8xf32> to vector<1x8x8xf32>
    tpu.vector_store %arg28[%c0_35, %c0_36, %c0_37], %59 {strides = array<i32>} : memref<4x8x8xf32, #tpu.memory_space<vmem>>, vector<1x8x8xf32>,
    %c0_38 = arith.constant 0 : index
    %c0_39 = arith.constant 0 : index
    %c0_40 = arith.constant 0 : index
    %60 = vector.load %arg26[%c0_38, %c0_39, %c0_40] : memref<4x8x1xf32, #tpu.memory_space<vmem>>, vector<1x8x1xf32>
    %61 = vector.shape_cast %60 : vector<1x8x1xf32> to vector<8x1xf32>
    %62 = vector.shape_cast %33 : vector<8x1xf32> to vector<1x8x1xf32>
    tpu.vector_store %arg26[%c0_38, %c0_39, %c0_40], %62 {strides = array<i32>} : memref<4x8x1xf32, #tpu.memory_space<vmem>>, vector<1x8x1xf32>,
    %63 = vector.extract_strided_slice %22 {offsets = [0, 8], sizes = [8, 8], strides = [1, 1]} : vector<8x32xf32> to vector<8x8xf32>
    %64 = vector.extract_strided_slice %11 {offsets = [0, 8], sizes = [16, 8], strides = [1, 1]} : vector<16x32xf32> to vector<16x8xf32>
    %65 = arith.truncf %63 : vector<8x8xf32> to vector<8x8xbf16>
    %66 = arith.truncf %64 : vector<16x8xf32> to vector<16x8xbf16>
    %cst_41 = arith.constant dense<0.000000e+00> : vector<8x16xf32>
    %67 = tpu.matmul %65, %66, %cst_41 {dimension_numbers = #tpu.dot_dimension_numbers<[1], [1], [0], [0], [0, 0, 1, 0], [], []>} : vector<8x8xbf16>, vector<16x8xbf16>, vector<8x16xf32> -> vector<8x16xf32>
    %68 = arith.addf %67, %21 : vector<8x16xf32>
    %c1 = arith.constant 1 : index
    %c0_42 = arith.constant 0 : index
    %c0_43 = arith.constant 0 : index
    %69 = vector.load %arg26[%c1, %c0_42, %c0_43] : memref<4x8x1xf32, #tpu.memory_space<vmem>>, vector<1x8x1xf32>
    %70 = vector.shape_cast %69 : vector<1x8x1xf32> to vector<8x1xf32>
    %cst_44 = arith.constant dense<0xFF800000> : vector<8xf32>
    %71 = vector.multi_reduction <maximumf>, %68, %cst_44 [1] : vector<8x16xf32> to vector<8xf32>
    %72 = vector.shape_cast %71 : vector<8xf32> to vector<8x1xf32>
    %73 = arith.maximumf %70, %72 : vector<8x1xf32>
    %74 = arith.subf %70, %73 : vector<8x1xf32>
    %75 = math.exp %74 : vector<8x1xf32>
    %76 = vector.broadcast %73 : vector<8x1xf32> to vector<8x16xf32>
    %77 = arith.subf %68, %76 : vector<8x16xf32>
    %78 = math.exp %77 : vector<8x16xf32>
    %c1_45 = arith.constant 1 : index
    %c0_46 = arith.constant 0 : index
    %c0_47 = arith.constant 0 : index
    %79 = vector.load %arg27[%c1_45, %c0_46, %c0_47] : memref<4x8x1xf32, #tpu.memory_space<vmem>>, vector<1x8x1xf32>
    %80 = vector.shape_cast %79 : vector<1x8x1xf32> to vector<8x1xf32>
    %81 = arith.mulf %75, %80 : vector<8x1xf32>
    %cst_48 = arith.constant dense<0.000000e+00> : vector<8xf32>
    %82 = vector.multi_reduction <add>, %78, %cst_48 [1] : vector<8x16xf32> to vector<8xf32>
    %83 = vector.shape_cast %82 : vector<8xf32> to vector<8x1xf32>
    %84 = arith.addf %81, %83 : vector<8x1xf32>
    %c1_49 = arith.constant 1 : index
    %c0_50 = arith.constant 0 : index
    %c0_51 = arith.constant 0 : index
    %85 = vector.load %arg27[%c1_49, %c0_50, %c0_51] : memref<4x8x1xf32, #tpu.memory_space<vmem>>, vector<1x8x1xf32>
    %86 = vector.shape_cast %85 : vector<1x8x1xf32> to vector<8x1xf32>
    %87 = vector.shape_cast %84 : vector<8x1xf32> to vector<1x8x1xf32>
    tpu.vector_store %arg27[%c1_49, %c0_50, %c0_51], %87 {strides = array<i32>} : memref<4x8x1xf32, #tpu.memory_space<vmem>>, vector<1x8x1xf32>,
    %c1_52 = arith.constant 1 : index
    %c0_53 = arith.constant 0 : index
    %c0_54 = arith.constant 0 : index
    %88 = vector.load %arg28[%c1_52, %c0_53, %c0_54] : memref<4x8x8xf32, #tpu.memory_space<vmem>>, vector<1x8x8xf32>
    %89 = vector.shape_cast %88 : vector<1x8x8xf32> to vector<8x8xf32>
    %90 = vector.broadcast %75 : vector<8x1xf32> to vector<8x8xf32>
    %91 = arith.mulf %90, %89 : vector<8x8xf32>
    %92 = vector.extract_strided_slice %16 {offsets = [0, 8], sizes = [16, 8], strides = [1, 1]} : vector<16x32xf32> to vector<16x8xf32>
    %93 = arith.truncf %78 : vector<8x16xf32> to vector<8x16xbf16>
    %94 = arith.truncf %92 : vector<16x8xf32> to vector<16x8xbf16>
    %cst_55 = arith.constant dense<0.000000e+00> : vector<8x8xf32>
    %95 = tpu.matmul %93, %94, %cst_55 {dimension_numbers = #tpu.dot_dimension_numbers<[1], [0], [0], [1], [0, 0, 1, 1], [], []>} : vector<8x16xbf16>, vector<16x8xbf16>, vector<8x8xf32> -> vector<8x8xf32>
    %96 = arith.addf %91, %95 : vector<8x8xf32>
    %c1_56 = arith.constant 1 : index
    %c0_57 = arith.constant 0 : index
    %c0_58 = arith.constant 0 : index
    %97 = vector.load %arg28[%c1_56, %c0_57, %c0_58] : memref<4x8x8xf32, #tpu.memory_space<vmem>>, vector<1x8x8xf32>
    %98 = vector.shape_cast %97 : vector<1x8x8xf32> to vector<8x8xf32>
    %99 = vector.shape_cast %96 : vector<8x8xf32> to vector<1x8x8xf32>
    tpu.vector_store %arg28[%c1_56, %c0_57, %c0_58], %99 {strides = array<i32>} : memref<4x8x8xf32, #tpu.memory_space<vmem>>, vector<1x8x8xf32>,
    %c1_59 = arith.constant 1 : index
    %c0_60 = arith.constant 0 : index
    %c0_61 = arith.constant 0 : index
    %100 = vector.load %arg26[%c1_59, %c0_60, %c0_61] : memref<4x8x1xf32, #tpu.memory_space<vmem>>, vector<1x8x1xf32>
    %101 = vector.shape_cast %100 : vector<1x8x1xf32> to vector<8x1xf32>
    %102 = vector.shape_cast %73 : vector<8x1xf32> to vector<1x8x1xf32>
    tpu.vector_store %arg26[%c1_59, %c0_60, %c0_61], %102 {strides = array<i32>} : memref<4x8x1xf32, #tpu.memory_space<vmem>>, vector<1x8x1xf32>,
    %103 = vector.extract_strided_slice %22 {offsets = [0, 16], sizes = [8, 8], strides = [1, 1]} : vector<8x32xf32> to vector<8x8xf32>
    %104 = vector.extract_strided_slice %11 {offsets = [0, 16], sizes = [16, 8], strides = [1, 1]} : vector<16x32xf32> to vector<16x8xf32>
    %105 = arith.truncf %103 : vector<8x8xf32> to vector<8x8xbf16>
    %106 = arith.truncf %104 : vector<16x8xf32> to vector<16x8xbf16>
    %cst_62 = arith.constant dense<0.000000e+00> : vector<8x16xf32>
    %107 = tpu.matmul %105, %106, %cst_62 {dimension_numbers = #tpu.dot_dimension_numbers<[1], [1], [0], [0], [0, 0, 1, 0], [], []>} : vector<8x8xbf16>, vector<16x8xbf16>, vector<8x16xf32> -> vector<8x16xf32>
    %108 = arith.addf %107, %21 : vector<8x16xf32>
    %c2 = arith.constant 2 : index
    %c0_63 = arith.constant 0 : index
    %c0_64 = arith.constant 0 : index
    %109 = vector.load %arg26[%c2, %c0_63, %c0_64] : memref<4x8x1xf32, #tpu.memory_space<vmem>>, vector<1x8x1xf32>
    %110 = vector.shape_cast %109 : vector<1x8x1xf32> to vector<8x1xf32>
    %cst_65 = arith.constant dense<0xFF800000> : vector<8xf32>
    %111 = vector.multi_reduction <maximumf>, %108, %cst_65 [1] : vector<8x16xf32> to vector<8xf32>
    %112 = vector.shape_cast %111 : vector<8xf32> to vector<8x1xf32>
    %113 = arith.maximumf %110, %112 : vector<8x1xf32>
    %114 = arith.subf %110, %113 : vector<8x1xf32>
    %115 = math.exp %114 : vector<8x1xf32>
    %116 = vector.broadcast %113 : vector<8x1xf32> to vector<8x16xf32>
    %117 = arith.subf %108, %116 : vector<8x16xf32>
    %118 = math.exp %117 : vector<8x16xf32>
    %c2_66 = arith.constant 2 : index
    %c0_67 = arith.constant 0 : index
    %c0_68 = arith.constant 0 : index
    %119 = vector.load %arg27[%c2_66, %c0_67, %c0_68] : memref<4x8x1xf32, #tpu.memory_space<vmem>>, vector<1x8x1xf32>
    %120 = vector.shape_cast %119 : vector<1x8x1xf32> to vector<8x1xf32>
    %121 = arith.mulf %115, %120 : vector<8x1xf32>
    %cst_69 = arith.constant dense<0.000000e+00> : vector<8xf32>
    %122 = vector.multi_reduction <add>, %118, %cst_69 [1] : vector<8x16xf32> to vector<8xf32>
    %123 = vector.shape_cast %122 : vector<8xf32> to vector<8x1xf32>
    %124 = arith.addf %121, %123 : vector<8x1xf32>
    %c2_70 = arith.constant 2 : index
    %c0_71 = arith.constant 0 : index
    %c0_72 = arith.constant 0 : index
    %125 = vector.load %arg27[%c2_70, %c0_71, %c0_72] : memref<4x8x1xf32, #tpu.memory_space<vmem>>, vector<1x8x1xf32>
    %126 = vector.shape_cast %125 : vector<1x8x1xf32> to vector<8x1xf32>
    %127 = vector.shape_cast %124 : vector<8x1xf32> to vector<1x8x1xf32>
    tpu.vector_store %arg27[%c2_70, %c0_71, %c0_72], %127 {strides = array<i32>} : memref<4x8x1xf32, #tpu.memory_space<vmem>>, vector<1x8x1xf32>,
    %c2_73 = arith.constant 2 : index
    %c0_74 = arith.constant 0 : index
    %c0_75 = arith.constant 0 : index
    %128 = vector.load %arg28[%c2_73, %c0_74, %c0_75] : memref<4x8x8xf32, #tpu.memory_space<vmem>>, vector<1x8x8xf32>
    %129 = vector.shape_cast %128 : vector<1x8x8xf32> to vector<8x8xf32>
    %130 = vector.broadcast %115 : vector<8x1xf32> to vector<8x8xf32>
    %131 = arith.mulf %130, %129 : vector<8x8xf32>
    %132 = vector.extract_strided_slice %16 {offsets = [0, 16], sizes = [16, 8], strides = [1, 1]} : vector<16x32xf32> to vector<16x8xf32>
    %133 = arith.truncf %118 : vector<8x16xf32> to vector<8x16xbf16>
    %134 = arith.truncf %132 : vector<16x8xf32> to vector<16x8xbf16>
    %cst_76 = arith.constant dense<0.000000e+00> : vector<8x8xf32>
    %135 = tpu.matmul %133, %134, %cst_76 {dimension_numbers = #tpu.dot_dimension_numbers<[1], [0], [0], [1], [0, 0, 1, 1], [], []>} : vector<8x16xbf16>, vector<16x8xbf16>, vector<8x8xf32> -> vector<8x8xf32>
    %136 = arith.addf %131, %135 : vector<8x8xf32>
    %c2_77 = arith.constant 2 : index
    %c0_78 = arith.constant 0 : index
    %c0_79 = arith.constant 0 : index
    %137 = vector.load %arg28[%c2_77, %c0_78, %c0_79] : memref<4x8x8xf32, #tpu.memory_space<vmem>>, vector<1x8x8xf32>
    %138 = vector.shape_cast %137 : vector<1x8x8xf32> to vector<8x8xf32>
    %139 = vector.shape_cast %136 : vector<8x8xf32> to vector<1x8x8xf32>
    tpu.vector_store %arg28[%c2_77, %c0_78, %c0_79], %139 {strides = array<i32>} : memref<4x8x8xf32, #tpu.memory_space<vmem>>, vector<1x8x8xf32>,
    %c2_80 = arith.constant 2 : index
    %c0_81 = arith.constant 0 : index
    %c0_82 = arith.constant 0 : index
    %140 = vector.load %arg26[%c2_80, %c0_81, %c0_82] : memref<4x8x1xf32, #tpu.memory_space<vmem>>, vector<1x8x1xf32>
    %141 = vector.shape_cast %140 : vector<1x8x1xf32> to vector<8x1xf32>
    %142 = vector.shape_cast %113 : vector<8x1xf32> to vector<1x8x1xf32>
    tpu.vector_store %arg26[%c2_80, %c0_81, %c0_82], %142 {strides = array<i32>} : memref<4x8x1xf32, #tpu.memory_space<vmem>>, vector<1x8x1xf32>,
    %143 = vector.extract_strided_slice %22 {offsets = [0, 24], sizes = [8, 8], strides = [1, 1]} : vector<8x32xf32> to vector<8x8xf32>
    %144 = vector.extract_strided_slice %11 {offsets = [0, 24], sizes = [16, 8], strides = [1, 1]} : vector<16x32xf32> to vector<16x8xf32>
    %145 = arith.truncf %143 : vector<8x8xf32> to vector<8x8xbf16>
    %146 = arith.truncf %144 : vector<16x8xf32> to vector<16x8xbf16>
    %cst_83 = arith.constant dense<0.000000e+00> : vector<8x16xf32>
    %147 = tpu.matmul %145, %146, %cst_83 {dimension_numbers = #tpu.dot_dimension_numbers<[1], [1], [0], [0], [0, 0, 1, 0], [], []>} : vector<8x8xbf16>, vector<16x8xbf16>, vector<8x16xf32> -> vector<8x16xf32>
    %148 = arith.addf %147, %21 : vector<8x16xf32>
    %c3 = arith.constant 3 : index
    %c0_84 = arith.constant 0 : index
    %c0_85 = arith.constant 0 : index
    %149 = vector.load %arg26[%c3, %c0_84, %c0_85] : memref<4x8x1xf32, #tpu.memory_space<vmem>>, vector<1x8x1xf32>
    %150 = vector.shape_cast %149 : vector<1x8x1xf32> to vector<8x1xf32>
    %cst_86 = arith.constant dense<0xFF800000> : vector<8xf32>
    %151 = vector.multi_reduction <maximumf>, %148, %cst_86 [1] : vector<8x16xf32> to vector<8xf32>
    %152 = vector.shape_cast %151 : vector<8xf32> to vector<8x1xf32>
    %153 = arith.maximumf %150, %152 : vector<8x1xf32>
    %154 = arith.subf %150, %153 : vector<8x1xf32>
    %155 = math.exp %154 : vector<8x1xf32>
    %156 = vector.broadcast %153 : vector<8x1xf32> to vector<8x16xf32>
    %157 = arith.subf %148, %156 : vector<8x16xf32>
    %158 = math.exp %157 : vector<8x16xf32>
    %c3_87 = arith.constant 3 : index
    %c0_88 = arith.constant 0 : index
    %c0_89 = arith.constant 0 : index
    %159 = vector.load %arg27[%c3_87, %c0_88, %c0_89] : memref<4x8x1xf32, #tpu.memory_space<vmem>>, vector<1x8x1xf32>
    %160 = vector.shape_cast %159 : vector<1x8x1xf32> to vector<8x1xf32>
    %161 = arith.mulf %155, %160 : vector<8x1xf32>
    %cst_90 = arith.constant dense<0.000000e+00> : vector<8xf32>
    %162 = vector.multi_reduction <add>, %158, %cst_90 [1] : vector<8x16xf32> to vector<8xf32>
    %163 = vector.shape_cast %162 : vector<8xf32> to vector<8x1xf32>
    %164 = arith.addf %161, %163 : vector<8x1xf32>
    %c3_91 = arith.constant 3 : index
    %c0_92 = arith.constant 0 : index
    %c0_93 = arith.constant 0 : index
    %165 = vector.load %arg27[%c3_91, %c0_92, %c0_93] : memref<4x8x1xf32, #tpu.memory_space<vmem>>, vector<1x8x1xf32>
    %166 = vector.shape_cast %165 : vector<1x8x1xf32> to vector<8x1xf32>
    %167 = vector.shape_cast %164 : vector<8x1xf32> to vector<1x8x1xf32>
    tpu.vector_store %arg27[%c3_91, %c0_92, %c0_93], %167 {strides = array<i32>} : memref<4x8x1xf32, #tpu.memory_space<vmem>>, vector<1x8x1xf32>,
    %c3_94 = arith.constant 3 : index
    %c0_95 = arith.constant 0 : index
    %c0_96 = arith.constant 0 : index
    %168 = vector.load %arg28[%c3_94, %c0_95, %c0_96] : memref<4x8x8xf32, #tpu.memory_space<vmem>>, vector<1x8x8xf32>
    %169 = vector.shape_cast %168 : vector<1x8x8xf32> to vector<8x8xf32>
    %170 = vector.broadcast %155 : vector<8x1xf32> to vector<8x8xf32>
    %171 = arith.mulf %170, %169 : vector<8x8xf32>
    %172 = vector.extract_strided_slice %16 {offsets = [0, 24], sizes = [16, 8], strides = [1, 1]} : vector<16x32xf32> to vector<16x8xf32>
    %173 = arith.truncf %158 : vector<8x16xf32> to vector<8x16xbf16>
    %174 = arith.truncf %172 : vector<16x8xf32> to vector<16x8xbf16>
    %cst_97 = arith.constant dense<0.000000e+00> : vector<8x8xf32>
    %175 = tpu.matmul %173, %174, %cst_97 {dimension_numbers = #tpu.dot_dimension_numbers<[1], [0], [0], [1], [0, 0, 1, 1], [], []>} : vector<8x16xbf16>, vector<16x8xbf16>, vector<8x8xf32> -> vector<8x8xf32>
    %176 = arith.addf %171, %175 : vector<8x8xf32>
    %c3_98 = arith.constant 3 : index
    %c0_99 = arith.constant 0 : index
    %c0_100 = arith.constant 0 : index
    %177 = vector.load %arg28[%c3_98, %c0_99, %c0_100] : memref<4x8x8xf32, #tpu.memory_space<vmem>>, vector<1x8x8xf32>
    %178 = vector.shape_cast %177 : vector<1x8x8xf32> to vector<8x8xf32>
    %179 = vector.shape_cast %176 : vector<8x8xf32> to vector<1x8x8xf32>
    tpu.vector_store %arg28[%c3_98, %c0_99, %c0_100], %179 {strides = array<i32>} : memref<4x8x8xf32, #tpu.memory_space<vmem>>, vector<1x8x8xf32>,
    %c3_101 = arith.constant 3 : index
    %c0_102 = arith.constant 0 : index
    %c0_103 = arith.constant 0 : index
    %180 = vector.load %arg26[%c3_101, %c0_102, %c0_103] : memref<4x8x1xf32, #tpu.memory_space<vmem>>, vector<1x8x1xf32>
    %181 = vector.shape_cast %180 : vector<1x8x1xf32> to vector<8x1xf32>
    %182 = vector.shape_cast %153 : vector<8x1xf32> to vector<1x8x1xf32>
    tpu.vector_store %arg26[%c3_101, %c0_102, %c0_103], %182 {strides = array<i32>} : memref<4x8x1xf32, #tpu.memory_space<vmem>>, vector<1x8x1xf32>,
    %c0_i32_104 = arith.constant 0 : i32
    %183 = arith.cmpi eq, %arg1, %c0_i32_104 : i32
    %184 = arith.extui %183 : i1 to i32
    %c0_i32_105 = arith.constant 0 : i32
    %185 = arith.cmpi ne, %184, %c0_i32_105 : i32
    scf.if %185 {
      %c0_106 = arith.constant 0 : index
      %c0_107 = arith.constant 0 : index
      %c0_108 = arith.constant 0 : index
      %186 = vector.load %arg2[%c0_106, %c0_107, %c0_108] : memref<1x8x32xf32, #tpu.memory_space<vmem>>, vector<1x8x32xf32>
      %187 = vector.shape_cast %186 : vector<1x8x32xf32> to vector<8x32xf32>
      %c0_109 = arith.constant 0 : index
      %c0_110 = arith.constant 0 : index
      %c0_111 = arith.constant 0 : index
      %188 = vector.load %arg28[%c0_109, %c0_110, %c0_111] : memref<4x8x8xf32, #tpu.memory_space<vmem>>, vector<1x8x8xf32>
      %189 = vector.shape_cast %188 : vector<1x8x8xf32> to vector<8x8xf32>
      %c0_112 = arith.constant 0 : index
      %c0_113 = arith.constant 0 : index
      %c0_114 = arith.constant 0 : index
      %190 = vector.load %arg27[%c0_112, %c0_113, %c0_114] : memref<4x8x1xf32, #tpu.memory_space<vmem>>, vector<1x8x1xf32>
      %191 = vector.shape_cast %190 : vector<1x8x1xf32> to vector<8x1xf32>
      %192 = tpu.reciprocal %191 {approx = true} : vector<8x1xf32> -> vector<8x1xf32>
      %193 = vector.broadcast %192 : vector<8x1xf32> to vector<8x8xf32>
      %194 = arith.mulf %189, %193 : vector<8x8xf32>
      %c1_115 = arith.constant 1 : index
      %c0_116 = arith.constant 0 : index
      %c0_117 = arith.constant 0 : index
      %195 = vector.load %arg28[%c1_115, %c0_116, %c0_117] : memref<4x8x8xf32, #tpu.memory_space<vmem>>, vector<1x8x8xf32>
      %196 = vector.shape_cast %195 : vector<1x8x8xf32> to vector<8x8xf32>
      %c1_118 = arith.constant 1 : index
      %c0_119 = arith.constant 0 : index
      %c0_120 = arith.constant 0 : index
      %197 = vector.load %arg27[%c1_118, %c0_119, %c0_120] : memref<4x8x1xf32, #tpu.memory_space<vmem>>, vector<1x8x1xf32>
      %198 = vector.shape_cast %197 : vector<1x8x1xf32> to vector<8x1xf32>
      %199 = tpu.reciprocal %198 {approx = true} : vector<8x1xf32> -> vector<8x1xf32>
      %200 = vector.broadcast %199 : vector<8x1xf32> to vector<8x8xf32>
      %201 = arith.mulf %196, %200 : vector<8x8xf32>
      %c2_121 = arith.constant 2 : index
      %c0_122 = arith.constant 0 : index
      %c0_123 = arith.constant 0 : index
      %202 = vector.load %arg28[%c2_121, %c0_122, %c0_123] : memref<4x8x8xf32, #tpu.memory_space<vmem>>, vector<1x8x8xf32>
      %203 = vector.shape_cast %202 : vector<1x8x8xf32> to vector<8x8xf32>
      %c2_124 = arith.constant 2 : index
      %c0_125 = arith.constant 0 : index
      %c0_126 = arith.constant 0 : index
      %204 = vector.load %arg27[%c2_124, %c0_125, %c0_126] : memref<4x8x1xf32, #tpu.memory_space<vmem>>, vector<1x8x1xf32>
      %205 = vector.shape_cast %204 : vector<1x8x1xf32> to vector<8x1xf32>
      %206 = tpu.reciprocal %205 {approx = true} : vector<8x1xf32> -> vector<8x1xf32>
      %207 = vector.broadcast %206 : vector<8x1xf32> to vector<8x8xf32>
      %208 = arith.mulf %203, %207 : vector<8x8xf32>
      %c3_127 = arith.constant 3 : index
      %c0_128 = arith.constant 0 : index
      %c0_129 = arith.constant 0 : index
      %209 = vector.load %arg28[%c3_127, %c0_128, %c0_129] : memref<4x8x8xf32, #tpu.memory_space<vmem>>, vector<1x8x8xf32>
      %210 = vector.shape_cast %209 : vector<1x8x8xf32> to vector<8x8xf32>
      %c3_130 = arith.constant 3 : index
      %c0_131 = arith.constant 0 : index
      %c0_132 = arith.constant 0 : index
      %211 = vector.load %arg27[%c3_130, %c0_131, %c0_132] : memref<4x8x1xf32, #tpu.memory_space<vmem>>, vector<1x8x1xf32>
      %212 = vector.shape_cast %211 : vector<1x8x1xf32> to vector<8x1xf32>
      %213 = tpu.reciprocal %212 {approx = true} : vector<8x1xf32> -> vector<8x1xf32>
      %214 = vector.broadcast %213 : vector<8x1xf32> to vector<8x8xf32>
      %215 = arith.mulf %210, %214 : vector<8x8xf32>
      %216 = tpu.concatenate %194, %201, %208, %215 in 1 : vector<8x8xf32>, vector<8x8xf32>, vector<8x8xf32>, vector<8x8xf32> -> vector<8x32xf32>
      %c0_133 = arith.constant 0 : index
      %c0_134 = arith.constant 0 : index
      %217 = vector.load %arg8[%c0_133, %c0_134] : memref<32x32xbf16, #tpu.memory_space<vmem>>, vector<32x32xbf16>
      %218 = arith.truncf %216 : vector<8x32xf32> to vector<8x32xbf16>
      %cst_135 = arith.constant dense<0.000000e+00> : vector<8x32xf32>
      %219 = tpu.matmul %218, %217, %cst_135 {dimension_numbers = #tpu.dot_dimension_numbers<[1], [0], [0], [1], [0, 0, 1, 1], [], []>} : vector<8x32xbf16>, vector<32x32xbf16>, vector<8x32xf32> -> vector<8x32xf32>
      %c0_136 = arith.constant 0 : index
      %c0_137 = arith.constant 0 : index
      %220 = vector.load %arg9[%c0_136, %c0_137] : memref<1x32xf32, #tpu.memory_space<vmem>>, vector<1x32xf32>
      %221 = vector.broadcast %220 : vector<1x32xf32> to vector<8x32xf32>
      %222 = arith.addf %219, %221 : vector<8x32xf32>
      %223 = arith.addf %222, %187 : vector<8x32xf32>
      %c0_138 = arith.constant 0 : index
      %c0_139 = arith.constant 0 : index
      %224 = vector.load %arg10[%c0_138, %c0_139] : memref<1x32xf32, #tpu.memory_space<vmem>>, vector<1x32xf32>
      %c0_140 = arith.constant 0 : index
      %c0_141 = arith.constant 0 : index
      %225 = vector.load %arg11[%c0_140, %c0_141] : memref<1x32xf32, #tpu.memory_space<vmem>>, vector<1x32xf32>
      %cst_142 = arith.constant dense<0.000000e+00> : vector<8xf32>
      %226 = vector.multi_reduction <add>, %223, %cst_142 [1] : vector<8x32xf32> to vector<8xf32>
      %227 = vector.shape_cast %226 : vector<8xf32> to vector<8x1xf32>
      %cst_143 = arith.constant 3.200000e+01 : f32
      %228 = vector.broadcast %cst_143 : f32 to vector<8x1xf32>
      %229 = arith.divf %227, %228 : vector<8x1xf32>
      %230 = vector.broadcast %229 : vector<8x1xf32> to vector<8x32xf32>
      %231 = arith.subf %223, %230 : vector<8x32xf32>
      %232 = arith.mulf %231, %231 : vector<8x32xf32>
      %cst_144 = arith.constant dense<0.000000e+00> : vector<8xf32>
      %233 = vector.multi_reduction <add>, %232, %cst_144 [1] : vector<8x32xf32> to vector<8xf32>
      %234 = vector.shape_cast %233 : vector<8xf32> to vector<8x1xf32>
      %cst_145 = arith.constant 3.200000e+01 : f32
      %235 = vector.broadcast %cst_145 : f32 to vector<8x1xf32>
      %236 = arith.divf %234, %235 : vector<8x1xf32>
      %237 = vector.broadcast %229 : vector<8x1xf32> to vector<8x32xf32>
      %238 = arith.subf %223, %237 : vector<8x32xf32>
      %cst_146 = arith.constant 9.99999974E-6 : f32
      %239 = vector.broadcast %cst_146 : f32 to vector<8x1xf32>
      %240 = arith.addf %236, %239 : vector<8x1xf32>
      %241 = math.rsqrt %240 : vector<8x1xf32>
      %242 = vector.broadcast %241 : vector<8x1xf32> to vector<8x32xf32>
      %243 = arith.mulf %238, %242 : vector<8x32xf32>
      %244 = vector.broadcast %224 : vector<1x32xf32> to vector<8x32xf32>
      %245 = arith.mulf %243, %244 : vector<8x32xf32>
      %246 = vector.broadcast %225 : vector<1x32xf32> to vector<8x32xf32>
      %247 = arith.addf %245, %246 : vector<8x32xf32>
      %c0_147 = arith.constant 0 : index
      %c0_148 = arith.constant 0 : index
      %248 = vector.load %arg12[%c0_147, %c0_148] : memref<32x96xbf16, #tpu.memory_space<vmem>>, vector<32x96xbf16>
      %249 = arith.truncf %247 : vector<8x32xf32> to vector<8x32xbf16>
      %cst_149 = arith.constant dense<0.000000e+00> : vector<8x96xf32>
      %250 = tpu.matmul %249, %248, %cst_149 {dimension_numbers = #tpu.dot_dimension_numbers<[1], [0], [0], [1], [0, 0, 1, 1], [], []>} : vector<8x32xbf16>, vector<32x96xbf16>, vector<8x96xf32> -> vector<8x96xf32>
      %c0_150 = arith.constant 0 : index
      %c0_151 = arith.constant 0 : index
      %251 = vector.load %arg13[%c0_150, %c0_151] : memref<1x96xf32, #tpu.memory_space<vmem>>, vector<1x96xf32>
      %252 = vector.broadcast %251 : vector<1x96xf32> to vector<8x96xf32>
      %253 = arith.addf %250, %252 : vector<8x96xf32>
      %254 = vector.extract_strided_slice %253 {offsets = [0, 0], sizes = [8, 32], strides = [1, 1]} : vector<8x96xf32> to vector<8x32xf32>
      %255 = vector.extract_strided_slice %253 {offsets = [0, 32], sizes = [8, 32], strides = [1, 1]} : vector<8x96xf32> to vector<8x32xf32>
      %256 = vector.extract_strided_slice %253 {offsets = [0, 64], sizes = [8, 32], strides = [1, 1]} : vector<8x96xf32> to vector<8x32xf32>
      %257 = vector.extract_strided_slice %254 {offsets = [0, 0], sizes = [8, 8], strides = [1, 1]} : vector<8x32xf32> to vector<8x8xf32>
      %258 = vector.extract_strided_slice %255 {offsets = [0, 0], sizes = [8, 8], strides = [1, 1]} : vector<8x32xf32> to vector<8x8xf32>
      %259 = arith.truncf %257 : vector<8x8xf32> to vector<8x8xbf16>
      %260 = arith.truncf %258 : vector<8x8xf32> to vector<8x8xbf16>
      %cst_152 = arith.constant dense<0.000000e+00> : vector<8x8xf32>
      %261 = tpu.matmul %259, %260, %cst_152 {dimension_numbers = #tpu.dot_dimension_numbers<[1], [1], [0], [0], [0, 0, 1, 0], [], []>} : vector<8x8xbf16>, vector<8x8xbf16>, vector<8x8xf32> -> vector<8x8xf32>
      %cst_153 = arith.constant dense<0xFF800000> : vector<8xf32>
      %262 = vector.multi_reduction <maximumf>, %261, %cst_153 [1] : vector<8x8xf32> to vector<8xf32>
      %263 = vector.shape_cast %262 : vector<8xf32> to vector<8x1xf32>
      %264 = vector.broadcast %263 : vector<8x1xf32> to vector<8x8xf32>
      %265 = arith.subf %261, %264 : vector<8x8xf32>
      %266 = math.exp %265 : vector<8x8xf32>
      %cst_154 = arith.constant dense<0.000000e+00> : vector<8xf32>
      %267 = vector.multi_reduction <add>, %266, %cst_154 [1] : vector<8x8xf32> to vector<8xf32>
      %268 = vector.shape_cast %267 : vector<8xf32> to vector<8x1xf32>
      %269 = tpu.reciprocal %268 {approx = true} : vector<8x1xf32> -> vector<8x1xf32>
      %270 = vector.extract_strided_slice %256 {offsets = [0, 0], sizes = [8, 8], strides = [1, 1]} : vector<8x32xf32> to vector<8x8xf32>
      %271 = arith.truncf %266 : vector<8x8xf32> to vector<8x8xbf16>
      %272 = arith.truncf %270 : vector<8x8xf32> to vector<8x8xbf16>
      %cst_155 = arith.constant dense<0.000000e+00> : vector<8x8xf32>
      %273 = tpu.matmul %271, %272, %cst_155 {dimension_numbers = #tpu.dot_dimension_numbers<[1], [0], [0], [1], [0, 0, 1, 1], [], []>} : vector<8x8xbf16>, vector<8x8xbf16>, vector<8x8xf32> -> vector<8x8xf32>
      %274 = vector.broadcast %269 : vector<8x1xf32> to vector<8x8xf32>
      %275 = arith.mulf %273, %274 : vector<8x8xf32>
      %276 = vector.extract_strided_slice %254 {offsets = [0, 8], sizes = [8, 8], strides = [1, 1]} : vector<8x32xf32> to vector<8x8xf32>
      %277 = vector.extract_strided_slice %255 {offsets = [0, 8], sizes = [8, 8], strides = [1, 1]} : vector<8x32xf32> to vector<8x8xf32>
      %278 = arith.truncf %276 : vector<8x8xf32> to vector<8x8xbf16>
      %279 = arith.truncf %277 : vector<8x8xf32> to vector<8x8xbf16>
      %cst_156 = arith.constant dense<0.000000e+00> : vector<8x8xf32>
      %280 = tpu.matmul %278, %279, %cst_156 {dimension_numbers = #tpu.dot_dimension_numbers<[1], [1], [0], [0], [0, 0, 1, 0], [], []>} : vector<8x8xbf16>, vector<8x8xbf16>, vector<8x8xf32> -> vector<8x8xf32>
      %cst_157 = arith.constant dense<0xFF800000> : vector<8xf32>
      %281 = vector.multi_reduction <maximumf>, %280, %cst_157 [1] : vector<8x8xf32> to vector<8xf32>
      %282 = vector.shape_cast %281 : vector<8xf32> to vector<8x1xf32>
      %283 = vector.broadcast %282 : vector<8x1xf32> to vector<8x8xf32>
      %284 = arith.subf %280, %283 : vector<8x8xf32>
      %285 = math.exp %284 : vector<8x8xf32>
      %cst_158 = arith.constant dense<0.000000e+00> : vector<8xf32>
      %286 = vector.multi_reduction <add>, %285, %cst_158 [1] : vector<8x8xf32> to vector<8xf32>
      %287 = vector.shape_cast %286 : vector<8xf32> to vector<8x1xf32>
      %288 = tpu.reciprocal %287 {approx = true} : vector<8x1xf32> -> vector<8x1xf32>
      %289 = vector.extract_strided_slice %256 {offsets = [0, 8], sizes = [8, 8], strides = [1, 1]} : vector<8x32xf32> to vector<8x8xf32>
      %290 = arith.truncf %285 : vector<8x8xf32> to vector<8x8xbf16>
      %291 = arith.truncf %289 : vector<8x8xf32> to vector<8x8xbf16>
      %cst_159 = arith.constant dense<0.000000e+00> : vector<8x8xf32>
      %292 = tpu.matmul %290, %291, %cst_159 {dimension_numbers = #tpu.dot_dimension_numbers<[1], [0], [0], [1], [0, 0, 1, 1], [], []>} : vector<8x8xbf16>, vector<8x8xbf16>, vector<8x8xf32> -> vector<8x8xf32>
      %293 = vector.broadcast %288 : vector<8x1xf32> to vector<8x8xf32>
      %294 = arith.mulf %292, %293 : vector<8x8xf32>
      %295 = vector.extract_strided_slice %254 {offsets = [0, 16], sizes = [8, 8], strides = [1, 1]} : vector<8x32xf32> to vector<8x8xf32>
      %296 = vector.extract_strided_slice %255 {offsets = [0, 16], sizes = [8, 8], strides = [1, 1]} : vector<8x32xf32> to vector<8x8xf32>
      %297 = arith.truncf %295 : vector<8x8xf32> to vector<8x8xbf16>
      %298 = arith.truncf %296 : vector<8x8xf32> to vector<8x8xbf16>
      %cst_160 = arith.constant dense<0.000000e+00> : vector<8x8xf32>
      %299 = tpu.matmul %297, %298, %cst_160 {dimension_numbers = #tpu.dot_dimension_numbers<[1], [1], [0], [0], [0, 0, 1, 0], [], []>} : vector<8x8xbf16>, vector<8x8xbf16>, vector<8x8xf32> -> vector<8x8xf32>
      %cst_161 = arith.constant dense<0xFF800000> : vector<8xf32>
      %300 = vector.multi_reduction <maximumf>, %299, %cst_161 [1] : vector<8x8xf32> to vector<8xf32>
      %301 = vector.shape_cast %300 : vector<8xf32> to vector<8x1xf32>
      %302 = vector.broadcast %301 : vector<8x1xf32> to vector<8x8xf32>
      %303 = arith.subf %299, %302 : vector<8x8xf32>
      %304 = math.exp %303 : vector<8x8xf32>
      %cst_162 = arith.constant dense<0.000000e+00> : vector<8xf32>
      %305 = vector.multi_reduction <add>, %304, %cst_162 [1] : vector<8x8xf32> to vector<8xf32>
      %306 = vector.shape_cast %305 : vector<8xf32> to vector<8x1xf32>
      %307 = tpu.reciprocal %306 {approx = true} : vector<8x1xf32> -> vector<8x1xf32>
      %308 = vector.extract_strided_slice %256 {offsets = [0, 16], sizes = [8, 8], strides = [1, 1]} : vector<8x32xf32> to vector<8x8xf32>
      %309 = arith.truncf %304 : vector<8x8xf32> to vector<8x8xbf16>
      %310 = arith.truncf %308 : vector<8x8xf32> to vector<8x8xbf16>
      %cst_163 = arith.constant dense<0.000000e+00> : vector<8x8xf32>
      %311 = tpu.matmul %309, %310, %cst_163 {dimension_numbers = #tpu.dot_dimension_numbers<[1], [0], [0], [1], [0, 0, 1, 1], [], []>} : vector<8x8xbf16>, vector<8x8xbf16>, vector<8x8xf32> -> vector<8x8xf32>
      %312 = vector.broadcast %307 : vector<8x1xf32> to vector<8x8xf32>
      %313 = arith.mulf %311, %312 : vector<8x8xf32>
      %314 = vector.extract_strided_slice %254 {offsets = [0, 24], sizes = [8, 8], strides = [1, 1]} : vector<8x32xf32> to vector<8x8xf32>
      %315 = vector.extract_strided_slice %255 {offsets = [0, 24], sizes = [8, 8], strides = [1, 1]} : vector<8x32xf32> to vector<8x8xf32>
      %316 = arith.truncf %314 : vector<8x8xf32> to vector<8x8xbf16>
      %317 = arith.truncf %315 : vector<8x8xf32> to vector<8x8xbf16>
      %cst_164 = arith.constant dense<0.000000e+00> : vector<8x8xf32>
      %318 = tpu.matmul %316, %317, %cst_164 {dimension_numbers = #tpu.dot_dimension_numbers<[1], [1], [0], [0], [0, 0, 1, 0], [], []>} : vector<8x8xbf16>, vector<8x8xbf16>, vector<8x8xf32> -> vector<8x8xf32>
      %cst_165 = arith.constant dense<0xFF800000> : vector<8xf32>
      %319 = vector.multi_reduction <maximumf>, %318, %cst_165 [1] : vector<8x8xf32> to vector<8xf32>
      %320 = vector.shape_cast %319 : vector<8xf32> to vector<8x1xf32>
      %321 = vector.broadcast %320 : vector<8x1xf32> to vector<8x8xf32>
      %322 = arith.subf %318, %321 : vector<8x8xf32>
      %323 = math.exp %322 : vector<8x8xf32>
      %cst_166 = arith.constant dense<0.000000e+00> : vector<8xf32>
      %324 = vector.multi_reduction <add>, %323, %cst_166 [1] : vector<8x8xf32> to vector<8xf32>
      %325 = vector.shape_cast %324 : vector<8xf32> to vector<8x1xf32>
      %326 = tpu.reciprocal %325 {approx = true} : vector<8x1xf32> -> vector<8x1xf32>
      %327 = vector.extract_strided_slice %256 {offsets = [0, 24], sizes = [8, 8], strides = [1, 1]} : vector<8x32xf32> to vector<8x8xf32>
      %328 = arith.truncf %323 : vector<8x8xf32> to vector<8x8xbf16>
      %329 = arith.truncf %327 : vector<8x8xf32> to vector<8x8xbf16>
      %cst_167 = arith.constant dense<0.000000e+00> : vector<8x8xf32>
      %330 = tpu.matmul %328, %329, %cst_167 {dimension_numbers = #tpu.dot_dimension_numbers<[1], [0], [0], [1], [0, 0, 1, 1], [], []>} : vector<8x8xbf16>, vector<8x8xbf16>, vector<8x8xf32> -> vector<8x8xf32>
      %331 = vector.broadcast %326 : vector<8x1xf32> to vector<8x8xf32>
      %332 = arith.mulf %330, %331 : vector<8x8xf32>
      %333 = tpu.concatenate %275, %294, %313, %332 in 1 : vector<8x8xf32>, vector<8x8xf32>, vector<8x8xf32>, vector<8x8xf32> -> vector<8x32xf32>
      %c0_168 = arith.constant 0 : index
      %c0_169 = arith.constant 0 : index
      %334 = vector.load %arg14[%c0_168, %c0_169] : memref<32x32xbf16, #tpu.memory_space<vmem>>, vector<32x32xbf16>
      %335 = arith.truncf %333 : vector<8x32xf32> to vector<8x32xbf16>
      %cst_170 = arith.constant dense<0.000000e+00> : vector<8x32xf32>
      %336 = tpu.matmul %335, %334, %cst_170 {dimension_numbers = #tpu.dot_dimension_numbers<[1], [0], [0], [1], [0, 0, 1, 1], [], []>} : vector<8x32xbf16>, vector<32x32xbf16>, vector<8x32xf32> -> vector<8x32xf32>
      %c0_171 = arith.constant 0 : index
      %c0_172 = arith.constant 0 : index
      %337 = vector.load %arg15[%c0_171, %c0_172] : memref<1x32xf32, #tpu.memory_space<vmem>>, vector<1x32xf32>
      %338 = vector.broadcast %337 : vector<1x32xf32> to vector<8x32xf32>
      %339 = arith.addf %336, %338 : vector<8x32xf32>
      %340 = arith.addf %339, %247 : vector<8x32xf32>
      %c0_173 = arith.constant 0 : index
      %c0_174 = arith.constant 0 : index
      %341 = vector.load %arg16[%c0_173, %c0_174] : memref<1x32xf32, #tpu.memory_space<vmem>>, vector<1x32xf32>
      %c0_175 = arith.constant 0 : index
      %c0_176 = arith.constant 0 : index
      %342 = vector.load %arg17[%c0_175, %c0_176] : memref<1x32xf32, #tpu.memory_space<vmem>>, vector<1x32xf32>
      %cst_177 = arith.constant dense<0.000000e+00> : vector<8xf32>
      %343 = vector.multi_reduction <add>, %340, %cst_177 [1] : vector<8x32xf32> to vector<8xf32>
      %344 = vector.shape_cast %343 : vector<8xf32> to vector<8x1xf32>
      %cst_178 = arith.constant 3.200000e+01 : f32
      %345 = vector.broadcast %cst_178 : f32 to vector<8x1xf32>
      %346 = arith.divf %344, %345 : vector<8x1xf32>
      %347 = vector.broadcast %346 : vector<8x1xf32> to vector<8x32xf32>
      %348 = arith.subf %340, %347 : vector<8x32xf32>
      %349 = arith.mulf %348, %348 : vector<8x32xf32>
      %cst_179 = arith.constant dense<0.000000e+00> : vector<8xf32>
      %350 = vector.multi_reduction <add>, %349, %cst_179 [1] : vector<8x32xf32> to vector<8xf32>
      %351 = vector.shape_cast %350 : vector<8xf32> to vector<8x1xf32>
      %cst_180 = arith.constant 3.200000e+01 : f32
      %352 = vector.broadcast %cst_180 : f32 to vector<8x1xf32>
      %353 = arith.divf %351, %352 : vector<8x1xf32>
      %354 = vector.broadcast %346 : vector<8x1xf32> to vector<8x32xf32>
      %355 = arith.subf %340, %354 : vector<8x32xf32>
      %cst_181 = arith.constant 9.99999974E-6 : f32
      %356 = vector.broadcast %cst_181 : f32 to vector<8x1xf32>
      %357 = arith.addf %353, %356 : vector<8x1xf32>
      %358 = math.rsqrt %357 : vector<8x1xf32>
      %359 = vector.broadcast %358 : vector<8x1xf32> to vector<8x32xf32>
      %360 = arith.mulf %355, %359 : vector<8x32xf32>
      %361 = vector.broadcast %341 : vector<1x32xf32> to vector<8x32xf32>
      %362 = arith.mulf %360, %361 : vector<8x32xf32>
      %363 = vector.broadcast %342 : vector<1x32xf32> to vector<8x32xf32>
      %364 = arith.addf %362, %363 : vector<8x32xf32>
      %c0_182 = arith.constant 0 : index
      %c0_183 = arith.constant 0 : index
      %365 = vector.load %arg18[%c0_182, %c0_183] : memref<32x64xbf16, #tpu.memory_space<vmem>>, vector<32x64xbf16>
      %366 = arith.truncf %364 : vector<8x32xf32> to vector<8x32xbf16>
      %cst_184 = arith.constant dense<0.000000e+00> : vector<8x64xf32>
      %367 = tpu.matmul %366, %365, %cst_184 {dimension_numbers = #tpu.dot_dimension_numbers<[1], [0], [0], [1], [0, 0, 1, 1], [], []>} : vector<8x32xbf16>, vector<32x64xbf16>, vector<8x64xf32> -> vector<8x64xf32>
      %c0_185 = arith.constant 0 : index
      %c0_186 = arith.constant 0 : index
      %368 = vector.load %arg19[%c0_185, %c0_186] : memref<1x64xf32, #tpu.memory_space<vmem>>, vector<1x64xf32>
      %369 = vector.broadcast %368 : vector<1x64xf32> to vector<8x64xf32>
      %370 = arith.addf %367, %369 : vector<8x64xf32>
      %cst_187 = arith.constant 0.000000e+00 : f32
      %371 = vector.broadcast %cst_187 : f32 to vector<8x64xf32>
      %372 = arith.maximumf %370, %371 : vector<8x64xf32>
      %c0_188 = arith.constant 0 : index
      %c0_189 = arith.constant 0 : index
      %373 = vector.load %arg20[%c0_188, %c0_189] : memref<64x32xbf16, #tpu.memory_space<vmem>>, vector<64x32xbf16>
      %374 = arith.truncf %372 : vector<8x64xf32> to vector<8x64xbf16>
      %cst_190 = arith.constant dense<0.000000e+00> : vector<8x32xf32>
      %375 = tpu.matmul %374, %373, %cst_190 {dimension_numbers = #tpu.dot_dimension_numbers<[1], [0], [0], [1], [0, 0, 1, 1], [], []>} : vector<8x64xbf16>, vector<64x32xbf16>, vector<8x32xf32> -> vector<8x32xf32>
      %c0_191 = arith.constant 0 : index
      %c0_192 = arith.constant 0 : index
      %376 = vector.load %arg21[%c0_191, %c0_192] : memref<1x32xf32, #tpu.memory_space<vmem>>, vector<1x32xf32>
      %377 = vector.broadcast %376 : vector<1x32xf32> to vector<8x32xf32>
      %378 = arith.addf %375, %377 : vector<8x32xf32>
      %379 = arith.addf %378, %364 : vector<8x32xf32>
      %c0_193 = arith.constant 0 : index
      %c0_194 = arith.constant 0 : index
      %380 = vector.load %arg22[%c0_193, %c0_194] : memref<1x32xf32, #tpu.memory_space<vmem>>, vector<1x32xf32>
      %c0_195 = arith.constant 0 : index
      %c0_196 = arith.constant 0 : index
      %381 = vector.load %arg23[%c0_195, %c0_196] : memref<1x32xf32, #tpu.memory_space<vmem>>, vector<1x32xf32>
      %cst_197 = arith.constant dense<0.000000e+00> : vector<8xf32>
      %382 = vector.multi_reduction <add>, %379, %cst_197 [1] : vector<8x32xf32> to vector<8xf32>
      %383 = vector.shape_cast %382 : vector<8xf32> to vector<8x1xf32>
      %cst_198 = arith.constant 3.200000e+01 : f32
      %384 = vector.broadcast %cst_198 : f32 to vector<8x1xf32>
      %385 = arith.divf %383, %384 : vector<8x1xf32>
      %386 = vector.broadcast %385 : vector<8x1xf32> to vector<8x32xf32>
      %387 = arith.subf %379, %386 : vector<8x32xf32>
      %388 = arith.mulf %387, %387 : vector<8x32xf32>
      %cst_199 = arith.constant dense<0.000000e+00> : vector<8xf32>
      %389 = vector.multi_reduction <add>, %388, %cst_199 [1] : vector<8x32xf32> to vector<8xf32>
      %390 = vector.shape_cast %389 : vector<8xf32> to vector<8x1xf32>
      %cst_200 = arith.constant 3.200000e+01 : f32
      %391 = vector.broadcast %cst_200 : f32 to vector<8x1xf32>
      %392 = arith.divf %390, %391 : vector<8x1xf32>
      %393 = vector.broadcast %385 : vector<8x1xf32> to vector<8x32xf32>
      %394 = arith.subf %379, %393 : vector<8x32xf32>
      %cst_201 = arith.constant 9.99999974E-6 : f32
      %395 = vector.broadcast %cst_201 : f32 to vector<8x1xf32>
      %396 = arith.addf %392, %395 : vector<8x1xf32>
      %397 = math.rsqrt %396 : vector<8x1xf32>
      %398 = vector.broadcast %397 : vector<8x1xf32> to vector<8x32xf32>
      %399 = arith.mulf %394, %398 : vector<8x32xf32>
      %400 = vector.broadcast %380 : vector<1x32xf32> to vector<8x32xf32>
      %401 = arith.mulf %399, %400 : vector<8x32xf32>
      %402 = vector.broadcast %381 : vector<1x32xf32> to vector<8x32xf32>
      %403 = arith.addf %401, %402 : vector<8x32xf32>
      %c0_202 = arith.constant 0 : index
      %c0_203 = arith.constant 0 : index
      %c0_204 = arith.constant 0 : index
      %404 = vector.load %arg24[%c0_202, %c0_203, %c0_204] : memref<1x8x32xf32, #tpu.memory_space<vmem>>, vector<1x8x32xf32>
      %405 = vector.shape_cast %404 : vector<1x8x32xf32> to vector<8x32xf32>
      %406 = vector.shape_cast %403 : vector<8x32xf32> to vector<1x8x32xf32>
      tpu.vector_store %arg24[%c0_202, %c0_203, %c0_204], %406 {strides = array<i32>} : memref<1x8x32xf32, #tpu.memory_space<vmem>>, vector<1x8x32xf32>,
    } else {
    }
    return
  }
  func.func @transform_0(%arg0: i32, %arg1: i32) -> (i32, i32, i32) {
    %c0_i32 = arith.constant 0 : i32
    %c0_i32_0 = arith.constant 0 : i32
    %c0_i32_1 = arith.constant 0 : i32
    return %arg0, %c0_i32, %c0_i32_0 : i32, i32, i32
  }
  func.func @transform_1(%arg0: i32, %arg1: i32) -> (i32, i32, i32) {
    %c0_i32 = arith.constant 0 : i32
    %c0_i32_0 = arith.constant 0 : i32
    return %arg0, %arg1, %c0_i32 : i32, i32, i32
  }
  func.func @transform_2(%arg0: i32, %arg1: i32) -> (i32, i32, i32) {
    %c0_i32 = arith.constant 0 : i32
    %c0_i32_0 = arith.constant 0 : i32
    return %arg0, %arg1, %c0_i32 : i32, i32, i32
  }
  func.func @transform_3(%arg0: i32, %arg1: i32) -> (i32, i32, i32) {
    %c0_i32 = arith.constant 0 : i32
    %c0_i32_0 = arith.constant 0 : i32
    return %arg0, %c0_i32, %arg1 : i32, i32, i32
  }
  func.func @transform_4(%arg0: i32, %arg1: i32) -> (i32, i32) {
    %c0_i32 = arith.constant 0 : i32
    %c0_i32_0 = arith.constant 0 : i32
    %c0_i32_1 = arith.constant 0 : i32
    return %c0_i32, %c0_i32_0 : i32, i32
  }
  func.func @transform_5(%arg0: i32, %arg1: i32) -> (i32, i32) {
    %c0_i32 = arith.constant 0 : i32
    %c0_i32_0 = arith.constant 0 : i32
    %c0_i32_1 = arith.constant 0 : i32
    return %c0_i32, %c0_i32_0 : i32, i32
  }
  func.func @transform_6(%arg0: i32, %arg1: i32) -> (i32, i32) {
    %c0_i32 = arith.constant 0 : i32
    %c0_i32_0 = arith.constant 0 : i32
    %c0_i32_1 = arith.constant 0 : i32
    return %c0_i32, %c0_i32_0 : i32, i32
  }
  func.func @transform_7(%arg0: i32, %arg1: i32) -> (i32, i32) {
    %c0_i32 = arith.constant 0 : i32
    %c0_i32_0 = arith.constant 0 : i32
    %c0_i32_1 = arith.constant 0 : i32
    return %c0_i32, %c0_i32_0 : i32, i32
  }
  func.func @transform_8(%arg0: i32, %arg1: i32) -> (i32, i32) {
    %c0_i32 = arith.constant 0 : i32
    %c0_i32_0 = arith.constant 0 : i32
    %c0_i32_1 = arith.constant 0 : i32
    return %c0_i32, %c0_i32_0 : i32, i32
  }
  func.func @transform_9(%arg0: i32, %arg1: i32) -> (i32, i32) {
    %c0_i32 = arith.constant 0 : i32
    %c0_i32_0 = arith.constant 0 : i32
    %c0_i32_1 = arith.constant 0 : i32
    return %c0_i32, %c0_i32_0 : i32, i32
  }
  func.func @transform_10(%arg0: i32, %arg1: i32) -> (i32, i32) {
    %c0_i32 = arith.constant 0 : i32
    %c0_i32_0 = arith.constant 0 : i32
    %c0_i32_1 = arith.constant 0 : i32
    return %c0_i32, %c0_i32_0 : i32, i32
  }
  func.func @transform_11(%arg0: i32, %arg1: i32) -> (i32, i32) {
    %c0_i32 = arith.constant 0 : i32
    %c0_i32_0 = arith.constant 0 : i32
    %c0_i32_1 = arith.constant 0 : i32
    return %c0_i32, %c0_i32_0 : i32, i32
  }
  func.func @transform_12(%arg0: i32, %arg1: i32) -> (i32, i32) {
    %c0_i32 = arith.constant 0 : i32
    %c0_i32_0 = arith.constant 0 : i32
    %c0_i32_1 = arith.constant 0 : i32
    return %c0_i32, %c0_i32_0 : i32, i32
  }
  func.func @transform_13(%arg0: i32, %arg1: i32) -> (i32, i32) {
    %c0_i32 = arith.constant 0 : i32
    %c0_i32_0 = arith.constant 0 : i32
    %c0_i32_1 = arith.constant 0 : i32
    return %c0_i32, %c0_i32_0 : i32, i32
  }
  func.func @transform_14(%arg0: i32, %arg1: i32) -> (i32, i32) {
    %c0_i32 = arith.constant 0 : i32
    %c0_i32_0 = arith.constant 0 : i32
    %c0_i32_1 = arith.constant 0 : i32
    return %c0_i32, %c0_i32_0 : i32, i32
  }
  func.func @transform_15(%arg0: i32, %arg1: i32) -> (i32, i32) {
    %c0_i32 = arith.constant 0 : i32
    %c0_i32_0 = arith.constant 0 : i32
    %c0_i32_1 = arith.constant 0 : i32
    return %c0_i32, %c0_i32_0 : i32, i32
  }
  func.func @transform_16(%arg0: i32, %arg1: i32) -> (i32, i32) {
    %c0_i32 = arith.constant 0 : i32
    %c0_i32_0 = arith.constant 0 : i32
    %c0_i32_1 = arith.constant 0 : i32
    return %c0_i32, %c0_i32_0 : i32, i32
  }
  func.func @transform_17(%arg0: i32, %arg1: i32) -> (i32, i32) {
    %c0_i32 = arith.constant 0 : i32
    %c0_i32_0 = arith.constant 0 : i32
    %c0_i32_1 = arith.constant 0 : i32
    return %c0_i32, %c0_i32_0 : i32, i32
  }
  func.func @transform_18(%arg0: i32, %arg1: i32) -> (i32, i32) {
    %c0_i32 = arith.constant 0 : i32
    %c0_i32_0 = arith.constant 0 : i32
    %c0_i32_1 = arith.constant 0 : i32
    return %c0_i32, %c0_i32_0 : i32, i32
  }
  func.func @transform_19(%arg0: i32, %arg1: i32) -> (i32, i32) {
    %c0_i32 = arith.constant 0 : i32
    %c0_i32_0 = arith.constant 0 : i32
    %c0_i32_1 = arith.constant 0 : i32
    return %c0_i32, %c0_i32_0 : i32, i32
  }
  func.func @transform_20(%arg0: i32, %arg1: i32) -> (i32, i32) {
    %c0_i32 = arith.constant 0 : i32
    %c0_i32_0 = arith.constant 0 : i32
    %c0_i32_1 = arith.constant 0 : i32
    return %c0_i32, %c0_i32_0 : i32, i32
  }
  func.func @transform_21(%arg0: i32, %arg1: i32) -> (i32, i32) {
    %c0_i32 = arith.constant 0 : i32
    %c0_i32_0 = arith.constant 0 : i32
    %c0_i32_1 = arith.constant 0 : i32
    return %c0_i32, %c0_i32_0 : i32, i32
  }
  func.func @transform_22(%arg0: i32, %arg1: i32) -> (i32, i32, i32) {
    %c0_i32 = arith.constant 0 : i32
    %c0_i32_0 = arith.constant 0 : i32
    %c0_i32_1 = arith.constant 0 : i32
    return %arg0, %c0_i32, %c0_i32_0 : i32, i32, i32
  }
}

module attributes {stable_mosaic.version = 11 : i64} {
  func.func @_dense_kernel(%arg0: i32, %arg1: memref<8x32xf32, #tpu.memory_space<vmem>>, %arg2: memref<32x32xf32, #tpu.memory_space<vmem>>, %arg3: memref<1x32xf32, #tpu.memory_space<vmem>>, %arg4: memref<8x32xf32, #tpu.memory_space<vmem>>) attributes {dimension_semantics = [#tpu.dimension_semantics<parallel>], iteration_bounds = array<i64: 1>, scalar_prefetch = 0 : i64, scratch_operands = 0 : i64, tpu.core_type = #tpu.core_type<tc>, window_params = [{transform_indices = @transform_0, window_bounds = array<i64: 8, 32>}, {pipeline_mode = #tpu.pipeline_mode<synchronous>, transform_indices = @transform_1, window_bounds = array<i64: 32, 32>}, {pipeline_mode = #tpu.pipeline_mode<synchronous>, transform_indices = @transform_2, window_bounds = array<i64: 1, 32>}, {transform_indices = @transform_3, window_bounds = array<i64: 8, 32>}]} {
    %c0 = arith.constant 0 : index
    %c0_0 = arith.constant 0 : index
    %0 = vector.load %arg1[%c0, %c0_0] : memref<8x32xf32, #tpu.memory_space<vmem>>, vector<8x32xf32>
    %c0_1 = arith.constant 0 : index
    %c0_2 = arith.constant 0 : index
    %1 = vector.load %arg2[%c0_1, %c0_2] : memref<32x32xf32, #tpu.memory_space<vmem>>, vector<32x32xf32>
    %2 = arith.truncf %0 : vector<8x32xf32> to vector<8x32xbf16>
    %3 = arith.truncf %1 : vector<32x32xf32> to vector<32x32xbf16>
    %cst = arith.constant dense<0.000000e+00> : vector<8x32xf32>
    %4 = tpu.matmul %2, %3, %cst {dimension_numbers = #tpu.dot_dimension_numbers<[1], [0], [0], [1], [0, 0, 1, 1], [], []>} : vector<8x32xbf16>, vector<32x32xbf16>, vector<8x32xf32> -> vector<8x32xf32>
    %c0_3 = arith.constant 0 : index
    %c0_4 = arith.constant 0 : index
    %5 = vector.load %arg3[%c0_3, %c0_4] : memref<1x32xf32, #tpu.memory_space<vmem>>, vector<1x32xf32>
    %6 = vector.broadcast %5 : vector<1x32xf32> to vector<8x32xf32>
    %7 = arith.addf %4, %6 : vector<8x32xf32>
    %c0_5 = arith.constant 0 : index
    %c0_6 = arith.constant 0 : index
    %8 = vector.load %arg4[%c0_5, %c0_6] : memref<8x32xf32, #tpu.memory_space<vmem>>, vector<8x32xf32>
    tpu.vector_store %arg4[%c0_5, %c0_6], %7 {strides = array<i32>} : memref<8x32xf32, #tpu.memory_space<vmem>>, vector<8x32xf32>,
    return
  }
  func.func @transform_0(%arg0: i32) -> (i32, i32) {
    %c0_i32 = arith.constant 0 : i32
    %c0_i32_0 = arith.constant 0 : i32
    return %arg0, %c0_i32 : i32, i32
  }
  func.func @transform_1(%arg0: i32) -> (i32, i32) {
    %c0_i32 = arith.constant 0 : i32
    %c0_i32_0 = arith.constant 0 : i32
    %c0_i32_1 = arith.constant 0 : i32
    return %c0_i32, %c0_i32_0 : i32, i32
  }
  func.func @transform_2(%arg0: i32) -> (i32, i32) {
    %c0_i32 = arith.constant 0 : i32
    %c0_i32_0 = arith.constant 0 : i32
    %c0_i32_1 = arith.constant 0 : i32
    return %c0_i32, %c0_i32_0 : i32, i32
  }
  func.func @transform_3(%arg0: i32) -> (i32, i32) {
    %c0_i32 = arith.constant 0 : i32
    %c0_i32_0 = arith.constant 0 : i32
    return %arg0, %c0_i32 : i32, i32
  }
}

module attributes {stable_mosaic.version = 11 : i64} {
  func.func @_dense_kernel(%arg0: i32, %arg1: memref<8x4xf32, #tpu.memory_space<vmem>>, %arg2: memref<4x32xf32, #tpu.memory_space<vmem>>, %arg3: memref<1x32xf32, #tpu.memory_space<vmem>>, %arg4: memref<8x32xf32, #tpu.memory_space<vmem>>) attributes {dimension_semantics = [#tpu.dimension_semantics<parallel>], iteration_bounds = array<i64: 1>, scalar_prefetch = 0 : i64, scratch_operands = 0 : i64, tpu.core_type = #tpu.core_type<tc>, window_params = [{transform_indices = @transform_0, window_bounds = array<i64: 8, 4>}, {pipeline_mode = #tpu.pipeline_mode<synchronous>, transform_indices = @transform_1, window_bounds = array<i64: 4, 32>}, {pipeline_mode = #tpu.pipeline_mode<synchronous>, transform_indices = @transform_2, window_bounds = array<i64: 1, 32>}, {transform_indices = @transform_3, window_bounds = array<i64: 8, 32>}]} {
    %c0 = arith.constant 0 : index
    %c0_0 = arith.constant 0 : index
    %0 = vector.load %arg1[%c0, %c0_0] : memref<8x4xf32, #tpu.memory_space<vmem>>, vector<8x4xf32>
    %c0_1 = arith.constant 0 : index
    %c0_2 = arith.constant 0 : index
    %1 = vector.load %arg2[%c0_1, %c0_2] : memref<4x32xf32, #tpu.memory_space<vmem>>, vector<4x32xf32>
    %2 = arith.truncf %0 : vector<8x4xf32> to vector<8x4xbf16>
    %3 = arith.truncf %1 : vector<4x32xf32> to vector<4x32xbf16>
    %cst = arith.constant dense<0.000000e+00> : vector<8x32xf32>
    %4 = tpu.matmul %2, %3, %cst {dimension_numbers = #tpu.dot_dimension_numbers<[1], [0], [0], [1], [0, 0, 1, 1], [], []>} : vector<8x4xbf16>, vector<4x32xbf16>, vector<8x32xf32> -> vector<8x32xf32>
    %c0_3 = arith.constant 0 : index
    %c0_4 = arith.constant 0 : index
    %5 = vector.load %arg3[%c0_3, %c0_4] : memref<1x32xf32, #tpu.memory_space<vmem>>, vector<1x32xf32>
    %6 = vector.broadcast %5 : vector<1x32xf32> to vector<8x32xf32>
    %7 = arith.addf %4, %6 : vector<8x32xf32>
    %c0_5 = arith.constant 0 : index
    %c0_6 = arith.constant 0 : index
    %8 = vector.load %arg4[%c0_5, %c0_6] : memref<8x32xf32, #tpu.memory_space<vmem>>, vector<8x32xf32>
    tpu.vector_store %arg4[%c0_5, %c0_6], %7 {strides = array<i32>} : memref<8x32xf32, #tpu.memory_space<vmem>>, vector<8x32xf32>,
    return
  }
  func.func @transform_0(%arg0: i32) -> (i32, i32) {
    %c0_i32 = arith.constant 0 : i32
    %c0_i32_0 = arith.constant 0 : i32
    return %arg0, %c0_i32 : i32, i32
  }
  func.func @transform_1(%arg0: i32) -> (i32, i32) {
    %c0_i32 = arith.constant 0 : i32
    %c0_i32_0 = arith.constant 0 : i32
    %c0_i32_1 = arith.constant 0 : i32
    return %c0_i32, %c0_i32_0 : i32, i32
  }
  func.func @transform_2(%arg0: i32) -> (i32, i32) {
    %c0_i32 = arith.constant 0 : i32
    %c0_i32_0 = arith.constant 0 : i32
    %c0_i32_1 = arith.constant 0 : i32
    return %c0_i32, %c0_i32_0 : i32, i32
  }
  func.func @transform_3(%arg0: i32) -> (i32, i32) {
    %c0_i32 = arith.constant 0 : i32
    %c0_i32_0 = arith.constant 0 : i32
    return %arg0, %c0_i32 : i32, i32
  }
}

module attributes {stable_mosaic.version = 11 : i64} {
  func.func @_resize_kernel(%arg0: i32, %arg1: memref<16x8x8xf32, #tpu.memory_space<vmem>>, %arg2: memref<2x8xf32, #tpu.memory_space<vmem>>, %arg3: memref<8x2xf32, #tpu.memory_space<vmem>>, %arg4: memref<16x2x2xf32, #tpu.memory_space<vmem>>) attributes {dimension_semantics = [#tpu.dimension_semantics<parallel>], iteration_bounds = array<i64: 4>, scalar_prefetch = 0 : i64, scratch_operands = 0 : i64, tpu.core_type = #tpu.core_type<tc>, window_params = [{transform_indices = @transform_0, window_bounds = array<i64: 16, 8, 8>}, {pipeline_mode = #tpu.pipeline_mode<synchronous>, transform_indices = @transform_1, window_bounds = array<i64: 2, 8>}, {pipeline_mode = #tpu.pipeline_mode<synchronous>, transform_indices = @transform_2, window_bounds = array<i64: 8, 2>}, {transform_indices = @transform_3, window_bounds = array<i64: 16, 2, 2>}]} {
    %c0 = arith.constant 0 : index
    %c0_0 = arith.constant 0 : index
    %0 = vector.load %arg2[%c0, %c0_0] : memref<2x8xf32, #tpu.memory_space<vmem>>, vector<2x8xf32>
    %c0_1 = arith.constant 0 : index
    %c0_2 = arith.constant 0 : index
    %1 = vector.load %arg3[%c0_1, %c0_2] : memref<8x2xf32, #tpu.memory_space<vmem>>, vector<8x2xf32>
    %c0_3 = arith.constant 0 : index
    %c0_4 = arith.constant 0 : index
    %c0_5 = arith.constant 0 : index
    %2 = vector.load %arg1[%c0_3, %c0_4, %c0_5] : memref<16x8x8xf32, #tpu.memory_space<vmem>>, vector<16x8x8xf32>
    %3 = vector.shape_cast %2 : vector<16x8x8xf32> to vector<128x8xf32>
    %4 = arith.truncf %3 : vector<128x8xf32> to vector<128x8xbf16>
    %5 = arith.truncf %1 : vector<8x2xf32> to vector<8x2xbf16>
    %cst = arith.constant dense<0.000000e+00> : vector<128x2xf32>
    %6 = tpu.matmul %4, %5, %cst {dimension_numbers = #tpu.dot_dimension_numbers<[1], [0], [0], [1], [0, 0, 1, 1], [], []>} : vector<128x8xbf16>, vector<8x2xbf16>, vector<128x2xf32> -> vector<128x2xf32>
    %7 = vector.shape_cast %6 : vector<128x2xf32> to vector<16x8x2xf32>
    %8 = vector.extract_strided_slice %7 {offsets = [0, 0, 0], sizes = [1, 8, 2], strides = [1, 1, 1]} : vector<16x8x2xf32> to vector<1x8x2xf32>
    %9 = vector.shape_cast %8 : vector<1x8x2xf32> to vector<8x2xf32>
    %10 = arith.truncf %0 : vector<2x8xf32> to vector<2x8xbf16>
    %11 = arith.truncf %9 : vector<8x2xf32> to vector<8x2xbf16>
    %cst_6 = arith.constant dense<0.000000e+00> : vector<2x2xf32>
    %12 = tpu.matmul %10, %11, %cst_6 {dimension_numbers = #tpu.dot_dimension_numbers<[1], [0], [0], [1], [0, 0, 1, 1], [], []>} : vector<2x8xbf16>, vector<8x2xbf16>, vector<2x2xf32> -> vector<2x2xf32>
    %c0_7 = arith.constant 0 : index
    %c0_8 = arith.constant 0 : index
    %c0_9 = arith.constant 0 : index
    %13 = vector.load %arg4[%c0_7, %c0_8, %c0_9] : memref<16x2x2xf32, #tpu.memory_space<vmem>>, vector<1x2x2xf32>
    %14 = vector.shape_cast %13 : vector<1x2x2xf32> to vector<2x2xf32>
    %15 = vector.shape_cast %12 : vector<2x2xf32> to vector<1x2x2xf32>
    tpu.vector_store %arg4[%c0_7, %c0_8, %c0_9], %15 {strides = array<i32>} : memref<16x2x2xf32, #tpu.memory_space<vmem>>, vector<1x2x2xf32>,
    %16 = vector.extract_strided_slice %7 {offsets = [1, 0, 0], sizes = [1, 8, 2], strides = [1, 1, 1]} : vector<16x8x2xf32> to vector<1x8x2xf32>
    %17 = vector.shape_cast %16 : vector<1x8x2xf32> to vector<8x2xf32>
    %18 = arith.truncf %0 : vector<2x8xf32> to vector<2x8xbf16>
    %19 = arith.truncf %17 : vector<8x2xf32> to vector<8x2xbf16>
    %cst_10 = arith.constant dense<0.000000e+00> : vector<2x2xf32>
    %20 = tpu.matmul %18, %19, %cst_10 {dimension_numbers = #tpu.dot_dimension_numbers<[1], [0], [0], [1], [0, 0, 1, 1], [], []>} : vector<2x8xbf16>, vector<8x2xbf16>, vector<2x2xf32> -> vector<2x2xf32>
    %c1 = arith.constant 1 : index
    %c0_11 = arith.constant 0 : index
    %c0_12 = arith.constant 0 : index
    %21 = vector.load %arg4[%c1, %c0_11, %c0_12] : memref<16x2x2xf32, #tpu.memory_space<vmem>>, vector<1x2x2xf32>
    %22 = vector.shape_cast %21 : vector<1x2x2xf32> to vector<2x2xf32>
    %23 = vector.shape_cast %20 : vector<2x2xf32> to vector<1x2x2xf32>
    tpu.vector_store %arg4[%c1, %c0_11, %c0_12], %23 {strides = array<i32>} : memref<16x2x2xf32, #tpu.memory_space<vmem>>, vector<1x2x2xf32>,
    %24 = vector.extract_strided_slice %7 {offsets = [2, 0, 0], sizes = [1, 8, 2], strides = [1, 1, 1]} : vector<16x8x2xf32> to vector<1x8x2xf32>
    %25 = vector.shape_cast %24 : vector<1x8x2xf32> to vector<8x2xf32>
    %26 = arith.truncf %0 : vector<2x8xf32> to vector<2x8xbf16>
    %27 = arith.truncf %25 : vector<8x2xf32> to vector<8x2xbf16>
    %cst_13 = arith.constant dense<0.000000e+00> : vector<2x2xf32>
    %28 = tpu.matmul %26, %27, %cst_13 {dimension_numbers = #tpu.dot_dimension_numbers<[1], [0], [0], [1], [0, 0, 1, 1], [], []>} : vector<2x8xbf16>, vector<8x2xbf16>, vector<2x2xf32> -> vector<2x2xf32>
    %c2 = arith.constant 2 : index
    %c0_14 = arith.constant 0 : index
    %c0_15 = arith.constant 0 : index
    %29 = vector.load %arg4[%c2, %c0_14, %c0_15] : memref<16x2x2xf32, #tpu.memory_space<vmem>>, vector<1x2x2xf32>
    %30 = vector.shape_cast %29 : vector<1x2x2xf32> to vector<2x2xf32>
    %31 = vector.shape_cast %28 : vector<2x2xf32> to vector<1x2x2xf32>
    tpu.vector_store %arg4[%c2, %c0_14, %c0_15], %31 {strides = array<i32>} : memref<16x2x2xf32, #tpu.memory_space<vmem>>, vector<1x2x2xf32>,
    %32 = vector.extract_strided_slice %7 {offsets = [3, 0, 0], sizes = [1, 8, 2], strides = [1, 1, 1]} : vector<16x8x2xf32> to vector<1x8x2xf32>
    %33 = vector.shape_cast %32 : vector<1x8x2xf32> to vector<8x2xf32>
    %34 = arith.truncf %0 : vector<2x8xf32> to vector<2x8xbf16>
    %35 = arith.truncf %33 : vector<8x2xf32> to vector<8x2xbf16>
    %cst_16 = arith.constant dense<0.000000e+00> : vector<2x2xf32>
    %36 = tpu.matmul %34, %35, %cst_16 {dimension_numbers = #tpu.dot_dimension_numbers<[1], [0], [0], [1], [0, 0, 1, 1], [], []>} : vector<2x8xbf16>, vector<8x2xbf16>, vector<2x2xf32> -> vector<2x2xf32>
    %c3 = arith.constant 3 : index
    %c0_17 = arith.constant 0 : index
    %c0_18 = arith.constant 0 : index
    %37 = vector.load %arg4[%c3, %c0_17, %c0_18] : memref<16x2x2xf32, #tpu.memory_space<vmem>>, vector<1x2x2xf32>
    %38 = vector.shape_cast %37 : vector<1x2x2xf32> to vector<2x2xf32>
    %39 = vector.shape_cast %36 : vector<2x2xf32> to vector<1x2x2xf32>
    tpu.vector_store %arg4[%c3, %c0_17, %c0_18], %39 {strides = array<i32>} : memref<16x2x2xf32, #tpu.memory_space<vmem>>, vector<1x2x2xf32>,
    %40 = vector.extract_strided_slice %7 {offsets = [4, 0, 0], sizes = [1, 8, 2], strides = [1, 1, 1]} : vector<16x8x2xf32> to vector<1x8x2xf32>
    %41 = vector.shape_cast %40 : vector<1x8x2xf32> to vector<8x2xf32>
    %42 = arith.truncf %0 : vector<2x8xf32> to vector<2x8xbf16>
    %43 = arith.truncf %41 : vector<8x2xf32> to vector<8x2xbf16>
    %cst_19 = arith.constant dense<0.000000e+00> : vector<2x2xf32>
    %44 = tpu.matmul %42, %43, %cst_19 {dimension_numbers = #tpu.dot_dimension_numbers<[1], [0], [0], [1], [0, 0, 1, 1], [], []>} : vector<2x8xbf16>, vector<8x2xbf16>, vector<2x2xf32> -> vector<2x2xf32>
    %c4 = arith.constant 4 : index
    %c0_20 = arith.constant 0 : index
    %c0_21 = arith.constant 0 : index
    %45 = vector.load %arg4[%c4, %c0_20, %c0_21] : memref<16x2x2xf32, #tpu.memory_space<vmem>>, vector<1x2x2xf32>
    %46 = vector.shape_cast %45 : vector<1x2x2xf32> to vector<2x2xf32>
    %47 = vector.shape_cast %44 : vector<2x2xf32> to vector<1x2x2xf32>
    tpu.vector_store %arg4[%c4, %c0_20, %c0_21], %47 {strides = array<i32>} : memref<16x2x2xf32, #tpu.memory_space<vmem>>, vector<1x2x2xf32>,
    %48 = vector.extract_strided_slice %7 {offsets = [5, 0, 0], sizes = [1, 8, 2], strides = [1, 1, 1]} : vector<16x8x2xf32> to vector<1x8x2xf32>
    %49 = vector.shape_cast %48 : vector<1x8x2xf32> to vector<8x2xf32>
    %50 = arith.truncf %0 : vector<2x8xf32> to vector<2x8xbf16>
    %51 = arith.truncf %49 : vector<8x2xf32> to vector<8x2xbf16>
    %cst_22 = arith.constant dense<0.000000e+00> : vector<2x2xf32>
    %52 = tpu.matmul %50, %51, %cst_22 {dimension_numbers = #tpu.dot_dimension_numbers<[1], [0], [0], [1], [0, 0, 1, 1], [], []>} : vector<2x8xbf16>, vector<8x2xbf16>, vector<2x2xf32> -> vector<2x2xf32>
    %c5 = arith.constant 5 : index
    %c0_23 = arith.constant 0 : index
    %c0_24 = arith.constant 0 : index
    %53 = vector.load %arg4[%c5, %c0_23, %c0_24] : memref<16x2x2xf32, #tpu.memory_space<vmem>>, vector<1x2x2xf32>
    %54 = vector.shape_cast %53 : vector<1x2x2xf32> to vector<2x2xf32>
    %55 = vector.shape_cast %52 : vector<2x2xf32> to vector<1x2x2xf32>
    tpu.vector_store %arg4[%c5, %c0_23, %c0_24], %55 {strides = array<i32>} : memref<16x2x2xf32, #tpu.memory_space<vmem>>, vector<1x2x2xf32>,
    %56 = vector.extract_strided_slice %7 {offsets = [6, 0, 0], sizes = [1, 8, 2], strides = [1, 1, 1]} : vector<16x8x2xf32> to vector<1x8x2xf32>
    %57 = vector.shape_cast %56 : vector<1x8x2xf32> to vector<8x2xf32>
    %58 = arith.truncf %0 : vector<2x8xf32> to vector<2x8xbf16>
    %59 = arith.truncf %57 : vector<8x2xf32> to vector<8x2xbf16>
    %cst_25 = arith.constant dense<0.000000e+00> : vector<2x2xf32>
    %60 = tpu.matmul %58, %59, %cst_25 {dimension_numbers = #tpu.dot_dimension_numbers<[1], [0], [0], [1], [0, 0, 1, 1], [], []>} : vector<2x8xbf16>, vector<8x2xbf16>, vector<2x2xf32> -> vector<2x2xf32>
    %c6 = arith.constant 6 : index
    %c0_26 = arith.constant 0 : index
    %c0_27 = arith.constant 0 : index
    %61 = vector.load %arg4[%c6, %c0_26, %c0_27] : memref<16x2x2xf32, #tpu.memory_space<vmem>>, vector<1x2x2xf32>
    %62 = vector.shape_cast %61 : vector<1x2x2xf32> to vector<2x2xf32>
    %63 = vector.shape_cast %60 : vector<2x2xf32> to vector<1x2x2xf32>
    tpu.vector_store %arg4[%c6, %c0_26, %c0_27], %63 {strides = array<i32>} : memref<16x2x2xf32, #tpu.memory_space<vmem>>, vector<1x2x2xf32>,
    %64 = vector.extract_strided_slice %7 {offsets = [7, 0, 0], sizes = [1, 8, 2], strides = [1, 1, 1]} : vector<16x8x2xf32> to vector<1x8x2xf32>
    %65 = vector.shape_cast %64 : vector<1x8x2xf32> to vector<8x2xf32>
    %66 = arith.truncf %0 : vector<2x8xf32> to vector<2x8xbf16>
    %67 = arith.truncf %65 : vector<8x2xf32> to vector<8x2xbf16>
    %cst_28 = arith.constant dense<0.000000e+00> : vector<2x2xf32>
    %68 = tpu.matmul %66, %67, %cst_28 {dimension_numbers = #tpu.dot_dimension_numbers<[1], [0], [0], [1], [0, 0, 1, 1], [], []>} : vector<2x8xbf16>, vector<8x2xbf16>, vector<2x2xf32> -> vector<2x2xf32>
    %c7 = arith.constant 7 : index
    %c0_29 = arith.constant 0 : index
    %c0_30 = arith.constant 0 : index
    %69 = vector.load %arg4[%c7, %c0_29, %c0_30] : memref<16x2x2xf32, #tpu.memory_space<vmem>>, vector<1x2x2xf32>
    %70 = vector.shape_cast %69 : vector<1x2x2xf32> to vector<2x2xf32>
    %71 = vector.shape_cast %68 : vector<2x2xf32> to vector<1x2x2xf32>
    tpu.vector_store %arg4[%c7, %c0_29, %c0_30], %71 {strides = array<i32>} : memref<16x2x2xf32, #tpu.memory_space<vmem>>, vector<1x2x2xf32>,
    %72 = vector.extract_strided_slice %7 {offsets = [8, 0, 0], sizes = [1, 8, 2], strides = [1, 1, 1]} : vector<16x8x2xf32> to vector<1x8x2xf32>
    %73 = vector.shape_cast %72 : vector<1x8x2xf32> to vector<8x2xf32>
    %74 = arith.truncf %0 : vector<2x8xf32> to vector<2x8xbf16>
    %75 = arith.truncf %73 : vector<8x2xf32> to vector<8x2xbf16>
    %cst_31 = arith.constant dense<0.000000e+00> : vector<2x2xf32>
    %76 = tpu.matmul %74, %75, %cst_31 {dimension_numbers = #tpu.dot_dimension_numbers<[1], [0], [0], [1], [0, 0, 1, 1], [], []>} : vector<2x8xbf16>, vector<8x2xbf16>, vector<2x2xf32> -> vector<2x2xf32>
    %c8 = arith.constant 8 : index
    %c0_32 = arith.constant 0 : index
    %c0_33 = arith.constant 0 : index
    %77 = vector.load %arg4[%c8, %c0_32, %c0_33] : memref<16x2x2xf32, #tpu.memory_space<vmem>>, vector<1x2x2xf32>
    %78 = vector.shape_cast %77 : vector<1x2x2xf32> to vector<2x2xf32>
    %79 = vector.shape_cast %76 : vector<2x2xf32> to vector<1x2x2xf32>
    tpu.vector_store %arg4[%c8, %c0_32, %c0_33], %79 {strides = array<i32>} : memref<16x2x2xf32, #tpu.memory_space<vmem>>, vector<1x2x2xf32>,
    %80 = vector.extract_strided_slice %7 {offsets = [9, 0, 0], sizes = [1, 8, 2], strides = [1, 1, 1]} : vector<16x8x2xf32> to vector<1x8x2xf32>
    %81 = vector.shape_cast %80 : vector<1x8x2xf32> to vector<8x2xf32>
    %82 = arith.truncf %0 : vector<2x8xf32> to vector<2x8xbf16>
    %83 = arith.truncf %81 : vector<8x2xf32> to vector<8x2xbf16>
    %cst_34 = arith.constant dense<0.000000e+00> : vector<2x2xf32>
    %84 = tpu.matmul %82, %83, %cst_34 {dimension_numbers = #tpu.dot_dimension_numbers<[1], [0], [0], [1], [0, 0, 1, 1], [], []>} : vector<2x8xbf16>, vector<8x2xbf16>, vector<2x2xf32> -> vector<2x2xf32>
    %c9 = arith.constant 9 : index
    %c0_35 = arith.constant 0 : index
    %c0_36 = arith.constant 0 : index
    %85 = vector.load %arg4[%c9, %c0_35, %c0_36] : memref<16x2x2xf32, #tpu.memory_space<vmem>>, vector<1x2x2xf32>
    %86 = vector.shape_cast %85 : vector<1x2x2xf32> to vector<2x2xf32>
    %87 = vector.shape_cast %84 : vector<2x2xf32> to vector<1x2x2xf32>
    tpu.vector_store %arg4[%c9, %c0_35, %c0_36], %87 {strides = array<i32>} : memref<16x2x2xf32, #tpu.memory_space<vmem>>, vector<1x2x2xf32>,
    %88 = vector.extract_strided_slice %7 {offsets = [10, 0, 0], sizes = [1, 8, 2], strides = [1, 1, 1]} : vector<16x8x2xf32> to vector<1x8x2xf32>
    %89 = vector.shape_cast %88 : vector<1x8x2xf32> to vector<8x2xf32>
    %90 = arith.truncf %0 : vector<2x8xf32> to vector<2x8xbf16>
    %91 = arith.truncf %89 : vector<8x2xf32> to vector<8x2xbf16>
    %cst_37 = arith.constant dense<0.000000e+00> : vector<2x2xf32>
    %92 = tpu.matmul %90, %91, %cst_37 {dimension_numbers = #tpu.dot_dimension_numbers<[1], [0], [0], [1], [0, 0, 1, 1], [], []>} : vector<2x8xbf16>, vector<8x2xbf16>, vector<2x2xf32> -> vector<2x2xf32>
    %c10 = arith.constant 10 : index
    %c0_38 = arith.constant 0 : index
    %c0_39 = arith.constant 0 : index
    %93 = vector.load %arg4[%c10, %c0_38, %c0_39] : memref<16x2x2xf32, #tpu.memory_space<vmem>>, vector<1x2x2xf32>
    %94 = vector.shape_cast %93 : vector<1x2x2xf32> to vector<2x2xf32>
    %95 = vector.shape_cast %92 : vector<2x2xf32> to vector<1x2x2xf32>
    tpu.vector_store %arg4[%c10, %c0_38, %c0_39], %95 {strides = array<i32>} : memref<16x2x2xf32, #tpu.memory_space<vmem>>, vector<1x2x2xf32>,
    %96 = vector.extract_strided_slice %7 {offsets = [11, 0, 0], sizes = [1, 8, 2], strides = [1, 1, 1]} : vector<16x8x2xf32> to vector<1x8x2xf32>
    %97 = vector.shape_cast %96 : vector<1x8x2xf32> to vector<8x2xf32>
    %98 = arith.truncf %0 : vector<2x8xf32> to vector<2x8xbf16>
    %99 = arith.truncf %97 : vector<8x2xf32> to vector<8x2xbf16>
    %cst_40 = arith.constant dense<0.000000e+00> : vector<2x2xf32>
    %100 = tpu.matmul %98, %99, %cst_40 {dimension_numbers = #tpu.dot_dimension_numbers<[1], [0], [0], [1], [0, 0, 1, 1], [], []>} : vector<2x8xbf16>, vector<8x2xbf16>, vector<2x2xf32> -> vector<2x2xf32>
    %c11 = arith.constant 11 : index
    %c0_41 = arith.constant 0 : index
    %c0_42 = arith.constant 0 : index
    %101 = vector.load %arg4[%c11, %c0_41, %c0_42] : memref<16x2x2xf32, #tpu.memory_space<vmem>>, vector<1x2x2xf32>
    %102 = vector.shape_cast %101 : vector<1x2x2xf32> to vector<2x2xf32>
    %103 = vector.shape_cast %100 : vector<2x2xf32> to vector<1x2x2xf32>
    tpu.vector_store %arg4[%c11, %c0_41, %c0_42], %103 {strides = array<i32>} : memref<16x2x2xf32, #tpu.memory_space<vmem>>, vector<1x2x2xf32>,
    %104 = vector.extract_strided_slice %7 {offsets = [12, 0, 0], sizes = [1, 8, 2], strides = [1, 1, 1]} : vector<16x8x2xf32> to vector<1x8x2xf32>
    %105 = vector.shape_cast %104 : vector<1x8x2xf32> to vector<8x2xf32>
    %106 = arith.truncf %0 : vector<2x8xf32> to vector<2x8xbf16>
    %107 = arith.truncf %105 : vector<8x2xf32> to vector<8x2xbf16>
    %cst_43 = arith.constant dense<0.000000e+00> : vector<2x2xf32>
    %108 = tpu.matmul %106, %107, %cst_43 {dimension_numbers = #tpu.dot_dimension_numbers<[1], [0], [0], [1], [0, 0, 1, 1], [], []>} : vector<2x8xbf16>, vector<8x2xbf16>, vector<2x2xf32> -> vector<2x2xf32>
    %c12 = arith.constant 12 : index
    %c0_44 = arith.constant 0 : index
    %c0_45 = arith.constant 0 : index
    %109 = vector.load %arg4[%c12, %c0_44, %c0_45] : memref<16x2x2xf32, #tpu.memory_space<vmem>>, vector<1x2x2xf32>
    %110 = vector.shape_cast %109 : vector<1x2x2xf32> to vector<2x2xf32>
    %111 = vector.shape_cast %108 : vector<2x2xf32> to vector<1x2x2xf32>
    tpu.vector_store %arg4[%c12, %c0_44, %c0_45], %111 {strides = array<i32>} : memref<16x2x2xf32, #tpu.memory_space<vmem>>, vector<1x2x2xf32>,
    %112 = vector.extract_strided_slice %7 {offsets = [13, 0, 0], sizes = [1, 8, 2], strides = [1, 1, 1]} : vector<16x8x2xf32> to vector<1x8x2xf32>
    %113 = vector.shape_cast %112 : vector<1x8x2xf32> to vector<8x2xf32>
    %114 = arith.truncf %0 : vector<2x8xf32> to vector<2x8xbf16>
    %115 = arith.truncf %113 : vector<8x2xf32> to vector<8x2xbf16>
    %cst_46 = arith.constant dense<0.000000e+00> : vector<2x2xf32>
    %116 = tpu.matmul %114, %115, %cst_46 {dimension_numbers = #tpu.dot_dimension_numbers<[1], [0], [0], [1], [0, 0, 1, 1], [], []>} : vector<2x8xbf16>, vector<8x2xbf16>, vector<2x2xf32> -> vector<2x2xf32>
    %c13 = arith.constant 13 : index
    %c0_47 = arith.constant 0 : index
    %c0_48 = arith.constant 0 : index
    %117 = vector.load %arg4[%c13, %c0_47, %c0_48] : memref<16x2x2xf32, #tpu.memory_space<vmem>>, vector<1x2x2xf32>
    %118 = vector.shape_cast %117 : vector<1x2x2xf32> to vector<2x2xf32>
    %119 = vector.shape_cast %116 : vector<2x2xf32> to vector<1x2x2xf32>
    tpu.vector_store %arg4[%c13, %c0_47, %c0_48], %119 {strides = array<i32>} : memref<16x2x2xf32, #tpu.memory_space<vmem>>, vector<1x2x2xf32>,
    %120 = vector.extract_strided_slice %7 {offsets = [14, 0, 0], sizes = [1, 8, 2], strides = [1, 1, 1]} : vector<16x8x2xf32> to vector<1x8x2xf32>
    %121 = vector.shape_cast %120 : vector<1x8x2xf32> to vector<8x2xf32>
    %122 = arith.truncf %0 : vector<2x8xf32> to vector<2x8xbf16>
    %123 = arith.truncf %121 : vector<8x2xf32> to vector<8x2xbf16>
    %cst_49 = arith.constant dense<0.000000e+00> : vector<2x2xf32>
    %124 = tpu.matmul %122, %123, %cst_49 {dimension_numbers = #tpu.dot_dimension_numbers<[1], [0], [0], [1], [0, 0, 1, 1], [], []>} : vector<2x8xbf16>, vector<8x2xbf16>, vector<2x2xf32> -> vector<2x2xf32>
    %c14 = arith.constant 14 : index
    %c0_50 = arith.constant 0 : index
    %c0_51 = arith.constant 0 : index
    %125 = vector.load %arg4[%c14, %c0_50, %c0_51] : memref<16x2x2xf32, #tpu.memory_space<vmem>>, vector<1x2x2xf32>
    %126 = vector.shape_cast %125 : vector<1x2x2xf32> to vector<2x2xf32>
    %127 = vector.shape_cast %124 : vector<2x2xf32> to vector<1x2x2xf32>
    tpu.vector_store %arg4[%c14, %c0_50, %c0_51], %127 {strides = array<i32>} : memref<16x2x2xf32, #tpu.memory_space<vmem>>, vector<1x2x2xf32>,
    %128 = vector.extract_strided_slice %7 {offsets = [15, 0, 0], sizes = [1, 8, 2], strides = [1, 1, 1]} : vector<16x8x2xf32> to vector<1x8x2xf32>
    %129 = vector.shape_cast %128 : vector<1x8x2xf32> to vector<8x2xf32>
    %130 = arith.truncf %0 : vector<2x8xf32> to vector<2x8xbf16>
    %131 = arith.truncf %129 : vector<8x2xf32> to vector<8x2xbf16>
    %cst_52 = arith.constant dense<0.000000e+00> : vector<2x2xf32>
    %132 = tpu.matmul %130, %131, %cst_52 {dimension_numbers = #tpu.dot_dimension_numbers<[1], [0], [0], [1], [0, 0, 1, 1], [], []>} : vector<2x8xbf16>, vector<8x2xbf16>, vector<2x2xf32> -> vector<2x2xf32>
    %c15 = arith.constant 15 : index
    %c0_53 = arith.constant 0 : index
    %c0_54 = arith.constant 0 : index
    %133 = vector.load %arg4[%c15, %c0_53, %c0_54] : memref<16x2x2xf32, #tpu.memory_space<vmem>>, vector<1x2x2xf32>
    %134 = vector.shape_cast %133 : vector<1x2x2xf32> to vector<2x2xf32>
    %135 = vector.shape_cast %132 : vector<2x2xf32> to vector<1x2x2xf32>
    tpu.vector_store %arg4[%c15, %c0_53, %c0_54], %135 {strides = array<i32>} : memref<16x2x2xf32, #tpu.memory_space<vmem>>, vector<1x2x2xf32>,
    return
  }
  func.func @transform_0(%arg0: i32) -> (i32, i32, i32) {
    %c0_i32 = arith.constant 0 : i32
    %c0_i32_0 = arith.constant 0 : i32
    %c0_i32_1 = arith.constant 0 : i32
    return %arg0, %c0_i32, %c0_i32_0 : i32, i32, i32
  }
  func.func @transform_1(%arg0: i32) -> (i32, i32) {
    %c0_i32 = arith.constant 0 : i32
    %c0_i32_0 = arith.constant 0 : i32
    %c0_i32_1 = arith.constant 0 : i32
    return %c0_i32, %c0_i32_0 : i32, i32
  }
  func.func @transform_2(%arg0: i32) -> (i32, i32) {
    %c0_i32 = arith.constant 0 : i32
    %c0_i32_0 = arith.constant 0 : i32
    %c0_i32_1 = arith.constant 0 : i32
    return %c0_i32, %c0_i32_0 : i32, i32
  }
  func.func @transform_3(%arg0: i32) -> (i32, i32, i32) {
    %c0_i32 = arith.constant 0 : i32
    %c0_i32_0 = arith.constant 0 : i32
    %c0_i32_1 = arith.constant 0 : i32
    return %arg0, %c0_i32, %c0_i32_0 : i32, i32, i32
  }
}

module attributes {stable_mosaic.version = 11 : i64} {
  func.func @_pred_heads_kernel(%arg0: i32, %arg1: i32, %arg2: memref<1x8x32xf32, #tpu.memory_space<vmem>>, %arg3: memref<1x32x4xbf16, #tpu.memory_space<vmem>>, %arg4: memref<1x32xf32, #tpu.memory_space<vmem>>, %arg5: memref<1x32xf32, #tpu.memory_space<vmem>>, %arg6: memref<32x128xbf16, #tpu.memory_space<vmem>>, %arg7: memref<1x128xf32, #tpu.memory_space<vmem>>, %arg8: memref<32x32xbf16, #tpu.memory_space<vmem>>, %arg9: memref<1x32xf32, #tpu.memory_space<vmem>>, %arg10: memref<32x32xbf16, #tpu.memory_space<vmem>>, %arg11: memref<1x32xf32, #tpu.memory_space<vmem>>, %arg12: memref<32x32xbf16, #tpu.memory_space<vmem>>, %arg13: memref<1x32xf32, #tpu.memory_space<vmem>>, %arg14: memref<1x8x128xf32, #tpu.memory_space<vmem>>, %arg15: memref<1x8x4xi8, #tpu.memory_space<vmem>>, %arg16: memref<8x32xf32, #tpu.memory_space<vmem>>) attributes {dimension_semantics = [#tpu.dimension_semantics<parallel>, #tpu.dimension_semantics<arbitrary>], iteration_bounds = array<i64: 2, 1>, scalar_prefetch = 0 : i64, scratch_operands = 1 : i64, tpu.core_type = #tpu.core_type<tc>, window_params = [{transform_indices = @transform_0, window_bounds = array<i64: 1, 8, 32>}, {transform_indices = @transform_1, window_bounds = array<i64: 1, 32, 4>}, {pipeline_mode = #tpu.pipeline_mode<synchronous>, transform_indices = @transform_2, window_bounds = array<i64: 1, 32>}, {pipeline_mode = #tpu.pipeline_mode<synchronous>, transform_indices = @transform_3, window_bounds = array<i64: 1, 32>}, {pipeline_mode = #tpu.pipeline_mode<synchronous>, transform_indices = @transform_4, window_bounds = array<i64: 32, 128>}, {pipeline_mode = #tpu.pipeline_mode<synchronous>, transform_indices = @transform_5, window_bounds = array<i64: 1, 128>}, {pipeline_mode = #tpu.pipeline_mode<synchronous>, transform_indices = @transform_6, window_bounds = array<i64: 32, 32>}, {pipeline_mode = #tpu.pipeline_mode<synchronous>, transform_indices = @transform_7, window_bounds = array<i64: 1, 32>}, {pipeline_mode = #tpu.pipeline_mode<synchronous>, transform_indices = @transform_8, window_bounds = array<i64: 32, 32>}, {pipeline_mode = #tpu.pipeline_mode<synchronous>, transform_indices = @transform_9, window_bounds = array<i64: 1, 32>}, {pipeline_mode = #tpu.pipeline_mode<synchronous>, transform_indices = @transform_10, window_bounds = array<i64: 32, 32>}, {pipeline_mode = #tpu.pipeline_mode<synchronous>, transform_indices = @transform_11, window_bounds = array<i64: 1, 32>}, {transform_indices = @transform_12, window_bounds = array<i64: 1, 8, 128>}, {transform_indices = @transform_13, window_bounds = array<i64: 1, 8, 4>}]} {
    %c0_i32 = arith.constant 0 : i32
    %0 = arith.cmpi eq, %arg1, %c0_i32 : i32
    %1 = arith.extui %0 : i1 to i32
    %c0_i32_0 = arith.constant 0 : i32
    %2 = arith.cmpi ne, %1, %c0_i32_0 : i32
    scf.if %2 {
      %c0_12 = arith.constant 0 : index
      %c0_13 = arith.constant 0 : index
      %c0_14 = arith.constant 0 : index
      %23 = vector.load %arg2[%c0_12, %c0_13, %c0_14] : memref<1x8x32xf32, #tpu.memory_space<vmem>>, vector<1x8x32xf32>
      %24 = vector.shape_cast %23 : vector<1x8x32xf32> to vector<8x32xf32>
      %c0_15 = arith.constant 0 : index
      %c0_16 = arith.constant 0 : index
      %25 = vector.load %arg4[%c0_15, %c0_16] : memref<1x32xf32, #tpu.memory_space<vmem>>, vector<1x32xf32>
      %c0_17 = arith.constant 0 : index
      %c0_18 = arith.constant 0 : index
      %26 = vector.load %arg5[%c0_17, %c0_18] : memref<1x32xf32, #tpu.memory_space<vmem>>, vector<1x32xf32>
      %cst_19 = arith.constant dense<0.000000e+00> : vector<8xf32>
      %27 = vector.multi_reduction <add>, %24, %cst_19 [1] : vector<8x32xf32> to vector<8xf32>
      %28 = vector.shape_cast %27 : vector<8xf32> to vector<8x1xf32>
      %cst_20 = arith.constant 3.200000e+01 : f32
      %29 = vector.broadcast %cst_20 : f32 to vector<8x1xf32>
      %30 = arith.divf %28, %29 : vector<8x1xf32>
      %31 = vector.broadcast %30 : vector<8x1xf32> to vector<8x32xf32>
      %32 = arith.subf %24, %31 : vector<8x32xf32>
      %33 = arith.mulf %32, %32 : vector<8x32xf32>
      %cst_21 = arith.constant dense<0.000000e+00> : vector<8xf32>
      %34 = vector.multi_reduction <add>, %33, %cst_21 [1] : vector<8x32xf32> to vector<8xf32>
      %35 = vector.shape_cast %34 : vector<8xf32> to vector<8x1xf32>
      %cst_22 = arith.constant 3.200000e+01 : f32
      %36 = vector.broadcast %cst_22 : f32 to vector<8x1xf32>
      %37 = arith.divf %35, %36 : vector<8x1xf32>
      %38 = vector.broadcast %30 : vector<8x1xf32> to vector<8x32xf32>
      %39 = arith.subf %24, %38 : vector<8x32xf32>
      %cst_23 = arith.constant 9.99999974E-6 : f32
      %40 = vector.broadcast %cst_23 : f32 to vector<8x1xf32>
      %41 = arith.addf %37, %40 : vector<8x1xf32>
      %42 = math.rsqrt %41 : vector<8x1xf32>
      %43 = vector.broadcast %42 : vector<8x1xf32> to vector<8x32xf32>
      %44 = arith.mulf %39, %43 : vector<8x32xf32>
      %45 = vector.broadcast %25 : vector<1x32xf32> to vector<8x32xf32>
      %46 = arith.mulf %44, %45 : vector<8x32xf32>
      %47 = vector.broadcast %26 : vector<1x32xf32> to vector<8x32xf32>
      %48 = arith.addf %46, %47 : vector<8x32xf32>
      %c0_24 = arith.constant 0 : index
      %c0_25 = arith.constant 0 : index
      %49 = vector.load %arg6[%c0_24, %c0_25] : memref<32x128xbf16, #tpu.memory_space<vmem>>, vector<32x128xbf16>
      %50 = arith.truncf %48 : vector<8x32xf32> to vector<8x32xbf16>
      %cst_26 = arith.constant dense<0.000000e+00> : vector<8x128xf32>
      %51 = tpu.matmul %50, %49, %cst_26 {dimension_numbers = #tpu.dot_dimension_numbers<[1], [0], [0], [1], [0, 0, 1, 1], [], []>} : vector<8x32xbf16>, vector<32x128xbf16>, vector<8x128xf32> -> vector<8x128xf32>
      %c0_27 = arith.constant 0 : index
      %c0_28 = arith.constant 0 : index
      %52 = vector.load %arg7[%c0_27, %c0_28] : memref<1x128xf32, #tpu.memory_space<vmem>>, vector<1x128xf32>
      %53 = vector.broadcast %52 : vector<1x128xf32> to vector<8x128xf32>
      %54 = arith.addf %51, %53 : vector<8x128xf32>
      %c0_29 = arith.constant 0 : index
      %c0_30 = arith.constant 0 : index
      %c0_31 = arith.constant 0 : index
      %55 = vector.load %arg14[%c0_29, %c0_30, %c0_31] : memref<1x8x128xf32, #tpu.memory_space<vmem>>, vector<1x8x128xf32>
      %56 = vector.shape_cast %55 : vector<1x8x128xf32> to vector<8x128xf32>
      %57 = vector.shape_cast %54 : vector<8x128xf32> to vector<1x8x128xf32>
      tpu.vector_store %arg14[%c0_29, %c0_30, %c0_31], %57 {strides = array<i32>} : memref<1x8x128xf32, #tpu.memory_space<vmem>>, vector<1x8x128xf32>,
      %c0_32 = arith.constant 0 : index
      %c0_33 = arith.constant 0 : index
      %58 = vector.load %arg8[%c0_32, %c0_33] : memref<32x32xbf16, #tpu.memory_space<vmem>>, vector<32x32xbf16>
      %59 = arith.truncf %48 : vector<8x32xf32> to vector<8x32xbf16>
      %cst_34 = arith.constant dense<0.000000e+00> : vector<8x32xf32>
      %60 = tpu.matmul %59, %58, %cst_34 {dimension_numbers = #tpu.dot_dimension_numbers<[1], [0], [0], [1], [0, 0, 1, 1], [], []>} : vector<8x32xbf16>, vector<32x32xbf16>, vector<8x32xf32> -> vector<8x32xf32>
      %c0_35 = arith.constant 0 : index
      %c0_36 = arith.constant 0 : index
      %61 = vector.load %arg9[%c0_35, %c0_36] : memref<1x32xf32, #tpu.memory_space<vmem>>, vector<1x32xf32>
      %62 = vector.broadcast %61 : vector<1x32xf32> to vector<8x32xf32>
      %63 = arith.addf %60, %62 : vector<8x32xf32>
      %cst_37 = arith.constant 0.000000e+00 : f32
      %64 = vector.broadcast %cst_37 : f32 to vector<8x32xf32>
      %65 = arith.maximumf %63, %64 : vector<8x32xf32>
      %c0_38 = arith.constant 0 : index
      %c0_39 = arith.constant 0 : index
      %66 = vector.load %arg10[%c0_38, %c0_39] : memref<32x32xbf16, #tpu.memory_space<vmem>>, vector<32x32xbf16>
      %67 = arith.truncf %65 : vector<8x32xf32> to vector<8x32xbf16>
      %cst_40 = arith.constant dense<0.000000e+00> : vector<8x32xf32>
      %68 = tpu.matmul %67, %66, %cst_40 {dimension_numbers = #tpu.dot_dimension_numbers<[1], [0], [0], [1], [0, 0, 1, 1], [], []>} : vector<8x32xbf16>, vector<32x32xbf16>, vector<8x32xf32> -> vector<8x32xf32>
      %c0_41 = arith.constant 0 : index
      %c0_42 = arith.constant 0 : index
      %69 = vector.load %arg11[%c0_41, %c0_42] : memref<1x32xf32, #tpu.memory_space<vmem>>, vector<1x32xf32>
      %70 = vector.broadcast %69 : vector<1x32xf32> to vector<8x32xf32>
      %71 = arith.addf %68, %70 : vector<8x32xf32>
      %cst_43 = arith.constant 0.000000e+00 : f32
      %72 = vector.broadcast %cst_43 : f32 to vector<8x32xf32>
      %73 = arith.maximumf %71, %72 : vector<8x32xf32>
      %c0_44 = arith.constant 0 : index
      %c0_45 = arith.constant 0 : index
      %74 = vector.load %arg12[%c0_44, %c0_45] : memref<32x32xbf16, #tpu.memory_space<vmem>>, vector<32x32xbf16>
      %75 = arith.truncf %73 : vector<8x32xf32> to vector<8x32xbf16>
      %cst_46 = arith.constant dense<0.000000e+00> : vector<8x32xf32>
      %76 = tpu.matmul %75, %74, %cst_46 {dimension_numbers = #tpu.dot_dimension_numbers<[1], [0], [0], [1], [0, 0, 1, 1], [], []>} : vector<8x32xbf16>, vector<32x32xbf16>, vector<8x32xf32> -> vector<8x32xf32>
      %c0_47 = arith.constant 0 : index
      %c0_48 = arith.constant 0 : index
      %77 = vector.load %arg13[%c0_47, %c0_48] : memref<1x32xf32, #tpu.memory_space<vmem>>, vector<1x32xf32>
      %78 = vector.broadcast %77 : vector<1x32xf32> to vector<8x32xf32>
      %79 = arith.addf %76, %78 : vector<8x32xf32>
      %cst_49 = arith.constant 0.000000e+00 : f32
      %80 = vector.broadcast %cst_49 : f32 to vector<8x32xf32>
      %81 = arith.maximumf %79, %80 : vector<8x32xf32>
      %c0_50 = arith.constant 0 : index
      %c0_51 = arith.constant 0 : index
      %82 = vector.load %arg16[%c0_50, %c0_51] : memref<8x32xf32, #tpu.memory_space<vmem>>, vector<8x32xf32>
      tpu.vector_store %arg16[%c0_50, %c0_51], %81 {strides = array<i32>} : memref<8x32xf32, #tpu.memory_space<vmem>>, vector<8x32xf32>,
    } else {
    }
    %c0 = arith.constant 0 : index
    %c0_1 = arith.constant 0 : index
    %3 = vector.load %arg16[%c0, %c0_1] : memref<8x32xf32, #tpu.memory_space<vmem>>, vector<8x32xf32>
    %c0_2 = arith.constant 0 : index
    %c0_3 = arith.constant 0 : index
    %c0_4 = arith.constant 0 : index
    %4 = vector.load %arg3[%c0_2, %c0_3, %c0_4] : memref<1x32x4xbf16, #tpu.memory_space<vmem>>, vector<1x32x4xbf16>
    %5 = vector.shape_cast %4 : vector<1x32x4xbf16> to vector<32x4xbf16>
    %6 = arith.truncf %3 : vector<8x32xf32> to vector<8x32xbf16>
    %cst = arith.constant dense<0.000000e+00> : vector<8x4xf32>
    %7 = tpu.matmul %6, %5, %cst {dimension_numbers = #tpu.dot_dimension_numbers<[1], [0], [0], [1], [0, 0, 1, 1], [], []>} : vector<8x32xbf16>, vector<32x4xbf16>, vector<8x4xf32> -> vector<8x4xf32>
    %cst_5 = arith.constant 0.000000e+00 : f32
    %8 = vector.broadcast %cst_5 : f32 to vector<8x4xf32>
    %9 = arith.cmpf olt, %7, %8 : vector<8x4xf32>
    %10 = arith.extui %9 : vector<8x4xi1> to vector<8x4xi32>
    %11 = arith.sitofp %10 : vector<8x4xi32> to vector<8x4xf32>
    %cst_6 = arith.constant dense<0.000000e+00> : vector<8xf32>
    %12 = vector.multi_reduction <add>, %11, %cst_6 [1] : vector<8x4xf32> to vector<8xf32>
    %13 = vector.shape_cast %12 : vector<8xf32> to vector<8x1xf32>
    %cst_7 = arith.constant 3.500000e+00 : f32
    %14 = vector.broadcast %cst_7 : f32 to vector<8x1xf32>
    %15 = arith.cmpf oge, %13, %14 : vector<8x1xf32>
    %cst_8 = arith.constant dense<true> : vector<8x1xi1>
    %16 = arith.xori %15, %cst_8 : vector<8x1xi1>
    %17 = vector.broadcast %16 : vector<8x1xi1> to vector<8x4xi1>
    %18 = arith.andi %9, %17 : vector<8x4xi1>
    %19 = arith.extui %18 : vector<8x4xi1> to vector<8x4xi8>
    %c0_9 = arith.constant 0 : index
    %c0_10 = arith.constant 0 : index
    %c0_11 = arith.constant 0 : index
    %20 = vector.load %arg15[%c0_9, %c0_10, %c0_11] : memref<1x8x4xi8, #tpu.memory_space<vmem>>, vector<1x8x4xi8>
    %21 = vector.shape_cast %20 : vector<1x8x4xi8> to vector<8x4xi8>
    %22 = vector.shape_cast %19 : vector<8x4xi8> to vector<1x8x4xi8>
    tpu.vector_store %arg15[%c0_9, %c0_10, %c0_11], %22 {strides = array<i32>} : memref<1x8x4xi8, #tpu.memory_space<vmem>>, vector<1x8x4xi8>,
    return
  }
  func.func @transform_0(%arg0: i32, %arg1: i32) -> (i32, i32, i32) {
    %c0_i32 = arith.constant 0 : i32
    %c0_i32_0 = arith.constant 0 : i32
    %c0_i32_1 = arith.constant 0 : i32
    return %arg0, %c0_i32, %c0_i32_0 : i32, i32, i32
  }
  func.func @transform_1(%arg0: i32, %arg1: i32) -> (i32, i32, i32) {
    %c0_i32 = arith.constant 0 : i32
    %c0_i32_0 = arith.constant 0 : i32
    return %arg0, %c0_i32, %arg1 : i32, i32, i32
  }
  func.func @transform_2(%arg0: i32, %arg1: i32) -> (i32, i32) {
    %c0_i32 = arith.constant 0 : i32
    %c0_i32_0 = arith.constant 0 : i32
    %c0_i32_1 = arith.constant 0 : i32
    return %c0_i32, %c0_i32_0 : i32, i32
  }
  func.func @transform_3(%arg0: i32, %arg1: i32) -> (i32, i32) {
    %c0_i32 = arith.constant 0 : i32
    %c0_i32_0 = arith.constant 0 : i32
    %c0_i32_1 = arith.constant 0 : i32
    return %c0_i32, %c0_i32_0 : i32, i32
  }
  func.func @transform_4(%arg0: i32, %arg1: i32) -> (i32, i32) {
    %c0_i32 = arith.constant 0 : i32
    %c0_i32_0 = arith.constant 0 : i32
    %c0_i32_1 = arith.constant 0 : i32
    return %c0_i32, %c0_i32_0 : i32, i32
  }
  func.func @transform_5(%arg0: i32, %arg1: i32) -> (i32, i32) {
    %c0_i32 = arith.constant 0 : i32
    %c0_i32_0 = arith.constant 0 : i32
    %c0_i32_1 = arith.constant 0 : i32
    return %c0_i32, %c0_i32_0 : i32, i32
  }
  func.func @transform_6(%arg0: i32, %arg1: i32) -> (i32, i32) {
    %c0_i32 = arith.constant 0 : i32
    %c0_i32_0 = arith.constant 0 : i32
    %c0_i32_1 = arith.constant 0 : i32
    return %c0_i32, %c0_i32_0 : i32, i32
  }
  func.func @transform_7(%arg0: i32, %arg1: i32) -> (i32, i32) {
    %c0_i32 = arith.constant 0 : i32
    %c0_i32_0 = arith.constant 0 : i32
    %c0_i32_1 = arith.constant 0 : i32
    return %c0_i32, %c0_i32_0 : i32, i32
  }
  func.func @transform_8(%arg0: i32, %arg1: i32) -> (i32, i32) {
    %c0_i32 = arith.constant 0 : i32
    %c0_i32_0 = arith.constant 0 : i32
    %c0_i32_1 = arith.constant 0 : i32
    return %c0_i32, %c0_i32_0 : i32, i32
  }
  func.func @transform_9(%arg0: i32, %arg1: i32) -> (i32, i32) {
    %c0_i32 = arith.constant 0 : i32
    %c0_i32_0 = arith.constant 0 : i32
    %c0_i32_1 = arith.constant 0 : i32
    return %c0_i32, %c0_i32_0 : i32, i32
  }
  func.func @transform_10(%arg0: i32, %arg1: i32) -> (i32, i32) {
    %c0_i32 = arith.constant 0 : i32
    %c0_i32_0 = arith.constant 0 : i32
    %c0_i32_1 = arith.constant 0 : i32
    return %c0_i32, %c0_i32_0 : i32, i32
  }
  func.func @transform_11(%arg0: i32, %arg1: i32) -> (i32, i32) {
    %c0_i32 = arith.constant 0 : i32
    %c0_i32_0 = arith.constant 0 : i32
    %c0_i32_1 = arith.constant 0 : i32
    return %c0_i32, %c0_i32_0 : i32, i32
  }
  func.func @transform_12(%arg0: i32, %arg1: i32) -> (i32, i32, i32) {
    %c0_i32 = arith.constant 0 : i32
    %c0_i32_0 = arith.constant 0 : i32
    %c0_i32_1 = arith.constant 0 : i32
    return %arg0, %c0_i32, %c0_i32_0 : i32, i32, i32
  }
  func.func @transform_13(%arg0: i32, %arg1: i32) -> (i32, i32, i32) {
    %c0_i32 = arith.constant 0 : i32
    %c0_i32_0 = arith.constant 0 : i32
    return %arg0, %c0_i32, %arg1 : i32, i32, i32
  }
}

module attributes {stable_mosaic.version = 11 : i64} {
  func.func @_pred_heads_kernel(%arg0: i32, %arg1: i32, %arg2: memref<1x8x32xf32, #tpu.memory_space<vmem>>, %arg3: memref<1x32x64xbf16, #tpu.memory_space<vmem>>, %arg4: memref<1x32xf32, #tpu.memory_space<vmem>>, %arg5: memref<1x32xf32, #tpu.memory_space<vmem>>, %arg6: memref<32x128xbf16, #tpu.memory_space<vmem>>, %arg7: memref<1x128xf32, #tpu.memory_space<vmem>>, %arg8: memref<32x32xbf16, #tpu.memory_space<vmem>>, %arg9: memref<1x32xf32, #tpu.memory_space<vmem>>, %arg10: memref<32x32xbf16, #tpu.memory_space<vmem>>, %arg11: memref<1x32xf32, #tpu.memory_space<vmem>>, %arg12: memref<32x32xbf16, #tpu.memory_space<vmem>>, %arg13: memref<1x32xf32, #tpu.memory_space<vmem>>, %arg14: memref<1x8x128xf32, #tpu.memory_space<vmem>>, %arg15: memref<1x8x64xf32, #tpu.memory_space<vmem>>, %arg16: memref<8x32xf32, #tpu.memory_space<vmem>>) attributes {dimension_semantics = [#tpu.dimension_semantics<parallel>, #tpu.dimension_semantics<arbitrary>], iteration_bounds = array<i64: 2, 1>, scalar_prefetch = 0 : i64, scratch_operands = 1 : i64, tpu.core_type = #tpu.core_type<tc>, window_params = [{transform_indices = @transform_0, window_bounds = array<i64: 1, 8, 32>}, {transform_indices = @transform_1, window_bounds = array<i64: 1, 32, 64>}, {pipeline_mode = #tpu.pipeline_mode<synchronous>, transform_indices = @transform_2, window_bounds = array<i64: 1, 32>}, {pipeline_mode = #tpu.pipeline_mode<synchronous>, transform_indices = @transform_3, window_bounds = array<i64: 1, 32>}, {pipeline_mode = #tpu.pipeline_mode<synchronous>, transform_indices = @transform_4, window_bounds = array<i64: 32, 128>}, {pipeline_mode = #tpu.pipeline_mode<synchronous>, transform_indices = @transform_5, window_bounds = array<i64: 1, 128>}, {pipeline_mode = #tpu.pipeline_mode<synchronous>, transform_indices = @transform_6, window_bounds = array<i64: 32, 32>}, {pipeline_mode = #tpu.pipeline_mode<synchronous>, transform_indices = @transform_7, window_bounds = array<i64: 1, 32>}, {pipeline_mode = #tpu.pipeline_mode<synchronous>, transform_indices = @transform_8, window_bounds = array<i64: 32, 32>}, {pipeline_mode = #tpu.pipeline_mode<synchronous>, transform_indices = @transform_9, window_bounds = array<i64: 1, 32>}, {pipeline_mode = #tpu.pipeline_mode<synchronous>, transform_indices = @transform_10, window_bounds = array<i64: 32, 32>}, {pipeline_mode = #tpu.pipeline_mode<synchronous>, transform_indices = @transform_11, window_bounds = array<i64: 1, 32>}, {transform_indices = @transform_12, window_bounds = array<i64: 1, 8, 128>}, {transform_indices = @transform_13, window_bounds = array<i64: 1, 8, 64>}]} {
    %c0_i32 = arith.constant 0 : i32
    %0 = arith.cmpi eq, %arg1, %c0_i32 : i32
    %1 = arith.extui %0 : i1 to i32
    %c0_i32_0 = arith.constant 0 : i32
    %2 = arith.cmpi ne, %1, %c0_i32_0 : i32
    scf.if %2 {
      %c0_8 = arith.constant 0 : index
      %c0_9 = arith.constant 0 : index
      %c0_10 = arith.constant 0 : index
      %11 = vector.load %arg2[%c0_8, %c0_9, %c0_10] : memref<1x8x32xf32, #tpu.memory_space<vmem>>, vector<1x8x32xf32>
      %12 = vector.shape_cast %11 : vector<1x8x32xf32> to vector<8x32xf32>
      %c0_11 = arith.constant 0 : index
      %c0_12 = arith.constant 0 : index
      %13 = vector.load %arg4[%c0_11, %c0_12] : memref<1x32xf32, #tpu.memory_space<vmem>>, vector<1x32xf32>
      %c0_13 = arith.constant 0 : index
      %c0_14 = arith.constant 0 : index
      %14 = vector.load %arg5[%c0_13, %c0_14] : memref<1x32xf32, #tpu.memory_space<vmem>>, vector<1x32xf32>
      %cst_15 = arith.constant dense<0.000000e+00> : vector<8xf32>
      %15 = vector.multi_reduction <add>, %12, %cst_15 [1] : vector<8x32xf32> to vector<8xf32>
      %16 = vector.shape_cast %15 : vector<8xf32> to vector<8x1xf32>
      %cst_16 = arith.constant 3.200000e+01 : f32
      %17 = vector.broadcast %cst_16 : f32 to vector<8x1xf32>
      %18 = arith.divf %16, %17 : vector<8x1xf32>
      %19 = vector.broadcast %18 : vector<8x1xf32> to vector<8x32xf32>
      %20 = arith.subf %12, %19 : vector<8x32xf32>
      %21 = arith.mulf %20, %20 : vector<8x32xf32>
      %cst_17 = arith.constant dense<0.000000e+00> : vector<8xf32>
      %22 = vector.multi_reduction <add>, %21, %cst_17 [1] : vector<8x32xf32> to vector<8xf32>
      %23 = vector.shape_cast %22 : vector<8xf32> to vector<8x1xf32>
      %cst_18 = arith.constant 3.200000e+01 : f32
      %24 = vector.broadcast %cst_18 : f32 to vector<8x1xf32>
      %25 = arith.divf %23, %24 : vector<8x1xf32>
      %26 = vector.broadcast %18 : vector<8x1xf32> to vector<8x32xf32>
      %27 = arith.subf %12, %26 : vector<8x32xf32>
      %cst_19 = arith.constant 9.99999974E-6 : f32
      %28 = vector.broadcast %cst_19 : f32 to vector<8x1xf32>
      %29 = arith.addf %25, %28 : vector<8x1xf32>
      %30 = math.rsqrt %29 : vector<8x1xf32>
      %31 = vector.broadcast %30 : vector<8x1xf32> to vector<8x32xf32>
      %32 = arith.mulf %27, %31 : vector<8x32xf32>
      %33 = vector.broadcast %13 : vector<1x32xf32> to vector<8x32xf32>
      %34 = arith.mulf %32, %33 : vector<8x32xf32>
      %35 = vector.broadcast %14 : vector<1x32xf32> to vector<8x32xf32>
      %36 = arith.addf %34, %35 : vector<8x32xf32>
      %c0_20 = arith.constant 0 : index
      %c0_21 = arith.constant 0 : index
      %37 = vector.load %arg6[%c0_20, %c0_21] : memref<32x128xbf16, #tpu.memory_space<vmem>>, vector<32x128xbf16>
      %38 = arith.truncf %36 : vector<8x32xf32> to vector<8x32xbf16>
      %cst_22 = arith.constant dense<0.000000e+00> : vector<8x128xf32>
      %39 = tpu.matmul %38, %37, %cst_22 {dimension_numbers = #tpu.dot_dimension_numbers<[1], [0], [0], [1], [0, 0, 1, 1], [], []>} : vector<8x32xbf16>, vector<32x128xbf16>, vector<8x128xf32> -> vector<8x128xf32>
      %c0_23 = arith.constant 0 : index
      %c0_24 = arith.constant 0 : index
      %40 = vector.load %arg7[%c0_23, %c0_24] : memref<1x128xf32, #tpu.memory_space<vmem>>, vector<1x128xf32>
      %41 = vector.broadcast %40 : vector<1x128xf32> to vector<8x128xf32>
      %42 = arith.addf %39, %41 : vector<8x128xf32>
      %c0_25 = arith.constant 0 : index
      %c0_26 = arith.constant 0 : index
      %c0_27 = arith.constant 0 : index
      %43 = vector.load %arg14[%c0_25, %c0_26, %c0_27] : memref<1x8x128xf32, #tpu.memory_space<vmem>>, vector<1x8x128xf32>
      %44 = vector.shape_cast %43 : vector<1x8x128xf32> to vector<8x128xf32>
      %45 = vector.shape_cast %42 : vector<8x128xf32> to vector<1x8x128xf32>
      tpu.vector_store %arg14[%c0_25, %c0_26, %c0_27], %45 {strides = array<i32>} : memref<1x8x128xf32, #tpu.memory_space<vmem>>, vector<1x8x128xf32>,
      %c0_28 = arith.constant 0 : index
      %c0_29 = arith.constant 0 : index
      %46 = vector.load %arg8[%c0_28, %c0_29] : memref<32x32xbf16, #tpu.memory_space<vmem>>, vector<32x32xbf16>
      %47 = arith.truncf %36 : vector<8x32xf32> to vector<8x32xbf16>
      %cst_30 = arith.constant dense<0.000000e+00> : vector<8x32xf32>
      %48 = tpu.matmul %47, %46, %cst_30 {dimension_numbers = #tpu.dot_dimension_numbers<[1], [0], [0], [1], [0, 0, 1, 1], [], []>} : vector<8x32xbf16>, vector<32x32xbf16>, vector<8x32xf32> -> vector<8x32xf32>
      %c0_31 = arith.constant 0 : index
      %c0_32 = arith.constant 0 : index
      %49 = vector.load %arg9[%c0_31, %c0_32] : memref<1x32xf32, #tpu.memory_space<vmem>>, vector<1x32xf32>
      %50 = vector.broadcast %49 : vector<1x32xf32> to vector<8x32xf32>
      %51 = arith.addf %48, %50 : vector<8x32xf32>
      %cst_33 = arith.constant 0.000000e+00 : f32
      %52 = vector.broadcast %cst_33 : f32 to vector<8x32xf32>
      %53 = arith.maximumf %51, %52 : vector<8x32xf32>
      %c0_34 = arith.constant 0 : index
      %c0_35 = arith.constant 0 : index
      %54 = vector.load %arg10[%c0_34, %c0_35] : memref<32x32xbf16, #tpu.memory_space<vmem>>, vector<32x32xbf16>
      %55 = arith.truncf %53 : vector<8x32xf32> to vector<8x32xbf16>
      %cst_36 = arith.constant dense<0.000000e+00> : vector<8x32xf32>
      %56 = tpu.matmul %55, %54, %cst_36 {dimension_numbers = #tpu.dot_dimension_numbers<[1], [0], [0], [1], [0, 0, 1, 1], [], []>} : vector<8x32xbf16>, vector<32x32xbf16>, vector<8x32xf32> -> vector<8x32xf32>
      %c0_37 = arith.constant 0 : index
      %c0_38 = arith.constant 0 : index
      %57 = vector.load %arg11[%c0_37, %c0_38] : memref<1x32xf32, #tpu.memory_space<vmem>>, vector<1x32xf32>
      %58 = vector.broadcast %57 : vector<1x32xf32> to vector<8x32xf32>
      %59 = arith.addf %56, %58 : vector<8x32xf32>
      %cst_39 = arith.constant 0.000000e+00 : f32
      %60 = vector.broadcast %cst_39 : f32 to vector<8x32xf32>
      %61 = arith.maximumf %59, %60 : vector<8x32xf32>
      %c0_40 = arith.constant 0 : index
      %c0_41 = arith.constant 0 : index
      %62 = vector.load %arg12[%c0_40, %c0_41] : memref<32x32xbf16, #tpu.memory_space<vmem>>, vector<32x32xbf16>
      %63 = arith.truncf %61 : vector<8x32xf32> to vector<8x32xbf16>
      %cst_42 = arith.constant dense<0.000000e+00> : vector<8x32xf32>
      %64 = tpu.matmul %63, %62, %cst_42 {dimension_numbers = #tpu.dot_dimension_numbers<[1], [0], [0], [1], [0, 0, 1, 1], [], []>} : vector<8x32xbf16>, vector<32x32xbf16>, vector<8x32xf32> -> vector<8x32xf32>
      %c0_43 = arith.constant 0 : index
      %c0_44 = arith.constant 0 : index
      %65 = vector.load %arg13[%c0_43, %c0_44] : memref<1x32xf32, #tpu.memory_space<vmem>>, vector<1x32xf32>
      %66 = vector.broadcast %65 : vector<1x32xf32> to vector<8x32xf32>
      %67 = arith.addf %64, %66 : vector<8x32xf32>
      %cst_45 = arith.constant 0.000000e+00 : f32
      %68 = vector.broadcast %cst_45 : f32 to vector<8x32xf32>
      %69 = arith.maximumf %67, %68 : vector<8x32xf32>
      %c0_46 = arith.constant 0 : index
      %c0_47 = arith.constant 0 : index
      %70 = vector.load %arg16[%c0_46, %c0_47] : memref<8x32xf32, #tpu.memory_space<vmem>>, vector<8x32xf32>
      tpu.vector_store %arg16[%c0_46, %c0_47], %69 {strides = array<i32>} : memref<8x32xf32, #tpu.memory_space<vmem>>, vector<8x32xf32>,
    } else {
    }
    %c0 = arith.constant 0 : index
    %c0_1 = arith.constant 0 : index
    %3 = vector.load %arg16[%c0, %c0_1] : memref<8x32xf32, #tpu.memory_space<vmem>>, vector<8x32xf32>
    %c0_2 = arith.constant 0 : index
    %c0_3 = arith.constant 0 : index
    %c0_4 = arith.constant 0 : index
    %4 = vector.load %arg3[%c0_2, %c0_3, %c0_4] : memref<1x32x64xbf16, #tpu.memory_space<vmem>>, vector<1x32x64xbf16>
    %5 = vector.shape_cast %4 : vector<1x32x64xbf16> to vector<32x64xbf16>
    %6 = arith.truncf %3 : vector<8x32xf32> to vector<8x32xbf16>
    %cst = arith.constant dense<0.000000e+00> : vector<8x64xf32>
    %7 = tpu.matmul %6, %5, %cst {dimension_numbers = #tpu.dot_dimension_numbers<[1], [0], [0], [1], [0, 0, 1, 1], [], []>} : vector<8x32xbf16>, vector<32x64xbf16>, vector<8x64xf32> -> vector<8x64xf32>
    %c0_5 = arith.constant 0 : index
    %c0_6 = arith.constant 0 : index
    %c0_7 = arith.constant 0 : index
    %8 = vector.load %arg15[%c0_5, %c0_6, %c0_7] : memref<1x8x64xf32, #tpu.memory_space<vmem>>, vector<1x8x64xf32>
    %9 = vector.shape_cast %8 : vector<1x8x64xf32> to vector<8x64xf32>
    %10 = vector.shape_cast %7 : vector<8x64xf32> to vector<1x8x64xf32>
    tpu.vector_store %arg15[%c0_5, %c0_6, %c0_7], %10 {strides = array<i32>} : memref<1x8x64xf32, #tpu.memory_space<vmem>>, vector<1x8x64xf32>,
    return
  }
  func.func @transform_0(%arg0: i32, %arg1: i32) -> (i32, i32, i32) {
    %c0_i32 = arith.constant 0 : i32
    %c0_i32_0 = arith.constant 0 : i32
    %c0_i32_1 = arith.constant 0 : i32
    return %arg0, %c0_i32, %c0_i32_0 : i32, i32, i32
  }
  func.func @transform_1(%arg0: i32, %arg1: i32) -> (i32, i32, i32) {
    %c0_i32 = arith.constant 0 : i32
    %c0_i32_0 = arith.constant 0 : i32
    return %arg0, %c0_i32, %arg1 : i32, i32, i32
  }
  func.func @transform_2(%arg0: i32, %arg1: i32) -> (i32, i32) {
    %c0_i32 = arith.constant 0 : i32
    %c0_i32_0 = arith.constant 0 : i32
    %c0_i32_1 = arith.constant 0 : i32
    return %c0_i32, %c0_i32_0 : i32, i32
  }
  func.func @transform_3(%arg0: i32, %arg1: i32) -> (i32, i32) {
    %c0_i32 = arith.constant 0 : i32
    %c0_i32_0 = arith.constant 0 : i32
    %c0_i32_1 = arith.constant 0 : i32
    return %c0_i32, %c0_i32_0 : i32, i32
  }
  func.func @transform_4(%arg0: i32, %arg1: i32) -> (i32, i32) {
    %c0_i32 = arith.constant 0 : i32
    %c0_i32_0 = arith.constant 0 : i32
    %c0_i32_1 = arith.constant 0 : i32
    return %c0_i32, %c0_i32_0 : i32, i32
  }
  func.func @transform_5(%arg0: i32, %arg1: i32) -> (i32, i32) {
    %c0_i32 = arith.constant 0 : i32
    %c0_i32_0 = arith.constant 0 : i32
    %c0_i32_1 = arith.constant 0 : i32
    return %c0_i32, %c0_i32_0 : i32, i32
  }
  func.func @transform_6(%arg0: i32, %arg1: i32) -> (i32, i32) {
    %c0_i32 = arith.constant 0 : i32
    %c0_i32_0 = arith.constant 0 : i32
    %c0_i32_1 = arith.constant 0 : i32
    return %c0_i32, %c0_i32_0 : i32, i32
  }
  func.func @transform_7(%arg0: i32, %arg1: i32) -> (i32, i32) {
    %c0_i32 = arith.constant 0 : i32
    %c0_i32_0 = arith.constant 0 : i32
    %c0_i32_1 = arith.constant 0 : i32
    return %c0_i32, %c0_i32_0 : i32, i32
  }
  func.func @transform_8(%arg0: i32, %arg1: i32) -> (i32, i32) {
    %c0_i32 = arith.constant 0 : i32
    %c0_i32_0 = arith.constant 0 : i32
    %c0_i32_1 = arith.constant 0 : i32
    return %c0_i32, %c0_i32_0 : i32, i32
  }
  func.func @transform_9(%arg0: i32, %arg1: i32) -> (i32, i32) {
    %c0_i32 = arith.constant 0 : i32
    %c0_i32_0 = arith.constant 0 : i32
    %c0_i32_1 = arith.constant 0 : i32
    return %c0_i32, %c0_i32_0 : i32, i32
  }
  func.func @transform_10(%arg0: i32, %arg1: i32) -> (i32, i32) {
    %c0_i32 = arith.constant 0 : i32
    %c0_i32_0 = arith.constant 0 : i32
    %c0_i32_1 = arith.constant 0 : i32
    return %c0_i32, %c0_i32_0 : i32, i32
  }
  func.func @transform_11(%arg0: i32, %arg1: i32) -> (i32, i32) {
    %c0_i32 = arith.constant 0 : i32
    %c0_i32_0 = arith.constant 0 : i32
    %c0_i32_1 = arith.constant 0 : i32
    return %c0_i32, %c0_i32_0 : i32, i32
  }
  func.func @transform_12(%arg0: i32, %arg1: i32) -> (i32, i32, i32) {
    %c0_i32 = arith.constant 0 : i32
    %c0_i32_0 = arith.constant 0 : i32
    %c0_i32_1 = arith.constant 0 : i32
    return %arg0, %c0_i32, %c0_i32_0 : i32, i32, i32
  }
  func.func @transform_13(%arg0: i32, %arg1: i32) -> (i32, i32, i32) {
    %c0_i32 = arith.constant 0 : i32
    %c0_i32_0 = arith.constant 0 : i32
    return %arg0, %c0_i32, %arg1 : i32, i32, i32
  }
}

module attributes {stable_mosaic.version = 11 : i64} {
  func.func @_decoder_block_kernel(%arg0: i32, %arg1: i32, %arg2: memref<1x8x32xf32, #tpu.memory_space<vmem>>, %arg3: memref<1x4x32xbf16, #tpu.memory_space<vmem>>, %arg4: memref<1x4x32xbf16, #tpu.memory_space<vmem>>, %arg5: memref<1x8x4xi8, #tpu.memory_space<vmem>>, %arg6: memref<32x96xbf16, #tpu.memory_space<vmem>>, %arg7: memref<1x96xf32, #tpu.memory_space<vmem>>, %arg8: memref<32x32xbf16, #tpu.memory_space<vmem>>, %arg9: memref<1x32xf32, #tpu.memory_space<vmem>>, %arg10: memref<1x32xf32, #tpu.memory_space<vmem>>, %arg11: memref<1x32xf32, #tpu.memory_space<vmem>>, %arg12: memref<32x96xbf16, #tpu.memory_space<vmem>>, %arg13: memref<1x96xf32, #tpu.memory_space<vmem>>, %arg14: memref<32x32xbf16, #tpu.memory_space<vmem>>, %arg15: memref<1x32xf32, #tpu.memory_space<vmem>>, %arg16: memref<1x32xf32, #tpu.memory_space<vmem>>, %arg17: memref<1x32xf32, #tpu.memory_space<vmem>>, %arg18: memref<32x64xbf16, #tpu.memory_space<vmem>>, %arg19: memref<1x64xf32, #tpu.memory_space<vmem>>, %arg20: memref<64x32xbf16, #tpu.memory_space<vmem>>, %arg21: memref<1x32xf32, #tpu.memory_space<vmem>>, %arg22: memref<1x32xf32, #tpu.memory_space<vmem>>, %arg23: memref<1x32xf32, #tpu.memory_space<vmem>>, %arg24: memref<1x8x32xf32, #tpu.memory_space<vmem>>, %arg25: memref<8x32xf32, #tpu.memory_space<vmem>>, %arg26: memref<4x8x1xf32, #tpu.memory_space<vmem>>, %arg27: memref<4x8x1xf32, #tpu.memory_space<vmem>>, %arg28: memref<4x8x8xf32, #tpu.memory_space<vmem>>) attributes {dimension_semantics = [#tpu.dimension_semantics<parallel>, #tpu.dimension_semantics<arbitrary>], iteration_bounds = array<i64: 2, 1>, scalar_prefetch = 0 : i64, scratch_operands = 4 : i64, tpu.core_type = #tpu.core_type<tc>, window_params = [{transform_indices = @transform_0, window_bounds = array<i64: 1, 8, 32>}, {transform_indices = @transform_1, window_bounds = array<i64: 1, 4, 32>}, {transform_indices = @transform_2, window_bounds = array<i64: 1, 4, 32>}, {transform_indices = @transform_3, window_bounds = array<i64: 1, 8, 4>}, {pipeline_mode = #tpu.pipeline_mode<synchronous>, transform_indices = @transform_4, window_bounds = array<i64: 32, 96>}, {pipeline_mode = #tpu.pipeline_mode<synchronous>, transform_indices = @transform_5, window_bounds = array<i64: 1, 96>}, {pipeline_mode = #tpu.pipeline_mode<synchronous>, transform_indices = @transform_6, window_bounds = array<i64: 32, 32>}, {pipeline_mode = #tpu.pipeline_mode<synchronous>, transform_indices = @transform_7, window_bounds = array<i64: 1, 32>}, {pipeline_mode = #tpu.pipeline_mode<synchronous>, transform_indices = @transform_8, window_bounds = array<i64: 1, 32>}, {pipeline_mode = #tpu.pipeline_mode<synchronous>, transform_indices = @transform_9, window_bounds = array<i64: 1, 32>}, {pipeline_mode = #tpu.pipeline_mode<synchronous>, transform_indices = @transform_10, window_bounds = array<i64: 32, 96>}, {pipeline_mode = #tpu.pipeline_mode<synchronous>, transform_indices = @transform_11, window_bounds = array<i64: 1, 96>}, {pipeline_mode = #tpu.pipeline_mode<synchronous>, transform_indices = @transform_12, window_bounds = array<i64: 32, 32>}, {pipeline_mode = #tpu.pipeline_mode<synchronous>, transform_indices = @transform_13, window_bounds = array<i64: 1, 32>}, {pipeline_mode = #tpu.pipeline_mode<synchronous>, transform_indices = @transform_14, window_bounds = array<i64: 1, 32>}, {pipeline_mode = #tpu.pipeline_mode<synchronous>, transform_indices = @transform_15, window_bounds = array<i64: 1, 32>}, {pipeline_mode = #tpu.pipeline_mode<synchronous>, transform_indices = @transform_16, window_bounds = array<i64: 32, 64>}, {pipeline_mode = #tpu.pipeline_mode<synchronous>, transform_indices = @transform_17, window_bounds = array<i64: 1, 64>}, {pipeline_mode = #tpu.pipeline_mode<synchronous>, transform_indices = @transform_18, window_bounds = array<i64: 64, 32>}, {pipeline_mode = #tpu.pipeline_mode<synchronous>, transform_indices = @transform_19, window_bounds = array<i64: 1, 32>}, {pipeline_mode = #tpu.pipeline_mode<synchronous>, transform_indices = @transform_20, window_bounds = array<i64: 1, 32>}, {pipeline_mode = #tpu.pipeline_mode<synchronous>, transform_indices = @transform_21, window_bounds = array<i64: 1, 32>}, {transform_indices = @transform_22, window_bounds = array<i64: 1, 8, 32>}]} {
    %c0_i32 = arith.constant 0 : i32
    %0 = arith.cmpi eq, %arg1, %c0_i32 : i32
    %1 = arith.extui %0 : i1 to i32
    %c0_i32_0 = arith.constant 0 : i32
    %2 = arith.cmpi ne, %1, %c0_i32_0 : i32
    scf.if %2 {
      %c0_106 = arith.constant 0 : index
      %c0_107 = arith.constant 0 : index
      %c0_108 = arith.constant 0 : index
      %186 = vector.load %arg2[%c0_106, %c0_107, %c0_108] : memref<1x8x32xf32, #tpu.memory_space<vmem>>, vector<1x8x32xf32>
      %187 = vector.shape_cast %186 : vector<1x8x32xf32> to vector<8x32xf32>
      %c0_109 = arith.constant 0 : index
      %c0_110 = arith.constant 0 : index
      %188 = vector.load %arg6[%c0_109, %c0_110] : memref<32x96xbf16, #tpu.memory_space<vmem>>, vector<32x32xbf16>
      %189 = arith.truncf %187 : vector<8x32xf32> to vector<8x32xbf16>
      %cst_111 = arith.constant dense<0.000000e+00> : vector<8x32xf32>
      %190 = tpu.matmul %189, %188, %cst_111 {dimension_numbers = #tpu.dot_dimension_numbers<[1], [0], [0], [1], [0, 0, 1, 1], [], []>} : vector<8x32xbf16>, vector<32x32xbf16>, vector<8x32xf32> -> vector<8x32xf32>
      %c0_112 = arith.constant 0 : index
      %c0_113 = arith.constant 0 : index
      %191 = vector.load %arg7[%c0_112, %c0_113] : memref<1x96xf32, #tpu.memory_space<vmem>>, vector<1x32xf32>
      %192 = vector.broadcast %191 : vector<1x32xf32> to vector<8x32xf32>
      %193 = arith.addf %190, %192 : vector<8x32xf32>
      %c0_114 = arith.constant 0 : index
      %c0_115 = arith.constant 0 : index
      %194 = vector.load %arg25[%c0_114, %c0_115] : memref<8x32xf32, #tpu.memory_space<vmem>>, vector<8x32xf32>
      tpu.vector_store %arg25[%c0_114, %c0_115], %193 {strides = array<i32>} : memref<8x32xf32, #tpu.memory_space<vmem>>, vector<8x32xf32>,
      %cst_116 = arith.constant 0xFF800000 : f32
      %195 = vector.broadcast %cst_116 : f32 to vector<4x8x1xf32>
      %c0_117 = arith.constant 0 : index
      %c0_118 = arith.constant 0 : index
      %c0_119 = arith.constant 0 : index
      %196 = vector.load %arg26[%c0_117, %c0_118, %c0_119] : memref<4x8x1xf32, #tpu.memory_space<vmem>>, vector<4x8x1xf32>
      tpu.vector_store %arg26[%c0_117, %c0_118, %c0_119], %195 {strides = array<i32>} : memref<4x8x1xf32, #tpu.memory_space<vmem>>, vector<4x8x1xf32>,
      %cst_120 = arith.constant 0.000000e+00 : f32
      %197 = vector.broadcast %cst_120 : f32 to vector<4x8x1xf32>
      %c0_121 = arith.constant 0 : index
      %c0_122 = arith.constant 0 : index
      %c0_123 = arith.constant 0 : index
      %198 = vector.load %arg27[%c0_121, %c0_122, %c0_123] : memref<4x8x1xf32, #tpu.memory_space<vmem>>, vector<4x8x1xf32>
      tpu.vector_store %arg27[%c0_121, %c0_122, %c0_123], %197 {strides = array<i32>} : memref<4x8x1xf32, #tpu.memory_space<vmem>>, vector<4x8x1xf32>,
      %cst_124 = arith.constant 0.000000e+00 : f32
      %199 = vector.broadcast %cst_124 : f32 to vector<4x8x8xf32>
      %c0_125 = arith.constant 0 : index
      %c0_126 = arith.constant 0 : index
      %c0_127 = arith.constant 0 : index
      %200 = vector.load %arg28[%c0_125, %c0_126, %c0_127] : memref<4x8x8xf32, #tpu.memory_space<vmem>>, vector<4x8x8xf32>
      tpu.vector_store %arg28[%c0_125, %c0_126, %c0_127], %199 {strides = array<i32>} : memref<4x8x8xf32, #tpu.memory_space<vmem>>, vector<4x8x8xf32>,
    } else {
    }
    %c0 = arith.constant 0 : index
    %c0_1 = arith.constant 0 : index
    %c0_2 = arith.constant 0 : index
    %3 = vector.load %arg3[%c0, %c0_1, %c0_2] : memref<1x4x32xbf16, #tpu.memory_space<vmem>>, vector<1x4x32xbf16>
    %4 = vector.shape_cast %3 : vector<1x4x32xbf16> to vector<4x32xbf16>
    %c0_3 = arith.constant 0 : index
    %c0_4 = arith.constant 0 : index
    %c0_5 = arith.constant 0 : index
    %5 = vector.load %arg4[%c0_3, %c0_4, %c0_5] : memref<1x4x32xbf16, #tpu.memory_space<vmem>>, vector<1x4x32xbf16>
    %6 = vector.shape_cast %5 : vector<1x4x32xbf16> to vector<4x32xbf16>
    %c0_6 = arith.constant 0 : index
    %c32 = arith.constant 32 : index
    %7 = vector.load %arg6[%c0_6, %c32] : memref<32x96xbf16, #tpu.memory_space<vmem>>, vector<32x32xbf16>
    %cst = arith.constant dense<0.000000e+00> : vector<4x32xf32>
    %8 = tpu.matmul %4, %7, %cst {dimension_numbers = #tpu.dot_dimension_numbers<[1], [0], [0], [1], [0, 0, 1, 1], [], []>} : vector<4x32xbf16>, vector<32x32xbf16>, vector<4x32xf32> -> vector<4x32xf32>
    %c0_7 = arith.constant 0 : index
    %c32_8 = arith.constant 32 : index
    %9 = vector.load %arg7[%c0_7, %c32_8] : memref<1x96xf32, #tpu.memory_space<vmem>>, vector<1x32xf32>
    %10 = vector.broadcast %9 : vector<1x32xf32> to vector<4x32xf32>
    %11 = arith.addf %8, %10 : vector<4x32xf32>
    %c0_9 = arith.constant 0 : index
    %c64 = arith.constant 64 : index
    %12 = vector.load %arg6[%c0_9, %c64] : memref<32x96xbf16, #tpu.memory_space<vmem>>, vector<32x32xbf16>
    %cst_10 = arith.constant dense<0.000000e+00> : vector<4x32xf32>
    %13 = tpu.matmul %6, %12, %cst_10 {dimension_numbers = #tpu.dot_dimension_numbers<[1], [0], [0], [1], [0, 0, 1, 1], [], []>} : vector<4x32xbf16>, vector<32x32xbf16>, vector<4x32xf32> -> vector<4x32xf32>
    %c0_11 = arith.constant 0 : index
    %c64_12 = arith.constant 64 : index
    %14 = vector.load %arg7[%c0_11, %c64_12] : memref<1x96xf32, #tpu.memory_space<vmem>>, vector<1x32xf32>
    %15 = vector.broadcast %14 : vector<1x32xf32> to vector<4x32xf32>
    %16 = arith.addf %13, %15 : vector<4x32xf32>
    %c0_13 = arith.constant 0 : index
    %c0_14 = arith.constant 0 : index
    %c0_15 = arith.constant 0 : index
    %17 = vector.load %arg5[%c0_13, %c0_14, %c0_15] : memref<1x8x4xi8, #tpu.memory_space<vmem>>, vector<1x8x4xi8>
    %18 = vector.shape_cast %17 : vector<1x8x4xi8> to vector<8x4xi8>
    %19 = arith.sitofp %18 : vector<8x4xi8> to vector<8x4xf32>
    %cst_16 = arith.constant -1.000000e+30 : f32
    %20 = vector.broadcast %cst_16 : f32 to vector<8x4xf32>
    %21 = arith.mulf %19, %20 : vector<8x4xf32>
    %c0_17 = arith.constant 0 : index
    %c0_18 = arith.constant 0 : index
    %22 = vector.load %arg25[%c0_17, %c0_18] : memref<8x32xf32, #tpu.memory_space<vmem>>, vector<8x32xf32>
    %23 = vector.extract_strided_slice %22 {offsets = [0, 0], sizes = [8, 8], strides = [1, 1]} : vector<8x32xf32> to vector<8x8xf32>
    %24 = vector.extract_strided_slice %11 {offsets = [0, 0], sizes = [4, 8], strides = [1, 1]} : vector<4x32xf32> to vector<4x8xf32>
    %25 = arith.truncf %23 : vector<8x8xf32> to vector<8x8xbf16>
    %26 = arith.truncf %24 : vector<4x8xf32> to vector<4x8xbf16>
    %cst_19 = arith.constant dense<0.000000e+00> : vector<8x4xf32>
    %27 = tpu.matmul %25, %26, %cst_19 {dimension_numbers = #tpu.dot_dimension_numbers<[1], [1], [0], [0], [0, 0, 1, 0], [], []>} : vector<8x8xbf16>, vector<4x8xbf16>, vector<8x4xf32> -> vector<8x4xf32>
    %28 = arith.addf %27, %21 : vector<8x4xf32>
    %c0_20 = arith.constant 0 : index
    %c0_21 = arith.constant 0 : index
    %c0_22 = arith.constant 0 : index
    %29 = vector.load %arg26[%c0_20, %c0_21, %c0_22] : memref<4x8x1xf32, #tpu.memory_space<vmem>>, vector<1x8x1xf32>
    %30 = vector.shape_cast %29 : vector<1x8x1xf32> to vector<8x1xf32>
    %cst_23 = arith.constant dense<0xFF800000> : vector<8xf32>
    %31 = vector.multi_reduction <maximumf>, %28, %cst_23 [1] : vector<8x4xf32> to vector<8xf32>
    %32 = vector.shape_cast %31 : vector<8xf32> to vector<8x1xf32>
    %33 = arith.maximumf %30, %32 : vector<8x1xf32>
    %34 = arith.subf %30, %33 : vector<8x1xf32>
    %35 = math.exp %34 : vector<8x1xf32>
    %36 = vector.broadcast %33 : vector<8x1xf32> to vector<8x4xf32>
    %37 = arith.subf %28, %36 : vector<8x4xf32>
    %38 = math.exp %37 : vector<8x4xf32>
    %c0_24 = arith.constant 0 : index
    %c0_25 = arith.constant 0 : index
    %c0_26 = arith.constant 0 : index
    %39 = vector.load %arg27[%c0_24, %c0_25, %c0_26] : memref<4x8x1xf32, #tpu.memory_space<vmem>>, vector<1x8x1xf32>
    %40 = vector.shape_cast %39 : vector<1x8x1xf32> to vector<8x1xf32>
    %41 = arith.mulf %35, %40 : vector<8x1xf32>
    %cst_27 = arith.constant dense<0.000000e+00> : vector<8xf32>
    %42 = vector.multi_reduction <add>, %38, %cst_27 [1] : vector<8x4xf32> to vector<8xf32>
    %43 = vector.shape_cast %42 : vector<8xf32> to vector<8x1xf32>
    %44 = arith.addf %41, %43 : vector<8x1xf32>
    %c0_28 = arith.constant 0 : index
    %c0_29 = arith.constant 0 : index
    %c0_30 = arith.constant 0 : index
    %45 = vector.load %arg27[%c0_28, %c0_29, %c0_30] : memref<4x8x1xf32, #tpu.memory_space<vmem>>, vector<1x8x1xf32>
    %46 = vector.shape_cast %45 : vector<1x8x1xf32> to vector<8x1xf32>
    %47 = vector.shape_cast %44 : vector<8x1xf32> to vector<1x8x1xf32>
    tpu.vector_store %arg27[%c0_28, %c0_29, %c0_30], %47 {strides = array<i32>} : memref<4x8x1xf32, #tpu.memory_space<vmem>>, vector<1x8x1xf32>,
    %c0_31 = arith.constant 0 : index
    %c0_32 = arith.constant 0 : index
    %c0_33 = arith.constant 0 : index
    %48 = vector.load %arg28[%c0_31, %c0_32, %c0_33] : memref<4x8x8xf32, #tpu.memory_space<vmem>>, vector<1x8x8xf32>
    %49 = vector.shape_cast %48 : vector<1x8x8xf32> to vector<8x8xf32>
    %50 = vector.broadcast %35 : vector<8x1xf32> to vector<8x8xf32>
    %51 = arith.mulf %50, %49 : vector<8x8xf32>
    %52 = vector.extract_strided_slice %16 {offsets = [0, 0], sizes = [4, 8], strides = [1, 1]} : vector<4x32xf32> to vector<4x8xf32>
    %53 = arith.truncf %38 : vector<8x4xf32> to vector<8x4xbf16>
    %54 = arith.truncf %52 : vector<4x8xf32> to vector<4x8xbf16>
    %cst_34 = arith.constant dense<0.000000e+00> : vector<8x8xf32>
    %55 = tpu.matmul %53, %54, %cst_34 {dimension_numbers = #tpu.dot_dimension_numbers<[1], [0], [0], [1], [0, 0, 1, 1], [], []>} : vector<8x4xbf16>, vector<4x8xbf16>, vector<8x8xf32> -> vector<8x8xf32>
    %56 = arith.addf %51, %55 : vector<8x8xf32>
    %c0_35 = arith.constant 0 : index
    %c0_36 = arith.constant 0 : index
    %c0_37 = arith.constant 0 : index
    %57 = vector.load %arg28[%c0_35, %c0_36, %c0_37] : memref<4x8x8xf32, #tpu.memory_space<vmem>>, vector<1x8x8xf32>
    %58 = vector.shape_cast %57 : vector<1x8x8xf32> to vector<8x8xf32>
    %59 = vector.shape_cast %56 : vector<8x8xf32> to vector<1x8x8xf32>
    tpu.vector_store %arg28[%c0_35, %c0_36, %c0_37], %59 {strides = array<i32>} : memref<4x8x8xf32, #tpu.memory_space<vmem>>, vector<1x8x8xf32>,
    %c0_38 = arith.constant 0 : index
    %c0_39 = arith.constant 0 : index
    %c0_40 = arith.constant 0 : index
    %60 = vector.load %arg26[%c0_38, %c0_39, %c0_40] : memref<4x8x1xf32, #tpu.memory_space<vmem>>, vector<1x8x1xf32>
    %61 = vector.shape_cast %60 : vector<1x8x1xf32> to vector<8x1xf32>
    %62 = vector.shape_cast %33 : vector<8x1xf32> to vector<1x8x1xf32>
    tpu.vector_store %arg26[%c0_38, %c0_39, %c0_40], %62 {strides = array<i32>} : memref<4x8x1xf32, #tpu.memory_space<vmem>>, vector<1x8x1xf32>,
    %63 = vector.extract_strided_slice %22 {offsets = [0, 8], sizes = [8, 8], strides = [1, 1]} : vector<8x32xf32> to vector<8x8xf32>
    %64 = vector.extract_strided_slice %11 {offsets = [0, 8], sizes = [4, 8], strides = [1, 1]} : vector<4x32xf32> to vector<4x8xf32>
    %65 = arith.truncf %63 : vector<8x8xf32> to vector<8x8xbf16>
    %66 = arith.truncf %64 : vector<4x8xf32> to vector<4x8xbf16>
    %cst_41 = arith.constant dense<0.000000e+00> : vector<8x4xf32>
    %67 = tpu.matmul %65, %66, %cst_41 {dimension_numbers = #tpu.dot_dimension_numbers<[1], [1], [0], [0], [0, 0, 1, 0], [], []>} : vector<8x8xbf16>, vector<4x8xbf16>, vector<8x4xf32> -> vector<8x4xf32>
    %68 = arith.addf %67, %21 : vector<8x4xf32>
    %c1 = arith.constant 1 : index
    %c0_42 = arith.constant 0 : index
    %c0_43 = arith.constant 0 : index
    %69 = vector.load %arg26[%c1, %c0_42, %c0_43] : memref<4x8x1xf32, #tpu.memory_space<vmem>>, vector<1x8x1xf32>
    %70 = vector.shape_cast %69 : vector<1x8x1xf32> to vector<8x1xf32>
    %cst_44 = arith.constant dense<0xFF800000> : vector<8xf32>
    %71 = vector.multi_reduction <maximumf>, %68, %cst_44 [1] : vector<8x4xf32> to vector<8xf32>
    %72 = vector.shape_cast %71 : vector<8xf32> to vector<8x1xf32>
    %73 = arith.maximumf %70, %72 : vector<8x1xf32>
    %74 = arith.subf %70, %73 : vector<8x1xf32>
    %75 = math.exp %74 : vector<8x1xf32>
    %76 = vector.broadcast %73 : vector<8x1xf32> to vector<8x4xf32>
    %77 = arith.subf %68, %76 : vector<8x4xf32>
    %78 = math.exp %77 : vector<8x4xf32>
    %c1_45 = arith.constant 1 : index
    %c0_46 = arith.constant 0 : index
    %c0_47 = arith.constant 0 : index
    %79 = vector.load %arg27[%c1_45, %c0_46, %c0_47] : memref<4x8x1xf32, #tpu.memory_space<vmem>>, vector<1x8x1xf32>
    %80 = vector.shape_cast %79 : vector<1x8x1xf32> to vector<8x1xf32>
    %81 = arith.mulf %75, %80 : vector<8x1xf32>
    %cst_48 = arith.constant dense<0.000000e+00> : vector<8xf32>
    %82 = vector.multi_reduction <add>, %78, %cst_48 [1] : vector<8x4xf32> to vector<8xf32>
    %83 = vector.shape_cast %82 : vector<8xf32> to vector<8x1xf32>
    %84 = arith.addf %81, %83 : vector<8x1xf32>
    %c1_49 = arith.constant 1 : index
    %c0_50 = arith.constant 0 : index
    %c0_51 = arith.constant 0 : index
    %85 = vector.load %arg27[%c1_49, %c0_50, %c0_51] : memref<4x8x1xf32, #tpu.memory_space<vmem>>, vector<1x8x1xf32>
    %86 = vector.shape_cast %85 : vector<1x8x1xf32> to vector<8x1xf32>
    %87 = vector.shape_cast %84 : vector<8x1xf32> to vector<1x8x1xf32>
    tpu.vector_store %arg27[%c1_49, %c0_50, %c0_51], %87 {strides = array<i32>} : memref<4x8x1xf32, #tpu.memory_space<vmem>>, vector<1x8x1xf32>,
    %c1_52 = arith.constant 1 : index
    %c0_53 = arith.constant 0 : index
    %c0_54 = arith.constant 0 : index
    %88 = vector.load %arg28[%c1_52, %c0_53, %c0_54] : memref<4x8x8xf32, #tpu.memory_space<vmem>>, vector<1x8x8xf32>
    %89 = vector.shape_cast %88 : vector<1x8x8xf32> to vector<8x8xf32>
    %90 = vector.broadcast %75 : vector<8x1xf32> to vector<8x8xf32>
    %91 = arith.mulf %90, %89 : vector<8x8xf32>
    %92 = vector.extract_strided_slice %16 {offsets = [0, 8], sizes = [4, 8], strides = [1, 1]} : vector<4x32xf32> to vector<4x8xf32>
    %93 = arith.truncf %78 : vector<8x4xf32> to vector<8x4xbf16>
    %94 = arith.truncf %92 : vector<4x8xf32> to vector<4x8xbf16>
    %cst_55 = arith.constant dense<0.000000e+00> : vector<8x8xf32>
    %95 = tpu.matmul %93, %94, %cst_55 {dimension_numbers = #tpu.dot_dimension_numbers<[1], [0], [0], [1], [0, 0, 1, 1], [], []>} : vector<8x4xbf16>, vector<4x8xbf16>, vector<8x8xf32> -> vector<8x8xf32>
    %96 = arith.addf %91, %95 : vector<8x8xf32>
    %c1_56 = arith.constant 1 : index
    %c0_57 = arith.constant 0 : index
    %c0_58 = arith.constant 0 : index
    %97 = vector.load %arg28[%c1_56, %c0_57, %c0_58] : memref<4x8x8xf32, #tpu.memory_space<vmem>>, vector<1x8x8xf32>
    %98 = vector.shape_cast %97 : vector<1x8x8xf32> to vector<8x8xf32>
    %99 = vector.shape_cast %96 : vector<8x8xf32> to vector<1x8x8xf32>
    tpu.vector_store %arg28[%c1_56, %c0_57, %c0_58], %99 {strides = array<i32>} : memref<4x8x8xf32, #tpu.memory_space<vmem>>, vector<1x8x8xf32>,
    %c1_59 = arith.constant 1 : index
    %c0_60 = arith.constant 0 : index
    %c0_61 = arith.constant 0 : index
    %100 = vector.load %arg26[%c1_59, %c0_60, %c0_61] : memref<4x8x1xf32, #tpu.memory_space<vmem>>, vector<1x8x1xf32>
    %101 = vector.shape_cast %100 : vector<1x8x1xf32> to vector<8x1xf32>
    %102 = vector.shape_cast %73 : vector<8x1xf32> to vector<1x8x1xf32>
    tpu.vector_store %arg26[%c1_59, %c0_60, %c0_61], %102 {strides = array<i32>} : memref<4x8x1xf32, #tpu.memory_space<vmem>>, vector<1x8x1xf32>,
    %103 = vector.extract_strided_slice %22 {offsets = [0, 16], sizes = [8, 8], strides = [1, 1]} : vector<8x32xf32> to vector<8x8xf32>
    %104 = vector.extract_strided_slice %11 {offsets = [0, 16], sizes = [4, 8], strides = [1, 1]} : vector<4x32xf32> to vector<4x8xf32>
    %105 = arith.truncf %103 : vector<8x8xf32> to vector<8x8xbf16>
    %106 = arith.truncf %104 : vector<4x8xf32> to vector<4x8xbf16>
    %cst_62 = arith.constant dense<0.000000e+00> : vector<8x4xf32>
    %107 = tpu.matmul %105, %106, %cst_62 {dimension_numbers = #tpu.dot_dimension_numbers<[1], [1], [0], [0], [0, 0, 1, 0], [], []>} : vector<8x8xbf16>, vector<4x8xbf16>, vector<8x4xf32> -> vector<8x4xf32>
    %108 = arith.addf %107, %21 : vector<8x4xf32>
    %c2 = arith.constant 2 : index
    %c0_63 = arith.constant 0 : index
    %c0_64 = arith.constant 0 : index
    %109 = vector.load %arg26[%c2, %c0_63, %c0_64] : memref<4x8x1xf32, #tpu.memory_space<vmem>>, vector<1x8x1xf32>
    %110 = vector.shape_cast %109 : vector<1x8x1xf32> to vector<8x1xf32>
    %cst_65 = arith.constant dense<0xFF800000> : vector<8xf32>
    %111 = vector.multi_reduction <maximumf>, %108, %cst_65 [1] : vector<8x4xf32> to vector<8xf32>
    %112 = vector.shape_cast %111 : vector<8xf32> to vector<8x1xf32>
    %113 = arith.maximumf %110, %112 : vector<8x1xf32>
    %114 = arith.subf %110, %113 : vector<8x1xf32>
    %115 = math.exp %114 : vector<8x1xf32>
    %116 = vector.broadcast %113 : vector<8x1xf32> to vector<8x4xf32>
    %117 = arith.subf %108, %116 : vector<8x4xf32>
    %118 = math.exp %117 : vector<8x4xf32>
    %c2_66 = arith.constant 2 : index
    %c0_67 = arith.constant 0 : index
    %c0_68 = arith.constant 0 : index
    %119 = vector.load %arg27[%c2_66, %c0_67, %c0_68] : memref<4x8x1xf32, #tpu.memory_space<vmem>>, vector<1x8x1xf32>
    %120 = vector.shape_cast %119 : vector<1x8x1xf32> to vector<8x1xf32>
    %121 = arith.mulf %115, %120 : vector<8x1xf32>
    %cst_69 = arith.constant dense<0.000000e+00> : vector<8xf32>
    %122 = vector.multi_reduction <add>, %118, %cst_69 [1] : vector<8x4xf32> to vector<8xf32>
    %123 = vector.shape_cast %122 : vector<8xf32> to vector<8x1xf32>
    %124 = arith.addf %121, %123 : vector<8x1xf32>
    %c2_70 = arith.constant 2 : index
    %c0_71 = arith.constant 0 : index
    %c0_72 = arith.constant 0 : index
    %125 = vector.load %arg27[%c2_70, %c0_71, %c0_72] : memref<4x8x1xf32, #tpu.memory_space<vmem>>, vector<1x8x1xf32>
    %126 = vector.shape_cast %125 : vector<1x8x1xf32> to vector<8x1xf32>
    %127 = vector.shape_cast %124 : vector<8x1xf32> to vector<1x8x1xf32>
    tpu.vector_store %arg27[%c2_70, %c0_71, %c0_72], %127 {strides = array<i32>} : memref<4x8x1xf32, #tpu.memory_space<vmem>>, vector<1x8x1xf32>,
    %c2_73 = arith.constant 2 : index
    %c0_74 = arith.constant 0 : index
    %c0_75 = arith.constant 0 : index
    %128 = vector.load %arg28[%c2_73, %c0_74, %c0_75] : memref<4x8x8xf32, #tpu.memory_space<vmem>>, vector<1x8x8xf32>
    %129 = vector.shape_cast %128 : vector<1x8x8xf32> to vector<8x8xf32>
    %130 = vector.broadcast %115 : vector<8x1xf32> to vector<8x8xf32>
    %131 = arith.mulf %130, %129 : vector<8x8xf32>
    %132 = vector.extract_strided_slice %16 {offsets = [0, 16], sizes = [4, 8], strides = [1, 1]} : vector<4x32xf32> to vector<4x8xf32>
    %133 = arith.truncf %118 : vector<8x4xf32> to vector<8x4xbf16>
    %134 = arith.truncf %132 : vector<4x8xf32> to vector<4x8xbf16>
    %cst_76 = arith.constant dense<0.000000e+00> : vector<8x8xf32>
    %135 = tpu.matmul %133, %134, %cst_76 {dimension_numbers = #tpu.dot_dimension_numbers<[1], [0], [0], [1], [0, 0, 1, 1], [], []>} : vector<8x4xbf16>, vector<4x8xbf16>, vector<8x8xf32> -> vector<8x8xf32>
    %136 = arith.addf %131, %135 : vector<8x8xf32>
    %c2_77 = arith.constant 2 : index
    %c0_78 = arith.constant 0 : index
    %c0_79 = arith.constant 0 : index
    %137 = vector.load %arg28[%c2_77, %c0_78, %c0_79] : memref<4x8x8xf32, #tpu.memory_space<vmem>>, vector<1x8x8xf32>
    %138 = vector.shape_cast %137 : vector<1x8x8xf32> to vector<8x8xf32>
    %139 = vector.shape_cast %136 : vector<8x8xf32> to vector<1x8x8xf32>
    tpu.vector_store %arg28[%c2_77, %c0_78, %c0_79], %139 {strides = array<i32>} : memref<4x8x8xf32, #tpu.memory_space<vmem>>, vector<1x8x8xf32>,
    %c2_80 = arith.constant 2 : index
    %c0_81 = arith.constant 0 : index
    %c0_82 = arith.constant 0 : index
    %140 = vector.load %arg26[%c2_80, %c0_81, %c0_82] : memref<4x8x1xf32, #tpu.memory_space<vmem>>, vector<1x8x1xf32>
    %141 = vector.shape_cast %140 : vector<1x8x1xf32> to vector<8x1xf32>
    %142 = vector.shape_cast %113 : vector<8x1xf32> to vector<1x8x1xf32>
    tpu.vector_store %arg26[%c2_80, %c0_81, %c0_82], %142 {strides = array<i32>} : memref<4x8x1xf32, #tpu.memory_space<vmem>>, vector<1x8x1xf32>,
    %143 = vector.extract_strided_slice %22 {offsets = [0, 24], sizes = [8, 8], strides = [1, 1]} : vector<8x32xf32> to vector<8x8xf32>
    %144 = vector.extract_strided_slice %11 {offsets = [0, 24], sizes = [4, 8], strides = [1, 1]} : vector<4x32xf32> to vector<4x8xf32>
    %145 = arith.truncf %143 : vector<8x8xf32> to vector<8x8xbf16>
    %146 = arith.truncf %144 : vector<4x8xf32> to vector<4x8xbf16>
    %cst_83 = arith.constant dense<0.000000e+00> : vector<8x4xf32>
    %147 = tpu.matmul %145, %146, %cst_83 {dimension_numbers = #tpu.dot_dimension_numbers<[1], [1], [0], [0], [0, 0, 1, 0], [], []>} : vector<8x8xbf16>, vector<4x8xbf16>, vector<8x4xf32> -> vector<8x4xf32>
    %148 = arith.addf %147, %21 : vector<8x4xf32>
    %c3 = arith.constant 3 : index
    %c0_84 = arith.constant 0 : index
    %c0_85 = arith.constant 0 : index
    %149 = vector.load %arg26[%c3, %c0_84, %c0_85] : memref<4x8x1xf32, #tpu.memory_space<vmem>>, vector<1x8x1xf32>
    %150 = vector.shape_cast %149 : vector<1x8x1xf32> to vector<8x1xf32>
    %cst_86 = arith.constant dense<0xFF800000> : vector<8xf32>
    %151 = vector.multi_reduction <maximumf>, %148, %cst_86 [1] : vector<8x4xf32> to vector<8xf32>
    %152 = vector.shape_cast %151 : vector<8xf32> to vector<8x1xf32>
    %153 = arith.maximumf %150, %152 : vector<8x1xf32>
    %154 = arith.subf %150, %153 : vector<8x1xf32>
    %155 = math.exp %154 : vector<8x1xf32>
    %156 = vector.broadcast %153 : vector<8x1xf32> to vector<8x4xf32>
    %157 = arith.subf %148, %156 : vector<8x4xf32>
    %158 = math.exp %157 : vector<8x4xf32>
    %c3_87 = arith.constant 3 : index
    %c0_88 = arith.constant 0 : index
    %c0_89 = arith.constant 0 : index
    %159 = vector.load %arg27[%c3_87, %c0_88, %c0_89] : memref<4x8x1xf32, #tpu.memory_space<vmem>>, vector<1x8x1xf32>
    %160 = vector.shape_cast %159 : vector<1x8x1xf32> to vector<8x1xf32>
    %161 = arith.mulf %155, %160 : vector<8x1xf32>
    %cst_90 = arith.constant dense<0.000000e+00> : vector<8xf32>
    %162 = vector.multi_reduction <add>, %158, %cst_90 [1] : vector<8x4xf32> to vector<8xf32>
    %163 = vector.shape_cast %162 : vector<8xf32> to vector<8x1xf32>
    %164 = arith.addf %161, %163 : vector<8x1xf32>
    %c3_91 = arith.constant 3 : index
    %c0_92 = arith.constant 0 : index
    %c0_93 = arith.constant 0 : index
    %165 = vector.load %arg27[%c3_91, %c0_92, %c0_93] : memref<4x8x1xf32, #tpu.memory_space<vmem>>, vector<1x8x1xf32>
    %166 = vector.shape_cast %165 : vector<1x8x1xf32> to vector<8x1xf32>
    %167 = vector.shape_cast %164 : vector<8x1xf32> to vector<1x8x1xf32>
    tpu.vector_store %arg27[%c3_91, %c0_92, %c0_93], %167 {strides = array<i32>} : memref<4x8x1xf32, #tpu.memory_space<vmem>>, vector<1x8x1xf32>,
    %c3_94 = arith.constant 3 : index
    %c0_95 = arith.constant 0 : index
    %c0_96 = arith.constant 0 : index
    %168 = vector.load %arg28[%c3_94, %c0_95, %c0_96] : memref<4x8x8xf32, #tpu.memory_space<vmem>>, vector<1x8x8xf32>
    %169 = vector.shape_cast %168 : vector<1x8x8xf32> to vector<8x8xf32>
    %170 = vector.broadcast %155 : vector<8x1xf32> to vector<8x8xf32>
    %171 = arith.mulf %170, %169 : vector<8x8xf32>
    %172 = vector.extract_strided_slice %16 {offsets = [0, 24], sizes = [4, 8], strides = [1, 1]} : vector<4x32xf32> to vector<4x8xf32>
    %173 = arith.truncf %158 : vector<8x4xf32> to vector<8x4xbf16>
    %174 = arith.truncf %172 : vector<4x8xf32> to vector<4x8xbf16>
    %cst_97 = arith.constant dense<0.000000e+00> : vector<8x8xf32>
    %175 = tpu.matmul %173, %174, %cst_97 {dimension_numbers = #tpu.dot_dimension_numbers<[1], [0], [0], [1], [0, 0, 1, 1], [], []>} : vector<8x4xbf16>, vector<4x8xbf16>, vector<8x8xf32> -> vector<8x8xf32>
    %176 = arith.addf %171, %175 : vector<8x8xf32>
    %c3_98 = arith.constant 3 : index
    %c0_99 = arith.constant 0 : index
    %c0_100 = arith.constant 0 : index
    %177 = vector.load %arg28[%c3_98, %c0_99, %c0_100] : memref<4x8x8xf32, #tpu.memory_space<vmem>>, vector<1x8x8xf32>
    %178 = vector.shape_cast %177 : vector<1x8x8xf32> to vector<8x8xf32>
    %179 = vector.shape_cast %176 : vector<8x8xf32> to vector<1x8x8xf32>
    tpu.vector_store %arg28[%c3_98, %c0_99, %c0_100], %179 {strides = array<i32>} : memref<4x8x8xf32, #tpu.memory_space<vmem>>, vector<1x8x8xf32>,
    %c3_101 = arith.constant 3 : index
    %c0_102 = arith.constant 0 : index
    %c0_103 = arith.constant 0 : index
    %180 = vector.load %arg26[%c3_101, %c0_102, %c0_103] : memref<4x8x1xf32, #tpu.memory_space<vmem>>, vector<1x8x1xf32>
    %181 = vector.shape_cast %180 : vector<1x8x1xf32> to vector<8x1xf32>
    %182 = vector.shape_cast %153 : vector<8x1xf32> to vector<1x8x1xf32>
    tpu.vector_store %arg26[%c3_101, %c0_102, %c0_103], %182 {strides = array<i32>} : memref<4x8x1xf32, #tpu.memory_space<vmem>>, vector<1x8x1xf32>,
    %c0_i32_104 = arith.constant 0 : i32
    %183 = arith.cmpi eq, %arg1, %c0_i32_104 : i32
    %184 = arith.extui %183 : i1 to i32
    %c0_i32_105 = arith.constant 0 : i32
    %185 = arith.cmpi ne, %184, %c0_i32_105 : i32
    scf.if %185 {
      %c0_106 = arith.constant 0 : index
      %c0_107 = arith.constant 0 : index
      %c0_108 = arith.constant 0 : index
      %186 = vector.load %arg2[%c0_106, %c0_107, %c0_108] : memref<1x8x32xf32, #tpu.memory_space<vmem>>, vector<1x8x32xf32>
      %187 = vector.shape_cast %186 : vector<1x8x32xf32> to vector<8x32xf32>
      %c0_109 = arith.constant 0 : index
      %c0_110 = arith.constant 0 : index
      %c0_111 = arith.constant 0 : index
      %188 = vector.load %arg28[%c0_109, %c0_110, %c0_111] : memref<4x8x8xf32, #tpu.memory_space<vmem>>, vector<1x8x8xf32>
      %189 = vector.shape_cast %188 : vector<1x8x8xf32> to vector<8x8xf32>
      %c0_112 = arith.constant 0 : index
      %c0_113 = arith.constant 0 : index
      %c0_114 = arith.constant 0 : index
      %190 = vector.load %arg27[%c0_112, %c0_113, %c0_114] : memref<4x8x1xf32, #tpu.memory_space<vmem>>, vector<1x8x1xf32>
      %191 = vector.shape_cast %190 : vector<1x8x1xf32> to vector<8x1xf32>
      %192 = tpu.reciprocal %191 {approx = true} : vector<8x1xf32> -> vector<8x1xf32>
      %193 = vector.broadcast %192 : vector<8x1xf32> to vector<8x8xf32>
      %194 = arith.mulf %189, %193 : vector<8x8xf32>
      %c1_115 = arith.constant 1 : index
      %c0_116 = arith.constant 0 : index
      %c0_117 = arith.constant 0 : index
      %195 = vector.load %arg28[%c1_115, %c0_116, %c0_117] : memref<4x8x8xf32, #tpu.memory_space<vmem>>, vector<1x8x8xf32>
      %196 = vector.shape_cast %195 : vector<1x8x8xf32> to vector<8x8xf32>
      %c1_118 = arith.constant 1 : index
      %c0_119 = arith.constant 0 : index
      %c0_120 = arith.constant 0 : index
      %197 = vector.load %arg27[%c1_118, %c0_119, %c0_120] : memref<4x8x1xf32, #tpu.memory_space<vmem>>, vector<1x8x1xf32>
      %198 = vector.shape_cast %197 : vector<1x8x1xf32> to vector<8x1xf32>
      %199 = tpu.reciprocal %198 {approx = true} : vector<8x1xf32> -> vector<8x1xf32>
      %200 = vector.broadcast %199 : vector<8x1xf32> to vector<8x8xf32>
      %201 = arith.mulf %196, %200 : vector<8x8xf32>
      %c2_121 = arith.constant 2 : index
      %c0_122 = arith.constant 0 : index
      %c0_123 = arith.constant 0 : index
      %202 = vector.load %arg28[%c2_121, %c0_122, %c0_123] : memref<4x8x8xf32, #tpu.memory_space<vmem>>, vector<1x8x8xf32>
      %203 = vector.shape_cast %202 : vector<1x8x8xf32> to vector<8x8xf32>
      %c2_124 = arith.constant 2 : index
      %c0_125 = arith.constant 0 : index
      %c0_126 = arith.constant 0 : index
      %204 = vector.load %arg27[%c2_124, %c0_125, %c0_126] : memref<4x8x1xf32, #tpu.memory_space<vmem>>, vector<1x8x1xf32>
      %205 = vector.shape_cast %204 : vector<1x8x1xf32> to vector<8x1xf32>
      %206 = tpu.reciprocal %205 {approx = true} : vector<8x1xf32> -> vector<8x1xf32>
      %207 = vector.broadcast %206 : vector<8x1xf32> to vector<8x8xf32>
      %208 = arith.mulf %203, %207 : vector<8x8xf32>
      %c3_127 = arith.constant 3 : index
      %c0_128 = arith.constant 0 : index
      %c0_129 = arith.constant 0 : index
      %209 = vector.load %arg28[%c3_127, %c0_128, %c0_129] : memref<4x8x8xf32, #tpu.memory_space<vmem>>, vector<1x8x8xf32>
      %210 = vector.shape_cast %209 : vector<1x8x8xf32> to vector<8x8xf32>
      %c3_130 = arith.constant 3 : index
      %c0_131 = arith.constant 0 : index
      %c0_132 = arith.constant 0 : index
      %211 = vector.load %arg27[%c3_130, %c0_131, %c0_132] : memref<4x8x1xf32, #tpu.memory_space<vmem>>, vector<1x8x1xf32>
      %212 = vector.shape_cast %211 : vector<1x8x1xf32> to vector<8x1xf32>
      %213 = tpu.reciprocal %212 {approx = true} : vector<8x1xf32> -> vector<8x1xf32>
      %214 = vector.broadcast %213 : vector<8x1xf32> to vector<8x8xf32>
      %215 = arith.mulf %210, %214 : vector<8x8xf32>
      %216 = tpu.concatenate %194, %201, %208, %215 in 1 : vector<8x8xf32>, vector<8x8xf32>, vector<8x8xf32>, vector<8x8xf32> -> vector<8x32xf32>
      %c0_133 = arith.constant 0 : index
      %c0_134 = arith.constant 0 : index
      %217 = vector.load %arg8[%c0_133, %c0_134] : memref<32x32xbf16, #tpu.memory_space<vmem>>, vector<32x32xbf16>
      %218 = arith.truncf %216 : vector<8x32xf32> to vector<8x32xbf16>
      %cst_135 = arith.constant dense<0.000000e+00> : vector<8x32xf32>
      %219 = tpu.matmul %218, %217, %cst_135 {dimension_numbers = #tpu.dot_dimension_numbers<[1], [0], [0], [1], [0, 0, 1, 1], [], []>} : vector<8x32xbf16>, vector<32x32xbf16>, vector<8x32xf32> -> vector<8x32xf32>
      %c0_136 = arith.constant 0 : index
      %c0_137 = arith.constant 0 : index
      %220 = vector.load %arg9[%c0_136, %c0_137] : memref<1x32xf32, #tpu.memory_space<vmem>>, vector<1x32xf32>
      %221 = vector.broadcast %220 : vector<1x32xf32> to vector<8x32xf32>
      %222 = arith.addf %219, %221 : vector<8x32xf32>
      %223 = arith.addf %222, %187 : vector<8x32xf32>
      %c0_138 = arith.constant 0 : index
      %c0_139 = arith.constant 0 : index
      %224 = vector.load %arg10[%c0_138, %c0_139] : memref<1x32xf32, #tpu.memory_space<vmem>>, vector<1x32xf32>
      %c0_140 = arith.constant 0 : index
      %c0_141 = arith.constant 0 : index
      %225 = vector.load %arg11[%c0_140, %c0_141] : memref<1x32xf32, #tpu.memory_space<vmem>>, vector<1x32xf32>
      %cst_142 = arith.constant dense<0.000000e+00> : vector<8xf32>
      %226 = vector.multi_reduction <add>, %223, %cst_142 [1] : vector<8x32xf32> to vector<8xf32>
      %227 = vector.shape_cast %226 : vector<8xf32> to vector<8x1xf32>
      %cst_143 = arith.constant 3.200000e+01 : f32
      %228 = vector.broadcast %cst_143 : f32 to vector<8x1xf32>
      %229 = arith.divf %227, %228 : vector<8x1xf32>
      %230 = vector.broadcast %229 : vector<8x1xf32> to vector<8x32xf32>
      %231 = arith.subf %223, %230 : vector<8x32xf32>
      %232 = arith.mulf %231, %231 : vector<8x32xf32>
      %cst_144 = arith.constant dense<0.000000e+00> : vector<8xf32>
      %233 = vector.multi_reduction <add>, %232, %cst_144 [1] : vector<8x32xf32> to vector<8xf32>
      %234 = vector.shape_cast %233 : vector<8xf32> to vector<8x1xf32>
      %cst_145 = arith.constant 3.200000e+01 : f32
      %235 = vector.broadcast %cst_145 : f32 to vector<8x1xf32>
      %236 = arith.divf %234, %235 : vector<8x1xf32>
      %237 = vector.broadcast %229 : vector<8x1xf32> to vector<8x32xf32>
      %238 = arith.subf %223, %237 : vector<8x32xf32>
      %cst_146 = arith.constant 9.99999974E-6 : f32
      %239 = vector.broadcast %cst_146 : f32 to vector<8x1xf32>
      %240 = arith.addf %236, %239 : vector<8x1xf32>
      %241 = math.rsqrt %240 : vector<8x1xf32>
      %242 = vector.broadcast %241 : vector<8x1xf32> to vector<8x32xf32>
      %243 = arith.mulf %238, %242 : vector<8x32xf32>
      %244 = vector.broadcast %224 : vector<1x32xf32> to vector<8x32xf32>
      %245 = arith.mulf %243, %244 : vector<8x32xf32>
      %246 = vector.broadcast %225 : vector<1x32xf32> to vector<8x32xf32>
      %247 = arith.addf %245, %246 : vector<8x32xf32>
      %c0_147 = arith.constant 0 : index
      %c0_148 = arith.constant 0 : index
      %248 = vector.load %arg12[%c0_147, %c0_148] : memref<32x96xbf16, #tpu.memory_space<vmem>>, vector<32x96xbf16>
      %249 = arith.truncf %247 : vector<8x32xf32> to vector<8x32xbf16>
      %cst_149 = arith.constant dense<0.000000e+00> : vector<8x96xf32>
      %250 = tpu.matmul %249, %248, %cst_149 {dimension_numbers = #tpu.dot_dimension_numbers<[1], [0], [0], [1], [0, 0, 1, 1], [], []>} : vector<8x32xbf16>, vector<32x96xbf16>, vector<8x96xf32> -> vector<8x96xf32>
      %c0_150 = arith.constant 0 : index
      %c0_151 = arith.constant 0 : index
      %251 = vector.load %arg13[%c0_150, %c0_151] : memref<1x96xf32, #tpu.memory_space<vmem>>, vector<1x96xf32>
      %252 = vector.broadcast %251 : vector<1x96xf32> to vector<8x96xf32>
      %253 = arith.addf %250, %252 : vector<8x96xf32>
      %254 = vector.extract_strided_slice %253 {offsets = [0, 0], sizes = [8, 32], strides = [1, 1]} : vector<8x96xf32> to vector<8x32xf32>
      %255 = vector.extract_strided_slice %253 {offsets = [0, 32], sizes = [8, 32], strides = [1, 1]} : vector<8x96xf32> to vector<8x32xf32>
      %256 = vector.extract_strided_slice %253 {offsets = [0, 64], sizes = [8, 32], strides = [1, 1]} : vector<8x96xf32> to vector<8x32xf32>
      %257 = vector.extract_strided_slice %254 {offsets = [0, 0], sizes = [8, 8], strides = [1, 1]} : vector<8x32xf32> to vector<8x8xf32>
      %258 = vector.extract_strided_slice %255 {offsets = [0, 0], sizes = [8, 8], strides = [1, 1]} : vector<8x32xf32> to vector<8x8xf32>
      %259 = arith.truncf %257 : vector<8x8xf32> to vector<8x8xbf16>
      %260 = arith.truncf %258 : vector<8x8xf32> to vector<8x8xbf16>
      %cst_152 = arith.constant dense<0.000000e+00> : vector<8x8xf32>
      %261 = tpu.matmul %259, %260, %cst_152 {dimension_numbers = #tpu.dot_dimension_numbers<[1], [1], [0], [0], [0, 0, 1, 0], [], []>} : vector<8x8xbf16>, vector<8x8xbf16>, vector<8x8xf32> -> vector<8x8xf32>
      %cst_153 = arith.constant dense<0xFF800000> : vector<8xf32>
      %262 = vector.multi_reduction <maximumf>, %261, %cst_153 [1] : vector<8x8xf32> to vector<8xf32>
      %263 = vector.shape_cast %262 : vector<8xf32> to vector<8x1xf32>
      %264 = vector.broadcast %263 : vector<8x1xf32> to vector<8x8xf32>
      %265 = arith.subf %261, %264 : vector<8x8xf32>
      %266 = math.exp %265 : vector<8x8xf32>
      %cst_154 = arith.constant dense<0.000000e+00> : vector<8xf32>
      %267 = vector.multi_reduction <add>, %266, %cst_154 [1] : vector<8x8xf32> to vector<8xf32>
      %268 = vector.shape_cast %267 : vector<8xf32> to vector<8x1xf32>
      %269 = tpu.reciprocal %268 {approx = true} : vector<8x1xf32> -> vector<8x1xf32>
      %270 = vector.extract_strided_slice %256 {offsets = [0, 0], sizes = [8, 8], strides = [1, 1]} : vector<8x32xf32> to vector<8x8xf32>
      %271 = arith.truncf %266 : vector<8x8xf32> to vector<8x8xbf16>
      %272 = arith.truncf %270 : vector<8x8xf32> to vector<8x8xbf16>
      %cst_155 = arith.constant dense<0.000000e+00> : vector<8x8xf32>
      %273 = tpu.matmul %271, %272, %cst_155 {dimension_numbers = #tpu.dot_dimension_numbers<[1], [0], [0], [1], [0, 0, 1, 1], [], []>} : vector<8x8xbf16>, vector<8x8xbf16>, vector<8x8xf32> -> vector<8x8xf32>
      %274 = vector.broadcast %269 : vector<8x1xf32> to vector<8x8xf32>
      %275 = arith.mulf %273, %274 : vector<8x8xf32>
      %276 = vector.extract_strided_slice %254 {offsets = [0, 8], sizes = [8, 8], strides = [1, 1]} : vector<8x32xf32> to vector<8x8xf32>
      %277 = vector.extract_strided_slice %255 {offsets = [0, 8], sizes = [8, 8], strides = [1, 1]} : vector<8x32xf32> to vector<8x8xf32>
      %278 = arith.truncf %276 : vector<8x8xf32> to vector<8x8xbf16>
      %279 = arith.truncf %277 : vector<8x8xf32> to vector<8x8xbf16>
      %cst_156 = arith.constant dense<0.000000e+00> : vector<8x8xf32>
      %280 = tpu.matmul %278, %279, %cst_156 {dimension_numbers = #tpu.dot_dimension_numbers<[1], [1], [0], [0], [0, 0, 1, 0], [], []>} : vector<8x8xbf16>, vector<8x8xbf16>, vector<8x8xf32> -> vector<8x8xf32>
      %cst_157 = arith.constant dense<0xFF800000> : vector<8xf32>
      %281 = vector.multi_reduction <maximumf>, %280, %cst_157 [1] : vector<8x8xf32> to vector<8xf32>
      %282 = vector.shape_cast %281 : vector<8xf32> to vector<8x1xf32>
      %283 = vector.broadcast %282 : vector<8x1xf32> to vector<8x8xf32>
      %284 = arith.subf %280, %283 : vector<8x8xf32>
      %285 = math.exp %284 : vector<8x8xf32>
      %cst_158 = arith.constant dense<0.000000e+00> : vector<8xf32>
      %286 = vector.multi_reduction <add>, %285, %cst_158 [1] : vector<8x8xf32> to vector<8xf32>
      %287 = vector.shape_cast %286 : vector<8xf32> to vector<8x1xf32>
      %288 = tpu.reciprocal %287 {approx = true} : vector<8x1xf32> -> vector<8x1xf32>
      %289 = vector.extract_strided_slice %256 {offsets = [0, 8], sizes = [8, 8], strides = [1, 1]} : vector<8x32xf32> to vector<8x8xf32>
      %290 = arith.truncf %285 : vector<8x8xf32> to vector<8x8xbf16>
      %291 = arith.truncf %289 : vector<8x8xf32> to vector<8x8xbf16>
      %cst_159 = arith.constant dense<0.000000e+00> : vector<8x8xf32>
      %292 = tpu.matmul %290, %291, %cst_159 {dimension_numbers = #tpu.dot_dimension_numbers<[1], [0], [0], [1], [0, 0, 1, 1], [], []>} : vector<8x8xbf16>, vector<8x8xbf16>, vector<8x8xf32> -> vector<8x8xf32>
      %293 = vector.broadcast %288 : vector<8x1xf32> to vector<8x8xf32>
      %294 = arith.mulf %292, %293 : vector<8x8xf32>
      %295 = vector.extract_strided_slice %254 {offsets = [0, 16], sizes = [8, 8], strides = [1, 1]} : vector<8x32xf32> to vector<8x8xf32>
      %296 = vector.extract_strided_slice %255 {offsets = [0, 16], sizes = [8, 8], strides = [1, 1]} : vector<8x32xf32> to vector<8x8xf32>
      %297 = arith.truncf %295 : vector<8x8xf32> to vector<8x8xbf16>
      %298 = arith.truncf %296 : vector<8x8xf32> to vector<8x8xbf16>
      %cst_160 = arith.constant dense<0.000000e+00> : vector<8x8xf32>
      %299 = tpu.matmul %297, %298, %cst_160 {dimension_numbers = #tpu.dot_dimension_numbers<[1], [1], [0], [0], [0, 0, 1, 0], [], []>} : vector<8x8xbf16>, vector<8x8xbf16>, vector<8x8xf32> -> vector<8x8xf32>
      %cst_161 = arith.constant dense<0xFF800000> : vector<8xf32>
      %300 = vector.multi_reduction <maximumf>, %299, %cst_161 [1] : vector<8x8xf32> to vector<8xf32>
      %301 = vector.shape_cast %300 : vector<8xf32> to vector<8x1xf32>
      %302 = vector.broadcast %301 : vector<8x1xf32> to vector<8x8xf32>
      %303 = arith.subf %299, %302 : vector<8x8xf32>
      %304 = math.exp %303 : vector<8x8xf32>
      %cst_162 = arith.constant dense<0.000000e+00> : vector<8xf32>
      %305 = vector.multi_reduction <add>, %304, %cst_162 [1] : vector<8x8xf32> to vector<8xf32>
      %306 = vector.shape_cast %305 : vector<8xf32> to vector<8x1xf32>
      %307 = tpu.reciprocal %306 {approx = true} : vector<8x1xf32> -> vector<8x1xf32>
      %308 = vector.extract_strided_slice %256 {offsets = [0, 16], sizes = [8, 8], strides = [1, 1]} : vector<8x32xf32> to vector<8x8xf32>
      %309 = arith.truncf %304 : vector<8x8xf32> to vector<8x8xbf16>
      %310 = arith.truncf %308 : vector<8x8xf32> to vector<8x8xbf16>
      %cst_163 = arith.constant dense<0.000000e+00> : vector<8x8xf32>
      %311 = tpu.matmul %309, %310, %cst_163 {dimension_numbers = #tpu.dot_dimension_numbers<[1], [0], [0], [1], [0, 0, 1, 1], [], []>} : vector<8x8xbf16>, vector<8x8xbf16>, vector<8x8xf32> -> vector<8x8xf32>
      %312 = vector.broadcast %307 : vector<8x1xf32> to vector<8x8xf32>
      %313 = arith.mulf %311, %312 : vector<8x8xf32>
      %314 = vector.extract_strided_slice %254 {offsets = [0, 24], sizes = [8, 8], strides = [1, 1]} : vector<8x32xf32> to vector<8x8xf32>
      %315 = vector.extract_strided_slice %255 {offsets = [0, 24], sizes = [8, 8], strides = [1, 1]} : vector<8x32xf32> to vector<8x8xf32>
      %316 = arith.truncf %314 : vector<8x8xf32> to vector<8x8xbf16>
      %317 = arith.truncf %315 : vector<8x8xf32> to vector<8x8xbf16>
      %cst_164 = arith.constant dense<0.000000e+00> : vector<8x8xf32>
      %318 = tpu.matmul %316, %317, %cst_164 {dimension_numbers = #tpu.dot_dimension_numbers<[1], [1], [0], [0], [0, 0, 1, 0], [], []>} : vector<8x8xbf16>, vector<8x8xbf16>, vector<8x8xf32> -> vector<8x8xf32>
      %cst_165 = arith.constant dense<0xFF800000> : vector<8xf32>
      %319 = vector.multi_reduction <maximumf>, %318, %cst_165 [1] : vector<8x8xf32> to vector<8xf32>
      %320 = vector.shape_cast %319 : vector<8xf32> to vector<8x1xf32>
      %321 = vector.broadcast %320 : vector<8x1xf32> to vector<8x8xf32>
      %322 = arith.subf %318, %321 : vector<8x8xf32>
      %323 = math.exp %322 : vector<8x8xf32>
      %cst_166 = arith.constant dense<0.000000e+00> : vector<8xf32>
      %324 = vector.multi_reduction <add>, %323, %cst_166 [1] : vector<8x8xf32> to vector<8xf32>
      %325 = vector.shape_cast %324 : vector<8xf32> to vector<8x1xf32>
      %326 = tpu.reciprocal %325 {approx = true} : vector<8x1xf32> -> vector<8x1xf32>
      %327 = vector.extract_strided_slice %256 {offsets = [0, 24], sizes = [8, 8], strides = [1, 1]} : vector<8x32xf32> to vector<8x8xf32>
      %328 = arith.truncf %323 : vector<8x8xf32> to vector<8x8xbf16>
      %329 = arith.truncf %327 : vector<8x8xf32> to vector<8x8xbf16>
      %cst_167 = arith.constant dense<0.000000e+00> : vector<8x8xf32>
      %330 = tpu.matmul %328, %329, %cst_167 {dimension_numbers = #tpu.dot_dimension_numbers<[1], [0], [0], [1], [0, 0, 1, 1], [], []>} : vector<8x8xbf16>, vector<8x8xbf16>, vector<8x8xf32> -> vector<8x8xf32>
      %331 = vector.broadcast %326 : vector<8x1xf32> to vector<8x8xf32>
      %332 = arith.mulf %330, %331 : vector<8x8xf32>
      %333 = tpu.concatenate %275, %294, %313, %332 in 1 : vector<8x8xf32>, vector<8x8xf32>, vector<8x8xf32>, vector<8x8xf32> -> vector<8x32xf32>
      %c0_168 = arith.constant 0 : index
      %c0_169 = arith.constant 0 : index
      %334 = vector.load %arg14[%c0_168, %c0_169] : memref<32x32xbf16, #tpu.memory_space<vmem>>, vector<32x32xbf16>
      %335 = arith.truncf %333 : vector<8x32xf32> to vector<8x32xbf16>
      %cst_170 = arith.constant dense<0.000000e+00> : vector<8x32xf32>
      %336 = tpu.matmul %335, %334, %cst_170 {dimension_numbers = #tpu.dot_dimension_numbers<[1], [0], [0], [1], [0, 0, 1, 1], [], []>} : vector<8x32xbf16>, vector<32x32xbf16>, vector<8x32xf32> -> vector<8x32xf32>
      %c0_171 = arith.constant 0 : index
      %c0_172 = arith.constant 0 : index
      %337 = vector.load %arg15[%c0_171, %c0_172] : memref<1x32xf32, #tpu.memory_space<vmem>>, vector<1x32xf32>
      %338 = vector.broadcast %337 : vector<1x32xf32> to vector<8x32xf32>
      %339 = arith.addf %336, %338 : vector<8x32xf32>
      %340 = arith.addf %339, %247 : vector<8x32xf32>
      %c0_173 = arith.constant 0 : index
      %c0_174 = arith.constant 0 : index
      %341 = vector.load %arg16[%c0_173, %c0_174] : memref<1x32xf32, #tpu.memory_space<vmem>>, vector<1x32xf32>
      %c0_175 = arith.constant 0 : index
      %c0_176 = arith.constant 0 : index
      %342 = vector.load %arg17[%c0_175, %c0_176] : memref<1x32xf32, #tpu.memory_space<vmem>>, vector<1x32xf32>
      %cst_177 = arith.constant dense<0.000000e+00> : vector<8xf32>
      %343 = vector.multi_reduction <add>, %340, %cst_177 [1] : vector<8x32xf32> to vector<8xf32>
      %344 = vector.shape_cast %343 : vector<8xf32> to vector<8x1xf32>
      %cst_178 = arith.constant 3.200000e+01 : f32
      %345 = vector.broadcast %cst_178 : f32 to vector<8x1xf32>
      %346 = arith.divf %344, %345 : vector<8x1xf32>
      %347 = vector.broadcast %346 : vector<8x1xf32> to vector<8x32xf32>
      %348 = arith.subf %340, %347 : vector<8x32xf32>
      %349 = arith.mulf %348, %348 : vector<8x32xf32>
      %cst_179 = arith.constant dense<0.000000e+00> : vector<8xf32>
      %350 = vector.multi_reduction <add>, %349, %cst_179 [1] : vector<8x32xf32> to vector<8xf32>
      %351 = vector.shape_cast %350 : vector<8xf32> to vector<8x1xf32>
      %cst_180 = arith.constant 3.200000e+01 : f32
      %352 = vector.broadcast %cst_180 : f32 to vector<8x1xf32>
      %353 = arith.divf %351, %352 : vector<8x1xf32>
      %354 = vector.broadcast %346 : vector<8x1xf32> to vector<8x32xf32>
      %355 = arith.subf %340, %354 : vector<8x32xf32>
      %cst_181 = arith.constant 9.99999974E-6 : f32
      %356 = vector.broadcast %cst_181 : f32 to vector<8x1xf32>
      %357 = arith.addf %353, %356 : vector<8x1xf32>
      %358 = math.rsqrt %357 : vector<8x1xf32>
      %359 = vector.broadcast %358 : vector<8x1xf32> to vector<8x32xf32>
      %360 = arith.mulf %355, %359 : vector<8x32xf32>
      %361 = vector.broadcast %341 : vector<1x32xf32> to vector<8x32xf32>
      %362 = arith.mulf %360, %361 : vector<8x32xf32>
      %363 = vector.broadcast %342 : vector<1x32xf32> to vector<8x32xf32>
      %364 = arith.addf %362, %363 : vector<8x32xf32>
      %c0_182 = arith.constant 0 : index
      %c0_183 = arith.constant 0 : index
      %365 = vector.load %arg18[%c0_182, %c0_183] : memref<32x64xbf16, #tpu.memory_space<vmem>>, vector<32x64xbf16>
      %366 = arith.truncf %364 : vector<8x32xf32> to vector<8x32xbf16>
      %cst_184 = arith.constant dense<0.000000e+00> : vector<8x64xf32>
      %367 = tpu.matmul %366, %365, %cst_184 {dimension_numbers = #tpu.dot_dimension_numbers<[1], [0], [0], [1], [0, 0, 1, 1], [], []>} : vector<8x32xbf16>, vector<32x64xbf16>, vector<8x64xf32> -> vector<8x64xf32>
      %c0_185 = arith.constant 0 : index
      %c0_186 = arith.constant 0 : index
      %368 = vector.load %arg19[%c0_185, %c0_186] : memref<1x64xf32, #tpu.memory_space<vmem>>, vector<1x64xf32>
      %369 = vector.broadcast %368 : vector<1x64xf32> to vector<8x64xf32>
      %370 = arith.addf %367, %369 : vector<8x64xf32>
      %cst_187 = arith.constant 0.000000e+00 : f32
      %371 = vector.broadcast %cst_187 : f32 to vector<8x64xf32>
      %372 = arith.maximumf %370, %371 : vector<8x64xf32>
      %c0_188 = arith.constant 0 : index
      %c0_189 = arith.constant 0 : index
      %373 = vector.load %arg20[%c0_188, %c0_189] : memref<64x32xbf16, #tpu.memory_space<vmem>>, vector<64x32xbf16>
      %374 = arith.truncf %372 : vector<8x64xf32> to vector<8x64xbf16>
      %cst_190 = arith.constant dense<0.000000e+00> : vector<8x32xf32>
      %375 = tpu.matmul %374, %373, %cst_190 {dimension_numbers = #tpu.dot_dimension_numbers<[1], [0], [0], [1], [0, 0, 1, 1], [], []>} : vector<8x64xbf16>, vector<64x32xbf16>, vector<8x32xf32> -> vector<8x32xf32>
      %c0_191 = arith.constant 0 : index
      %c0_192 = arith.constant 0 : index
      %376 = vector.load %arg21[%c0_191, %c0_192] : memref<1x32xf32, #tpu.memory_space<vmem>>, vector<1x32xf32>
      %377 = vector.broadcast %376 : vector<1x32xf32> to vector<8x32xf32>
      %378 = arith.addf %375, %377 : vector<8x32xf32>
      %379 = arith.addf %378, %364 : vector<8x32xf32>
      %c0_193 = arith.constant 0 : index
      %c0_194 = arith.constant 0 : index
      %380 = vector.load %arg22[%c0_193, %c0_194] : memref<1x32xf32, #tpu.memory_space<vmem>>, vector<1x32xf32>
      %c0_195 = arith.constant 0 : index
      %c0_196 = arith.constant 0 : index
      %381 = vector.load %arg23[%c0_195, %c0_196] : memref<1x32xf32, #tpu.memory_space<vmem>>, vector<1x32xf32>
      %cst_197 = arith.constant dense<0.000000e+00> : vector<8xf32>
      %382 = vector.multi_reduction <add>, %379, %cst_197 [1] : vector<8x32xf32> to vector<8xf32>
      %383 = vector.shape_cast %382 : vector<8xf32> to vector<8x1xf32>
      %cst_198 = arith.constant 3.200000e+01 : f32
      %384 = vector.broadcast %cst_198 : f32 to vector<8x1xf32>
      %385 = arith.divf %383, %384 : vector<8x1xf32>
      %386 = vector.broadcast %385 : vector<8x1xf32> to vector<8x32xf32>
      %387 = arith.subf %379, %386 : vector<8x32xf32>
      %388 = arith.mulf %387, %387 : vector<8x32xf32>
      %cst_199 = arith.constant dense<0.000000e+00> : vector<8xf32>
      %389 = vector.multi_reduction <add>, %388, %cst_199 [1] : vector<8x32xf32> to vector<8xf32>
      %390 = vector.shape_cast %389 : vector<8xf32> to vector<8x1xf32>
      %cst_200 = arith.constant 3.200000e+01 : f32
      %391 = vector.broadcast %cst_200 : f32 to vector<8x1xf32>
      %392 = arith.divf %390, %391 : vector<8x1xf32>
      %393 = vector.broadcast %385 : vector<8x1xf32> to vector<8x32xf32>
      %394 = arith.subf %379, %393 : vector<8x32xf32>
      %cst_201 = arith.constant 9.99999974E-6 : f32
      %395 = vector.broadcast %cst_201 : f32 to vector<8x1xf32>
      %396 = arith.addf %392, %395 : vector<8x1xf32>
      %397 = math.rsqrt %396 : vector<8x1xf32>
      %398 = vector.broadcast %397 : vector<8x1xf32> to vector<8x32xf32>
      %399 = arith.mulf %394, %398 : vector<8x32xf32>
      %400 = vector.broadcast %380 : vector<1x32xf32> to vector<8x32xf32>
      %401 = arith.mulf %399, %400 : vector<8x32xf32>
      %402 = vector.broadcast %381 : vector<1x32xf32> to vector<8x32xf32>
      %403 = arith.addf %401, %402 : vector<8x32xf32>
      %c0_202 = arith.constant 0 : index
      %c0_203 = arith.constant 0 : index
      %c0_204 = arith.constant 0 : index
      %404 = vector.load %arg24[%c0_202, %c0_203, %c0_204] : memref<1x8x32xf32, #tpu.memory_space<vmem>>, vector<1x8x32xf32>
      %405 = vector.shape_cast %404 : vector<1x8x32xf32> to vector<8x32xf32>
      %406 = vector.shape_cast %403 : vector<8x32xf32> to vector<1x8x32xf32>
      tpu.vector_store %arg24[%c0_202, %c0_203, %c0_204], %406 {strides = array<i32>} : memref<1x8x32xf32, #tpu.memory_space<vmem>>, vector<1x8x32xf32>,
    } else {
    }
    return
  }
  func.func @transform_0(%arg0: i32, %arg1: i32) -> (i32, i32, i32) {
    %c0_i32 = arith.constant 0 : i32
    %c0_i32_0 = arith.constant 0 : i32
    %c0_i32_1 = arith.constant 0 : i32
    return %arg0, %c0_i32, %c0_i32_0 : i32, i32, i32
  }
  func.func @transform_1(%arg0: i32, %arg1: i32) -> (i32, i32, i32) {
    %c0_i32 = arith.constant 0 : i32
    %c0_i32_0 = arith.constant 0 : i32
    return %arg0, %arg1, %c0_i32 : i32, i32, i32
  }
  func.func @transform_2(%arg0: i32, %arg1: i32) -> (i32, i32, i32) {
    %c0_i32 = arith.constant 0 : i32
    %c0_i32_0 = arith.constant 0 : i32
    return %arg0, %arg1, %c0_i32 : i32, i32, i32
  }
  func.func @transform_3(%arg0: i32, %arg1: i32) -> (i32, i32, i32) {
    %c0_i32 = arith.constant 0 : i32
    %c0_i32_0 = arith.constant 0 : i32
    return %arg0, %c0_i32, %arg1 : i32, i32, i32
  }
  func.func @transform_4(%arg0: i32, %arg1: i32) -> (i32, i32) {
    %c0_i32 = arith.constant 0 : i32
    %c0_i32_0 = arith.constant 0 : i32
    %c0_i32_1 = arith.constant 0 : i32
    return %c0_i32, %c0_i32_0 : i32, i32
  }
  func.func @transform_5(%arg0: i32, %arg1: i32) -> (i32, i32) {
    %c0_i32 = arith.constant 0 : i32
    %c0_i32_0 = arith.constant 0 : i32
    %c0_i32_1 = arith.constant 0 : i32
    return %c0_i32, %c0_i32_0 : i32, i32
  }
  func.func @transform_6(%arg0: i32, %arg1: i32) -> (i32, i32) {
    %c0_i32 = arith.constant 0 : i32
    %c0_i32_0 = arith.constant 0 : i32
    %c0_i32_1 = arith.constant 0 : i32
    return %c0_i32, %c0_i32_0 : i32, i32
  }
  func.func @transform_7(%arg0: i32, %arg1: i32) -> (i32, i32) {
    %c0_i32 = arith.constant 0 : i32
    %c0_i32_0 = arith.constant 0 : i32
    %c0_i32_1 = arith.constant 0 : i32
    return %c0_i32, %c0_i32_0 : i32, i32
  }
  func.func @transform_8(%arg0: i32, %arg1: i32) -> (i32, i32) {
    %c0_i32 = arith.constant 0 : i32
    %c0_i32_0 = arith.constant 0 : i32
    %c0_i32_1 = arith.constant 0 : i32
    return %c0_i32, %c0_i32_0 : i32, i32
  }
  func.func @transform_9(%arg0: i32, %arg1: i32) -> (i32, i32) {
    %c0_i32 = arith.constant 0 : i32
    %c0_i32_0 = arith.constant 0 : i32
    %c0_i32_1 = arith.constant 0 : i32
    return %c0_i32, %c0_i32_0 : i32, i32
  }
  func.func @transform_10(%arg0: i32, %arg1: i32) -> (i32, i32) {
    %c0_i32 = arith.constant 0 : i32
    %c0_i32_0 = arith.constant 0 : i32
    %c0_i32_1 = arith.constant 0 : i32
    return %c0_i32, %c0_i32_0 : i32, i32
  }
  func.func @transform_11(%arg0: i32, %arg1: i32) -> (i32, i32) {
    %c0_i32 = arith.constant 0 : i32
    %c0_i32_0 = arith.constant 0 : i32
    %c0_i32_1 = arith.constant 0 : i32
    return %c0_i32, %c0_i32_0 : i32, i32
  }
  func.func @transform_12(%arg0: i32, %arg1: i32) -> (i32, i32) {
    %c0_i32 = arith.constant 0 : i32
    %c0_i32_0 = arith.constant 0 : i32
    %c0_i32_1 = arith.constant 0 : i32
    return %c0_i32, %c0_i32_0 : i32, i32
  }
  func.func @transform_13(%arg0: i32, %arg1: i32) -> (i32, i32) {
    %c0_i32 = arith.constant 0 : i32
    %c0_i32_0 = arith.constant 0 : i32
    %c0_i32_1 = arith.constant 0 : i32
    return %c0_i32, %c0_i32_0 : i32, i32
  }
  func.func @transform_14(%arg0: i32, %arg1: i32) -> (i32, i32) {
    %c0_i32 = arith.constant 0 : i32
    %c0_i32_0 = arith.constant 0 : i32
    %c0_i32_1 = arith.constant 0 : i32
    return %c0_i32, %c0_i32_0 : i32, i32
  }
  func.func @transform_15(%arg0: i32, %arg1: i32) -> (i32, i32) {
    %c0_i32 = arith.constant 0 : i32
    %c0_i32_0 = arith.constant 0 : i32
    %c0_i32_1 = arith.constant 0 : i32
    return %c0_i32, %c0_i32_0 : i32, i32
  }
  func.func @transform_16(%arg0: i32, %arg1: i32) -> (i32, i32) {
    %c0_i32 = arith.constant 0 : i32
    %c0_i32_0 = arith.constant 0 : i32
    %c0_i32_1 = arith.constant 0 : i32
    return %c0_i32, %c0_i32_0 : i32, i32
  }
  func.func @transform_17(%arg0: i32, %arg1: i32) -> (i32, i32) {
    %c0_i32 = arith.constant 0 : i32
    %c0_i32_0 = arith.constant 0 : i32
    %c0_i32_1 = arith.constant 0 : i32
    return %c0_i32, %c0_i32_0 : i32, i32
  }
  func.func @transform_18(%arg0: i32, %arg1: i32) -> (i32, i32) {
    %c0_i32 = arith.constant 0 : i32
    %c0_i32_0 = arith.constant 0 : i32
    %c0_i32_1 = arith.constant 0 : i32
    return %c0_i32, %c0_i32_0 : i32, i32
  }
  func.func @transform_19(%arg0: i32, %arg1: i32) -> (i32, i32) {
    %c0_i32 = arith.constant 0 : i32
    %c0_i32_0 = arith.constant 0 : i32
    %c0_i32_1 = arith.constant 0 : i32
    return %c0_i32, %c0_i32_0 : i32, i32
  }
  func.func @transform_20(%arg0: i32, %arg1: i32) -> (i32, i32) {
    %c0_i32 = arith.constant 0 : i32
    %c0_i32_0 = arith.constant 0 : i32
    %c0_i32_1 = arith.constant 0 : i32
    return %c0_i32, %c0_i32_0 : i32, i32
  }
  func.func @transform_21(%arg0: i32, %arg1: i32) -> (i32, i32) {
    %c0_i32 = arith.constant 0 : i32
    %c0_i32_0 = arith.constant 0 : i32
    %c0_i32_1 = arith.constant 0 : i32
    return %c0_i32, %c0_i32_0 : i32, i32
  }
  func.func @transform_22(%arg0: i32, %arg1: i32) -> (i32, i32, i32) {
    %c0_i32 = arith.constant 0 : i32
    %c0_i32_0 = arith.constant 0 : i32
    %c0_i32_1 = arith.constant 0 : i32
    return %arg0, %c0_i32, %c0_i32_0 : i32, i32, i32
  }
}

module attributes {stable_mosaic.version = 11 : i64} {
  func.func @_resize_kernel(%arg0: i32, %arg1: memref<16x8x8xf32, #tpu.memory_space<vmem>>, %arg2: memref<32x8xf32, #tpu.memory_space<vmem>>, %arg3: memref<8x32xf32, #tpu.memory_space<vmem>>, %arg4: memref<16x32x32xf32, #tpu.memory_space<vmem>>) attributes {dimension_semantics = [#tpu.dimension_semantics<parallel>], iteration_bounds = array<i64: 1>, scalar_prefetch = 0 : i64, scratch_operands = 0 : i64, tpu.core_type = #tpu.core_type<tc>, window_params = [{transform_indices = @transform_0, window_bounds = array<i64: 16, 8, 8>}, {pipeline_mode = #tpu.pipeline_mode<synchronous>, transform_indices = @transform_1, window_bounds = array<i64: 32, 8>}, {pipeline_mode = #tpu.pipeline_mode<synchronous>, transform_indices = @transform_2, window_bounds = array<i64: 8, 32>}, {transform_indices = @transform_3, window_bounds = array<i64: 16, 32, 32>}]} {
    %c0 = arith.constant 0 : index
    %c0_0 = arith.constant 0 : index
    %0 = vector.load %arg2[%c0, %c0_0] : memref<32x8xf32, #tpu.memory_space<vmem>>, vector<32x8xf32>
    %c0_1 = arith.constant 0 : index
    %c0_2 = arith.constant 0 : index
    %1 = vector.load %arg3[%c0_1, %c0_2] : memref<8x32xf32, #tpu.memory_space<vmem>>, vector<8x32xf32>
    %c0_3 = arith.constant 0 : index
    %c0_4 = arith.constant 0 : index
    %c0_5 = arith.constant 0 : index
    %2 = vector.load %arg1[%c0_3, %c0_4, %c0_5] : memref<16x8x8xf32, #tpu.memory_space<vmem>>, vector<16x8x8xf32>
    %3 = vector.shape_cast %2 : vector<16x8x8xf32> to vector<128x8xf32>
    %4 = arith.truncf %3 : vector<128x8xf32> to vector<128x8xbf16>
    %5 = arith.truncf %1 : vector<8x32xf32> to vector<8x32xbf16>
    %cst = arith.constant dense<0.000000e+00> : vector<128x32xf32>
    %6 = tpu.matmul %4, %5, %cst {dimension_numbers = #tpu.dot_dimension_numbers<[1], [0], [0], [1], [0, 0, 1, 1], [], []>} : vector<128x8xbf16>, vector<8x32xbf16>, vector<128x32xf32> -> vector<128x32xf32>
    %7 = vector.shape_cast %6 : vector<128x32xf32> to vector<16x8x32xf32>
    %8 = vector.extract_strided_slice %7 {offsets = [0, 0, 0], sizes = [1, 8, 32], strides = [1, 1, 1]} : vector<16x8x32xf32> to vector<1x8x32xf32>
    %9 = vector.shape_cast %8 : vector<1x8x32xf32> to vector<8x32xf32>
    %10 = arith.truncf %0 : vector<32x8xf32> to vector<32x8xbf16>
    %11 = arith.truncf %9 : vector<8x32xf32> to vector<8x32xbf16>
    %cst_6 = arith.constant dense<0.000000e+00> : vector<32x32xf32>
    %12 = tpu.matmul %10, %11, %cst_6 {dimension_numbers = #tpu.dot_dimension_numbers<[1], [0], [0], [1], [0, 0, 1, 1], [], []>} : vector<32x8xbf16>, vector<8x32xbf16>, vector<32x32xf32> -> vector<32x32xf32>
    %c0_7 = arith.constant 0 : index
    %c0_8 = arith.constant 0 : index
    %c0_9 = arith.constant 0 : index
    %13 = vector.load %arg4[%c0_7, %c0_8, %c0_9] : memref<16x32x32xf32, #tpu.memory_space<vmem>>, vector<1x32x32xf32>
    %14 = vector.shape_cast %13 : vector<1x32x32xf32> to vector<32x32xf32>
    %15 = vector.shape_cast %12 : vector<32x32xf32> to vector<1x32x32xf32>
    tpu.vector_store %arg4[%c0_7, %c0_8, %c0_9], %15 {strides = array<i32>} : memref<16x32x32xf32, #tpu.memory_space<vmem>>, vector<1x32x32xf32>,
    %16 = vector.extract_strided_slice %7 {offsets = [1, 0, 0], sizes = [1, 8, 32], strides = [1, 1, 1]} : vector<16x8x32xf32> to vector<1x8x32xf32>
    %17 = vector.shape_cast %16 : vector<1x8x32xf32> to vector<8x32xf32>
    %18 = arith.truncf %0 : vector<32x8xf32> to vector<32x8xbf16>
    %19 = arith.truncf %17 : vector<8x32xf32> to vector<8x32xbf16>
    %cst_10 = arith.constant dense<0.000000e+00> : vector<32x32xf32>
    %20 = tpu.matmul %18, %19, %cst_10 {dimension_numbers = #tpu.dot_dimension_numbers<[1], [0], [0], [1], [0, 0, 1, 1], [], []>} : vector<32x8xbf16>, vector<8x32xbf16>, vector<32x32xf32> -> vector<32x32xf32>
    %c1 = arith.constant 1 : index
    %c0_11 = arith.constant 0 : index
    %c0_12 = arith.constant 0 : index
    %21 = vector.load %arg4[%c1, %c0_11, %c0_12] : memref<16x32x32xf32, #tpu.memory_space<vmem>>, vector<1x32x32xf32>
    %22 = vector.shape_cast %21 : vector<1x32x32xf32> to vector<32x32xf32>
    %23 = vector.shape_cast %20 : vector<32x32xf32> to vector<1x32x32xf32>
    tpu.vector_store %arg4[%c1, %c0_11, %c0_12], %23 {strides = array<i32>} : memref<16x32x32xf32, #tpu.memory_space<vmem>>, vector<1x32x32xf32>,
    %24 = vector.extract_strided_slice %7 {offsets = [2, 0, 0], sizes = [1, 8, 32], strides = [1, 1, 1]} : vector<16x8x32xf32> to vector<1x8x32xf32>
    %25 = vector.shape_cast %24 : vector<1x8x32xf32> to vector<8x32xf32>
    %26 = arith.truncf %0 : vector<32x8xf32> to vector<32x8xbf16>
    %27 = arith.truncf %25 : vector<8x32xf32> to vector<8x32xbf16>
    %cst_13 = arith.constant dense<0.000000e+00> : vector<32x32xf32>
    %28 = tpu.matmul %26, %27, %cst_13 {dimension_numbers = #tpu.dot_dimension_numbers<[1], [0], [0], [1], [0, 0, 1, 1], [], []>} : vector<32x8xbf16>, vector<8x32xbf16>, vector<32x32xf32> -> vector<32x32xf32>
    %c2 = arith.constant 2 : index
    %c0_14 = arith.constant 0 : index
    %c0_15 = arith.constant 0 : index
    %29 = vector.load %arg4[%c2, %c0_14, %c0_15] : memref<16x32x32xf32, #tpu.memory_space<vmem>>, vector<1x32x32xf32>
    %30 = vector.shape_cast %29 : vector<1x32x32xf32> to vector<32x32xf32>
    %31 = vector.shape_cast %28 : vector<32x32xf32> to vector<1x32x32xf32>
    tpu.vector_store %arg4[%c2, %c0_14, %c0_15], %31 {strides = array<i32>} : memref<16x32x32xf32, #tpu.memory_space<vmem>>, vector<1x32x32xf32>,
    %32 = vector.extract_strided_slice %7 {offsets = [3, 0, 0], sizes = [1, 8, 32], strides = [1, 1, 1]} : vector<16x8x32xf32> to vector<1x8x32xf32>
    %33 = vector.shape_cast %32 : vector<1x8x32xf32> to vector<8x32xf32>
    %34 = arith.truncf %0 : vector<32x8xf32> to vector<32x8xbf16>
    %35 = arith.truncf %33 : vector<8x32xf32> to vector<8x32xbf16>
    %cst_16 = arith.constant dense<0.000000e+00> : vector<32x32xf32>
    %36 = tpu.matmul %34, %35, %cst_16 {dimension_numbers = #tpu.dot_dimension_numbers<[1], [0], [0], [1], [0, 0, 1, 1], [], []>} : vector<32x8xbf16>, vector<8x32xbf16>, vector<32x32xf32> -> vector<32x32xf32>
    %c3 = arith.constant 3 : index
    %c0_17 = arith.constant 0 : index
    %c0_18 = arith.constant 0 : index
    %37 = vector.load %arg4[%c3, %c0_17, %c0_18] : memref<16x32x32xf32, #tpu.memory_space<vmem>>, vector<1x32x32xf32>
    %38 = vector.shape_cast %37 : vector<1x32x32xf32> to vector<32x32xf32>
    %39 = vector.shape_cast %36 : vector<32x32xf32> to vector<1x32x32xf32>
    tpu.vector_store %arg4[%c3, %c0_17, %c0_18], %39 {strides = array<i32>} : memref<16x32x32xf32, #tpu.memory_space<vmem>>, vector<1x32x32xf32>,
    %40 = vector.extract_strided_slice %7 {offsets = [4, 0, 0], sizes = [1, 8, 32], strides = [1, 1, 1]} : vector<16x8x32xf32> to vector<1x8x32xf32>
    %41 = vector.shape_cast %40 : vector<1x8x32xf32> to vector<8x32xf32>
    %42 = arith.truncf %0 : vector<32x8xf32> to vector<32x8xbf16>
    %43 = arith.truncf %41 : vector<8x32xf32> to vector<8x32xbf16>
    %cst_19 = arith.constant dense<0.000000e+00> : vector<32x32xf32>
    %44 = tpu.matmul %42, %43, %cst_19 {dimension_numbers = #tpu.dot_dimension_numbers<[1], [0], [0], [1], [0, 0, 1, 1], [], []>} : vector<32x8xbf16>, vector<8x32xbf16>, vector<32x32xf32> -> vector<32x32xf32>
    %c4 = arith.constant 4 : index
    %c0_20 = arith.constant 0 : index
    %c0_21 = arith.constant 0 : index
    %45 = vector.load %arg4[%c4, %c0_20, %c0_21] : memref<16x32x32xf32, #tpu.memory_space<vmem>>, vector<1x32x32xf32>
    %46 = vector.shape_cast %45 : vector<1x32x32xf32> to vector<32x32xf32>
    %47 = vector.shape_cast %44 : vector<32x32xf32> to vector<1x32x32xf32>
    tpu.vector_store %arg4[%c4, %c0_20, %c0_21], %47 {strides = array<i32>} : memref<16x32x32xf32, #tpu.memory_space<vmem>>, vector<1x32x32xf32>,
    %48 = vector.extract_strided_slice %7 {offsets = [5, 0, 0], sizes = [1, 8, 32], strides = [1, 1, 1]} : vector<16x8x32xf32> to vector<1x8x32xf32>
    %49 = vector.shape_cast %48 : vector<1x8x32xf32> to vector<8x32xf32>
    %50 = arith.truncf %0 : vector<32x8xf32> to vector<32x8xbf16>
    %51 = arith.truncf %49 : vector<8x32xf32> to vector<8x32xbf16>
    %cst_22 = arith.constant dense<0.000000e+00> : vector<32x32xf32>
    %52 = tpu.matmul %50, %51, %cst_22 {dimension_numbers = #tpu.dot_dimension_numbers<[1], [0], [0], [1], [0, 0, 1, 1], [], []>} : vector<32x8xbf16>, vector<8x32xbf16>, vector<32x32xf32> -> vector<32x32xf32>
    %c5 = arith.constant 5 : index
    %c0_23 = arith.constant 0 : index
    %c0_24 = arith.constant 0 : index
    %53 = vector.load %arg4[%c5, %c0_23, %c0_24] : memref<16x32x32xf32, #tpu.memory_space<vmem>>, vector<1x32x32xf32>
    %54 = vector.shape_cast %53 : vector<1x32x32xf32> to vector<32x32xf32>
    %55 = vector.shape_cast %52 : vector<32x32xf32> to vector<1x32x32xf32>
    tpu.vector_store %arg4[%c5, %c0_23, %c0_24], %55 {strides = array<i32>} : memref<16x32x32xf32, #tpu.memory_space<vmem>>, vector<1x32x32xf32>,
    %56 = vector.extract_strided_slice %7 {offsets = [6, 0, 0], sizes = [1, 8, 32], strides = [1, 1, 1]} : vector<16x8x32xf32> to vector<1x8x32xf32>
    %57 = vector.shape_cast %56 : vector<1x8x32xf32> to vector<8x32xf32>
    %58 = arith.truncf %0 : vector<32x8xf32> to vector<32x8xbf16>
    %59 = arith.truncf %57 : vector<8x32xf32> to vector<8x32xbf16>
    %cst_25 = arith.constant dense<0.000000e+00> : vector<32x32xf32>
    %60 = tpu.matmul %58, %59, %cst_25 {dimension_numbers = #tpu.dot_dimension_numbers<[1], [0], [0], [1], [0, 0, 1, 1], [], []>} : vector<32x8xbf16>, vector<8x32xbf16>, vector<32x32xf32> -> vector<32x32xf32>
    %c6 = arith.constant 6 : index
    %c0_26 = arith.constant 0 : index
    %c0_27 = arith.constant 0 : index
    %61 = vector.load %arg4[%c6, %c0_26, %c0_27] : memref<16x32x32xf32, #tpu.memory_space<vmem>>, vector<1x32x32xf32>
    %62 = vector.shape_cast %61 : vector<1x32x32xf32> to vector<32x32xf32>
    %63 = vector.shape_cast %60 : vector<32x32xf32> to vector<1x32x32xf32>
    tpu.vector_store %arg4[%c6, %c0_26, %c0_27], %63 {strides = array<i32>} : memref<16x32x32xf32, #tpu.memory_space<vmem>>, vector<1x32x32xf32>,
    %64 = vector.extract_strided_slice %7 {offsets = [7, 0, 0], sizes = [1, 8, 32], strides = [1, 1, 1]} : vector<16x8x32xf32> to vector<1x8x32xf32>
    %65 = vector.shape_cast %64 : vector<1x8x32xf32> to vector<8x32xf32>
    %66 = arith.truncf %0 : vector<32x8xf32> to vector<32x8xbf16>
    %67 = arith.truncf %65 : vector<8x32xf32> to vector<8x32xbf16>
    %cst_28 = arith.constant dense<0.000000e+00> : vector<32x32xf32>
    %68 = tpu.matmul %66, %67, %cst_28 {dimension_numbers = #tpu.dot_dimension_numbers<[1], [0], [0], [1], [0, 0, 1, 1], [], []>} : vector<32x8xbf16>, vector<8x32xbf16>, vector<32x32xf32> -> vector<32x32xf32>
    %c7 = arith.constant 7 : index
    %c0_29 = arith.constant 0 : index
    %c0_30 = arith.constant 0 : index
    %69 = vector.load %arg4[%c7, %c0_29, %c0_30] : memref<16x32x32xf32, #tpu.memory_space<vmem>>, vector<1x32x32xf32>
    %70 = vector.shape_cast %69 : vector<1x32x32xf32> to vector<32x32xf32>
    %71 = vector.shape_cast %68 : vector<32x32xf32> to vector<1x32x32xf32>
    tpu.vector_store %arg4[%c7, %c0_29, %c0_30], %71 {strides = array<i32>} : memref<16x32x32xf32, #tpu.memory_space<vmem>>, vector<1x32x32xf32>,
    %72 = vector.extract_strided_slice %7 {offsets = [8, 0, 0], sizes = [1, 8, 32], strides = [1, 1, 1]} : vector<16x8x32xf32> to vector<1x8x32xf32>
    %73 = vector.shape_cast %72 : vector<1x8x32xf32> to vector<8x32xf32>
    %74 = arith.truncf %0 : vector<32x8xf32> to vector<32x8xbf16>
    %75 = arith.truncf %73 : vector<8x32xf32> to vector<8x32xbf16>
    %cst_31 = arith.constant dense<0.000000e+00> : vector<32x32xf32>
    %76 = tpu.matmul %74, %75, %cst_31 {dimension_numbers = #tpu.dot_dimension_numbers<[1], [0], [0], [1], [0, 0, 1, 1], [], []>} : vector<32x8xbf16>, vector<8x32xbf16>, vector<32x32xf32> -> vector<32x32xf32>
    %c8 = arith.constant 8 : index
    %c0_32 = arith.constant 0 : index
    %c0_33 = arith.constant 0 : index
    %77 = vector.load %arg4[%c8, %c0_32, %c0_33] : memref<16x32x32xf32, #tpu.memory_space<vmem>>, vector<1x32x32xf32>
    %78 = vector.shape_cast %77 : vector<1x32x32xf32> to vector<32x32xf32>
    %79 = vector.shape_cast %76 : vector<32x32xf32> to vector<1x32x32xf32>
    tpu.vector_store %arg4[%c8, %c0_32, %c0_33], %79 {strides = array<i32>} : memref<16x32x32xf32, #tpu.memory_space<vmem>>, vector<1x32x32xf32>,
    %80 = vector.extract_strided_slice %7 {offsets = [9, 0, 0], sizes = [1, 8, 32], strides = [1, 1, 1]} : vector<16x8x32xf32> to vector<1x8x32xf32>
    %81 = vector.shape_cast %80 : vector<1x8x32xf32> to vector<8x32xf32>
    %82 = arith.truncf %0 : vector<32x8xf32> to vector<32x8xbf16>
    %83 = arith.truncf %81 : vector<8x32xf32> to vector<8x32xbf16>
    %cst_34 = arith.constant dense<0.000000e+00> : vector<32x32xf32>
    %84 = tpu.matmul %82, %83, %cst_34 {dimension_numbers = #tpu.dot_dimension_numbers<[1], [0], [0], [1], [0, 0, 1, 1], [], []>} : vector<32x8xbf16>, vector<8x32xbf16>, vector<32x32xf32> -> vector<32x32xf32>
    %c9 = arith.constant 9 : index
    %c0_35 = arith.constant 0 : index
    %c0_36 = arith.constant 0 : index
    %85 = vector.load %arg4[%c9, %c0_35, %c0_36] : memref<16x32x32xf32, #tpu.memory_space<vmem>>, vector<1x32x32xf32>
    %86 = vector.shape_cast %85 : vector<1x32x32xf32> to vector<32x32xf32>
    %87 = vector.shape_cast %84 : vector<32x32xf32> to vector<1x32x32xf32>
    tpu.vector_store %arg4[%c9, %c0_35, %c0_36], %87 {strides = array<i32>} : memref<16x32x32xf32, #tpu.memory_space<vmem>>, vector<1x32x32xf32>,
    %88 = vector.extract_strided_slice %7 {offsets = [10, 0, 0], sizes = [1, 8, 32], strides = [1, 1, 1]} : vector<16x8x32xf32> to vector<1x8x32xf32>
    %89 = vector.shape_cast %88 : vector<1x8x32xf32> to vector<8x32xf32>
    %90 = arith.truncf %0 : vector<32x8xf32> to vector<32x8xbf16>
    %91 = arith.truncf %89 : vector<8x32xf32> to vector<8x32xbf16>
    %cst_37 = arith.constant dense<0.000000e+00> : vector<32x32xf32>
    %92 = tpu.matmul %90, %91, %cst_37 {dimension_numbers = #tpu.dot_dimension_numbers<[1], [0], [0], [1], [0, 0, 1, 1], [], []>} : vector<32x8xbf16>, vector<8x32xbf16>, vector<32x32xf32> -> vector<32x32xf32>
    %c10 = arith.constant 10 : index
    %c0_38 = arith.constant 0 : index
    %c0_39 = arith.constant 0 : index
    %93 = vector.load %arg4[%c10, %c0_38, %c0_39] : memref<16x32x32xf32, #tpu.memory_space<vmem>>, vector<1x32x32xf32>
    %94 = vector.shape_cast %93 : vector<1x32x32xf32> to vector<32x32xf32>
    %95 = vector.shape_cast %92 : vector<32x32xf32> to vector<1x32x32xf32>
    tpu.vector_store %arg4[%c10, %c0_38, %c0_39], %95 {strides = array<i32>} : memref<16x32x32xf32, #tpu.memory_space<vmem>>, vector<1x32x32xf32>,
    %96 = vector.extract_strided_slice %7 {offsets = [11, 0, 0], sizes = [1, 8, 32], strides = [1, 1, 1]} : vector<16x8x32xf32> to vector<1x8x32xf32>
    %97 = vector.shape_cast %96 : vector<1x8x32xf32> to vector<8x32xf32>
    %98 = arith.truncf %0 : vector<32x8xf32> to vector<32x8xbf16>
    %99 = arith.truncf %97 : vector<8x32xf32> to vector<8x32xbf16>
    %cst_40 = arith.constant dense<0.000000e+00> : vector<32x32xf32>
    %100 = tpu.matmul %98, %99, %cst_40 {dimension_numbers = #tpu.dot_dimension_numbers<[1], [0], [0], [1], [0, 0, 1, 1], [], []>} : vector<32x8xbf16>, vector<8x32xbf16>, vector<32x32xf32> -> vector<32x32xf32>
    %c11 = arith.constant 11 : index
    %c0_41 = arith.constant 0 : index
    %c0_42 = arith.constant 0 : index
    %101 = vector.load %arg4[%c11, %c0_41, %c0_42] : memref<16x32x32xf32, #tpu.memory_space<vmem>>, vector<1x32x32xf32>
    %102 = vector.shape_cast %101 : vector<1x32x32xf32> to vector<32x32xf32>
    %103 = vector.shape_cast %100 : vector<32x32xf32> to vector<1x32x32xf32>
    tpu.vector_store %arg4[%c11, %c0_41, %c0_42], %103 {strides = array<i32>} : memref<16x32x32xf32, #tpu.memory_space<vmem>>, vector<1x32x32xf32>,
    %104 = vector.extract_strided_slice %7 {offsets = [12, 0, 0], sizes = [1, 8, 32], strides = [1, 1, 1]} : vector<16x8x32xf32> to vector<1x8x32xf32>
    %105 = vector.shape_cast %104 : vector<1x8x32xf32> to vector<8x32xf32>
    %106 = arith.truncf %0 : vector<32x8xf32> to vector<32x8xbf16>
    %107 = arith.truncf %105 : vector<8x32xf32> to vector<8x32xbf16>
    %cst_43 = arith.constant dense<0.000000e+00> : vector<32x32xf32>
    %108 = tpu.matmul %106, %107, %cst_43 {dimension_numbers = #tpu.dot_dimension_numbers<[1], [0], [0], [1], [0, 0, 1, 1], [], []>} : vector<32x8xbf16>, vector<8x32xbf16>, vector<32x32xf32> -> vector<32x32xf32>
    %c12 = arith.constant 12 : index
    %c0_44 = arith.constant 0 : index
    %c0_45 = arith.constant 0 : index
    %109 = vector.load %arg4[%c12, %c0_44, %c0_45] : memref<16x32x32xf32, #tpu.memory_space<vmem>>, vector<1x32x32xf32>
    %110 = vector.shape_cast %109 : vector<1x32x32xf32> to vector<32x32xf32>
    %111 = vector.shape_cast %108 : vector<32x32xf32> to vector<1x32x32xf32>
    tpu.vector_store %arg4[%c12, %c0_44, %c0_45], %111 {strides = array<i32>} : memref<16x32x32xf32, #tpu.memory_space<vmem>>, vector<1x32x32xf32>,
    %112 = vector.extract_strided_slice %7 {offsets = [13, 0, 0], sizes = [1, 8, 32], strides = [1, 1, 1]} : vector<16x8x32xf32> to vector<1x8x32xf32>
    %113 = vector.shape_cast %112 : vector<1x8x32xf32> to vector<8x32xf32>
    %114 = arith.truncf %0 : vector<32x8xf32> to vector<32x8xbf16>
    %115 = arith.truncf %113 : vector<8x32xf32> to vector<8x32xbf16>
    %cst_46 = arith.constant dense<0.000000e+00> : vector<32x32xf32>
    %116 = tpu.matmul %114, %115, %cst_46 {dimension_numbers = #tpu.dot_dimension_numbers<[1], [0], [0], [1], [0, 0, 1, 1], [], []>} : vector<32x8xbf16>, vector<8x32xbf16>, vector<32x32xf32> -> vector<32x32xf32>
    %c13 = arith.constant 13 : index
    %c0_47 = arith.constant 0 : index
    %c0_48 = arith.constant 0 : index
    %117 = vector.load %arg4[%c13, %c0_47, %c0_48] : memref<16x32x32xf32, #tpu.memory_space<vmem>>, vector<1x32x32xf32>
    %118 = vector.shape_cast %117 : vector<1x32x32xf32> to vector<32x32xf32>
    %119 = vector.shape_cast %116 : vector<32x32xf32> to vector<1x32x32xf32>
    tpu.vector_store %arg4[%c13, %c0_47, %c0_48], %119 {strides = array<i32>} : memref<16x32x32xf32, #tpu.memory_space<vmem>>, vector<1x32x32xf32>,
    %120 = vector.extract_strided_slice %7 {offsets = [14, 0, 0], sizes = [1, 8, 32], strides = [1, 1, 1]} : vector<16x8x32xf32> to vector<1x8x32xf32>
    %121 = vector.shape_cast %120 : vector<1x8x32xf32> to vector<8x32xf32>
    %122 = arith.truncf %0 : vector<32x8xf32> to vector<32x8xbf16>
    %123 = arith.truncf %121 : vector<8x32xf32> to vector<8x32xbf16>
    %cst_49 = arith.constant dense<0.000000e+00> : vector<32x32xf32>
    %124 = tpu.matmul %122, %123, %cst_49 {dimension_numbers = #tpu.dot_dimension_numbers<[1], [0], [0], [1], [0, 0, 1, 1], [], []>} : vector<32x8xbf16>, vector<8x32xbf16>, vector<32x32xf32> -> vector<32x32xf32>
    %c14 = arith.constant 14 : index
    %c0_50 = arith.constant 0 : index
    %c0_51 = arith.constant 0 : index
    %125 = vector.load %arg4[%c14, %c0_50, %c0_51] : memref<16x32x32xf32, #tpu.memory_space<vmem>>, vector<1x32x32xf32>
    %126 = vector.shape_cast %125 : vector<1x32x32xf32> to vector<32x32xf32>
    %127 = vector.shape_cast %124 : vector<32x32xf32> to vector<1x32x32xf32>
    tpu.vector_store %arg4[%c14, %c0_50, %c0_51], %127 {strides = array<i32>} : memref<16x32x32xf32, #tpu.memory_space<vmem>>, vector<1x32x32xf32>,
    %128 = vector.extract_strided_slice %7 {offsets = [15, 0, 0], sizes = [1, 8, 32], strides = [1, 1, 1]} : vector<16x8x32xf32> to vector<1x8x32xf32>
    %129 = vector.shape_cast %128 : vector<1x8x32xf32> to vector<8x32xf32>
    %130 = arith.truncf %0 : vector<32x8xf32> to vector<32x8xbf16>
    %131 = arith.truncf %129 : vector<8x32xf32> to vector<8x32xbf16>
    %cst_52 = arith.constant dense<0.000000e+00> : vector<32x32xf32>
    %132 = tpu.matmul %130, %131, %cst_52 {dimension_numbers = #tpu.dot_dimension_numbers<[1], [0], [0], [1], [0, 0, 1, 1], [], []>} : vector<32x8xbf16>, vector<8x32xbf16>, vector<32x32xf32> -> vector<32x32xf32>
    %c15 = arith.constant 15 : index
    %c0_53 = arith.constant 0 : index
    %c0_54 = arith.constant 0 : index
    %133 = vector.load %arg4[%c15, %c0_53, %c0_54] : memref<16x32x32xf32, #tpu.memory_space<vmem>>, vector<1x32x32xf32>
    %134 = vector.shape_cast %133 : vector<1x32x32xf32> to vector<32x32xf32>
    %135 = vector.shape_cast %132 : vector<32x32xf32> to vector<1x32x32xf32>
    tpu.vector_store %arg4[%c15, %c0_53, %c0_54], %135 {strides = array<i32>} : memref<16x32x32xf32, #tpu.memory_space<vmem>>, vector<1x32x32xf32>,
    return
  }
  func.func @transform_0(%arg0: i32) -> (i32, i32, i32) {
    %c0_i32 = arith.constant 0 : i32
    %c0_i32_0 = arith.constant 0 : i32
    %c0_i32_1 = arith.constant 0 : i32
    return %arg0, %c0_i32, %c0_i32_0 : i32, i32, i32
  }
  func.func @transform_1(%arg0: i32) -> (i32, i32) {
    %c0_i32 = arith.constant 0 : i32
    %c0_i32_0 = arith.constant 0 : i32
    %c0_i32_1 = arith.constant 0 : i32
    return %c0_i32, %c0_i32_0 : i32, i32
  }
  func.func @transform_2(%arg0: i32) -> (i32, i32) {
    %c0_i32 = arith.constant 0 : i32
    %c0_i32_0 = arith.constant 0 : i32
    %c0_i32_1 = arith.constant 0 : i32
    return %c0_i32, %c0_i32_0 : i32, i32
  }
  func.func @transform_3(%arg0: i32) -> (i32, i32, i32) {
    %c0_i32 = arith.constant 0 : i32
    %c0_i32_0 = arith.constant 0 : i32
    %c0_i32_1 = arith.constant 0 : i32
    return %arg0, %c0_i32, %c0_i32_0 : i32, i32, i32
  }
}

</mosaic_0001>

<bundles_post_ra>
// kernel: _lambda_.21
= control target key start
LH: loop header
LB: loop body
LE: loop exit
PB: predicated region body
PF: predicated region fallthrough
CT: control target
= control target key end

     0   :  { %vm37_vm0 = vcmask 1041408   ;;  %vm30_vm1 = vcmask 31744   ;;  %vm90_vm2 = vcmask 261120   ;;  %s162_s1 = inlined_call_operand.vmem [shape: f32[4,32], index: 1, kind: input, shape index: {}]   ;;  %s163_s0 = inlined_call_operand.vmem [shape: f32[32,4], index: 0, kind: input, shape index: {}]   ;;  %s164_s2 = inlined_call_operand.vmem [shape: f32[1,32], index: 2, kind: input, shape index: {}]   ;;  %s165_s3 = inlined_call_operand.vmem [shape: f32[32,32], index: 3, kind: output, shape index: {}]  }
   0x1   :  { %v19_v0 = vld [vmem:[%s162_s1] sm:$0xf]  ;;  %v16_v2 = vld [vmem:[%s163_s0 + $0x8] sm:$0xff]  ;;  %v17_v5 = vld [vmem:[%s163_s0 + $0x10] sm:$0xff] }
   0x2   :  { %v15_v1 = vld [vmem:[%s163_s0] sm:$0xff]  ;;  %v22_v3 = vpack.c.bf16 %v19_v0, %v19_v0  ;;  %v18_v6 = vld [vmem:[%s163_s0 + $0x18] sm:$0xff] }
   0x3   :  { %v20_v4 = vpack.c.bf16 %v16_v2, %v15_v1  ;;  %v21_v8 = vpack.c.bf16 %v18_v6, %v17_v5  ;;  %v99_v9 = vld [vmem:[%s164_s2] ss:$0 sm:$0xff] }
   0x4   :  { %111 = vmatprep.subr.msk.bf16.mxu0 %vm37_vm0, %v22_v3  ;;  %v39_v7 = vsel %vm37_vm0, %v22_v3, 0 }
   0x5   :  { %107 = vmatprep.mubr.msk.bf16.mxu0 %vm30_vm1, %v20_v4  ;;  %106 = vmatpush3.bf16.msra.mxu0 %v39_v7 }
   0x8   :  { %108 = vmatmul.mubr.msk.bf16.vlgmr.msra.gmra.mxu0 %vm30_vm1, %v21_v8 }
  0xc8   :  { %v109_v10 = vpop.f32.mrf.mxu0 }
  0xc9   :  { %v84_v11 = vadd.f32 %v109_v10, %v99_v9 }
  0xca   :  { %v75_v12 = vpop.f32.mrf.mxu0 }
  0xcb   :  { %93 = vst.msk [vmem:[%s165_s3 + $0x10] sm:$0xff] %vm90_vm2, %v84_v11  ;;  %v76_v13 = vadd.f32 %v99_v9, %v75_v12 }
  0xcc   :  { %v110_v14 = vpop.f32.mrf.mxu0 }
  0xcd   :  { %91 = vst.msk [vmem:[%s165_s3] sm:$0xff] %vm90_vm2, %v76_v13  ;;  %v87_v15 = vadd.f32 %v110_v14, %v99_v9 }
  0xce   :  { %v78_v16 = vpop.f32.mrf.mxu0 }
  0xcf   :  { %94 = vst.msk [vmem:[%s165_s3 + $0x18] sm:$0xff] %vm90_vm2, %v87_v15  ;;  %v79_v17 = vadd.f32 %v99_v9, %v78_v16 }
  0xd1   :  { %92 = vst.msk [vmem:[%s165_s3 + $0x8] sm:$0xff] %vm90_vm2, %v79_v17 }

// kernel: _lambda_.24
= control target key start
LH: loop header
LB: loop body
LE: loop exit
PB: predicated region body
PF: predicated region fallthrough
CT: control target
= control target key end

     0   :  { %vm34_vm0 = vcmask 261120   ;;  %s178_s1 = inlined_call_operand.vmem [shape: f32[32,32], index: 1, kind: input, shape index: {}]   ;;  %s179_s0 = inlined_call_operand.vmem [shape: f32[32,32], index: 0, kind: input, shape index: {}]   ;;  %s180_s2 = inlined_call_operand.vmem [shape: f32[1,32], index: 2, kind: input, shape index: {}]   ;;  %s181_s3 = inlined_call_operand.vmem [shape: f32[32,32], index: 3, kind: output, shape index: {}]  }
   0x1   :  { %v21_v0 = vld [vmem:[%s178_s1 + $0x10] sm:$0xff]  ;;  %v22_v1 = vld [vmem:[%s178_s1 + $0x18] sm:$0xff]  ;;  %v19_v2 = vld [vmem:[%s178_s1] sm:$0xff] }
   0x2   :  { %v26_v3 = vpack.c.bf16 %v22_v1, %v21_v0  ;;  %v20_v4 = vld [vmem:[%s178_s1 + $0x8] sm:$0xff]  ;;  %v15_v5 = vld [vmem:[%s179_s0] sm:$0xff]  ;;  %v17_v9 = vld [vmem:[%s179_s0 + $0x10] sm:$0xff] }
   0x3   :  { %v16_v6 = vld [vmem:[%s179_s0 + $0x8] sm:$0xff]  ;;  %v25_v7 = vpack.c.bf16 %v20_v4, %v19_v2  ;;  %v18_v10 = vld [vmem:[%s179_s0 + $0x18] sm:$0xff]  ;;  %v98_v12 = vld [vmem:[%s180_s2] ss:$0 sm:$0xff] }
   0x4   :  { %v23_v8 = vpack.c.bf16 %v16_v6, %v15_v5  ;;  %105 = vmatprep.subr.bf16.mxu0 %v26_v3  ;;  %v24_v11 = vpack.c.bf16 %v18_v10, %v17_v9 }
   0x5   :  { %106 = vmatpush3.bf16.msra.mxu0 %v26_v3 }
   0x6   :  { %109 = vmatprep.mubr.msk.bf16.mxu0 %vm34_vm0, %v23_v8  ;;  %107 = vmatprep.subr.bf16.mxu0 %v25_v7 }
   0x9   :  { %108 = vmatpush3.bf16.msra.mxu0 %v25_v7 }
   0xc   :  { %110 = vmatmul.mubr.msk.bf16.vlgmr.msra.gmra.mxu0 %vm34_vm0, %v24_v11 }
  0xcc   :  { %v111_v13 = vpop.f32.mrf.mxu0 }
  0xcd   :  { %v84_v14 = vadd.f32 %v111_v13, %v98_v12 }
  0xce   :  { %v75_v15 = vpop.f32.mrf.mxu0 }
  0xcf   :  { %92 = vst.msk [vmem:[%s181_s3 + $0x10] sm:$0xff] %vm34_vm0, %v84_v14  ;;  %v76_v16 = vadd.f32 %v98_v12, %v75_v15 }
  0xd0   :  { %v112_v17 = vpop.f32.mrf.mxu0 }
  0xd1   :  { %90 = vst.msk [vmem:[%s181_s3] sm:$0xff] %vm34_vm0, %v76_v16  ;;  %v87_v18 = vadd.f32 %v112_v17, %v98_v12 }
  0xd2   :  { %v78_v19 = vpop.f32.mrf.mxu0 }
  0xd3   :  { %93 = vst.msk [vmem:[%s181_s3 + $0x18] sm:$0xff] %vm34_vm0, %v87_v18  ;;  %v79_v20 = vadd.f32 %v98_v12, %v78_v19 }
  0xd5   :  { %91 = vst.msk [vmem:[%s181_s3 + $0x8] sm:$0xff] %vm34_vm0, %v79_v20 }

// kernel: _lambda_.23
= control target key start
LH: loop header
LB: loop body
LE: loop exit
PB: predicated region body
PF: predicated region fallthrough
CT: control target
= control target key end

     0   :  { %vm73_vm0 = vcmask 1041408   ;;  %vm48_vm1 = vcmask 31744   ;;  %vm174_vm2 = vcmask 261120   ;;  %s381_s1 = inlined_call_operand.vmem [shape: f32[4,32], index: 1, kind: input, shape index: {}]   ;;  %s382_s0 = inlined_call_operand.vmem [shape: f32[128,4], index: 0, kind: input, shape index: {}]   ;;  %s383_s2 = inlined_call_operand.vmem [shape: f32[1,32], index: 2, kind: input, shape index: {}]   ;;  %s384_s3 = inlined_call_operand.vmem [shape: f32[128,32], index: 3, kind: output, shape index: {}]  }
   0x1   :  { %v31_v0 = vld [vmem:[%s381_s1] sm:$0xf]  ;;  %v16_v2 = vld [vmem:[%s382_s0 + $0x8] sm:$0xff]  ;;  %v17_v7 = vld [vmem:[%s382_s0 + $0x10] sm:$0xff] }
   0x2   :  { %v15_v1 = vld [vmem:[%s382_s0] sm:$0xff]  ;;  %v40_v3 = vpack.c.bf16 %v31_v0, %v31_v0  ;;  %v24_v6 = vld [vmem:[%s382_s0 + $0x48] sm:$0xff]  ;;  %v18_v9 = vld [vmem:[%s382_s0 + $0x18] sm:$0xff] }
   0x3   :  { %v32_v4 = vpack.c.bf16 %v16_v2, %v15_v1  ;;  %v23_v5 = vld [vmem:[%s382_s0 + $0x40] sm:$0xff]  ;;  %v25_v10 = vld [vmem:[%s382_s0 + $0x50] sm:$0xff]  ;;  %v26_v11 = vld [vmem:[%s382_s0 + $0x58] sm:$0xff]  ;;  %v33_v13 = vpack.c.bf16 %v18_v9, %v17_v7 }
   0x4   :  { %v36_v8 = vpack.c.bf16 %v24_v6, %v23_v5  ;;  %233 = vmatprep.subr.msk.bf16.mxu0 %vm73_vm0, %v40_v3  ;;  %234 = vmatprep.subr.msk.bf16.mxu1 %vm73_vm0, %v40_v3  ;;  %v75_v12 = vsel %vm73_vm0, %v40_v3, 0  ;;  %v37_v14 = vpack.c.bf16 %v26_v11, %v25_v10  ;;  %v19_v15 = vld [vmem:[%s382_s0 + $0x20] sm:$0xff]  ;;  %v20_v16 = vld [vmem:[%s382_s0 + $0x28] sm:$0xff]  ;;  %v21_v21 = vld [vmem:[%s382_s0 + $0x30] sm:$0xff] }
   0x5   :  { %v27_v17 = vld [vmem:[%s382_s0 + $0x60] sm:$0xff]  ;;  %214 = vmatpush3.bf16.msra.mxu0 %v75_v12  ;;  %232 = vmatpush3.bf16.msra.mxu1 %v75_v12  ;;  %v34_v18 = vpack.c.bf16 %v20_v16, %v19_v15  ;;  %v28_v19 = vld [vmem:[%s382_s0 + $0x68] sm:$0xff]  ;;  %v22_v22 = vld [vmem:[%s382_s0 + $0x38] sm:$0xff] }
   0x6   :  { %215 = vmatprep.mubr.msk.bf16.mxu0 %vm48_vm1, %v32_v4  ;;  %223 = vmatprep.mubr.msk.bf16.mxu1 %vm48_vm1, %v36_v8  ;;  %v38_v20 = vpack.c.bf16 %v28_v19, %v27_v17  ;;  %v29_v23 = vld [vmem:[%s382_s0 + $0x70] sm:$0xff]  ;;  %v30_v24 = vld [vmem:[%s382_s0 + $0x78] sm:$0xff]  ;;  %v35_v25 = vpack.c.bf16 %v22_v22, %v21_v21  ;;  %v195_v27 = vld [vmem:[%s383_s2] ss:$0 sm:$0xff] }
   0x7   :  { %v39_v26 = vpack.c.bf16 %v30_v24, %v29_v23 }
   0x8   :  { %216 = vmatmul.mubr.msk.bf16.vlgmr.msra.gmra.mxu0 %vm48_vm1, %v33_v13  ;;  %224 = vmatmul.mubr.msk.bf16.vlgmr.msra.gmra.mxu1 %vm48_vm1, %v37_v14 }
   0x9   :  { %219 = vmatprep.mubr.msk.bf16.mxu0 %vm48_vm1, %v34_v18  ;;  %227 = vmatprep.mubr.msk.bf16.mxu1 %vm48_vm1, %v38_v20 }
  0x10   :  { %220 = vmatmul.mubr.msk.bf16.gmra.mxu0 %vm48_vm1, %v35_v25  ;;  %228 = vmatmul.mubr.msk.bf16.gmra.mxu1 %vm48_vm1, %v39_v26 }
  0xc8   :  { %v217_v28 = vpop.f32.mrf.mxu0  ;;  %v225_v29 = vpop.f32.mrf.mxu1 }
  0xc9   :  { %v120_v30 = vadd.f32 %v217_v28, %v195_v27  ;;  %v152_v31 = vadd.f32 %v225_v29, %v195_v27 }
  0xca   :  { %v111_v32 = vpop.f32.mrf.mxu0  ;;  %v143_v33 = vpop.f32.mrf.mxu1 }
  0xcb   :  { %177 = vst.msk [vmem:[%s384_s3 + $0x10] sm:$0xff] %vm174_vm2, %v120_v30  ;;  %185 = vst.msk [vmem:[%s384_s3 + $0x50] sm:$0xff] %vm174_vm2, %v152_v31  ;;  %v112_v34 = vadd.f32 %v195_v27, %v111_v32  ;;  %v144_v35 = vadd.f32 %v195_v27, %v143_v33 }
  0xcc   :  { %v218_v36 = vpop.f32.mrf.mxu0  ;;  %v226_v37 = vpop.f32.mrf.mxu1 }
  0xcd   :  { %175 = vst.msk [vmem:[%s384_s3] sm:$0xff] %vm174_vm2, %v112_v34  ;;  %183 = vst.msk [vmem:[%s384_s3 + $0x40] sm:$0xff] %vm174_vm2, %v144_v35  ;;  %v123_v38 = vadd.f32 %v218_v36, %v195_v27  ;;  %v155_v39 = vadd.f32 %v226_v37, %v195_v27 }
  0xce   :  { %v114_v40 = vpop.f32.mrf.mxu0  ;;  %v146_v41 = vpop.f32.mrf.mxu1 }
  0xcf   :  { %178 = vst.msk [vmem:[%s384_s3 + $0x18] sm:$0xff] %vm174_vm2, %v123_v38  ;;  %186 = vst.msk [vmem:[%s384_s3 + $0x58] sm:$0xff] %vm174_vm2, %v155_v39  ;;  %v115_v42 = vadd.f32 %v195_v27, %v114_v40  ;;  %v147_v43 = vadd.f32 %v195_v27, %v146_v41 }
  0xd0   :  { %v221_v44 = vpop.f32.mrf.mxu0  ;;  %v229_v45 = vpop.f32.mrf.mxu1 }
  0xd1   :  { %176 = vst.msk [vmem:[%s384_s3 + $0x8] sm:$0xff] %vm174_vm2, %v115_v42  ;;  %184 = vst.msk [vmem:[%s384_s3 + $0x48] sm:$0xff] %vm174_vm2, %v147_v43  ;;  %v136_v46 = vadd.f32 %v221_v44, %v195_v27  ;;  %v168_v47 = vadd.f32 %v229_v45, %v195_v27 }
  0xd2   :  { %v127_v48 = vpop.f32.mrf.mxu0  ;;  %v159_v49 = vpop.f32.mrf.mxu1 }
  0xd3   :  { %181 = vst.msk [vmem:[%s384_s3 + $0x30] sm:$0xff] %vm174_vm2, %v136_v46  ;;  %189 = vst.msk [vmem:[%s384_s3 + $0x70] sm:$0xff] %vm174_vm2, %v168_v47  ;;  %v128_v50 = vadd.f32 %v195_v27, %v127_v48  ;;  %v160_v51 = vadd.f32 %v195_v27, %v159_v49 }
  0xd4   :  { %v222_v52 = vpop.f32.mrf.mxu0  ;;  %v230_v53 = vpop.f32.mrf.mxu1 }
  0xd5   :  { %179 = vst.msk [vmem:[%s384_s3 + $0x20] sm:$0xff] %vm174_vm2, %v128_v50  ;;  %187 = vst.msk [vmem:[%s384_s3 + $0x60] sm:$0xff] %vm174_vm2, %v160_v51  ;;  %v139_v54 = vadd.f32 %v222_v52, %v195_v27  ;;  %v171_v55 = vadd.f32 %v230_v53, %v195_v27 }
  0xd6   :  { %v130_v56 = vpop.f32.mrf.mxu0  ;;  %v162_v57 = vpop.f32.mrf.mxu1 }
  0xd7   :  { %182 = vst.msk [vmem:[%s384_s3 + $0x38] sm:$0xff] %vm174_vm2, %v139_v54  ;;  %190 = vst.msk [vmem:[%s384_s3 + $0x78] sm:$0xff] %vm174_vm2, %v171_v55  ;;  %v131_v58 = vadd.f32 %v195_v27, %v130_v56  ;;  %v163_v59 = vadd.f32 %v195_v27, %v162_v57 }
  0xd9   :  { %180 = vst.msk [vmem:[%s384_s3 + $0x28] sm:$0xff] %vm174_vm2, %v131_v58  ;;  %188 = vst.msk [vmem:[%s384_s3 + $0x68] sm:$0xff] %vm174_vm2, %v163_v59 }

// kernel: _lambda_.25
= control target key start
LH: loop header
LB: loop body
LE: loop exit
PB: predicated region body
PF: predicated region fallthrough
CT: control target
= control target key end

     0   :  { %s1370_s12 = smov 0   ;;  %s1557_s0 = inlined_call_operand.vmem [shape: f32[64,8,8], index: 0, kind: input, shape index: {}]   ;;  %s1558_s1 = inlined_call_operand.vmem [shape: f32[4,8], index: 1, kind: input, shape index: {}]   ;;  %s1559_s2 = inlined_call_operand.vmem [shape: f32[8,4], index: 2, kind: input, shape index: {}]   ;;  %s1560_s3 = inlined_call_operand.vmem [shape: f32[64,4,4], index: 3, kind: output, shape index: {}]  }
   0x1 LB: > { %s1124_s13 = sadd.s32 4294967295, %s1346_s12   ;;  %p1128_p0 = scmp.ge.s32.totalorder %s1346_s12, 1  ;;  %s1346_s12 = sphi %s1370_s12, %s13_s12  }
   0x2   : > { %p138_p1 = scmp.lt.s32.totalorder %s1346_s12, 5 }
   0x4   : > { %p139_p2 = pnand %p1128_p0, %p138_p1 }
   0x5   : > { %s1129_s16 = sshll.u32 (!%p139_p2), %s1124_s13, 4 }
   0x6   : > { %142 = sbr.rel (%p139_p2) target bundleno = 490 (0x1ea), region = 32  ;;  %p163_p3 = scmp.lt.s32.totalorder (!%p139_p2), %s1129_s16, 63 }
   0xb   : > { %v176_v0 = vld [vmem:[%s1559_s2] sm:$0xff]  ;;  %vm227_vm0 = vcmask 1043456   ;;  %s1562_s16 = smov (!%p163_p3, %s1129_s16), 63  ;;  %vm202_vm1 = vcmask 64512   ;;  %v1348_v27 = vmov 0.0   ;;  %vm1349_vm2 = vmmov 0  }
   0xc   : > { %v201_v1 = vpack.c.bf16 %v176_v0, %v176_v0  ;;  %s1130_s17 = sshll.u32 %s1562_s16, 3  ;;  %1233 = vmatprep.subr.bf16.mxu1 %v1348_v27  ;;  %1235 = vmatprep.mubr.msk.bf16.mxu1 %vm1349_vm2, %v1348_v27  ;;  %v175_v30 = vld [vmem:[%s1558_s1] sm:$0xf]  ;;  %s1132_s23 = sshll.u32 %s1562_s16, 2  ;;  %vm376_vm3 = vcmask 27648  }
   0xd   : > { %s1389_s20 = scalar_lea.vmem %s1557_s0, %s1130_s17  ;;  %v1425_v34 = vpack.c.bf16 %v175_v30, %v175_v30  ;;  %s1520_s26 = scalar_lea.vmem %s1560_s3, %s1132_s23 }
   0xe   : > { %1329 = vmatprep.subr.msk.bf16.mxu0 %vm227_vm0, %v201_v1  ;;  %v229_v2 = vsel %vm227_vm0, %v201_v1, 0  ;;  %v177_v3 = vld [vmem:[%s1389_s20] sm:$0xff]  ;;  %v178_v4 = vld [vmem:[%s1389_s20 + $0x8] sm:$0xff]  ;;  %v179_v5 = vld [vmem:[%s1389_s20 + $0x10] sm:$0xff] }
   0xf   : > { %1216 = vmatpush3.bf16.msra.mxu0 %v229_v2  ;;  %v193_v6 = vpack.c.bf16 %v178_v4, %v177_v3  ;;  %v180_v7 = vld [vmem:[%s1389_s20 + $0x18] sm:$0xff]  ;;  %v181_v8 = vld [vmem:[%s1389_s20 + $0x20] sm:$0xff]  ;;  %v182_v9 = vld [vmem:[%s1389_s20 + $0x28] sm:$0xff] }
  0x10   : > { %v194_v10 = vpack.c.bf16 %v180_v7, %v179_v5  ;;  %v195_v11 = vpack.c.bf16 %v182_v9, %v181_v8  ;;  %v183_v12 = vld [vmem:[%s1389_s20 + $0x30] sm:$0xff]  ;;  %v184_v13 = vld [vmem:[%s1389_s20 + $0x38] sm:$0xff]  ;;  %v185_v14 = vld [vmem:[%s1389_s20 + $0x40] sm:$0xff]  ;;  %1257 = vmatprep.subr.bf16.mxu0 %v1348_v27 }
  0x11   : > { %1217 = vmatprep.mubr.msk.bf16.mxu0 %vm202_vm1, %v193_v6  ;;  %v186_v15 = vld [vmem:[%s1389_s20 + $0x48] sm:$0xff]  ;;  %v196_v16 = vpack.c.bf16 %v184_v13, %v183_v12  ;;  %v187_v18 = vld [vmem:[%s1389_s20 + $0x50] sm:$0xff]  ;;  %v188_v19 = vld [vmem:[%s1389_s20 + $0x58] sm:$0xff] }
  0x12   : > { %1218 = vmatmul.mubr.msk.bf16.vlgmr.msra.gmra.mxu0 %vm202_vm1, %v194_v10  ;;  %v197_v17 = vpack.c.bf16 %v186_v15, %v185_v14  ;;  %v189_v20 = vld [vmem:[%s1389_s20 + $0x60] sm:$0xff]  ;;  %v190_v21 = vld [vmem:[%s1389_s20 + $0x68] sm:$0xff]  ;;  %v198_v22 = vpack.c.bf16 %v188_v19, %v187_v18  ;;  %v191_v24 = vld [vmem:[%s1389_s20 + $0x70] sm:$0xff] }
  0x13   : > { %1221 = vmatprep.mubr.msk.bf16.mxu0 %vm202_vm1, %v195_v11  ;;  %v199_v23 = vpack.c.bf16 %v190_v21, %v189_v20  ;;  %v192_v25 = vld [vmem:[%s1389_s20 + $0x78] sm:$0xff] }
  0x14   : > { %v200_v26 = vpack.c.bf16 %v192_v25, %v191_v24 }
  0x1a   : > { %1222 = vmatmul.mubr.msk.bf16.gmra.mxu0 %vm202_vm1, %v196_v16 }
  0x1b   : > { %1225 = vmatprep.mubr.msk.bf16.mxu0 %vm202_vm1, %v197_v17 }
  0x22   : > { %1226 = vmatmul.mubr.msk.bf16.gmra.mxu0 %vm202_vm1, %v198_v22 }
  0x23   : > { %1229 = vmatprep.mubr.msk.bf16.mxu0 %vm202_vm1, %v199_v23 }
  0x2a   : > { %1230 = vmatmul.mubr.msk.bf16.gmra.mxu0 %vm202_vm1, %v200_v26 }
  0x2b   : > { %1259 = vmatprep.mubr.msk.bf16.mxu0 %vm1349_vm2, %v1348_v27 }
  0xd2   : > { %v1219_v28 = vpop.f32.mrf.mxu0 }
  0xd3   : > { %v424_v43 = vpack.c.bf16 %v1219_v28, %v1219_v28 }
  0xd4   : > { %v265_v29 = vpop.f32.mrf.mxu0 }
  0xd5   : > { %v329_v31 = vpack.c.bf16 %v265_v29, %v265_v29  ;;  %v426_v48 = vsel %vm227_vm0, %v424_v43, 0 }
  0xd6   : > { %v1220_v32 = vpop.f32.mrf.mxu0 }
  0xd7   : > { %v334_v33 = vsel %vm227_vm0, %v329_v31, 0  ;;  %v470_v51 = vpack.c.bf16 %v1220_v32, %v1220_v32 }
  0xd8   : > { %v268_v35 = vpop.f32.mrf.mxu0  ;;  %1234 = vmatpush3.bf16.msra.mxu1 %v334_v33 }
  0xd9   : > { %v378_v36 = vpack.c.bf16 %v268_v35, %v268_v35  ;;  %1239 = vmatprep.subr.bf16.mxu1 %v1348_v27  ;;  %v472_v54 = vsel %vm227_vm0, %v470_v51, 0 }
  0xda   : > { %v1223_v37 = vpop.f32.mrf.mxu0 }
  0xdb   : > { %v380_v38 = vsel %vm227_vm0, %v378_v36, 0  ;;  %1236 = vmatmul.mubr.msk.bf16.vlgmr.msra.gmra.mxu1 %vm202_vm1, %v1425_v34  ;;  %v608_v40 = vpack.c.bf16 %v1223_v37, %v1223_v37 }
  0xdc   : > { %v281_v39 = vpop.f32.mrf.mxu0  ;;  %1240 = vmatpush3.bf16.msra.mxu1 %v380_v38  ;;  %1241 = vmatprep.mubr.msk.bf16.mxu1 %vm1349_vm2, %v1348_v27 }
  0xdd   : > { %v516_v41 = vpack.c.bf16 %v281_v39, %v281_v39  ;;  %1245 = vmatprep.subr.bf16.mxu1 %v1348_v27  ;;  %v610_v46 = vsel %vm227_vm0, %v608_v40, 0 }
  0xde   : > { %v1224_v42 = vpop.f32.mrf.mxu0 }
  0xdf   : > { %v518_v44 = vsel %vm227_vm0, %v516_v41, 0  ;;  %v654_v63 = vpack.c.bf16 %v1224_v42, %v1224_v42 }
  0xe0   : > { %v284_v45 = vpop.f32.mrf.mxu0  ;;  %1258 = vmatpush3.bf16.msra.mxu0 %v518_v44 }
  0xe1   : > { %1269 = vmatprep.subr.bf16.mxu0 %v1348_v27  ;;  %v562_v55 = vpack.c.bf16 %v284_v45, %v284_v45  ;;  %v656_v1 = vsel %vm227_vm0, %v654_v63, 0 }
  0xe2   : > { %v1227_v47 = vpop.f32.mrf.mxu0 }
  0xe3   : > { %1242 = vmatmul.mubr.msk.bf16.vlgmr.msra.gmra.mxu1 %vm202_vm1, %v1425_v34  ;;  %1260 = vmatmul.mubr.msk.bf16.vlgmr.msra.gmra.mxu0 %vm202_vm1, %v1425_v34  ;;  %v792_v57 = vpack.c.bf16 %v1227_v47, %v1227_v47  ;;  %v564_v59 = vsel %vm227_vm0, %v562_v55, 0 }
  0xe4   : > { %1246 = vmatpush3.bf16.msra.mxu1 %v426_v48  ;;  %1270 = vmatpush3.bf16.msra.mxu0 %v610_v46  ;;  %v297_v49 = vpop.f32.mrf.mxu0 }
  0xe5   : > { %1247 = vmatprep.mubr.msk.bf16.mxu1 %vm1349_vm2, %v1348_v27  ;;  %1251 = vmatprep.subr.bf16.mxu1 %v1348_v27  ;;  %v700_v50 = vpack.c.bf16 %v297_v49, %v297_v49  ;;  %v794_v60 = vsel %vm227_vm0, %v792_v57, 0 }
  0xe6   : > { %1271 = vmatprep.mubr.msk.bf16.mxu0 %vm1349_vm2, %v1348_v27  ;;  %1281 = vmatprep.subr.bf16.mxu0 %v1348_v27  ;;  %v1228_v52 = vpop.f32.mrf.mxu0 }
  0xe7   : > { %v702_v53 = vsel %vm227_vm0, %v700_v50, 0  ;;  %v838_v7 = vpack.c.bf16 %v1228_v52, %v1228_v52 }
  0xe8   : > { %v300_v56 = vpop.f32.mrf.mxu0 }
  0xe9   : > { %v746_v2 = vpack.c.bf16 %v300_v56, %v300_v56  ;;  %v840_v9 = vsel %vm227_vm0, %v838_v7, 0 }
  0xea   : > { %v1231_v58 = vpop.f32.mrf.mxu0 }
  0xeb   : > { %1248 = vmatmul.mubr.msk.bf16.vlgmr.msra.gmra.mxu1 %vm202_vm1, %v1425_v34  ;;  %1272 = vmatmul.mubr.msk.bf16.vlgmr.msra.gmra.mxu0 %vm202_vm1, %v1425_v34  ;;  %v976_v3 = vpack.c.bf16 %v1231_v58, %v1231_v58  ;;  %v748_v4 = vsel %vm227_vm0, %v746_v2, 0 }
  0xec   : > { %1252 = vmatpush3.bf16.msra.mxu1 %v472_v54  ;;  %1253 = vmatprep.mubr.msk.bf16.mxu1 %vm1349_vm2, %v1348_v27  ;;  %v313_v61 = vpop.f32.mrf.mxu0 }
  0xed   : > { %1263 = vmatprep.subr.bf16.mxu1 %v1348_v27  ;;  %1282 = vmatpush3.bf16.msra.mxu0 %v702_v53  ;;  %v884_v62 = vpack.c.bf16 %v313_v61, %v313_v61  ;;  %v978_v5 = vsel %vm227_vm0, %v976_v3, 0 }
  0xee   : > { %1283 = vmatprep.mubr.msk.bf16.mxu0 %vm1349_vm2, %v1348_v27  ;;  %1293 = vmatprep.subr.bf16.mxu0 %v1348_v27  ;;  %v1232_v6 = vpop.f32.mrf.mxu0 }
  0xef   : > { %v886_v0 = vsel %vm227_vm0, %v884_v62, 0  ;;  %v1022_v12 = vpack.c.bf16 %v1232_v6, %v1232_v6 }
  0xf0   : > { %v316_v8 = vpop.f32.mrf.mxu0 }
  0xf1   : > { %v930_v10 = vpack.c.bf16 %v316_v8, %v316_v8  ;;  %v1024_v13 = vsel %vm227_vm0, %v1022_v12, 0 }
  0xf3   : > { %1254 = vmatmul.mubr.msk.bf16.vlgmr.msra.gmra.mxu1 %vm202_vm1, %v1425_v34  ;;  %1284 = vmatmul.mubr.msk.bf16.vlgmr.msra.gmra.mxu0 %vm202_vm1, %v1425_v34  ;;  %v932_v11 = vsel %vm227_vm0, %v930_v10, 0 }
  0xf4   : > { %1264 = vmatpush3.bf16.msra.mxu1 %v564_v59  ;;  %1265 = vmatprep.mubr.msk.bf16.mxu1 %vm1349_vm2, %v1348_v27 }
  0xf5   : > { %1275 = vmatprep.subr.bf16.mxu1 %v1348_v27  ;;  %1294 = vmatpush3.bf16.msra.mxu0 %v794_v60 }
  0xf6   : > { %1295 = vmatprep.mubr.msk.bf16.mxu0 %vm1349_vm2, %v1348_v27  ;;  %1305 = vmatprep.subr.bf16.mxu0 %v1348_v27 }
  0xfb   : > { %1266 = vmatmul.mubr.msk.bf16.vlgmr.msra.gmra.mxu1 %vm202_vm1, %v1425_v34  ;;  %1296 = vmatmul.mubr.msk.bf16.vlgmr.msra.gmra.mxu0 %vm202_vm1, %v1425_v34 }
  0xfc   : > { %1276 = vmatpush3.bf16.msra.mxu1 %v656_v1  ;;  %1277 = vmatprep.mubr.msk.bf16.mxu1 %vm1349_vm2, %v1348_v27 }
  0xfd   : > { %1287 = vmatprep.subr.bf16.mxu1 %v1348_v27  ;;  %1306 = vmatpush3.bf16.msra.mxu0 %v886_v0 }
  0xfe   : > { %1307 = vmatprep.mubr.msk.bf16.mxu0 %vm1349_vm2, %v1348_v27  ;;  %1317 = vmatprep.subr.bf16.mxu0 %v1348_v27 }
 0x103   : > { %1278 = vmatmul.mubr.msk.bf16.vlgmr.msra.gmra.mxu1 %vm202_vm1, %v1425_v34  ;;  %1308 = vmatmul.mubr.msk.bf16.vlgmr.msra.gmra.mxu0 %vm202_vm1, %v1425_v34 }
 0x104   : > { %1288 = vmatpush3.bf16.msra.mxu1 %v748_v4  ;;  %1289 = vmatprep.mubr.msk.bf16.mxu1 %vm1349_vm2, %v1348_v27 }
 0x105   : > { %1299 = vmatprep.subr.bf16.mxu1 %v1348_v27  ;;  %1318 = vmatpush3.bf16.msra.mxu0 %v978_v5 }
 0x106   : > { %1319 = vmatprep.mubr.msk.bf16.mxu0 %vm1349_vm2, %v1348_v27 }
 0x10b   : > { %1290 = vmatmul.mubr.msk.bf16.vlgmr.msra.gmra.mxu1 %vm202_vm1, %v1425_v34  ;;  %1320 = vmatmul.mubr.msk.bf16.vlgmr.msra.gmra.mxu0 %vm202_vm1, %v1425_v34 }
 0x10c   : > { %1300 = vmatpush3.bf16.msra.mxu1 %v840_v9  ;;  %1301 = vmatprep.mubr.msk.bf16.mxu1 %vm1349_vm2, %v1348_v27 }
 0x10d   : > { %1311 = vmatprep.subr.bf16.mxu1 %v1348_v27 }
 0x113   : > { %1302 = vmatmul.mubr.msk.bf16.vlgmr.msra.gmra.mxu1 %vm202_vm1, %v1425_v34 }
 0x114   : > { %1312 = vmatpush3.bf16.msra.mxu1 %v932_v11  ;;  %1313 = vmatprep.mubr.msk.bf16.mxu1 %vm1349_vm2, %v1348_v27 }
 0x115   : > { %1323 = vmatprep.subr.bf16.mxu1 %v1348_v27 }
 0x11b   : > { %1314 = vmatmul.mubr.msk.bf16.vlgmr.msra.gmra.mxu1 %vm202_vm1, %v1425_v34 }
 0x11c   : > { %1324 = vmatpush3.bf16.msra.mxu1 %v1024_v13  ;;  %1325 = vmatprep.mubr.msk.bf16.mxu1 %vm1349_vm2, %v1348_v27 }
 0x123   : > { %1326 = vmatmul.mubr.msk.bf16.vlgmr.msra.gmra.mxu1 %vm202_vm1, %v1425_v34 }
 0x19b   : > { %v370_v14 = vpop.f32.mrf.mxu1 }
 0x19c   : > { %377 = vst.msk [vmem:[%s1520_s26] sm:$0xf] %vm376_vm3, %v370_v14 }
 0x19d   : > { %v1237_v15 = vpop.f32.mrf.mxu1 }
 0x19f   : > { %v373_v16 = vpop.f32.mrf.mxu1 }
 0x1a1   : > { %v1238_v17 = vpop.f32.mrf.mxu1 }
 0x1a3   : > { %v416_v18 = vpop.f32.mrf.mxu1  ;;  %v554_v19 = vpop.f32.mrf.mxu0 }
 0x1a4   : > { %1143 = vst.msk [vmem:[%s1520_s26 + $0x4] sm:$0xf] %vm376_vm3, %v416_v18  ;;  %1149 = vst.msk [vmem:[%s1520_s26 + $0x10] sm:$0xf] %vm376_vm3, %v554_v19 }
 0x1a5   : > { %v1243_v20 = vpop.f32.mrf.mxu1  ;;  %v1261_v21 = vpop.f32.mrf.mxu0 }
 0x1a7   : > { %v419_v22 = vpop.f32.mrf.mxu1  ;;  %v557_v23 = vpop.f32.mrf.mxu0 }
 0x1a9   : > { %v1244_v24 = vpop.f32.mrf.mxu1  ;;  %v1262_v25 = vpop.f32.mrf.mxu0 }
 0x1ab   : > { %v462_v26 = vpop.f32.mrf.mxu1  ;;  %v646_v27 = vpop.f32.mrf.mxu0 }
 0x1ac   : > { %1145 = vst.msk [vmem:[%s1520_s26 + $0x8] sm:$0xf] %vm376_vm3, %v462_v26  ;;  %1153 = vst.msk [vmem:[%s1520_s26 + $0x18] sm:$0xf] %vm376_vm3, %v646_v27 }
 0x1ad   : > { %v1249_v28 = vpop.f32.mrf.mxu1  ;;  %v1273_v29 = vpop.f32.mrf.mxu0 }
 0x1af   : > { %v465_v30 = vpop.f32.mrf.mxu1  ;;  %v649_v31 = vpop.f32.mrf.mxu0 }
 0x1b1   : > { %v1250_v32 = vpop.f32.mrf.mxu1  ;;  %v1274_v33 = vpop.f32.mrf.mxu0 }
 0x1b3   : > { %v508_v34 = vpop.f32.mrf.mxu1  ;;  %v738_v35 = vpop.f32.mrf.mxu0 }
 0x1b4   : > { %1147 = vst.msk [vmem:[%s1520_s26 + $0xc] sm:$0xf] %vm376_vm3, %v508_v34  ;;  %1157 = vst.msk [vmem:[%s1520_s26 + $0x20] sm:$0xf] %vm376_vm3, %v738_v35 }
 0x1b5   : > { %v1255_v36 = vpop.f32.mrf.mxu1  ;;  %v1285_v37 = vpop.f32.mrf.mxu0 }
 0x1b7   : > { %v511_v38 = vpop.f32.mrf.mxu1  ;;  %v741_v39 = vpop.f32.mrf.mxu0 }
 0x1b9   : > { %v1256_v40 = vpop.f32.mrf.mxu1  ;;  %v1286_v41 = vpop.f32.mrf.mxu0 }
 0x1bb   : > { %v600_v42 = vpop.f32.mrf.mxu1  ;;  %v830_v43 = vpop.f32.mrf.mxu0 }
 0x1bc   : > { %1151 = vst.msk [vmem:[%s1520_s26 + $0x14] sm:$0xf] %vm376_vm3, %v600_v42  ;;  %1161 = vst.msk [vmem:[%s1520_s26 + $0x28] sm:$0xf] %vm376_vm3, %v830_v43 }
 0x1bd   : > { %v1267_v44 = vpop.f32.mrf.mxu1  ;;  %v1297_v45 = vpop.f32.mrf.mxu0 }
 0x1bf   : > { %v603_v46 = vpop.f32.mrf.mxu1  ;;  %v833_v47 = vpop.f32.mrf.mxu0 }
 0x1c1   : > { %v1268_v48 = vpop.f32.mrf.mxu1  ;;  %v1298_v49 = vpop.f32.mrf.mxu0 }
 0x1c3   : > { %v692_v50 = vpop.f32.mrf.mxu1  ;;  %v922_v51 = vpop.f32.mrf.mxu0 }
 0x1c4   : > { %1155 = vst.msk [vmem:[%s1520_s26 + $0x1c] sm:$0xf] %vm376_vm3, %v692_v50  ;;  %1165 = vst.msk [vmem:[%s1520_s26 + $0x30] sm:$0xf] %vm376_vm3, %v922_v51 }
 0x1c5   : > { %v1279_v52 = vpop.f32.mrf.mxu1  ;;  %v1309_v53 = vpop.f32.mrf.mxu0 }
 0x1c7   : > { %v695_v54 = vpop.f32.mrf.mxu1  ;;  %v925_v55 = vpop.f32.mrf.mxu0 }
 0x1c9   : > { %v1280_v56 = vpop.f32.mrf.mxu1  ;;  %v1310_v57 = vpop.f32.mrf.mxu0 }
 0x1cb   : > { %v784_v58 = vpop.f32.mrf.mxu1  ;;  %v1014_v59 = vpop.f32.mrf.mxu0 }
 0x1cc   : > { %1159 = vst.msk [vmem:[%s1520_s26 + $0x24] sm:$0xf] %vm376_vm3, %v784_v58  ;;  %1169 = vst.msk [vmem:[%s1520_s26 + $0x38] sm:$0xf] %vm376_vm3, %v1014_v59 }
 0x1cd   : > { %v1291_v60 = vpop.f32.mrf.mxu1  ;;  %v1321_v61 = vpop.f32.mrf.mxu0 }
 0x1cf   : > { %v787_v62 = vpop.f32.mrf.mxu1  ;;  %v1017_v63 = vpop.f32.mrf.mxu0 }
 0x1d1   : > { %v1292_v0 = vpop.f32.mrf.mxu1  ;;  %v1322_v1 = vpop.f32.mrf.mxu0 }
 0x1d3   : > { %v876_v2 = vpop.f32.mrf.mxu1 }
 0x1d4   : > { %1163 = vst.msk [vmem:[%s1520_s26 + $0x2c] sm:$0xf] %vm376_vm3, %v876_v2 }
 0x1d5   : > { %v1303_v3 = vpop.f32.mrf.mxu1 }
 0x1d7   : > { %v879_v4 = vpop.f32.mrf.mxu1 }
 0x1d9   : > { %v1304_v5 = vpop.f32.mrf.mxu1 }
 0x1db   : > { %v968_v6 = vpop.f32.mrf.mxu1 }
 0x1dc   : > { %1167 = vst.msk [vmem:[%s1520_s26 + $0x34] sm:$0xf] %vm376_vm3, %v968_v6 }
 0x1dd   : > { %v1315_v7 = vpop.f32.mrf.mxu1 }
 0x1df   : > { %v971_v8 = vpop.f32.mrf.mxu1 }
 0x1e1   : > { %v1316_v9 = vpop.f32.mrf.mxu1 }
 0x1e3   : > { %v1060_v10 = vpop.f32.mrf.mxu1 }
 0x1e4   : > { %1171 = vst.msk [vmem:[%s1520_s26 + $0x3c] sm:$0xf] %vm376_vm3, %v1060_v10 }
 0x1e5   : > { %v1327_v11 = vpop.f32.mrf.mxu1 }
 0x1e7   : > { %v1063_v12 = vpop.f32.mrf.mxu1 }
 0x1e9   : > { %v1328_v13 = vpop.f32.mrf.mxu1 }
 0x1ea PF: > { %s13_s12 = sadd.s32 1, %s1346_s12  }
 0x1eb   : > { %p10_p4 = scmp.ge.s32.totalorder %s13_s12, 6  }
 0x1ed   :  { %12 = sbr.rel (!%p10_p4) target bundleno = 1 (0x1), region = 77 }

// kernel: _lambda_.26
= control target key start
LH: loop header
LB: loop body
LE: loop exit
PB: predicated region body
PF: predicated region fallthrough
CT: control target
= control target key end

     0   :  { %s1539_s0 = inlined_call_operand.vmem [shape: f32[2,8,32], index: 0, kind: input, shape index: {}]   ;;  %s1540_s1 = inlined_call_operand.vmem [shape: bf16[2,32,16], index: 1, kind: input, shape index: {}]   ;;  %s1541_s2 = inlined_call_operand.vmem [shape: f32[1,32], index: 2, kind: input, shape index: {}]   ;;  %s1542_s3 = inlined_call_operand.vmem [shape: f32[1,32], index: 3, kind: input, shape index: {}]   ;;  %s1543_s4 = inlined_call_operand.vmem [shape: bf16[32,128], index: 4, kind: input, shape index: {}]   ;;  %s1544_s5 = inlined_call_operand.vmem [shape: f32[1,128], index: 5, kind: input, shape index: {}]   ;;  %s1545_s6 = inlined_call_operand.vmem [shape: bf16[32,32], index: 6, kind: input, shape index: {}]   ;;  %s1546_s7 = inlined_call_operand.vmem [shape: f32[1,32], index: 7, kind: input, shape index: {}]   ;;  %s1547_s8 = inlined_call_operand.vmem [shape: bf16[32,32], index: 8, kind: input, shape index: {}]   ;;  %s1548_s9 = inlined_call_operand.vmem [shape: f32[1,32], index: 9, kind: input, shape index: {}]   ;;  %s1549_s10 = inlined_call_operand.vmem [shape: bf16[32,32], index: 10, kind: input, shape index: {}]   ;;  %s1550_s11 = inlined_call_operand.vmem [shape: f32[1,32], index: 11, kind: input, shape index: {}]   ;;  %s1551_s12 = inlined_call_operand.hbm [shape: f32[2,8,128], index: 12, kind: output, shape index: {0}]   ;;  %s1552_s13 = inlined_call_operand.vmem [shape: s8[2,8,16], index: 13, kind: output, shape index: {1}]  }
   0x1   :  { %1556 = sst [smem:[#allocation10_spill]] %s1539_s0 }
   0x2   :  { %1557 = sst [smem:[#allocation11_spill]] %s1540_s1 }
   0x3   :  { %1558 = sst [smem:[#allocation12_spill]] %s1541_s2 }
   0x4   :  { %19 = vsyncpa [#allocation4], 0 }
   0x5   :  { %21 = vsyncpa [#allocation4 + $0x1], 0  ;;  %s1341_s25 = smov 0   ;;  %s1343_s26 = smov 0  }
   0x6   :  { %s1345_s27 = smov 0   ;;  %s1347_s28 = smov 0  }
   0x7   :  { %s1349_s29 = smov 0   ;;  %s1351_s30 = smov 0  }
   0x8 LB: > { %1559 = sst [smem:[#allocation6_spill]] %s1252_s27  ;;  %s1025_s14 = sadd.s32 4294967295, %s1264_s30   ;;  %s1264_s30 = sphi %s1351_s30, %s27_s30   ;;  %s1260_s29 = sphi %s1349_s29, %s1571_s29   ;;  %s1256_s28 = sphi %s1347_s28, %s1570_s28   ;;  %s1252_s27 = sphi %s1345_s27, %s1569_s27   ;;  %s1248_s26 = sphi %s1343_s26, %s1573_s26   ;;  %s1244_s25 = sphi %s1341_s25, %s1572_s25  }
   0x9   : > { %1560 = sst [smem:[#allocation7_spill]] %s1260_s29  ;;  %s1026_s15 = sadd.s32 4294967294, %s1264_s30  }
   0xa   : > { %s39_s16 = sadd.s32 1, %s1260_s29  ;;  %s310_s17 = sadd.s32 1, %s1252_s27 }
   0xb   : > { %p41_p0 = scmp.ge.s32.totalorder %s39_s16, 2  ;;  %p320_p1 = scmp.ne.s32.totalorder %s1252_s27, %s1248_s26 }
   0xc   : > { %p321_p2 = scmp.eq.s32.totalorder %s1025_s14, 1  ;;  %p326_p3 = scmp.ne.s32.totalorder %s1248_s26, %s1244_s25 }
   0xd   : > { %s1575_s16 = smov (%p41_p0, %s39_s16), 0  ;;  %p327_p5 = scmp.eq.s32.totalorder %s1026_s15, 1 }
   0xe   : > { %1561 = sst [smem:[#allocation8_spill]] %s1575_s16  ;;  %p1381_p4 = por %p321_p2, %p320_p1 }
   0xf   : > { %s307_s19 = ssub.s32 %s1260_s29, %s1575_s16  ;;  %p1029_p6 = scmp.ge.s32.totalorder %s1264_s30, 1 }
  0x10   : > { %p308_p7 = scmp.eq.s32.totalorder %s307_s19, 0  ;;  %p1388_p8 = por %p327_p5, %p326_p3 }
  0x11   : > { %p421_p9 = scmp.lt.s32.totalorder %s1264_s30, 3 }
  0x12   : > { %s1394_s21 = scalar_select %p308_p7, %s1252_s27, %s310_s17  }
  0x13   : > { %p422_p10 = pnand %p1029_p6, %p421_p9 }
  0x14   : > { %1564 = sst [smem:[#allocation9_spill]] %s1394_s21  ;;  %p479_p11 = scmp.lt.s32.totalorder (!%p422_p10), %s1256_s28, 1 }
  0x15   : > { %425 = sbr.rel (%p422_p10) target bundleno = 1287 (0x507), region = 68  ;;  %s1565_s0 = sld [smem:[#allocation10_spill]] (!%p422_p10) }
  0x16   : > { %s1566_s1 = sld [smem:[#allocation11_spill]] (!%p422_p10)  ;;  %s467_s21 = sand.u32 (!%p422_p10), 1, %s1248_s26  }
  0x17   : > { %s1567_s2 = sld [smem:[#allocation12_spill]] (!%p422_p10)  ;;  %s886_s29 = scalar_lea.sflag (!%p422_p10), [#allocation4], %s467_s21 }
  0x1a   : > { %s1398_s22 = scalar_select %p479_p11, %s1256_s28, 1  ;;  %vm508_vm0 = vcmask 261120   ;;  %v1176_v7 = vld [vmem:[%s1543_s4 + $0x8] sm:$0xff]   ;;  %v1266_v9 = vmov 0.0   ;;  %v1178_v10 = vld [vmem:[%s1543_s4] sm:$0xff]   ;;  %vm1267_vm1 = vmmov 0  }
  0x1b   : > { %v1177_v8 = vld [vmem:[%s1545_s6 + $0x8] sm:$0xff]   ;;  %1077 = vmatprep.subr.bf16.mxu0 %v1266_v9  ;;  %1085 = vmatprep.subr.bf16.mxu1 %v1266_v9  ;;  %v1179_v11 = vld [vmem:[%s1545_s6] sm:$0xff]   ;;  %vm871_vm2 = vcmask 130048  }
  0x1c   : > { %s1031_s23 = sshll.u32 %s1398_s22, 3  ;;  %s1061_s24 = sshll.u32 %s1398_s22, 4  ;;  %1078 = vmatpush3.bf16.msra.mxu0 %v1176_v7  ;;  %1086 = vmatpush3.bf16.msra.mxu1 %v1177_v8  ;;  %v1036_v18 = vld [vmem:[%s1542_s3] ss:$0 sm:$0xff]  ;;  %v1180_v21 = vld [vmem:[%s1547_s8 + $0x8] sm:$0xff]  }
  0x1d   : > { %s482_s19 = scalar_lea.vmem %s1565_s0, %s1031_s23  ;;  %s1408_s17 = scalar_lea.vmem %s1566_s1, %s1061_s24  ;;  %1079 = vmatprep.subr.bf16.mxu0 %v1266_v9  ;;  %1087 = vmatprep.subr.bf16.mxu1 %v1266_v9  ;;  %v1035_v16 = vld [vmem:[%s1567_s2] ss:$0 sm:$0xff]  ;;  %v1182_v24 = vld [vmem:[%s1549_s10 + $0x8] sm:$0xff]  }
  0x1e   : > { %v505_v0 = vld [vmem:[%s482_s19] sm:$0xff]  ;;  %1081 = vmatprep.mubr.msk.bf16.mxu0 %vm1267_vm1, %v1266_v9  ;;  %1089 = vmatprep.mubr.msk.bf16.mxu1 %vm1267_vm1, %v1266_v9  ;;  %s1461_s19 = sshll.u32 %s467_s21, 3  ;;  %v1184_v48 = vld [vmem:[%s1408_s17 + $0x8] sm:$0xff]   ;;  %s1268_s0 = smov [#allocation3]  }
  0x1f   : > { %v509_v1 = vsel %vm508_vm0, %v505_v0, 0.0  ;;  %v1181_v23 = vld [vmem:[%s1547_s8] sm:$0xff]   ;;  %s469_s24 = scalar_lea.vmem [#allocation3], %s1461_s19  ;;  %s1192_s1 = sshll.u32 %s1268_s0, 4  ;;  %s1193_s1 = int_to_ptr.vmem [resolvable:$false] %s1192_s1 }
  0x20   : > { %510 = vadd.xlane.f32.xlu0 %v509_v1  ;;  %1080 = vmatpush3.bf16.msra.mxu0 %v1178_v10  ;;  %v1037_v25 = vld [vmem:[%s1544_s5] ss:$0 sm:$0xff]  ;;  %s906_s15 = sshll.u32 %s469_s24, 4  ;;  %s1194_s2 = scalar_lea.vmem %s1193_s1, 256  ;;  %s907_s15 = int_to_ptr.vmem [resolvable:$true] %s906_s15 }
  0x21   : > { %1088 = vmatpush3.bf16.msra.mxu1 %v1179_v11  ;;  %1093 = vmatprep.subr.bf16.mxu0 %v1266_v9  ;;  %v1041_v26 = vld [vmem:[%s1546_s7] ss:$0 sm:$0xff]  ;;  %s1188_s16 = scalar_lea.vmem %s907_s15, 128  ;;  %p1195_p1 = scmp.lt.s32.totalorder %s907_s15, %s1193_s1 }
  0x22   : > { %1101 = vmatprep.subr.bf16.mxu1 %v1266_v9  ;;  %v1183_v39 = vld [vmem:[%s1549_s10] sm:$0xff]   ;;  %p1189_p12 = scmp.ne.s32.totalorder %s907_s15, %s1188_s16  ;;  %p1196_p2 = scmp.lt.s32.totalorder %s1194_s2, %s1188_s16 }
  0x23   : > { %v1045_v40 = vld [vmem:[%s1548_s9] ss:$0 sm:$0xff] }
  0x24   : > { %v1185_v49 = vld [vmem:[%s1408_s17] sm:$0xff]   ;;  %s1058_s17 = sshll.u32 %s1256_s28, 7  ;;  %p1190_p13 = pnand %p1189_p12, %p1381_p4 }
  0x25   : > { %v1049_v50 = vld [vmem:[%s1550_s11] ss:$0 sm:$0xff]  ;;  %s904_s14 = scalar_lea.hbm %s1551_s12, %s1058_s17  ;;  %p1197_p3 = por %p1196_p2, %p1195_p1 }
  0x26   : > { %p1191_p0 = pneg %p1190_p13 }
  0x28   : > { %p1198_p5 = pnand %p1197_p3, %p1191_p0 }
  0xa9   : > { %v511_v2 = vpop.xlane.xlu0 %510 }
  0xaa   : > { %v513_v3 = vmul.f32 0.03125, %v511_v2 }
  0xac   : > { %v514_v4 = vsub.f32 %v505_v0, %v513_v3 }
  0xae   : > { %v515_v5 = vmul.f32 %v514_v4, %v514_v4 }
  0xb0   : > { %v516_v6 = vsel %vm508_vm0, %v515_v5, 0.0 }
  0xb1   : > { %517 = vadd.xlane.f32.xlu0 %v516_v6 }
 0x13a   : > { %v518_v12 = vpop.xlane.xlu0 %517 }
 0x13b   : > { %v519_v13 = vmul.f32 0.03125, %v518_v12 }
 0x13d   : > { %v520_v14 = vadd.f32 1e-05, %v519_v13 }
 0x13f   : > { %1186 = vrsqrt.f32 %v520_v14 }
 0x14c   : > { %v1187_v15 = vpop.eup %1186 }
 0x14d   : > { %v522_v17 = vmul.f32 %v1187_v15, %v514_v4 }
 0x14f   : > { %v529_v19 = vmul.f32 %v1035_v16, %v522_v17 }
 0x151   : > { %v536_v20 = vadd.f32 %v1036_v18, %v529_v19 }
 0x153   : > { %v541_v22 = vpack.c.bf16 %v536_v20, %v536_v20 }
 0x155   : > { %1082 = vmatmul.mubr.msk.bf16.vlgmr.msra.gmra.mxu0 %vm508_vm0, %v541_v22  ;;  %1090 = vmatmul.mubr.msk.bf16.vlgmr.msra.gmra.mxu1 %vm508_vm0, %v541_v22 }
 0x156   : > { %1094 = vmatpush3.bf16.msra.mxu0 %v1180_v21  ;;  %1097 = vmatprep.mubr.msk.bf16.mxu0 %vm1267_vm1, %v1266_v9 }
 0x157   : > { %1095 = vmatprep.subr.bf16.mxu0 %v1266_v9  ;;  %1105 = vmatprep.mubr.msk.bf16.mxu1 %vm1267_vm1, %v1266_v9 }
 0x158   : > { %1102 = vmatpush3.bf16.msra.mxu1 %v1182_v24 }
 0x159   : > { %1103 = vmatprep.subr.bf16.mxu1 %v1266_v9 }
 0x15a   : > { %1096 = vmatpush3.bf16.msra.mxu0 %v1181_v23 }
 0x15b   : > { %1109 = vmatprep.subr.bf16.mxu0 %v1266_v9 }
 0x15c   : > { %1104 = vmatpush3.bf16.msra.mxu1 %v1183_v39 }
 0x215   : > { %v598_v27 = vpop.f32.mrf.mxu0  ;;  %v662_v28 = vpop.f32.mrf.mxu1 }
 0x216   : > { %v599_v29 = vadd.f32 %v1037_v25, %v598_v27  ;;  %v663_v30 = vadd.f32 %v1041_v26, %v662_v28 }
 0x217   : > { %v1083_v31 = vpop.f32.mrf.mxu0  ;;  %v1091_v32 = vpop.f32.mrf.mxu1 }
 0x218   : > { %604 = vst [vmem:[%s469_s24] sm:$0xff] %v599_v29  ;;  %v668_v33 = vmax.f32 %v663_v30, 0.0 }
 0x219   : > { %v601_v34 = vpop.f32.mrf.mxu0  ;;  %v665_v35 = vpop.f32.mrf.mxu1 }
 0x21a   : > { %v673_v36 = vpack.c.bf16 %v668_v33, %v668_v33 }
 0x21b   : > { %v1084_v37 = vpop.f32.mrf.mxu0  ;;  %v1092_v38 = vpop.f32.mrf.mxu1 }
 0x21c   : > { %1098 = vmatmul.mubr.msk.bf16.vlgmr.msra.gmra.mxu0 %vm508_vm0, %v673_v36 }
 0x21d   : > { %1113 = vmatprep.mubr.msk.bf16.mxu0 %vm1267_vm1, %v1266_v9  ;;  %1110 = vmatpush3.bf16.msra.mxu0 %v1184_v48 }
 0x21e   : > { %1111 = vmatprep.subr.bf16.mxu0 %v1266_v9 }
 0x221   : > { %1112 = vmatpush3.bf16.msra.mxu0 %v1185_v49 }
 0x2dc   : > { %v730_v41 = vpop.f32.mrf.mxu0 }
 0x2dd   : > { %v731_v42 = vadd.f32 %v1045_v40, %v730_v41 }
 0x2de   : > { %v1099_v43 = vpop.f32.mrf.mxu0 }
 0x2df   : > { %v736_v44 = vmax.f32 %v731_v42, 0.0 }
 0x2e0   : > { %v733_v45 = vpop.f32.mrf.mxu0 }
 0x2e1   : > { %v741_v46 = vpack.c.bf16 %v736_v44, %v736_v44 }
 0x2e2   : > { %v1100_v47 = vpop.f32.mrf.mxu0 }
 0x2e3   : > { %1106 = vmatmul.mubr.msk.bf16.vlgmr.msra.gmra.mxu1 %vm508_vm0, %v741_v46 }
 0x3a3   : > { %v798_v51 = vpop.f32.mrf.mxu1 }
 0x3a4   : > { %v799_v52 = vadd.f32 %v1049_v50, %v798_v51 }
 0x3a5   : > { %v1107_v53 = vpop.f32.mrf.mxu1 }
 0x3a6   : > { %v804_v54 = vmax.f32 %v799_v52, 0.0 }
 0x3a7   : > { %v801_v55 = vpop.f32.mrf.mxu1 }
 0x3a8   : > { %805 = vst.msk [vmem:[#allocation2] sm:$0xff] %vm508_vm0, %v804_v54 }
 0x3a9   : > { %v1108_v56 = vpop.f32.mrf.mxu1 }
 0x3af   : > { %v806_v57 = vld [vmem:[#allocation2] sm:$0xff] }
 0x3b0   : > { %v811_v58 = vpack.c.bf16 %v806_v57, %v806_v57 }
 0x3b2   : > { %1114 = vmatmul.mubr.msk.bf16.vlgmr.msra.gmra.mxu0 %vm508_vm0, %v811_v58 }
 0x472   : > { %v862_v59 = vpop.f32.mrf.mxu0 }
 0x473   : > { %vm868_vm3 = vcmp.lt.f32.partialorder %v862_v59, 0.0 }
 0x474   : > { %v1115_v60 = vpop.f32.mrf.mxu0  ;;  %v1056_v61 = vsel %vm868_vm3, 1.0, %v1266_v9 }
 0x475   : > { %v872_v62 = vsel %vm871_vm2, %v1056_v61, 0.0 }
 0x476   : > { %873 = vadd.xlane.f32.xlu1 %v872_v62  ;;  %v865_v63 = vpop.f32.mrf.mxu0 }
 0x478   : > { %v1116_v0 = vpop.f32.mrf.mxu0 }
 0x479   : > { %1201 = shalt.err (!%p1198_p5)
}
 0x47a   : > { %s1202_s28 = scalar_lea.hbm %s904_s14, 128  ;;  %s1206_s24 = scalar_lea.hbm %s1551_s12, 256 }
 0x47b   : > { %p1203_p6 = scmp.ne.s32.totalorder %s904_s14, %s1202_s28  ;;  %p1207_p10 = scmp.lt.s32.totalorder %s904_s14, %s1551_s12 }
 0x47c   : > { %p1208_p11 = scmp.lt.s32.totalorder %s1206_s24, %s1202_s28 }
 0x47d   : > { %p1204_p7 = pnand %p1203_p6, %p1381_p4 }
 0x47e   : > { %p1209_p12 = por %p1208_p11, %p1207_p10 }
 0x47f   : > { %p1205_p9 = pneg %p1204_p7 }
 0x481   : > { %p1210_p13 = pnand %p1209_p12, %p1205_p9 }
 0x483   : > { %1213 = shalt.err (!%p1210_p13)
}
 0x484   : > { %1117 = dma.vmem_to_hbm [thread:$0]  (%p1381_p4), %s907_s15, 128, %s904_s14, %s886_s29   ;;  %vm1269_vm5 = vmmov 1   ;;  %vm883_vm8 = vcmask 123904   ;;  %v1270_v2 = vmov 0  }
 0x485   : > { %s1034_s0 = sshll.u32 %s1398_s22, 1 }
 0x486   : > { %s497_s23 = scalar_lea.vmem %s1552_s13, %s1034_s0 }
 0x4ff   : > { %v874_v1 = vpop.xlane.xlu1 %873 }
 0x500   : > { %vm875_vm4 = vcmp.ge.f32.partialorder %v874_v1, 15.5 }
 0x501   : > { %vm876_vm6 = vmxor %vm875_vm4, %vm1269_vm5 }
 0x502   : > { %vm879_vm7 = vmand %vm868_vm3, %vm876_vm6 }
 0x503   : > { %vm880_vm9 = vmpackc.low %vm879_vm7, %vm879_vm7 }
 0x504   : > { %vm881_vm10 = vmpackc.even %vm880_vm9, %vm880_vm9 }
 0x505   : > { %v882_v3 = vsel %vm881_vm10, 16843009, %v1270_v2 }
 0x506   : > { %884 = vst.msk [vmem:[%s497_s23] sm:$0x3] %vm883_vm8, %v882_v3 }
 0x507 PF: > { %p1123_p4 = scmp.ge.s32.totalorder %s1264_s30, 2  ;;  %s921_s18 = sand.u32 1, %s1244_s25  }
 0x508   : > { %s922_s22 = scalar_lea.sflag [#allocation4], %s921_s18 }
 0x509   : > { %p1120_p0 = pnand %p1123_p4, %p1388_p8 }
 0x50b   : > { %p1121_p1 = pneg %p1120_p0 }
 0x50d   : > { %1239 = dma.done.wait (%p1121_p1), %s922_s22, 128  }
 0x50e   : > { %1241 = vsyncadd (%p1121_p1), %s922_s22, 4294967168  ;;  %s27_s30 = sadd.s32 1, %s1264_s30   ;;  %s1568_s15 = sld [smem:[#allocation6_spill]] }
 0x50f   : > { %p24_p2 = scmp.ge.s32.totalorder %s27_s30, 4   ;;  %s1569_s27 = sld [smem:[#allocation9_spill]] }
 0x510   : > { %s1570_s28 = sld [smem:[#allocation7_spill]]  ;;  %s1572_s25 = smov %s1248_s26 }
 0x511   : > { %s1571_s29 = sld [smem:[#allocation8_spill]]  ;;  %26 = sbr.rel (!%p24_p2) target bundleno = 8 (0x8), region = 122 }
 0x514   : > { %s1573_s26 = smov %s1568_s15 }
 0x516   :  { %937 = vsyncpa [#allocation4], 1 }
 0x517   :  { %939 = vsyncpa [#allocation4 + $0x1], 1 }

// kernel: _lambda_.32
= control target key start
LH: loop header
LB: loop body
LE: loop exit
PB: predicated region body
PF: predicated region fallthrough
CT: control target
= control target key end

     0   :  { %v94_v0 = vmov 0.0   ;;  %vm95_vm0 = vmmov 0   ;;  %vm30_vm1 = vcmask 261120   ;;  %s137_s1 = inlined_call_operand.vmem [shape: f32[32,32], index: 1, kind: input, shape index: {}]   ;;  %s138_s0 = inlined_call_operand.vmem [shape: f32[8,32], index: 0, kind: input, shape index: {}]   ;;  %s139_s2 = inlined_call_operand.vmem [shape: f32[1,32], index: 2, kind: input, shape index: {}]   ;;  %s140_s3 = inlined_call_operand.vmem [shape: f32[8,32], index: 3, kind: output, shape index: {}]  }
   0x1   :  { %84 = vmatprep.subr.bf16.mxu0 %v94_v0  ;;  %v18_v1 = vld [vmem:[%s137_s1 + $0x10] sm:$0xff]  ;;  %v19_v2 = vld [vmem:[%s137_s1 + $0x18] sm:$0xff]  ;;  %v16_v3 = vld [vmem:[%s137_s1] sm:$0xff]  ;;  %88 = vmatprep.mubr.msk.bf16.mxu0 %vm95_vm0, %v94_v0 }
   0x2   :  { %v22_v4 = vpack.c.bf16 %v19_v2, %v18_v1  ;;  %v17_v5 = vld [vmem:[%s137_s1 + $0x8] sm:$0xff]  ;;  %v15_v7 = vld [vmem:[%s138_s0] sm:$0xff] }
   0x3   :  { %v21_v6 = vpack.c.bf16 %v17_v5, %v16_v3  ;;  %v20_v8 = vpack.c.bf16 %v15_v7, %v15_v7  ;;  %v79_v9 = vld [vmem:[%s139_s2] ss:$0 sm:$0xff] }
   0x4   :  { %85 = vmatpush3.bf16.msra.mxu0 %v22_v4 }
   0x5   :  { %86 = vmatprep.subr.bf16.mxu0 %v94_v0 }
   0x8   :  { %87 = vmatpush3.bf16.msra.mxu0 %v21_v6 }
   0xb   :  { %89 = vmatmul.mubr.msk.bf16.vlgmr.msra.gmra.mxu0 %vm30_vm1, %v20_v8 }
  0xcb   :  { %v68_v10 = vpop.f32.mrf.mxu0 }
  0xcc   :  { %v69_v11 = vadd.f32 %v79_v9, %v68_v10 }
  0xcd   :  { %v90_v12 = vpop.f32.mrf.mxu0 }
  0xce   :  { %74 = vst.msk [vmem:[%s140_s3] sm:$0xff] %vm30_vm1, %v69_v11 }
  0xcf   :  { %v71_v13 = vpop.f32.mrf.mxu0 }
  0xd1   :  { %v91_v14 = vpop.f32.mrf.mxu0 }

// kernel: _lambda_.22
= control target key start
LH: loop header
LB: loop body
LE: loop exit
PB: predicated region body
PF: predicated region fallthrough
CT: control target
= control target key end

     0   :  { %v92_v0 = vmov 0.0   ;;  %vm30_vm0 = vcmask 1041408   ;;  %vm93_vm1 = vmmov 0   ;;  %vm26_vm2 = vcmask 31744   ;;  %s126_s1 = inlined_call_operand.vmem [shape: f32[4,32], index: 1, kind: input, shape index: {}]   ;;  %s127_s0 = inlined_call_operand.vmem [shape: f32[8,4], index: 0, kind: input, shape index: {}]   ;;  %s128_s2 = inlined_call_operand.vmem [shape: f32[1,32], index: 2, kind: input, shape index: {}]   ;;  %s129_s3 = inlined_call_operand.vmem [shape: f32[8,32], index: 3, kind: output, shape index: {}]  }
   0x1   :  { %84 = vmatprep.subr.bf16.mxu0 %v92_v0  ;;  %v16_v1 = vld [vmem:[%s126_s1] sm:$0xf]  ;;  %86 = vmatprep.mubr.msk.bf16.mxu0 %vm93_vm1, %v92_v0  ;;  %vm74_vm3 = vcmask 261120  }
   0x2   :  { %v15_v2 = vld [vmem:[%s127_s0] sm:$0xff]  ;;  %v18_v3 = vpack.c.bf16 %v16_v1, %v16_v1 }
   0x3   :  { %v17_v5 = vpack.c.bf16 %v15_v2, %v15_v2  ;;  %v80_v6 = vld [vmem:[%s128_s2] ss:$0 sm:$0xff] }
   0x4   :  { %v32_v4 = vsel %vm30_vm0, %v18_v3, 0 }
   0x5   :  { %85 = vmatpush3.bf16.msra.mxu0 %v32_v4 }
   0x8   :  { %87 = vmatmul.mubr.msk.bf16.vlgmr.msra.gmra.mxu0 %vm26_vm2, %v17_v5 }
  0xc8   :  { %v68_v7 = vpop.f32.mrf.mxu0 }
  0xc9   :  { %v69_v8 = vadd.f32 %v80_v6, %v68_v7 }
  0xca   :  { %v88_v9 = vpop.f32.mrf.mxu0 }
  0xcb   :  { %75 = vst.msk [vmem:[%s129_s3] sm:$0xff] %vm74_vm3, %v69_v8 }
  0xcc   :  { %v71_v10 = vpop.f32.mrf.mxu0 }
  0xce   :  { %v89_v11 = vpop.f32.mrf.mxu0 }

// kernel: _lambda_.27
= control target key start
LH: loop header
LB: loop body
LE: loop exit
PB: predicated region body
PF: predicated region fallthrough
CT: control target
= control target key end

     0   :  { %s3186_s28 = smov 0   ;;  %s3188_s29 = smov 0   ;;  %s3605_s0 = inlined_call_operand.vmem [shape: f32[2,8,32], index: 0, kind: input, shape index: {}]   ;;  %s3606_s1 = inlined_call_operand.vmem [shape: bf16[2,16,32], index: 1, kind: input, shape index: {}]   ;;  %s3607_s2 = inlined_call_operand.vmem [shape: bf16[2,16,32], index: 2, kind: input, shape index: {}]   ;;  %s3608_s3 = inlined_call_operand.vmem [shape: s8[2,8,16], index: 3, kind: input, shape index: {}]   ;;  %s3609_s4 = inlined_call_operand.vmem [shape: bf16[32,96], index: 4, kind: input, shape index: {}]   ;;  %s3610_s5 = inlined_call_operand.vmem [shape: f32[1,96], index: 5, kind: input, shape index: {}]   ;;  %s3611_s6 = inlined_call_operand.vmem [shape: bf16[32,32], index: 6, kind: input, shape index: {}]   ;;  %s3612_s7 = inlined_call_operand.vmem [shape: f32[1,32], index: 7, kind: input, shape index: {}]   ;;  %s3613_s8 = inlined_call_operand.vmem [shape: f32[1,32], index: 8, kind: input, shape index: {}]   ;;  %s3614_s9 = inlined_call_operand.vmem [shape: f32[1,32], index: 9, kind: input, shape index: {}]   ;;  %s3615_s10 = inlined_call_operand.vmem [shape: bf16[32,96], index: 10, kind: input, shape index: {}]   ;;  %s3616_s11 = inlined_call_operand.vmem [shape: f32[1,96], index: 11, kind: input, shape index: {}]   ;;  %s3617_s12 = inlined_call_operand.vmem [shape: bf16[32,32], index: 12, kind: input, shape index: {}]   ;;  %s3618_s13 = inlined_call_operand.vmem [shape: f32[1,32], index: 13, kind: input, shape index: {}]   ;;  %s3619_s14 = inlined_call_operand.vmem [shape: f32[1,32], index: 14, kind: input, shape index: {}]   ;;  %s3620_s15 = inlined_call_operand.vmem [shape: f32[1,32], index: 15, kind: input, shape index: {}]   ;;  %s3621_s16 = inlined_call_operand.vmem [shape: bf16[32,64], index: 16, kind: input, shape index: {}]   ;;  %s3622_s17 = inlined_call_operand.vmem [shape: f32[1,64], index: 17, kind: input, shape index: {}]   ;;  %s3623_s18 = inlined_call_operand.vmem [shape: bf16[64,32], index: 18, kind: input, shape index: {}]   ;;  %s3624_s19 = inlined_call_operand.vmem [shape: f32[1,32], index: 19, kind: input, shape index: {}]   ;;  %s3625_s20 = inlined_call_operand.vmem [shape: f32[1,32], index: 20, kind: input, shape index: {}]   ;;  %s3626_s21 = inlined_call_operand.vmem [shape: f32[1,32], index: 21, kind: input, shape index: {}]   ;;  %s3627_s22 = inlined_call_operand.vmem [shape: f32[2,8,32], index: 22, kind: output, shape index: {}]  }
   0x1   :  { %3635 = sst [smem:[#allocation6_spill]] %s3605_s0 }
   0x2   :  { %3636 = sst [smem:[#allocation7_spill]] %s3606_s1 }
   0x3   :  { %3637 = sst [smem:[#allocation8_spill]] %s3607_s2 }
   0x4   :  { %3638 = sst [smem:[#allocation9_spill]] %s3608_s3  ;;  %s3184_s3 = smov 0  }
   0x5   :  { %3639 = sst [smem:[#allocation10_spill]] %s3609_s4 }
   0x6   :  { %3640 = sst [smem:[#allocation11_spill]] %s3610_s5 }
   0x7   :  { %3641 = sst [smem:[#allocation12_spill]] %s3611_s6 }
   0x8 LB: > { %s44_s30 = sadd.s32 1, %s3045_s28  ;;  %p2630_p0 = scmp.ge.s32.totalorder %s3049_s29, 1  ;;  %s3049_s29 = sphi %s3188_s29, %s32_s29   ;;  %s3045_s28 = sphi %s3186_s28, %s3655_s28   ;;  %s3041_s3 = sphi %s3184_s3, %s3654_s3  }
   0x9   : > { %p46_p1 = scmp.ge.s32.totalorder %s44_s30, 2  ;;  %p671_p2 = scmp.lt.s32.totalorder %s3049_s29, 3 }
   0xb   : > { %s3657_s30 = smov (%p46_p1, %s44_s30), 0  ;;  %p672_p3 = pnand %p2630_p0, %p671_p2 }
   0xc   : > { %s3642_s23 = sld [smem:[#allocation10_spill]] (!%p672_p3)  ;;  %s3630_s24 = smov (!%p672_p3), 96  }
   0xd   : > { %675 = sbr.rel (%p672_p3) target bundleno = 4098 (0x1002), region = 108  ;;  %p756_p4 = scmp.lt.s32.totalorder (!%p672_p3), %s3041_s3, 1 }
   0xe   : > { %s3643_s0 = sld [smem:[#allocation11_spill]] (!%p672_p3)  ;;  %s3054_s5 = smov (!%p672_p3), 120  }
   0xf   : > { %s3644_s25 = sld [smem:[#allocation6_spill]] (!%p672_p3)  ;;  %s3055_s6 = smov (!%p672_p3), 112  }
  0x10   : > { %s3645_s4 = sld [smem:[#allocation7_spill]] (!%p672_p3)  ;;  %s3633_s27 = smov (!%p672_p3), 8  }
  0x12   : > { %v3205_v0 = vld [vmem:[%s3642_s23 + $0x8] sm:$0xff]   ;;  %v3210_v1 = vld [vmem:[%s3642_s23] sm:$0xff]   ;;  %v3052_v2 = vmov 0.0   ;;  %vm3053_vm0 = vmmov 0   ;;  %s3659_s3 = smov (!%p756_p4, %s3041_s3), 1  ;;  %vm821_vm1 = vcmask 261120  }
  0x13   : > { %911 = vrot.lane.b32.xlu0 %v3205_v0, %s3630_s24  ;;  %2755 = vmatprep.subr.bf16.mxu0 %v3052_v2  ;;  %v2965_v3 = vld [vmem:[%s3642_s23 + $0x8] sm:$0xff]   ;;  %v2966_v4 = vld [vmem:[%s3642_s23] sm:$0xff]   ;;  %s3239_s1 = sshll.u32 %s3659_s3, 3  ;;  %vm875_vm2 = vcmask 64512   ;;  %s2636_s2 = sshll.u32 %s3659_s3, 1  ;;  %vm1076_vm3 = vcmask 130048  }
  0x14   : > { %2763 = vmatprep.subr.bf16.mxu1 %v3052_v2  ;;  %2759 = vmatprep.mubr.msk.bf16.mxu0 %vm3053_vm0, %v3052_v2  ;;  %v3229_v5 = vld [vmem:[%s3643_s0] ss:$0 sm:$0xff]  ;;  %876 = vst.msk [vmem:[#allocation5] sm:$0xff] %vm875_vm2, %v3052_v2  ;;  %877 = vst.msk [vmem:[#allocation5 + $0x8] sm:$0xff] %vm875_vm2, %v3052_v2  ;;  %vm866_vm4 = vcmask 7168   ;;  %v3058_v49 = vmov -inf  }
  0x15   : > { %2756 = vmatpush3.bf16.msra.mxu0 %v2965_v3  ;;  %2767 = vmatprep.mubr.msk.bf16.mxu1 %vm3053_vm0, %v3052_v2  ;;  %s759_s26 = scalar_lea.vmem %s3644_s25, %s3239_s1  ;;  %878 = vst.msk [vmem:[#allocation5 + $0x10] sm:$0xff] %vm875_vm2, %v3052_v2  ;;  %879 = vst.msk [vmem:[#allocation5 + $0x18] sm:$0xff] %vm875_vm2, %v3052_v2  ;;  %s3056_s25 = smov 104   ;;  %v3059_v50 = vmov 0   ;;  %vm1611_vm5 = vcmask 195584   ;;  %vm1844_vm6 = vcmask 1043456  }
  0x16   : > { %2757 = vmatprep.subr.bf16.mxu0 %v3052_v2  ;;  %915 = vrot.lane.b32.xlu1 %v3229_v5, %s3630_s24  ;;  %v3245_v6 = vld [vmem:[%s759_s26] sm:$0xff]  ;;  %s768_s0 = scalar_lea.vmem %s3645_s4, %s3239_s1  ;;  %s3634_s26 = smov 64   ;;  %867 = vst.msk [vmem:[#allocation3] sm:$0xff] %vm866_vm4, %v3058_v49  ;;  %868 = vst.msk [vmem:[#allocation3 + $0x8] sm:$0xff] %vm866_vm4, %v3058_v49  ;;  %vm2439_vm7 = vcmask 523264  }
  0x17   : > { %909 = vrot.lane.b32.xlu0 %v3210_v1, %s3630_s24  ;;  %v801_v7 = vpack.c.bf16 %v3245_v6, %v3245_v6  ;;  %v2967_v10 = vld [vmem:[%s768_s0] sm:$0xff]   ;;  %s3646_s4 = sld [smem:[#allocation8_spill]]  ;;  %869 = vst.msk [vmem:[#allocation3 + $0x10] sm:$0xff] %vm866_vm4, %v3058_v49  ;;  %870 = vst.msk [vmem:[#allocation3 + $0x18] sm:$0xff] %vm866_vm4, %v3058_v49  ;;  %2961 = vset.pattern.permute.xlu1 %v3059_v50  ;;  %s3632_s3 = smov 16  }
  0x18   : > { %871 = vst.msk [vmem:[#allocation4] sm:$0xff] %vm866_vm4, %v3052_v2  ;;  %872 = vst.msk [vmem:[#allocation4 + $0x8] sm:$0xff] %vm866_vm4, %v3052_v2  ;;  %2962 = vset.pattern.permute.xlu0 %v3059_v50 }
  0x19   : > { %2758 = vmatpush3.bf16.msra.mxu0 %v2966_v4  ;;  %873 = vst.msk [vmem:[#allocation4 + $0x10] sm:$0xff] %vm866_vm4, %v3052_v2  ;;  %874 = vst.msk [vmem:[#allocation4 + $0x18] sm:$0xff] %vm866_vm4, %v3052_v2 }
  0x1a   : > { %2771 = vmatprep.subr.bf16.mxu0 %v3052_v2 }
  0x1c   : > { %2760 = vmatmul.mubr.msk.bf16.vlgmr.msra.gmra.mxu0 %vm821_vm1, %v801_v7 }
  0x1d   : > { %2775 = vmatprep.mubr.msk.bf16.mxu0 %vm3053_vm0, %v3052_v2  ;;  %s778_s0 = scalar_lea.vmem %s3646_s4, %s3239_s1  ;;  %s3065_s4 = smov 72  }
  0x1e   : > { %v2968_v37 = vld [vmem:[%s778_s0] sm:$0xff]   ;;  %s3647_s0 = sld [smem:[#allocation9_spill]] }
  0x24   : > { %s786_s24 = scalar_lea.vmem %s3647_s0, %s2636_s2  ;;  %s3648_s2 = sld [smem:[#allocation12_spill]] }
  0x25   : > { %v1021_v39 = vld [vmem:[%s786_s24] sm:$0x3]  ;;  %s3631_s24 = smov 24  }
  0x26   : > { %v1022_v40 = vunpack.c.0.s8 %v1021_v39 }
  0x28   : > { %v1023_v41 = vcvt.s32.f32 %v1022_v40 }
  0x2a   : > { %v1024_v42 = vmul.f32 -1e+30, %v1023_v41 }
  0x85   : > { %v912_v8 = vpop.permute.xlu0 %911 }
  0x86   : > { %2764 = vmatpush3.bf16.msra.mxu1 %v912_v8  ;;  %v3343_v8 = vld [vmem:[#allocation3] sm:$0xff] }
  0x87   : > { %2765 = vmatprep.subr.bf16.mxu1 %v3052_v2 }
  0x88   : > { %v916_v19 = vpop.permute.xlu1 %915 }
  0x89   : > { %v910_v9 = vpop.permute.xlu0 %909 }
  0x8a   : > { %2766 = vmatpush3.bf16.msra.mxu1 %v910_v9 }
  0x8b   : > { %2779 = vmatprep.subr.bf16.mxu1 %v3052_v2 }
  0x8d   : > { %2768 = vmatmul.mubr.msk.bf16.vlgmr.msra.gmra.mxu1 %vm821_vm1, %v2967_v10 }
  0x8e   : > { %2781 = vmatprep.mubr.msk.bf16.mxu1 %vm3053_vm0, %v3052_v2 }
  0xdc   : > { %v859_v11 = vpop.f32.mrf.mxu0 }
  0xdd   : > { %v860_v12 = vadd.f32 %v3229_v5, %v859_v11 }
  0xde   : > { %v2761_v13 = vpop.f32.mrf.mxu0 }
  0xdf   : > { %865 = vst.msk [vmem:[#allocation2] sm:$0xff] %vm821_vm1, %v860_v12 }
  0xe0   : > { %v862_v14 = vpop.f32.mrf.mxu0 }
  0xe2   : > { %v2762_v15 = vpop.f32.mrf.mxu0 }
  0xe6   : > { %v1025_v16 = vld [vmem:[#allocation2] sm:$0xff] }
  0xe7   : > { %v1026_v17 = vpack.c.bf16 %v1025_v16, %v1025_v16  ;;  %v1208_v16 = vld [vmem:[#allocation3 + $0x8] sm:$0xff] }
  0xe9   : > { %1156 = vrot.lane.b32.xlu0 %v1026_v17, %s3054_s5 }
  0xed   : > { %1291 = vrot.lane.b32.xlu0 %v1026_v17, %s3055_s6 }
  0xf1   : > { %1424 = vrot.lane.b32.xlu0 %v1026_v17, %s3056_s25 }
  0xf5   : > { %968 = vrot.lane.b32.xlu0 %v3210_v1, %s3634_s26 }
 0x14d   : > { %v956_v18 = vpop.f32.mrf.mxu1 }
 0x14e   : > { %v957_v22 = vadd.f32 %v956_v18, %v916_v19 }
 0x14f   : > { %v2769_v20 = vpop.f32.mrf.mxu1 }
 0x150   : > { %v3356_v20 = vld [vmem:[#allocation3 + $0x10] sm:$0xff] }
 0x151   : > { %v959_v21 = vpop.f32.mrf.mxu1 }
 0x152   : > { %v960_v23 = vadd.f32 %v959_v21, %v916_v19 }
 0x153   : > { %v2770_v24 = vpop.f32.mrf.mxu1 }
 0x154   : > { %v1027_v25 = vpack.c.bf16 %v960_v23, %v957_v22 }
 0x156   : > { %1159 = vrot.lane.b32.xlu1 %v1027_v25, %s3054_s5  ;;  %v1033_v26 = vsel %vm875_vm2, %v1027_v25, 0 }
 0x157   : > { %2780 = vmatpush3.bf16.xpose.msra.mxu1 %v1033_v26  ;;  %v1475_v26 = vld [vmem:[#allocation3 + $0x18] sm:$0xff] }
 0x158   : > { %2791 = vmatprep.subr.bf16.mxu1 %v3052_v2 }
 0x15a   : > { %1293 = vrot.lane.b32.xlu1 %v1027_v25, %s3055_s6 }
 0x15b   : > { %v1157_v27 = vpop.permute.xlu0 %1156 }
 0x15e   : > { %1426 = vrot.lane.b32.xlu1 %v1027_v25, %s3056_s25  ;;  %2782 = vmatmul.mubr.msk.bf16.vlgmr.msra.gmra.mxu1 %vm875_vm2, %v1026_v17 }
 0x15f   : > { %2793 = vmatprep.mubr.msk.bf16.mxu1 %vm3053_vm0, %v3052_v2  ;;  %v1292_v31 = vpop.permute.xlu0 %1291 }
 0x162   : > { %970 = vrot.lane.b32.xlu1 %v3205_v0, %s3634_s26 }
 0x163   : > { %v1425_v34 = vpop.permute.xlu0 %1424 }
 0x167   : > { %v969_v36 = vpop.permute.xlu0 %968 }
 0x1c8   : > { %v1160_v28 = vpop.permute.xlu1 %1159 }
 0x1c9   : > { %v1165_v29 = vsel %vm875_vm2, %v1160_v28, 0 }
 0x1ca   : > { %2792 = vmatpush3.bf16.xpose.msra.mxu1 %v1165_v29 }
 0x1cb   : > { %2803 = vmatprep.subr.bf16.mxu1 %v3052_v2 }
 0x1cc   : > { %v1294_v30 = vpop.permute.xlu1 %1293 }
 0x1cd   : > { %v1299_v33 = vsel %vm875_vm2, %v1294_v30, 0 }
 0x1d0   : > { %v1427_v32 = vpop.permute.xlu1 %1426 }
 0x1d1   : > { %2794 = vmatmul.mubr.msk.bf16.vlgmr.msra.gmra.mxu1 %vm875_vm2, %v1157_v27  ;;  %v1432_v38 = vsel %vm875_vm2, %v1427_v32, 0 }
 0x1d2   : > { %2804 = vmatpush3.bf16.xpose.msra.mxu1 %v1299_v33  ;;  %2805 = vmatprep.mubr.msk.bf16.mxu1 %vm3053_vm0, %v3052_v2 }
 0x1d3   : > { %2815 = vmatprep.subr.bf16.mxu1 %v3052_v2 }
 0x1d4   : > { %v971_v35 = vpop.permute.xlu1 %970 }
 0x1d5   : > { %2772 = vmatpush3.bf16.msra.mxu0 %v971_v35 }
 0x1d6   : > { %2773 = vmatprep.subr.bf16.mxu0 %v3052_v2 }
 0x1d9   : > { %2806 = vmatmul.mubr.msk.bf16.vlgmr.msra.gmra.mxu1 %vm875_vm2, %v1292_v31  ;;  %2774 = vmatpush3.bf16.msra.mxu0 %v969_v36 }
 0x1da   : > { %2816 = vmatpush3.bf16.xpose.msra.mxu1 %v1432_v38  ;;  %2817 = vmatprep.mubr.msk.bf16.mxu1 %vm3053_vm0, %v3052_v2 }
 0x1db   : > { %2785 = vmatprep.subr.bf16.mxu0 %v3052_v2  ;;  %2827 = vmatprep.subr.bf16.mxu1 %v3052_v2 }
 0x1dc   : > { %2776 = vmatmul.mubr.msk.bf16.vlgmr.msra.gmra.mxu0 %vm821_vm1, %v2968_v37 }
 0x1dd   : > { %2787 = vmatprep.mubr.msk.bf16.mxu0 %vm3053_vm0, %v3052_v2 }
 0x1e1   : > { %2818 = vmatmul.mubr.msk.bf16.vlgmr.msra.gmra.mxu1 %vm875_vm2, %v1425_v34 }
 0x1e2   : > { %2831 = vmatprep.mubr.msk.bf16.mxu1 %vm3053_vm0, %v3052_v2 }
 0x21e   : > { %v1069_v43 = vpop.f32.mrf.mxu1 }
 0x21f   : > { %v3315_v44 = vadd.f32 %v1069_v43, %v1024_v42 }
 0x220   : > { %v2783_v45 = vpop.f32.mrf.mxu1 }
 0x221   : > { %v1077_v46 = vsel %vm1076_vm3, %v3315_v44, -inf }
 0x222   : > { %1078 = vmax.xlane.f32.xlu1 %v1077_v46  ;;  %v1072_v47 = vpop.f32.mrf.mxu1 }
 0x224   : > { %v2784_v48 = vpop.f32.mrf.mxu1 }
 0x291   : > { %v1201_v51 = vpop.f32.mrf.mxu1 }
 0x292   : > { %v3331_v52 = vadd.f32 %v1201_v51, %v1024_v42 }
 0x293   : > { %v2795_v53 = vpop.f32.mrf.mxu1 }
 0x294   : > { %v1209_v54 = vsel %vm1076_vm3, %v3331_v52, -inf }
 0x295   : > { %1210 = vmax.xlane.f32.xlu0 %v1209_v54  ;;  %v1204_v55 = vpop.f32.mrf.mxu1 }
 0x297   : > { %v2796_v56 = vpop.f32.mrf.mxu1 }
 0x299   : > { %v1335_v57 = vpop.f32.mrf.mxu1 }
 0x29a   : > { %v3335_v58 = vadd.f32 %v1335_v57, %v1024_v42 }
 0x29b   : > { %v2807_v59 = vpop.f32.mrf.mxu1 }
 0x29c   : > { %v1343_v60 = vsel %vm1076_vm3, %v3335_v58, -inf  ;;  %v1014_v12 = vpop.f32.mrf.mxu0 }
 0x29d   : > { %1344 = vmax.xlane.f32.xlu0 %v1343_v60  ;;  %v1338_v61 = vpop.f32.mrf.mxu1 }
 0x29e   : > { %v2777_v13 = vpop.f32.mrf.mxu0 }
 0x29f   : > { %v2808_v62 = vpop.f32.mrf.mxu1 }
 0x2a0   : > { %v1017_v14 = vpop.f32.mrf.mxu0 }
 0x2a1   : > { %v1468_v63 = vpop.f32.mrf.mxu1 }
 0x2a2   : > { %v3339_v0 = vadd.f32 %v1468_v63, %v1024_v42  ;;  %v2778_v15 = vpop.f32.mrf.mxu0 }
 0x2a3   : > { %v2819_v1 = vpop.f32.mrf.mxu1  ;;  %v1359_v15 = vld [vmem:[#allocation4 + $0x10] sm:$0xff] }
 0x2a4   : > { %v1476_v3 = vsel %vm1076_vm3, %v3339_v0, -inf }
 0x2a5   : > { %1477 = vmax.xlane.f32.xlu1 %v1476_v3  ;;  %v1471_v4 = vpop.f32.mrf.mxu1 }
 0x2a7   : > { %v2820_v7 = vpop.f32.mrf.mxu1 }
 0x2a8   : > { %v1225_v7 = vld [vmem:[#allocation4 + $0x8] sm:$0xff] }
 0x2ab   : > { %v1079_v9 = vpop.xlane.xlu1 %1078 }
 0x2ac   : > { %v3346_v10 = vmax.f32 %v3343_v8, %v1079_v9 }
 0x2ae   : > { %v1081_v11 = vsub.f32 %v3343_v8, %v3346_v10  ;;  %1154 = vst.msk [vmem:[#allocation3] sm:$0xff] %vm866_vm4, %v3346_v10  ;;  %v1092_v8 = vld [vmem:[#allocation4] sm:$0xff] }
 0x2b0   : > { %v1082_v9 = vmul.f32 1.442695, %v1081_v11 }
 0x2b3   : > { %974 = vrot.lane.b32.xlu0 %v3229_v5, %s3634_s26  ;;  %s3063_s26 = smov 88  }
 0x2b6   : > { %1086 = vperm.xlu1 %2961, %v3346_v10  }
 0x31e   : > { %v1211_v17 = vpop.xlane.xlu0 %1210 }
 0x31f   : > { %v1212_v18 = vmax.f32 %v1208_v16, %v1211_v17 }
 0x321   : > { %v1213_v19 = vsub.f32 %v1208_v16, %v1212_v18  ;;  %1290 = vst.msk [vmem:[#allocation3 + $0x8] sm:$0xff] %vm866_vm4, %v1212_v18  ;;  %1218 = vperm.xlu1 %2961, %v1212_v18  }
 0x323   : > { %v1214_v51 = vmul.f32 1.442695, %v1213_v19 }
 0x326   : > { %v1345_v21 = vpop.xlane.xlu0 %1344 }
 0x327   : > { %v3359_v22 = vmax.f32 %v3356_v20, %v1345_v21 }
 0x329   : > { %v1347_v5 = vsub.f32 %v3356_v20, %v3359_v22  ;;  %1423 = vst.msk [vmem:[#allocation3 + $0x10] sm:$0xff] %vm866_vm4, %v3359_v22  ;;  %1352 = vperm.xlu0 %2962, %v3359_v22   ;;  %v1492_v20 = vld [vmem:[#allocation4 + $0x18] sm:$0xff] }
 0x32a   : > { %v975_v23 = vpop.permute.xlu0 %974 }
 0x32b   : > { %v1015_v24 = vadd.f32 %v1014_v12, %v975_v23  ;;  %v1018_v25 = vadd.f32 %v1017_v14, %v975_v23  ;;  %v1348_v61 = vmul.f32 1.442695, %v1347_v5 }
 0x32d   : > { %v1108_v27 = vpack.c.bf16 %v1018_v25, %v1015_v24 }
 0x32e   : > { %v1478_v28 = vpop.xlane.xlu1 %1477 }
 0x32f   : > { %v1479_v29 = vmax.f32 %v1475_v26, %v1478_v28  ;;  %2786 = vmatpush3.bf16.msra.mxu0 %v1108_v27  ;;  %1375 = vrot.lane.b32.xlu0 %v1108_v27, %s3055_s6 }
 0x330   : > { %2797 = vmatprep.subr.bf16.mxu0 %v3052_v2 }
 0x331   : > { %v1480_v30 = vsub.f32 %v1475_v26, %v1479_v29  ;;  %1556 = vst.msk [vmem:[#allocation3 + $0x18] sm:$0xff] %vm866_vm4, %v1479_v29  ;;  %1485 = vperm.xlu1 %2961, %v1479_v29  }
 0x332   : > { %v1087_v31 = vpop.permute.xlu1 %1086 }
 0x333   : > { %v1089_v32 = vsub.f32 %v3315_v44, %v1087_v31  ;;  %v1481_v55 = vmul.f32 1.442695, %v1480_v30 }
 0x335   : > { %v1090_v33 = vmul.f32 1.442695, %v1089_v32  ;;  %1242 = vrot.lane.b32.xlu1 %v1108_v27, %s3054_s5  ;;  %v1233_v32 = vld [vmem:[#allocation5 + $0x8] sm:$0xff] }
 0x337   : > { %2981 = vpow2.f32 %v1090_v33 }
 0x339   : > { %1508 = vrot.lane.b32.xlu1 %v1108_v27, %s3056_s25 }
 0x344   : > { %v2982_v34 = vpop.eup %2981 }
 0x345   : > { %v1107_v35 = vpack.c.bf16 %v2982_v34, %v2982_v34  ;;  %v1094_v59 = vsel %vm1076_vm3, %v2982_v34, 0.0 }
 0x347   : > { %2788 = vmatmul.mubr.msk.bf16.vlgmr.msra.gmra.mxu0 %vm1076_vm3, %v1107_v35 }
 0x348   : > { %2799 = vmatprep.mubr.msk.bf16.mxu0 %vm3053_vm0, %v3052_v2 }
 0x39c   : > { %v1219_v36 = vpop.permute.xlu1 %1218 }
 0x39d   : > { %v1221_v37 = vsub.f32 %v3331_v52, %v1219_v36 }
 0x39f   : > { %v1222_v38 = vmul.f32 1.442695, %v1221_v37 }
 0x3a1   : > { %2983 = vpow2.f32 %v1222_v38  ;;  %v1367_v38 = vld [vmem:[#allocation5 + $0x10] sm:$0xff] }
 0x3a4   : > { %v1353_v39 = vpop.permute.xlu0 %1352 }
 0x3a5   : > { %v1355_v40 = vsub.f32 %v3335_v58, %v1353_v39 }
 0x3a7   : > { %v1356_v41 = vmul.f32 1.442695, %v1355_v40 }
 0x3a8   : > { %v1376_v49 = vpop.permute.xlu0 %1375 }
 0x3a9   : > { %2985 = vpow2.f32 %v1356_v41 }
 0x3ac   : > { %v1486_v42 = vpop.permute.xlu1 %1485 }
 0x3ad   : > { %v1488_v43 = vsub.f32 %v3339_v0, %v1486_v42 }
 0x3ae   : > { %v2984_v44 = vpop.eup %2983 }
 0x3af   : > { %v1489_v45 = vmul.f32 1.442695, %v1488_v43  ;;  %v1227_v46 = vsel %vm1076_vm3, %v2984_v44, 0.0  ;;  %v1240_v48 = vpack.c.bf16 %v2984_v44, %v2984_v44 }
 0x3b0   : > { %1228 = vadd.xlane.f32.xlu0 %v1227_v46  ;;  %v1243_v47 = vpop.permute.xlu1 %1242  ;;  %v1500_v46 = vld [vmem:[#allocation5 + $0x18] sm:$0xff] }
 0x3b1   : > { %2987 = vpow2.f32 %v1489_v45  ;;  %2798 = vmatpush3.bf16.msra.mxu0 %v1243_v47 }
 0x3b2   : > { %2809 = vmatprep.subr.bf16.mxu0 %v3052_v2  ;;  %2989 = vpow2.f32 %v1214_v51 }
 0x3b3   : > { %2991 = vpow2.f32 %v1481_v55 }
 0x3b4   : > { %2800 = vmatmul.mubr.msk.bf16.vlgmr.msra.gmra.mxu0 %vm1076_vm3, %v1240_v48  ;;  %v1509_v54 = vpop.permute.xlu1 %1508  ;;  %2993 = vpow2.f32 %v1348_v61 }
 0x3b5   : > { %2810 = vmatpush3.bf16.msra.mxu0 %v1376_v49  ;;  %2811 = vmatprep.mubr.msk.bf16.mxu0 %vm3053_vm0, %v3052_v2  ;;  %2995 = vpow2.f32 %v1082_v9 }
 0x3b6   : > { %v2986_v50 = vpop.eup %2985  ;;  %2821 = vmatprep.subr.bf16.mxu0 %v3052_v2 }
 0x3b7   : > { %v1361_v52 = vsel %vm1076_vm3, %v2986_v50, 0.0  ;;  %v1374_v53 = vpack.c.bf16 %v2986_v50, %v2986_v50 }
 0x3b8   : > { %1362 = vadd.xlane.f32.xlu1 %v1361_v52 }
 0x3bc   : > { %2812 = vmatmul.mubr.msk.bf16.vlgmr.msra.gmra.mxu0 %vm1076_vm3, %v1374_v53 }
 0x3bd   : > { %2822 = vmatpush3.bf16.msra.mxu0 %v1509_v54  ;;  %2823 = vmatprep.mubr.msk.bf16.mxu0 %vm3053_vm0, %v3052_v2 }
 0x3be   : > { %v2988_v56 = vpop.eup %2987  ;;  %2835 = vmatprep.subr.bf16.mxu0 %v3052_v2 }
 0x3bf   : > { %v1494_v57 = vsel %vm1076_vm3, %v2988_v56, 0.0  ;;  %v1507_v58 = vpack.c.bf16 %v2988_v56, %v2988_v56  ;;  %v2990_v60 = vpop.eup %2989  ;;  %v2969_v56 = vld [vmem:[%s3648_s2 + $0x8] sm:$0xff]  }
 0x3c0   : > { %1495 = vadd.xlane.f32.xlu0 %v1494_v57  ;;  %v2992_v62 = vpop.eup %2991  ;;  %v1226_v12 = vmul.f32 %v2990_v60, %v1225_v7  ;;  %2828 = vmatpush3.bf16.msra.mxu1 %v2969_v56 }
 0x3c1   : > { %v2994_v63 = vpop.eup %2993  ;;  %v1493_v21 = vmul.f32 %v2992_v62, %v1492_v20  ;;  %2829 = vmatprep.subr.bf16.mxu1 %v3052_v2 }
 0x3c2   : > { %v1360_v16 = vmul.f32 %v2994_v63, %v1359_v15  ;;  %v2996_v22 = vpop.eup %2995 }
 0x3c3   : > { %v1093_v23 = vmul.f32 %v2996_v22, %v1092_v8 }
 0x3c4   : > { %1095 = vadd.xlane.f32.xlu0 %v1094_v59  ;;  %2824 = vmatmul.mubr.msk.bf16.vlgmr.msra.gmra.mxu0 %vm1076_vm3, %v1507_v58 }
 0x3c5   : > { %2839 = vmatprep.mubr.msk.bf16.mxu0 %vm3053_vm0, %v3052_v2 }
 0x3c9   : > { %1236 = vperm.xlu1 %2961, %v2990_v60   ;;  %v2970_v60 = vld [vmem:[%s3648_s2] sm:$0xff]  }
 0x3ca   : > { %2830 = vmatpush3.bf16.msra.mxu1 %v2970_v60 }
 0x3cb   : > { %2843 = vmatprep.subr.bf16.mxu1 %v3052_v2 }
 0x3cd   : > { %1503 = vperm.xlu1 %2961, %v2992_v62  }
 0x3da   : > { %1370 = vperm.xlu0 %2962, %v2994_v63  }
 0x407   : > { %v3397_v0 = vpop.f32.mrf.mxu0 }
 0x409   : > { %v2789_v1 = vpop.f32.mrf.mxu0 }
 0x40a   : > { %v1100_v1 = vld [vmem:[#allocation5] sm:$0xff] }
 0x40b   : > { %v1149_v3 = vpop.f32.mrf.mxu0 }
 0x40d   : > { %v2790_v4 = vpop.f32.mrf.mxu0 }
 0x439   : > { %v1229_v13 = vpop.xlane.xlu0 %1228 }
 0x43a   : > { %v1230_v14 = vadd.f32 %v1229_v13, %v1226_v12 }
 0x43c   : > { %1231 = vst.msk [vmem:[#allocation4 + $0x8] sm:$0xff] %vm866_vm4, %v1230_v14 }
 0x441   : > { %v1363_v17 = vpop.xlane.xlu1 %1362 }
 0x442   : > { %v1364_v18 = vadd.f32 %v1363_v17, %v1360_v16 }
 0x443   : > { %v1571_v19 = vld [vmem:[#allocation4 + $0x8] sm:$0xff] }
 0x444   : > { %1365 = vst.msk [vmem:[#allocation4 + $0x10] sm:$0xff] %vm866_vm4, %v1364_v18  ;;  %2997 = vrcp.f32 %v1571_v19 }
 0x445   : > { %v1237_v33 = vpop.permute.xlu1 %1236 }
 0x446   : > { %v1239_v34 = vmul.f32 %v1237_v33, %v1233_v32  ;;  %v2971_v32 = vld [vmem:[%s3615_s10 + $0x8] sm:$0xff]  }
 0x447   : > { %2836 = vmatpush3.bf16.msra.mxu0 %v2971_v32 }
 0x448   : > { %2837 = vmatprep.subr.bf16.mxu0 %v3052_v2 }
 0x449   : > { %v1496_v5 = vpop.xlane.xlu0 %1495  ;;  %v1504_v47 = vpop.permute.xlu1 %1503 }
 0x44a   : > { %v1497_v10 = vadd.f32 %v1496_v5, %v1493_v21  ;;  %v1506_v50 = vmul.f32 %v1504_v47, %v1500_v46  ;;  %v2657_v5 = vld [vmem:[%s3612_s7] ss:$0 sm:$0xff] }
 0x44b   : > { %v1580_v11 = vld [vmem:[#allocation4 + $0x10] sm:$0xff] }
 0x44c   : > { %1498 = vst.msk [vmem:[#allocation4 + $0x18] sm:$0xff] %vm866_vm4, %v1497_v10  ;;  %2999 = vrcp.f32 %v1580_v11 }
 0x44d   : > { %v1096_v24 = vpop.xlane.xlu0 %1095 }
 0x44e   : > { %v1097_v25 = vadd.f32 %v1096_v24, %v1093_v23 }
 0x450   : > { %1099 = vst.msk [vmem:[#allocation4] sm:$0xff] %vm866_vm4, %v1097_v25 }
 0x451   : > { %v2998_v26 = vpop.eup %2997 }
 0x452   : > { %1575 = vperm.xlu1 %2961, %v2998_v26  }
 0x453   : > { %v1589_v27 = vld [vmem:[#allocation4 + $0x18] sm:$0xff] }
 0x454   : > { %3001 = vrcp.f32 %v1589_v27 }
 0x455   : > { %v1371_v39 = vpop.permute.xlu0 %1370 }
 0x456   : > { %v1373_v42 = vmul.f32 %v1371_v39, %v1367_v38  ;;  %v2662_v39 = vld [vmem:[%s3614_s9] ss:$0 sm:$0xff] }
 0x457   : > { %v1562_v28 = vld [vmem:[#allocation4] sm:$0xff] }
 0x458   : > { %3003 = vrcp.f32 %v1562_v28 }
 0x459   : > { %v3000_v29 = vpop.eup %2999 }
 0x45a   : > { %1584 = vperm.xlu0 %2962, %v3000_v29  }
 0x45e   : > { %1103 = vperm.xlu0 %2962, %v2996_v22  }
 0x461   : > { %v3002_v30 = vpop.eup %3001 }
 0x462   : > { %1593 = vperm.xlu1 %2961, %v3002_v30  }
 0x465   : > { %v3004_v31 = vpop.eup %3003 }
 0x466   : > { %1566 = vperm.xlu1 %2961, %v3004_v31  }
 0x474   : > { %v1282_v35 = vpop.f32.mrf.mxu0 }
 0x475   : > { %v1288_v36 = vadd.f32 %v1282_v35, %v1239_v34 }
 0x476   : > { %v2801_v37 = vpop.f32.mrf.mxu0 }
 0x477   : > { %1289 = vst.msk [vmem:[#allocation5 + $0x8] sm:$0xff] %vm875_vm2, %v1288_v36  ;;  %v2661_v37 = vld [vmem:[%s3613_s8] ss:$0 sm:$0xff] }
 0x478   : > { %v1285_v40 = vpop.f32.mrf.mxu0 }
 0x47a   : > { %v2802_v41 = vpop.f32.mrf.mxu0 }
 0x47c   : > { %v1415_v43 = vpop.f32.mrf.mxu0 }
 0x47d   : > { %v1421_v44 = vadd.f32 %v1415_v43, %v1373_v42  ;;  %v2663_v43 = vld [vmem:[%s3616_s11] ss:$0 sm:$0xff] }
 0x47e   : > { %v2813_v45 = vpop.f32.mrf.mxu0  ;;  %v1570_v58 = vld [vmem:[#allocation5 + $0x8] sm:$0xff] }
 0x47f   : > { %1422 = vst.msk [vmem:[#allocation5 + $0x10] sm:$0xff] %vm875_vm2, %v1421_v44 }
 0x480   : > { %v1418_v48 = vpop.f32.mrf.mxu0 }
 0x482   : > { %v2814_v49 = vpop.f32.mrf.mxu0 }
 0x484   : > { %v1548_v51 = vpop.f32.mrf.mxu0 }
 0x485   : > { %v1554_v52 = vadd.f32 %v1548_v51, %v1506_v50 }
 0x486   : > { %v2825_v53 = vpop.f32.mrf.mxu0  ;;  %v1579_v62 = vld [vmem:[#allocation5 + $0x10] sm:$0xff] }
 0x487   : > { %1555 = vst.msk [vmem:[#allocation5 + $0x18] sm:$0xff] %vm875_vm2, %v1554_v52 }
 0x488   : > { %v1551_v54 = vpop.f32.mrf.mxu0 }
 0x48a   : > { %v2826_v55 = vpop.f32.mrf.mxu0 }
 0x48e   : > { %v1588_v12 = vld [vmem:[#allocation5 + $0x18] sm:$0xff] }
 0x4cd   : > { %v1576_v57 = vpop.permute.xlu1 %1575 }
 0x4ce   : > { %v1578_v59 = vmul.f32 %v1576_v57, %v1570_v58 }
 0x4d0   : > { %1598 = vrot.lane.b32.xlu0 %v1578_v59, %s3633_s27  ;;  %s3649_s27 = smov 96  }
 0x4d5   : > { %v1585_v61 = vpop.permute.xlu0 %1584 }
 0x4d6   : > { %v1587_v63 = vmul.f32 %v1585_v61, %v1579_v62 }
 0x4d8   : > { %1602 = vrot.lane.b32.xlu1 %v1587_v63, %s3632_s3  ;;  %s3650_s3 = smov 64  }
 0x4d9   : > { %v1104_v3 = vpop.permute.xlu0 %1103 }
 0x4da   : > { %v1106_v4 = vmul.f32 %v1104_v3, %v1100_v1 }
 0x4dc   : > { %v1152_v7 = vadd.f32 %v3397_v0, %v1106_v4 }
 0x4dd   : > { %v1594_v9 = vpop.permute.xlu1 %1593 }
 0x4de   : > { %1153 = vst.msk [vmem:[#allocation5] sm:$0xff] %vm875_vm2, %v1152_v7  ;;  %v1596_v13 = vmul.f32 %v1594_v9, %v1588_v12 }
 0x4e0   : > { %1606 = vrot.lane.b32.xlu0 %v1596_v13, %s3631_s24  ;;  %s3064_s24 = smov 80  }
 0x4e1   : > { %v1567_v14 = vpop.permute.xlu1 %1566 }
 0x4e5   : > { %v1561_v15 = vld [vmem:[#allocation5] sm:$0xff] }
 0x4e6   : > { %v1569_v17 = vmul.f32 %v1567_v14, %v1561_v15 }
 0x542   : > { %v1599_v16 = vpop.permute.xlu0 %1598 }
 0x543   : > { %v1609_v19 = vsel %vm875_vm2, %v1569_v17, %v1599_v16 }
 0x54a   : > { %v1603_v18 = vpop.permute.xlu1 %1602 }
 0x54b   : > { %v1610_v20 = vsel %vm1076_vm3, %v1609_v19, %v1603_v18 }
 0x552   : > { %v1607_v21 = vpop.permute.xlu0 %1606 }
 0x553   : > { %v1612_v0 = vsel %vm1611_vm5, %v1610_v20, %v1607_v21 }
 0x554   : > { %v1617_v22 = vpack.c.bf16 %v1612_v0, %v1612_v0 }
 0x556   : > { %2832 = vmatmul.mubr.msk.bf16.vlgmr.msra.gmra.mxu1 %vm821_vm1, %v1617_v22 }
 0x557   : > { %2845 = vmatprep.mubr.msk.bf16.mxu1 %vm3053_vm0, %v3052_v2 }
 0x616   : > { %v1674_v8 = vpop.f32.mrf.mxu1 }
 0x617   : > { %v1675_v10 = vadd.f32 %v2657_v5, %v1674_v8 }
 0x618   : > { %v2833_v11 = vpop.f32.mrf.mxu1 }
 0x619   : > { %v1680_v23 = vadd.f32 %v1675_v10, %v3245_v6  ;;  %v2972_v6 = vld [vmem:[%s3615_s10] sm:$0xff]  }
 0x61a   : > { %v1677_v24 = vpop.f32.mrf.mxu1  ;;  %2838 = vmatpush3.bf16.msra.mxu0 %v2972_v6 }
 0x61b   : > { %v1683_v25 = vsel %vm821_vm1, %v1680_v23, 0.0  ;;  %2849 = vmatprep.subr.bf16.mxu0 %v3052_v2 }
 0x61c   : > { %1684 = vadd.xlane.f32.xlu1 %v1683_v25  ;;  %v2834_v26 = vpop.f32.mrf.mxu1 }
 0x6a5   : > { %v1685_v27 = vpop.xlane.xlu1 %1684 }
 0x6a6   : > { %v1687_v28 = vmul.f32 0.03125, %v1685_v27 }
 0x6a8   : > { %v1688_v29 = vsub.f32 %v1680_v23, %v1687_v28 }
 0x6aa   : > { %v1689_v30 = vmul.f32 %v1688_v29, %v1688_v29 }
 0x6ac   : > { %v1690_v31 = vsel %vm821_vm1, %v1689_v30, 0.0 }
 0x6ad   : > { %1691 = vadd.xlane.f32.xlu0 %v1690_v31 }
 0x736   : > { %v1692_v33 = vpop.xlane.xlu0 %1691 }
 0x737   : > { %v1693_v34 = vmul.f32 0.03125, %v1692_v33 }
 0x739   : > { %v1694_v35 = vadd.f32 1e-05, %v1693_v34 }
 0x73b   : > { %3005 = vrsqrt.f32 %v1694_v35 }
 0x748   : > { %v3006_v36 = vpop.eup %3005 }
 0x749   : > { %v1696_v38 = vmul.f32 %v3006_v36, %v1688_v29 }
 0x74b   : > { %v1703_v40 = vmul.f32 %v2661_v37, %v1696_v38 }
 0x74d   : > { %v3448_v41 = vadd.f32 %v2662_v39, %v1703_v40 }
 0x74f   : > { %v1715_v42 = vpack.c.bf16 %v3448_v41, %v3448_v41 }
 0x751   : > { %2840 = vmatmul.mubr.msk.bf16.vlgmr.msra.gmra.mxu0 %vm821_vm1, %v1715_v42 }
 0x752   : > { %2851 = vmatprep.mubr.msk.bf16.mxu0 %vm3053_vm0, %v3052_v2 }
 0x811   : > { %v1772_v44 = vpop.f32.mrf.mxu0 }
 0x812   : > { %v1773_v45 = vadd.f32 %v2663_v43, %v1772_v44 }
 0x813   : > { %v2841_v46 = vpop.f32.mrf.mxu0 }
 0x814   : > { %v3458_v47 = vpack.c.bf16 %v1773_v45, %v1773_v45 }
 0x815   : > { %v1775_v48 = vpop.f32.mrf.mxu0 }
 0x816   : > { %1891 = vrot.lane.b32.xlu1 %v3458_v47, %s3063_s26  ;;  %1780 = vrot.lane.b32.xlu0 %v3458_v47, %s3649_s27  ;;  %s3651_s27 = smov 8  }
 0x817   : > { %v2842_v49 = vpop.f32.mrf.mxu0 }
 0x81a   : > { %1889 = vrot.lane.b32.xlu1 %v3458_v47, %s3054_s5  ;;  %2001 = vrot.lane.b32.xlu0 %v3458_v47, %s3064_s24  ;;  %s3066_s5 = smov 48  }
 0x81e   : > { %1999 = vrot.lane.b32.xlu1 %v3458_v47, %s3055_s6  ;;  %2111 = vrot.lane.b32.xlu0 %v3458_v47, %s3065_s4  ;;  %s3067_s6 = smov 40  }
 0x822   : > { %2109 = vrot.lane.b32.xlu1 %v3458_v47, %s3056_s25  ;;  %s3068_s25 = smov 56  }
 0x826   : > { %1839 = vrot.lane.b32.xlu1 %v3458_v47, %s3650_s3  ;;  %s3652_s3 = smov 16  }
 0x888   : > { %v1892_v50 = vpop.permute.xlu1 %1891  ;;  %v1781_v51 = vpop.permute.xlu0 %1780 }
 0x889   : > { %v1786_v52 = vsel %vm875_vm2, %v1781_v51, 0  ;;  %v1897_v55 = vsel %vm875_vm2, %v1892_v50, 0 }
 0x88a   : > { %2844 = vmatpush3.bf16.xpose.msra.mxu1 %v1786_v52 }
 0x88b   : > { %2855 = vmatprep.subr.bf16.mxu1 %v3052_v2 }
 0x88c   : > { %v1890_v53 = vpop.permute.xlu1 %1889  ;;  %v2002_v57 = vpop.permute.xlu0 %2001 }
 0x88d   : > { %v2007_v59 = vsel %vm875_vm2, %v2002_v57, 0  ;;  %v2973_v57 = vld [vmem:[%s3617_s12 + $0x8] sm:$0xff]  }
 0x890   : > { %v2000_v54 = vpop.permute.xlu1 %1999  ;;  %v2112_v61 = vpop.permute.xlu0 %2111 }
 0x891   : > { %2846 = vmatmul.mubr.msk.bf16.vlgmr.msra.gmra.mxu1 %vm875_vm2, %v3458_v47  ;;  %v2117_v62 = vsel %vm875_vm2, %v2112_v61, 0 }
 0x892   : > { %2856 = vmatpush3.bf16.xpose.msra.mxu1 %v1897_v55  ;;  %2857 = vmatprep.mubr.msk.bf16.mxu1 %vm3053_vm0, %v3052_v2 }
 0x893   : > { %2867 = vmatprep.subr.bf16.mxu1 %v3052_v2 }
 0x894   : > { %v2110_v56 = vpop.permute.xlu1 %2109 }
 0x898   : > { %v1840_v58 = vpop.permute.xlu1 %1839 }
 0x899   : > { %v1846_v60 = vsel %vm1844_vm6, %v1840_v58, 0  ;;  %2858 = vmatmul.mubr.msk.bf16.vlgmr.msra.gmra.mxu1 %vm875_vm2, %v1890_v53 }
 0x89a   : > { %2850 = vmatpush3.bf16.msra.mxu0 %v1846_v60  ;;  %2868 = vmatpush3.bf16.xpose.msra.mxu1 %v2007_v59 }
 0x89b   : > { %2869 = vmatprep.mubr.msk.bf16.mxu1 %vm3053_vm0, %v3052_v2  ;;  %2879 = vmatprep.subr.bf16.mxu1 %v3052_v2 }
 0x89c   : > { %2861 = vmatprep.subr.bf16.mxu0 %v3052_v2 }
 0x8a1   : > { %2870 = vmatmul.mubr.msk.bf16.vlgmr.msra.gmra.mxu1 %vm875_vm2, %v2000_v54 }
 0x8a2   : > { %2880 = vmatpush3.bf16.xpose.msra.mxu1 %v2117_v62  ;;  %2881 = vmatprep.mubr.msk.bf16.mxu1 %vm3053_vm0, %v3052_v2 }
 0x8a3   : > { %2891 = vmatprep.subr.bf16.mxu1 %v3052_v2 }
 0x8a9   : > { %2882 = vmatmul.mubr.msk.bf16.vlgmr.msra.gmra.mxu1 %vm875_vm2, %v2110_v56 }
 0x8aa   : > { %2895 = vmatprep.mubr.msk.bf16.mxu1 %vm3053_vm0, %v3052_v2  ;;  %2892 = vmatpush3.bf16.msra.mxu1 %v2973_v57 }
 0x8ab   : > { %2893 = vmatprep.subr.bf16.mxu1 %v3052_v2 }
 0x951   : > { %v1822_v63 = vpop.f32.mrf.mxu1 }
 0x952   : > { %v1828_v1 = vsel %vm875_vm2, %v1822_v63, -inf }
 0x953   : > { %1829 = vmax.xlane.f32.xlu0 %v1828_v1  ;;  %v2847_v3 = vpop.f32.mrf.mxu1  ;;  %v2974_v1 = vld [vmem:[%s3617_s12] sm:$0xff]  }
 0x954   : > { %2894 = vmatpush3.bf16.msra.mxu1 %v2974_v1 }
 0x955   : > { %v1825_v4 = vpop.f32.mrf.mxu1  ;;  %2907 = vmatprep.subr.bf16.mxu1 %v3052_v2 }
 0x957   : > { %v2848_v7 = vpop.f32.mrf.mxu1 }
 0x959   : > { %v1933_v9 = vpop.f32.mrf.mxu1 }
 0x95a   : > { %v1939_v12 = vsel %vm875_vm2, %v1933_v9, -inf }
 0x95b   : > { %1940 = vmax.xlane.f32.xlu1 %v1939_v12  ;;  %v2859_v13 = vpop.f32.mrf.mxu1 }
 0x95d   : > { %v1936_v14 = vpop.f32.mrf.mxu1 }
 0x95f   : > { %v2860_v15 = vpop.f32.mrf.mxu1 }
 0x961   : > { %v2043_v16 = vpop.f32.mrf.mxu1 }
 0x962   : > { %v2049_v17 = vsel %vm875_vm2, %v2043_v16, -inf }
 0x963   : > { %2050 = vmax.xlane.f32.xlu0 %v2049_v17  ;;  %v2871_v18 = vpop.f32.mrf.mxu1 }
 0x965   : > { %v2046_v19 = vpop.f32.mrf.mxu1 }
 0x967   : > { %v2872_v20 = vpop.f32.mrf.mxu1 }
 0x969   : > { %v2153_v21 = vpop.f32.mrf.mxu1 }
 0x96a   : > { %v2159_v0 = vsel %vm875_vm2, %v2153_v21, -inf }
 0x96b   : > { %2160 = vmax.xlane.f32.xlu0 %v2159_v0  ;;  %v2883_v22 = vpop.f32.mrf.mxu1 }
 0x96c   : > { %2060 = vrot.lane.b32.xlu1 %v3458_v47, %s3066_s5  ;;  %s3653_s5 = smov 24  }
 0x96d   : > { %v2156_v5 = vpop.f32.mrf.mxu1 }
 0x96f   : > { %v2884_v8 = vpop.f32.mrf.mxu1 }
 0x970   : > { %2170 = vrot.lane.b32.xlu1 %v3458_v47, %s3067_s6 }
 0x981   : > { %1950 = vrot.lane.b32.xlu0 %v3458_v47, %s3068_s25  ;;  %s790_s25 = scalar_lea.vmem %s3627_s22, %s3239_s1 }
 0x9dc   : > { %v1830_v10 = vpop.xlane.xlu0 %1829 }
 0x9dd   : > { %v1831_v11 = vsub.f32 %v1822_v63, %v1830_v10 }
 0x9df   : > { %v1832_v23 = vmul.f32 1.442695, %v1831_v11 }
 0x9e1   : > { %3007 = vpow2.f32 %v1832_v23 }
 0x9e4   : > { %v1941_v24 = vpop.xlane.xlu1 %1940 }
 0x9e5   : > { %v1942_v25 = vsub.f32 %v1933_v9, %v1941_v24 }
 0x9e7   : > { %v1943_v26 = vmul.f32 1.442695, %v1942_v25 }
 0x9e8   : > { %v2061_v38 = vpop.permute.xlu1 %2060 }
 0x9e9   : > { %3009 = vpow2.f32 %v1943_v26  ;;  %v2066_v40 = vsel %vm1844_vm6, %v2061_v38, 0  ;;  %v2675_v26 = vld [vmem:[%s3618_s13] ss:$0 sm:$0xff]  ;;  %v2975_v38 = vld [vmem:[%s3621_s16 + $0x8] sm:$0xff]  }
 0x9ec   : > { %v2051_v27 = vpop.xlane.xlu0 %2050  ;;  %v2171_v44 = vpop.permute.xlu1 %2170 }
 0x9ed   : > { %v2052_v28 = vsub.f32 %v2043_v16, %v2051_v27  ;;  %v2176_v46 = vsel %vm1844_vm6, %v2171_v44, 0 }
 0x9ee   : > { %v3008_v29 = vpop.eup %3007 }
 0x9ef   : > { %v2053_v30 = vmul.f32 1.442695, %v2052_v28  ;;  %v1838_v31 = vpack.c.bf16 %v3008_v29, %v3008_v29  ;;  %v1834_v49 = vsel %vm875_vm2, %v3008_v29, 0.0 }
 0x9f1   : > { %3011 = vpow2.f32 %v2053_v30  ;;  %2852 = vmatmul.mubr.msk.bf16.vlgmr.msra.gmra.mxu0 %vm875_vm2, %v1838_v31 }
 0x9f2   : > { %2863 = vmatprep.mubr.msk.bf16.mxu0 %vm3053_vm0, %v3052_v2 }
 0x9f4   : > { %v2161_v32 = vpop.xlane.xlu0 %2160 }
 0x9f5   : > { %v2162_v6 = vsub.f32 %v2153_v21, %v2161_v32 }
 0x9f6   : > { %v3010_v33 = vpop.eup %3009 }
 0x9f7   : > { %v2163_v34 = vmul.f32 1.442695, %v2162_v6  ;;  %v1945_v35 = vsel %vm875_vm2, %v3010_v33, 0.0  ;;  %v1949_v39 = vpack.c.bf16 %v3010_v33, %v3010_v33 }
 0x9f8   : > { %1946 = vadd.xlane.f32.xlu0 %v1945_v35  ;;  %v1951_v36 = vpop.permute.xlu0 %1950 }
 0x9f9   : > { %3013 = vpow2.f32 %v2163_v34  ;;  %v1956_v37 = vsel %vm1844_vm6, %v1951_v36, 0 }
 0x9fa   : > { %2862 = vmatpush3.bf16.msra.mxu0 %v1956_v37 }
 0x9fb   : > { %2873 = vmatprep.subr.bf16.mxu0 %v3052_v2 }
 0x9fd   : > { %2864 = vmatmul.mubr.msk.bf16.vlgmr.msra.gmra.mxu0 %vm875_vm2, %v1949_v39  ;;  %v2977_v39 = vld [vmem:[%s3623_s18 + $0x18] sm:$0xff]  }
 0x9fe   : > { %v3012_v42 = vpop.eup %3011  ;;  %2874 = vmatpush3.bf16.msra.mxu0 %v2066_v40  ;;  %2875 = vmatprep.mubr.msk.bf16.mxu0 %vm3053_vm0, %v3052_v2  ;;  %v2978_v40 = vld [vmem:[%s3623_s18 + $0x10] sm:$0xff]  }
 0x9ff   : > { %v2055_v43 = vsel %vm875_vm2, %v3012_v42, 0.0  ;;  %2885 = vmatprep.subr.bf16.mxu0 %v3052_v2  ;;  %v2059_v45 = vpack.c.bf16 %v3012_v42, %v3012_v42 }
 0xa00   : > { %2056 = vadd.xlane.f32.xlu1 %v2055_v43 }
 0xa05   : > { %2876 = vmatmul.mubr.msk.bf16.vlgmr.msra.gmra.mxu0 %vm875_vm2, %v2059_v45 }
 0xa06   : > { %v3014_v47 = vpop.eup %3013  ;;  %2886 = vmatpush3.bf16.msra.mxu0 %v2176_v46  ;;  %2887 = vmatprep.mubr.msk.bf16.mxu0 %vm3053_vm0, %v3052_v2  ;;  %v2679_v46 = vld [vmem:[%s3619_s14] ss:$0 sm:$0xff] }
 0xa07   : > { %v2165_v48 = vsel %vm875_vm2, %v3014_v47, 0.0  ;;  %2899 = vmatprep.subr.bf16.mxu0 %v3052_v2  ;;  %v2169_v50 = vpack.c.bf16 %v3014_v47, %v3014_v47 }
 0xa08   : > { %2166 = vadd.xlane.f32.xlu0 %v2165_v48  ;;  %v2680_v48 = vld [vmem:[%s3620_s15] ss:$0 sm:$0xff] }
 0xa0c   : > { %1835 = vadd.xlane.f32.xlu0 %v1834_v49 }
 0xa0d   : > { %2888 = vmatmul.mubr.msk.bf16.vlgmr.msra.gmra.mxu0 %vm875_vm2, %v2169_v50 }
 0xa0e   : > { %2903 = vmatprep.mubr.msk.bf16.mxu0 %vm3053_vm0, %v3052_v2  ;;  %2900 = vmatpush3.bf16.msra.mxu0 %v2975_v38 }
 0xa0f   : > { %2901 = vmatprep.subr.bf16.mxu0 %v3052_v2 }
 0xa81   : > { %v1947_v51 = vpop.xlane.xlu0 %1946 }
 0xa82   : > { %3015 = vrcp.f32 %v1947_v51 }
 0xa89   : > { %v2057_v54 = vpop.xlane.xlu1 %2056 }
 0xa8a   : > { %3017 = vrcp.f32 %v2057_v54  ;;  %v2681_v54 = vld [vmem:[%s3622_s17] ss:$0 sm:$0xff] }
 0xa8f   : > { %v3016_v58 = vpop.eup %3015 }
 0xa91   : > { %v2167_v59 = vpop.xlane.xlu0 %2166 }
 0xa92   : > { %3019 = vrcp.f32 %v2167_v59 }
 0xa95   : > { %v1836_v21 = vpop.xlane.xlu0 %1835 }
 0xa96   : > { %3021 = vrcp.f32 %v1836_v21  ;;  %v2691_v21 = vld [vmem:[%s3625_s20] ss:$0 sm:$0xff] }
 0xa97   : > { %v3018_v4 = vpop.eup %3017 }
 0xa9f   : > { %v3020_v15 = vpop.eup %3019 }
 0xaa3   : > { %v3022_v0 = vpop.eup %3021 }
 0xab1   : > { %v1882_v52 = vpop.f32.mrf.mxu0 }
 0xab2   : > { %v1888_v5 = vmul.f32 %v3022_v0, %v1882_v52  ;;  %v2979_v52 = vld [vmem:[%s3623_s18 + $0x8] sm:$0xff]  }
 0xab3   : > { %v2853_v53 = vpop.f32.mrf.mxu0 }
 0xab4   : > { %v2980_v53 = vld [vmem:[%s3623_s18] sm:$0xff]  }
 0xab5   : > { %v1885_v55 = vpop.f32.mrf.mxu0 }
 0xab7   : > { %v2854_v56 = vpop.f32.mrf.mxu0 }
 0xabd   : > { %v1992_v60 = vpop.f32.mrf.mxu0 }
 0xabe   : > { %v1998_v61 = vmul.f32 %v3016_v58, %v1992_v60 }
 0xabf   : > { %v2865_v62 = vpop.f32.mrf.mxu0 }
 0xac0   : > { %2220 = vrot.lane.b32.xlu1 %v1998_v61, %s3651_s27 }
 0xac1   : > { %v1995_v63 = vpop.f32.mrf.mxu0 }
 0xac3   : > { %v2866_v3 = vpop.f32.mrf.mxu0 }
 0xac5   : > { %v2102_v7 = vpop.f32.mrf.mxu0 }
 0xac6   : > { %v2108_v9 = vmul.f32 %v3018_v4, %v2102_v7 }
 0xac7   : > { %v2877_v12 = vpop.f32.mrf.mxu0 }
 0xac8   : > { %2224 = vrot.lane.b32.xlu0 %v2108_v9, %s3652_s3 }
 0xac9   : > { %v2105_v13 = vpop.f32.mrf.mxu0 }
 0xacb   : > { %v2878_v14 = vpop.f32.mrf.mxu0 }
 0xacd   : > { %v2212_v16 = vpop.f32.mrf.mxu0 }
 0xace   : > { %v2218_v17 = vmul.f32 %v3020_v15, %v2212_v16 }
 0xacf   : > { %v2889_v18 = vpop.f32.mrf.mxu0 }
 0xad0   : > { %2228 = vrot.lane.b32.xlu1 %v2218_v17, %s3653_s5 }
 0xad1   : > { %v2215_v19 = vpop.f32.mrf.mxu0 }
 0xad3   : > { %v2890_v20 = vpop.f32.mrf.mxu0 }
 0xb32   : > { %v2221_v22 = vpop.permute.xlu1 %2220 }
 0xb33   : > { %v2231_v10 = vsel %vm875_vm2, %v1888_v5, %v2221_v22  ;;  %v2692_v22 = vld [vmem:[%s3626_s21] ss:$0 sm:$0xff] }
 0xb3a   : > { %v2225_v8 = vpop.permute.xlu0 %2224 }
 0xb3b   : > { %v2232_v11 = vsel %vm1076_vm3, %v2231_v10, %v2225_v8 }
 0xb42   : > { %v2229_v23 = vpop.permute.xlu1 %2228 }
 0xb43   : > { %v2233_v24 = vsel %vm1611_vm5, %v2232_v11, %v2229_v23 }
 0xb44   : > { %v2238_v25 = vpack.c.bf16 %v2233_v24, %v2233_v24 }
 0xb46   : > { %2896 = vmatmul.mubr.msk.bf16.vlgmr.msra.gmra.mxu1 %vm821_vm1, %v2238_v25 }
 0xb47   : > { %2915 = vmatprep.mubr.msk.bf16.mxu1 %vm3053_vm0, %v3052_v2  ;;  %2908 = vmatpush3.bf16.msra.mxu1 %v2977_v39 }
 0xb48   : > { %2909 = vmatprep.subr.bf16.mxu1 %v3052_v2 }
 0xb4b   : > { %2910 = vmatpush3.bf16.msra.mxu1 %v2978_v40 }
 0xb4c   : > { %2911 = vmatprep.subr.bf16.mxu1 %v3052_v2 }
 0xb4f   : > { %2912 = vmatpush3.bf16.msra.mxu1 %v2979_v52 }
 0xb50   : > { %2913 = vmatprep.subr.bf16.mxu1 %v3052_v2  ;;  %v2685_v2 = vld [vmem:[%s3624_s19] ss:$0 sm:$0xff] }
 0xb53   : > { %2914 = vmatpush3.bf16.msra.mxu1 %v2980_v53 }
 0xc06   : > { %v2295_v27 = vpop.f32.mrf.mxu1 }
 0xc07   : > { %v2296_v28 = vadd.f32 %v2675_v26, %v2295_v27 }
 0xc08   : > { %v2897_v29 = vpop.f32.mrf.mxu1 }
 0xc09   : > { %v2301_v30 = vadd.f32 %v2296_v28, %v3448_v41  ;;  %v2976_v41 = vld [vmem:[%s3621_s16] sm:$0xff]  }
 0xc0a   : > { %v2298_v31 = vpop.f32.mrf.mxu1  ;;  %2902 = vmatpush3.bf16.msra.mxu0 %v2976_v41 }
 0xc0b   : > { %v2304_v32 = vsel %vm821_vm1, %v2301_v30, 0.0 }
 0xc0c   : > { %2305 = vadd.xlane.f32.xlu1 %v2304_v32  ;;  %v2898_v6 = vpop.f32.mrf.mxu1 }
 0xc95   : > { %v2306_v33 = vpop.xlane.xlu1 %2305 }
 0xc96   : > { %v2307_v34 = vmul.f32 0.03125, %v2306_v33 }
 0xc98   : > { %v2308_v35 = vsub.f32 %v2301_v30, %v2307_v34 }
 0xc9a   : > { %v2309_v36 = vmul.f32 %v2308_v35, %v2308_v35 }
 0xc9c   : > { %v2310_v37 = vsel %vm821_vm1, %v2309_v36, 0.0 }
 0xc9d   : > { %2311 = vadd.xlane.f32.xlu0 %v2310_v37 }
 0xd26   : > { %v2312_v42 = vpop.xlane.xlu0 %2311 }
 0xd27   : > { %v2313_v43 = vmul.f32 0.03125, %v2312_v42 }
 0xd29   : > { %v2314_v44 = vadd.f32 1e-05, %v2313_v43 }
 0xd2b   : > { %3023 = vrsqrt.f32 %v2314_v44 }
 0xd38   : > { %v3024_v45 = vpop.eup %3023 }
 0xd39   : > { %v2316_v47 = vmul.f32 %v3024_v45, %v2308_v35 }
 0xd3b   : > { %v2323_v49 = vmul.f32 %v2679_v46, %v2316_v47 }
 0xd3d   : > { %v2330_v50 = vadd.f32 %v2680_v48, %v2323_v49 }
 0xd3f   : > { %v2335_v51 = vpack.c.bf16 %v2330_v50, %v2330_v50 }
 0xd41   : > { %2904 = vmatmul.mubr.msk.bf16.vlgmr.msra.gmra.mxu0 %vm821_vm1, %v2335_v51 }
 0xe01   : > { %v2392_v55 = vpop.f32.mrf.mxu0 }
 0xe02   : > { %v2393_v56 = vadd.f32 %v2681_v54, %v2392_v55 }
 0xe03   : > { %v2905_v57 = vpop.f32.mrf.mxu0 }
 0xe04   : > { %v2398_v58 = vmax.f32 %v2393_v56, 0.0 }
 0xe05   : > { %v2395_v59 = vpop.f32.mrf.mxu0 }
 0xe06   : > { %v2407_v60 = vpack.c.bf16 %v2398_v58, %v2398_v58 }
 0xe07   : > { %v2906_v61 = vpop.f32.mrf.mxu0 }
 0xe08   : > { %2916 = vmatmul.mubr.msk.bf16.vlgmr.msra.gmra.mxu1 %vm2439_vm7, %v2407_v60 }
 0xec8   : > { %v2477_v62 = vpop.f32.mrf.mxu1 }
 0xec9   : > { %v2478_v63 = vadd.f32 %v2685_v2, %v2477_v62 }
 0xeca   : > { %v2917_v1 = vpop.f32.mrf.mxu1 }
 0xecb   : > { %v2483_v3 = vadd.f32 %v2478_v63, %v2330_v50 }
 0xecc   : > { %v2480_v4 = vpop.f32.mrf.mxu1 }
 0xecd   : > { %v2486_v7 = vsel %vm821_vm1, %v2483_v3, 0.0 }
 0xece   : > { %2487 = vadd.xlane.f32.xlu0 %v2486_v7  ;;  %v2918_v9 = vpop.f32.mrf.mxu1 }
 0xf57   : > { %v2488_v12 = vpop.xlane.xlu0 %2487 }
 0xf58   : > { %v2489_v13 = vmul.f32 0.03125, %v2488_v12 }
 0xf5a   : > { %v2490_v14 = vsub.f32 %v2483_v3, %v2489_v13 }
 0xf5c   : > { %v2491_v15 = vmul.f32 %v2490_v14, %v2490_v14 }
 0xf5e   : > { %v2492_v16 = vsel %vm821_vm1, %v2491_v15, 0.0 }
 0xf5f   : > { %2493 = vadd.xlane.f32.xlu1 %v2492_v16 }
 0xfe8   : > { %v2494_v17 = vpop.xlane.xlu1 %2493 }
 0xfe9   : > { %v2495_v18 = vmul.f32 0.03125, %v2494_v17 }
 0xfeb   : > { %v2496_v19 = vadd.f32 1e-05, %v2495_v18 }
 0xfed   : > { %3025 = vrsqrt.f32 %v2496_v19 }
 0xffa   : > { %v3026_v20 = vpop.eup %3025 }
 0xffb   : > { %v2498_v0 = vmul.f32 %v3026_v20, %v2490_v14 }
 0xffd   : > { %v2505_v5 = vmul.f32 %v2691_v21, %v2498_v0 }
 0xfff   : > { %v2512_v8 = vadd.f32 %v2692_v22, %v2505_v5 }
0x1001   : > { %2513 = vst.msk [vmem:[%s790_s25] sm:$0xff] %vm821_vm1, %v2512_v8 }
0x1002 PF: > { %s32_s29 = sadd.s32 1, %s3049_s29   ;;  %s3654_s3 = smov %s3045_s28 }
0x1003   : > { %p29_p5 = scmp.ge.s32.totalorder %s32_s29, 4   ;;  %s3655_s28 = smov %s3657_s30 }
0x1005   :  { %31 = sbr.rel (!%p29_p5) target bundleno = 8 (0x8), region = 164 }

// kernel: _lambda_.33
= control target key start
LH: loop header
LB: loop body
LE: loop exit
PB: predicated region body
PF: predicated region fallthrough
CT: control target
= control target key end

     0   :  { %s1370_s12 = smov 0   ;;  %s1557_s0 = inlined_call_operand.vmem [shape: f32[64,8,8], index: 0, kind: input, shape index: {}]   ;;  %s1558_s1 = inlined_call_operand.vmem [shape: f32[2,8], index: 1, kind: input, shape index: {}]   ;;  %s1559_s2 = inlined_call_operand.vmem [shape: f32[8,2], index: 2, kind: input, shape index: {}]   ;;  %s1560_s3 = inlined_call_operand.vmem [shape: f32[64,2,2], index: 3, kind: output, shape index: {}]  }
   0x1 LB: > { %s1124_s13 = sadd.s32 4294967295, %s1346_s12   ;;  %p1128_p0 = scmp.ge.s32.totalorder %s1346_s12, 1  ;;  %s1346_s12 = sphi %s1370_s12, %s13_s12  }
   0x2   : > { %p138_p1 = scmp.lt.s32.totalorder %s1346_s12, 5 }
   0x4   : > { %p139_p2 = pnand %p1128_p0, %p138_p1 }
   0x5   : > { %s1129_s16 = sshll.u32 (!%p139_p2), %s1124_s13, 4 }
   0x6   : > { %142 = sbr.rel (%p139_p2) target bundleno = 490 (0x1ea), region = 32  ;;  %p163_p3 = scmp.lt.s32.totalorder (!%p139_p2), %s1129_s16, 63 }
   0xb   : > { %v176_v0 = vld [vmem:[%s1559_s2] sm:$0xff]  ;;  %vm227_vm0 = vcmask 1043456   ;;  %s1562_s16 = smov (!%p163_p3, %s1129_s16), 63  ;;  %vm202_vm1 = vcmask 64512   ;;  %v1348_v27 = vmov 0.0   ;;  %vm1349_vm2 = vmmov 0  }
   0xc   : > { %v201_v1 = vpack.c.bf16 %v176_v0, %v176_v0  ;;  %s1130_s17 = sshll.u32 %s1562_s16, 3  ;;  %1233 = vmatprep.subr.bf16.mxu1 %v1348_v27  ;;  %1235 = vmatprep.mubr.msk.bf16.mxu1 %vm1349_vm2, %v1348_v27  ;;  %v175_v30 = vld [vmem:[%s1558_s1] sm:$0x3]  ;;  %s1132_s23 = sshll.u32 %s1562_s16, 1  ;;  %vm376_vm3 = vcmask 9216  }
   0xd   : > { %s1389_s20 = scalar_lea.vmem %s1557_s0, %s1130_s17  ;;  %v1425_v34 = vpack.c.bf16 %v175_v30, %v175_v30  ;;  %s1520_s26 = scalar_lea.vmem %s1560_s3, %s1132_s23 }
   0xe   : > { %1329 = vmatprep.subr.msk.bf16.mxu0 %vm227_vm0, %v201_v1  ;;  %v229_v2 = vsel %vm227_vm0, %v201_v1, 0  ;;  %v177_v3 = vld [vmem:[%s1389_s20] sm:$0xff]  ;;  %v178_v4 = vld [vmem:[%s1389_s20 + $0x8] sm:$0xff]  ;;  %v179_v5 = vld [vmem:[%s1389_s20 + $0x10] sm:$0xff] }
   0xf   : > { %1216 = vmatpush3.bf16.msra.mxu0 %v229_v2  ;;  %v193_v6 = vpack.c.bf16 %v178_v4, %v177_v3  ;;  %v180_v7 = vld [vmem:[%s1389_s20 + $0x18] sm:$0xff]  ;;  %v181_v8 = vld [vmem:[%s1389_s20 + $0x20] sm:$0xff]  ;;  %v182_v9 = vld [vmem:[%s1389_s20 + $0x28] sm:$0xff] }
  0x10   : > { %v194_v10 = vpack.c.bf16 %v180_v7, %v179_v5  ;;  %v195_v11 = vpack.c.bf16 %v182_v9, %v181_v8  ;;  %v183_v12 = vld [vmem:[%s1389_s20 + $0x30] sm:$0xff]  ;;  %v184_v13 = vld [vmem:[%s1389_s20 + $0x38] sm:$0xff]  ;;  %v185_v14 = vld [vmem:[%s1389_s20 + $0x40] sm:$0xff]  ;;  %1257 = vmatprep.subr.bf16.mxu0 %v1348_v27 }
  0x11   : > { %1217 = vmatprep.mubr.msk.bf16.mxu0 %vm202_vm1, %v193_v6  ;;  %v186_v15 = vld [vmem:[%s1389_s20 + $0x48] sm:$0xff]  ;;  %v196_v16 = vpack.c.bf16 %v184_v13, %v183_v12  ;;  %v187_v18 = vld [vmem:[%s1389_s20 + $0x50] sm:$0xff]  ;;  %v188_v19 = vld [vmem:[%s1389_s20 + $0x58] sm:$0xff] }
  0x12   : > { %1218 = vmatmul.mubr.msk.bf16.vlgmr.msra.gmra.mxu0 %vm202_vm1, %v194_v10  ;;  %v197_v17 = vpack.c.bf16 %v186_v15, %v185_v14  ;;  %v189_v20 = vld [vmem:[%s1389_s20 + $0x60] sm:$0xff]  ;;  %v190_v21 = vld [vmem:[%s1389_s20 + $0x68] sm:$0xff]  ;;  %v198_v22 = vpack.c.bf16 %v188_v19, %v187_v18  ;;  %v191_v24 = vld [vmem:[%s1389_s20 + $0x70] sm:$0xff] }
  0x13   : > { %1221 = vmatprep.mubr.msk.bf16.mxu0 %vm202_vm1, %v195_v11  ;;  %v199_v23 = vpack.c.bf16 %v190_v21, %v189_v20  ;;  %v192_v25 = vld [vmem:[%s1389_s20 + $0x78] sm:$0xff] }
  0x14   : > { %v200_v26 = vpack.c.bf16 %v192_v25, %v191_v24 }
  0x1a   : > { %1222 = vmatmul.mubr.msk.bf16.gmra.mxu0 %vm202_vm1, %v196_v16 }
  0x1b   : > { %1225 = vmatprep.mubr.msk.bf16.mxu0 %vm202_vm1, %v197_v17 }
  0x22   : > { %1226 = vmatmul.mubr.msk.bf16.gmra.mxu0 %vm202_vm1, %v198_v22 }
  0x23   : > { %1229 = vmatprep.mubr.msk.bf16.mxu0 %vm202_vm1, %v199_v23 }
  0x2a   : > { %1230 = vmatmul.mubr.msk.bf16.gmra.mxu0 %vm202_vm1, %v200_v26 }
  0x2b   : > { %1259 = vmatprep.mubr.msk.bf16.mxu0 %vm1349_vm2, %v1348_v27 }
  0xd2   : > { %v1219_v28 = vpop.f32.mrf.mxu0 }
  0xd3   : > { %v424_v43 = vpack.c.bf16 %v1219_v28, %v1219_v28 }
  0xd4   : > { %v265_v29 = vpop.f32.mrf.mxu0 }
  0xd5   : > { %v329_v31 = vpack.c.bf16 %v265_v29, %v265_v29  ;;  %v426_v48 = vsel %vm227_vm0, %v424_v43, 0 }
  0xd6   : > { %v1220_v32 = vpop.f32.mrf.mxu0 }
  0xd7   : > { %v334_v33 = vsel %vm227_vm0, %v329_v31, 0  ;;  %v470_v51 = vpack.c.bf16 %v1220_v32, %v1220_v32 }
  0xd8   : > { %v268_v35 = vpop.f32.mrf.mxu0  ;;  %1234 = vmatpush3.bf16.msra.mxu1 %v334_v33 }
  0xd9   : > { %v378_v36 = vpack.c.bf16 %v268_v35, %v268_v35  ;;  %1239 = vmatprep.subr.bf16.mxu1 %v1348_v27  ;;  %v472_v54 = vsel %vm227_vm0, %v470_v51, 0 }
  0xda   : > { %v1223_v37 = vpop.f32.mrf.mxu0 }
  0xdb   : > { %v380_v38 = vsel %vm227_vm0, %v378_v36, 0  ;;  %1236 = vmatmul.mubr.msk.bf16.vlgmr.msra.gmra.mxu1 %vm202_vm1, %v1425_v34  ;;  %v608_v40 = vpack.c.bf16 %v1223_v37, %v1223_v37 }
  0xdc   : > { %v281_v39 = vpop.f32.mrf.mxu0  ;;  %1240 = vmatpush3.bf16.msra.mxu1 %v380_v38  ;;  %1241 = vmatprep.mubr.msk.bf16.mxu1 %vm1349_vm2, %v1348_v27 }
  0xdd   : > { %v516_v41 = vpack.c.bf16 %v281_v39, %v281_v39  ;;  %1245 = vmatprep.subr.bf16.mxu1 %v1348_v27  ;;  %v610_v46 = vsel %vm227_vm0, %v608_v40, 0 }
  0xde   : > { %v1224_v42 = vpop.f32.mrf.mxu0 }
  0xdf   : > { %v518_v44 = vsel %vm227_vm0, %v516_v41, 0  ;;  %v654_v63 = vpack.c.bf16 %v1224_v42, %v1224_v42 }
  0xe0   : > { %v284_v45 = vpop.f32.mrf.mxu0  ;;  %1258 = vmatpush3.bf16.msra.mxu0 %v518_v44 }
  0xe1   : > { %1269 = vmatprep.subr.bf16.mxu0 %v1348_v27  ;;  %v562_v55 = vpack.c.bf16 %v284_v45, %v284_v45  ;;  %v656_v1 = vsel %vm227_vm0, %v654_v63, 0 }
  0xe2   : > { %v1227_v47 = vpop.f32.mrf.mxu0 }
  0xe3   : > { %1242 = vmatmul.mubr.msk.bf16.vlgmr.msra.gmra.mxu1 %vm202_vm1, %v1425_v34  ;;  %1260 = vmatmul.mubr.msk.bf16.vlgmr.msra.gmra.mxu0 %vm202_vm1, %v1425_v34  ;;  %v792_v57 = vpack.c.bf16 %v1227_v47, %v1227_v47  ;;  %v564_v59 = vsel %vm227_vm0, %v562_v55, 0 }
  0xe4   : > { %1246 = vmatpush3.bf16.msra.mxu1 %v426_v48  ;;  %1270 = vmatpush3.bf16.msra.mxu0 %v610_v46  ;;  %v297_v49 = vpop.f32.mrf.mxu0 }
  0xe5   : > { %1247 = vmatprep.mubr.msk.bf16.mxu1 %vm1349_vm2, %v1348_v27  ;;  %1251 = vmatprep.subr.bf16.mxu1 %v1348_v27  ;;  %v700_v50 = vpack.c.bf16 %v297_v49, %v297_v49  ;;  %v794_v60 = vsel %vm227_vm0, %v792_v57, 0 }
  0xe6   : > { %1271 = vmatprep.mubr.msk.bf16.mxu0 %vm1349_vm2, %v1348_v27  ;;  %1281 = vmatprep.subr.bf16.mxu0 %v1348_v27  ;;  %v1228_v52 = vpop.f32.mrf.mxu0 }
  0xe7   : > { %v702_v53 = vsel %vm227_vm0, %v700_v50, 0  ;;  %v838_v7 = vpack.c.bf16 %v1228_v52, %v1228_v52 }
  0xe8   : > { %v300_v56 = vpop.f32.mrf.mxu0 }
  0xe9   : > { %v746_v2 = vpack.c.bf16 %v300_v56, %v300_v56  ;;  %v840_v9 = vsel %vm227_vm0, %v838_v7, 0 }
  0xea   : > { %v1231_v58 = vpop.f32.mrf.mxu0 }
  0xeb   : > { %1248 = vmatmul.mubr.msk.bf16.vlgmr.msra.gmra.mxu1 %vm202_vm1, %v1425_v34  ;;  %1272 = vmatmul.mubr.msk.bf16.vlgmr.msra.gmra.mxu0 %vm202_vm1, %v1425_v34  ;;  %v976_v3 = vpack.c.bf16 %v1231_v58, %v1231_v58  ;;  %v748_v4 = vsel %vm227_vm0, %v746_v2, 0 }
  0xec   : > { %1252 = vmatpush3.bf16.msra.mxu1 %v472_v54  ;;  %1253 = vmatprep.mubr.msk.bf16.mxu1 %vm1349_vm2, %v1348_v27  ;;  %v313_v61 = vpop.f32.mrf.mxu0 }
  0xed   : > { %1263 = vmatprep.subr.bf16.mxu1 %v1348_v27  ;;  %1282 = vmatpush3.bf16.msra.mxu0 %v702_v53  ;;  %v884_v62 = vpack.c.bf16 %v313_v61, %v313_v61  ;;  %v978_v5 = vsel %vm227_vm0, %v976_v3, 0 }
  0xee   : > { %1283 = vmatprep.mubr.msk.bf16.mxu0 %vm1349_vm2, %v1348_v27  ;;  %1293 = vmatprep.subr.bf16.mxu0 %v1348_v27  ;;  %v1232_v6 = vpop.f32.mrf.mxu0 }
  0xef   : > { %v886_v0 = vsel %vm227_vm0, %v884_v62, 0  ;;  %v1022_v12 = vpack.c.bf16 %v1232_v6, %v1232_v6 }
  0xf0   : > { %v316_v8 = vpop.f32.mrf.mxu0 }
  0xf1   : > { %v930_v10 = vpack.c.bf16 %v316_v8, %v316_v8  ;;  %v1024_v13 = vsel %vm227_vm0, %v1022_v12, 0 }
  0xf3   : > { %1254 = vmatmul.mubr.msk.bf16.vlgmr.msra.gmra.mxu1 %vm202_vm1, %v1425_v34  ;;  %1284 = vmatmul.mubr.msk.bf16.vlgmr.msra.gmra.mxu0 %vm202_vm1, %v1425_v34  ;;  %v932_v11 = vsel %vm227_vm0, %v930_v10, 0 }
  0xf4   : > { %1264 = vmatpush3.bf16.msra.mxu1 %v564_v59  ;;  %1265 = vmatprep.mubr.msk.bf16.mxu1 %vm1349_vm2, %v1348_v27 }
  0xf5   : > { %1275 = vmatprep.subr.bf16.mxu1 %v1348_v27  ;;  %1294 = vmatpush3.bf16.msra.mxu0 %v794_v60 }
  0xf6   : > { %1295 = vmatprep.mubr.msk.bf16.mxu0 %vm1349_vm2, %v1348_v27  ;;  %1305 = vmatprep.subr.bf16.mxu0 %v1348_v27 }
  0xfb   : > { %1266 = vmatmul.mubr.msk.bf16.vlgmr.msra.gmra.mxu1 %vm202_vm1, %v1425_v34  ;;  %1296 = vmatmul.mubr.msk.bf16.vlgmr.msra.gmra.mxu0 %vm202_vm1, %v1425_v34 }
  0xfc   : > { %1276 = vmatpush3.bf16.msra.mxu1 %v656_v1  ;;  %1277 = vmatprep.mubr.msk.bf16.mxu1 %vm1349_vm2, %v1348_v27 }
  0xfd   : > { %1287 = vmatprep.subr.bf16.mxu1 %v1348_v27  ;;  %1306 = vmatpush3.bf16.msra.mxu0 %v886_v0 }
  0xfe   : > { %1307 = vmatprep.mubr.msk.bf16.mxu0 %vm1349_vm2, %v1348_v27  ;;  %1317 = vmatprep.subr.bf16.mxu0 %v1348_v27 }
 0x103   : > { %1278 = vmatmul.mubr.msk.bf16.vlgmr.msra.gmra.mxu1 %vm202_vm1, %v1425_v34  ;;  %1308 = vmatmul.mubr.msk.bf16.vlgmr.msra.gmra.mxu0 %vm202_vm1, %v1425_v34 }
 0x104   : > { %1288 = vmatpush3.bf16.msra.mxu1 %v748_v4  ;;  %1289 = vmatprep.mubr.msk.bf16.mxu1 %vm1349_vm2, %v1348_v27 }
 0x105   : > { %1299 = vmatprep.subr.bf16.mxu1 %v1348_v27  ;;  %1318 = vmatpush3.bf16.msra.mxu0 %v978_v5 }
 0x106   : > { %1319 = vmatprep.mubr.msk.bf16.mxu0 %vm1349_vm2, %v1348_v27 }
 0x10b   : > { %1290 = vmatmul.mubr.msk.bf16.vlgmr.msra.gmra.mxu1 %vm202_vm1, %v1425_v34  ;;  %1320 = vmatmul.mubr.msk.bf16.vlgmr.msra.gmra.mxu0 %vm202_vm1, %v1425_v34 }
 0x10c   : > { %1300 = vmatpush3.bf16.msra.mxu1 %v840_v9  ;;  %1301 = vmatprep.mubr.msk.bf16.mxu1 %vm1349_vm2, %v1348_v27 }
 0x10d   : > { %1311 = vmatprep.subr.bf16.mxu1 %v1348_v27 }
 0x113   : > { %1302 = vmatmul.mubr.msk.bf16.vlgmr.msra.gmra.mxu1 %vm202_vm1, %v1425_v34 }
 0x114   : > { %1312 = vmatpush3.bf16.msra.mxu1 %v932_v11  ;;  %1313 = vmatprep.mubr.msk.bf16.mxu1 %vm1349_vm2, %v1348_v27 }
 0x115   : > { %1323 = vmatprep.subr.bf16.mxu1 %v1348_v27 }
 0x11b   : > { %1314 = vmatmul.mubr.msk.bf16.vlgmr.msra.gmra.mxu1 %vm202_vm1, %v1425_v34 }
 0x11c   : > { %1324 = vmatpush3.bf16.msra.mxu1 %v1024_v13  ;;  %1325 = vmatprep.mubr.msk.bf16.mxu1 %vm1349_vm2, %v1348_v27 }
 0x123   : > { %1326 = vmatmul.mubr.msk.bf16.vlgmr.msra.gmra.mxu1 %vm202_vm1, %v1425_v34 }
 0x19b   : > { %v370_v14 = vpop.f32.mrf.mxu1 }
 0x19c   : > { %377 = vst.msk [vmem:[%s1520_s26] sm:$0x3] %vm376_vm3, %v370_v14 }
 0x19d   : > { %v1237_v15 = vpop.f32.mrf.mxu1 }
 0x19f   : > { %v373_v16 = vpop.f32.mrf.mxu1 }
 0x1a1   : > { %v1238_v17 = vpop.f32.mrf.mxu1 }
 0x1a3   : > { %v416_v18 = vpop.f32.mrf.mxu1  ;;  %v554_v19 = vpop.f32.mrf.mxu0 }
 0x1a4   : > { %1143 = vst.msk [vmem:[%s1520_s26 + $0x2] sm:$0x3] %vm376_vm3, %v416_v18  ;;  %1149 = vst.msk [vmem:[%s1520_s26 + $0x8] sm:$0x3] %vm376_vm3, %v554_v19 }
 0x1a5   : > { %v1243_v20 = vpop.f32.mrf.mxu1  ;;  %v1261_v21 = vpop.f32.mrf.mxu0 }
 0x1a7   : > { %v419_v22 = vpop.f32.mrf.mxu1  ;;  %v557_v23 = vpop.f32.mrf.mxu0 }
 0x1a9   : > { %v1244_v24 = vpop.f32.mrf.mxu1  ;;  %v1262_v25 = vpop.f32.mrf.mxu0 }
 0x1ab   : > { %v462_v26 = vpop.f32.mrf.mxu1  ;;  %v646_v27 = vpop.f32.mrf.mxu0 }
 0x1ac   : > { %1145 = vst.msk [vmem:[%s1520_s26 + $0x4] sm:$0x3] %vm376_vm3, %v462_v26  ;;  %1153 = vst.msk [vmem:[%s1520_s26 + $0xc] sm:$0x3] %vm376_vm3, %v646_v27 }
 0x1ad   : > { %v1249_v28 = vpop.f32.mrf.mxu1  ;;  %v1273_v29 = vpop.f32.mrf.mxu0 }
 0x1af   : > { %v465_v30 = vpop.f32.mrf.mxu1  ;;  %v649_v31 = vpop.f32.mrf.mxu0 }
 0x1b1   : > { %v1250_v32 = vpop.f32.mrf.mxu1  ;;  %v1274_v33 = vpop.f32.mrf.mxu0 }
 0x1b3   : > { %v508_v34 = vpop.f32.mrf.mxu1  ;;  %v738_v35 = vpop.f32.mrf.mxu0 }
 0x1b4   : > { %1147 = vst.msk [vmem:[%s1520_s26 + $0x6] sm:$0x3] %vm376_vm3, %v508_v34  ;;  %1157 = vst.msk [vmem:[%s1520_s26 + $0x10] sm:$0x3] %vm376_vm3, %v738_v35 }
 0x1b5   : > { %v1255_v36 = vpop.f32.mrf.mxu1  ;;  %v1285_v37 = vpop.f32.mrf.mxu0 }
 0x1b7   : > { %v511_v38 = vpop.f32.mrf.mxu1  ;;  %v741_v39 = vpop.f32.mrf.mxu0 }
 0x1b9   : > { %v1256_v40 = vpop.f32.mrf.mxu1  ;;  %v1286_v41 = vpop.f32.mrf.mxu0 }
 0x1bb   : > { %v600_v42 = vpop.f32.mrf.mxu1  ;;  %v830_v43 = vpop.f32.mrf.mxu0 }
 0x1bc   : > { %1151 = vst.msk [vmem:[%s1520_s26 + $0xa] sm:$0x3] %vm376_vm3, %v600_v42  ;;  %1161 = vst.msk [vmem:[%s1520_s26 + $0x14] sm:$0x3] %vm376_vm3, %v830_v43 }
 0x1bd   : > { %v1267_v44 = vpop.f32.mrf.mxu1  ;;  %v1297_v45 = vpop.f32.mrf.mxu0 }
 0x1bf   : > { %v603_v46 = vpop.f32.mrf.mxu1  ;;  %v833_v47 = vpop.f32.mrf.mxu0 }
 0x1c1   : > { %v1268_v48 = vpop.f32.mrf.mxu1  ;;  %v1298_v49 = vpop.f32.mrf.mxu0 }
 0x1c3   : > { %v692_v50 = vpop.f32.mrf.mxu1  ;;  %v922_v51 = vpop.f32.mrf.mxu0 }
 0x1c4   : > { %1155 = vst.msk [vmem:[%s1520_s26 + $0xe] sm:$0x3] %vm376_vm3, %v692_v50  ;;  %1165 = vst.msk [vmem:[%s1520_s26 + $0x18] sm:$0x3] %vm376_vm3, %v922_v51 }
 0x1c5   : > { %v1279_v52 = vpop.f32.mrf.mxu1  ;;  %v1309_v53 = vpop.f32.mrf.mxu0 }
 0x1c7   : > { %v695_v54 = vpop.f32.mrf.mxu1  ;;  %v925_v55 = vpop.f32.mrf.mxu0 }
 0x1c9   : > { %v1280_v56 = vpop.f32.mrf.mxu1  ;;  %v1310_v57 = vpop.f32.mrf.mxu0 }
 0x1cb   : > { %v784_v58 = vpop.f32.mrf.mxu1  ;;  %v1014_v59 = vpop.f32.mrf.mxu0 }
 0x1cc   : > { %1159 = vst.msk [vmem:[%s1520_s26 + $0x12] sm:$0x3] %vm376_vm3, %v784_v58  ;;  %1169 = vst.msk [vmem:[%s1520_s26 + $0x1c] sm:$0x3] %vm376_vm3, %v1014_v59 }
 0x1cd   : > { %v1291_v60 = vpop.f32.mrf.mxu1  ;;  %v1321_v61 = vpop.f32.mrf.mxu0 }
 0x1cf   : > { %v787_v62 = vpop.f32.mrf.mxu1  ;;  %v1017_v63 = vpop.f32.mrf.mxu0 }
 0x1d1   : > { %v1292_v0 = vpop.f32.mrf.mxu1  ;;  %v1322_v1 = vpop.f32.mrf.mxu0 }
 0x1d3   : > { %v876_v2 = vpop.f32.mrf.mxu1 }
 0x1d4   : > { %1163 = vst.msk [vmem:[%s1520_s26 + $0x16] sm:$0x3] %vm376_vm3, %v876_v2 }
 0x1d5   : > { %v1303_v3 = vpop.f32.mrf.mxu1 }
 0x1d7   : > { %v879_v4 = vpop.f32.mrf.mxu1 }
 0x1d9   : > { %v1304_v5 = vpop.f32.mrf.mxu1 }
 0x1db   : > { %v968_v6 = vpop.f32.mrf.mxu1 }
 0x1dc   : > { %1167 = vst.msk [vmem:[%s1520_s26 + $0x1a] sm:$0x3] %vm376_vm3, %v968_v6 }
 0x1dd   : > { %v1315_v7 = vpop.f32.mrf.mxu1 }
 0x1df   : > { %v971_v8 = vpop.f32.mrf.mxu1 }
 0x1e1   : > { %v1316_v9 = vpop.f32.mrf.mxu1 }
 0x1e3   : > { %v1060_v10 = vpop.f32.mrf.mxu1 }
 0x1e4   : > { %1171 = vst.msk [vmem:[%s1520_s26 + $0x1e] sm:$0x3] %vm376_vm3, %v1060_v10 }
 0x1e5   : > { %v1327_v11 = vpop.f32.mrf.mxu1 }
 0x1e7   : > { %v1063_v12 = vpop.f32.mrf.mxu1 }
 0x1e9   : > { %v1328_v13 = vpop.f32.mrf.mxu1 }
 0x1ea PF: > { %s13_s12 = sadd.s32 1, %s1346_s12  }
 0x1eb   : > { %p10_p4 = scmp.ge.s32.totalorder %s13_s12, 6  }
 0x1ed   :  { %12 = sbr.rel (!%p10_p4) target bundleno = 1 (0x1), region = 77 }

// kernel: _lambda_.34
= control target key start
LH: loop header
LB: loop body
LE: loop exit
PB: predicated region body
PF: predicated region fallthrough
CT: control target
= control target key end

     0   :  { %s1539_s0 = inlined_call_operand.vmem [shape: f32[2,8,32], index: 0, kind: input, shape index: {}]   ;;  %s1540_s1 = inlined_call_operand.vmem [shape: bf16[2,32,4], index: 1, kind: input, shape index: {}]   ;;  %s1541_s2 = inlined_call_operand.vmem [shape: f32[1,32], index: 2, kind: input, shape index: {}]   ;;  %s1542_s3 = inlined_call_operand.vmem [shape: f32[1,32], index: 3, kind: input, shape index: {}]   ;;  %s1543_s4 = inlined_call_operand.vmem [shape: bf16[32,128], index: 4, kind: input, shape index: {}]   ;;  %s1544_s5 = inlined_call_operand.vmem [shape: f32[1,128], index: 5, kind: input, shape index: {}]   ;;  %s1545_s6 = inlined_call_operand.vmem [shape: bf16[32,32], index: 6, kind: input, shape index: {}]   ;;  %s1546_s7 = inlined_call_operand.vmem [shape: f32[1,32], index: 7, kind: input, shape index: {}]   ;;  %s1547_s8 = inlined_call_operand.vmem [shape: bf16[32,32], index: 8, kind: input, shape index: {}]   ;;  %s1548_s9 = inlined_call_operand.vmem [shape: f32[1,32], index: 9, kind: input, shape index: {}]   ;;  %s1549_s10 = inlined_call_operand.vmem [shape: bf16[32,32], index: 10, kind: input, shape index: {}]   ;;  %s1550_s11 = inlined_call_operand.vmem [shape: f32[1,32], index: 11, kind: input, shape index: {}]   ;;  %s1551_s12 = inlined_call_operand.hbm [shape: f32[2,8,128], index: 12, kind: output, shape index: {0}]   ;;  %s1552_s13 = inlined_call_operand.vmem [shape: s8[2,8,4], index: 13, kind: output, shape index: {1}]  }
   0x1   :  { %1556 = sst [smem:[#allocation10_spill]] %s1539_s0 }
   0x2   :  { %1557 = sst [smem:[#allocation11_spill]] %s1540_s1 }
   0x3   :  { %1558 = sst [smem:[#allocation12_spill]] %s1541_s2 }
   0x4   :  { %19 = vsyncpa [#allocation4], 0 }
   0x5   :  { %21 = vsyncpa [#allocation4 + $0x1], 0  ;;  %s1341_s25 = smov 0   ;;  %s1343_s26 = smov 0  }
   0x6   :  { %s1345_s27 = smov 0   ;;  %s1347_s28 = smov 0  }
   0x7   :  { %s1349_s29 = smov 0   ;;  %s1351_s30 = smov 0  }
   0x8 LB: > { %1559 = sst [smem:[#allocation6_spill]] %s1252_s27  ;;  %s1025_s14 = sadd.s32 4294967295, %s1264_s30   ;;  %s1264_s30 = sphi %s1351_s30, %s27_s30   ;;  %s1260_s29 = sphi %s1349_s29, %s1571_s29   ;;  %s1256_s28 = sphi %s1347_s28, %s1570_s28   ;;  %s1252_s27 = sphi %s1345_s27, %s1569_s27   ;;  %s1248_s26 = sphi %s1343_s26, %s1573_s26   ;;  %s1244_s25 = sphi %s1341_s25, %s1572_s25  }
   0x9   : > { %1560 = sst [smem:[#allocation7_spill]] %s1260_s29  ;;  %s1026_s15 = sadd.s32 4294967294, %s1264_s30  }
   0xa   : > { %s39_s16 = sadd.s32 1, %s1260_s29  ;;  %s310_s17 = sadd.s32 1, %s1252_s27 }
   0xb   : > { %p41_p0 = scmp.ge.s32.totalorder %s39_s16, 2  ;;  %p320_p1 = scmp.ne.s32.totalorder %s1252_s27, %s1248_s26 }
   0xc   : > { %p321_p2 = scmp.eq.s32.totalorder %s1025_s14, 1  ;;  %p326_p3 = scmp.ne.s32.totalorder %s1248_s26, %s1244_s25 }
   0xd   : > { %s1575_s16 = smov (%p41_p0, %s39_s16), 0  ;;  %p327_p5 = scmp.eq.s32.totalorder %s1026_s15, 1 }
   0xe   : > { %1561 = sst [smem:[#allocation8_spill]] %s1575_s16  ;;  %p1381_p4 = por %p321_p2, %p320_p1 }
   0xf   : > { %s307_s19 = ssub.s32 %s1260_s29, %s1575_s16  ;;  %p1029_p6 = scmp.ge.s32.totalorder %s1264_s30, 1 }
  0x10   : > { %p308_p7 = scmp.eq.s32.totalorder %s307_s19, 0  ;;  %p1388_p8 = por %p327_p5, %p326_p3 }
  0x11   : > { %p421_p9 = scmp.lt.s32.totalorder %s1264_s30, 3 }
  0x12   : > { %s1394_s21 = scalar_select %p308_p7, %s1252_s27, %s310_s17  }
  0x13   : > { %p422_p10 = pnand %p1029_p6, %p421_p9 }
  0x14   : > { %1564 = sst [smem:[#allocation9_spill]] %s1394_s21  ;;  %p479_p11 = scmp.lt.s32.totalorder (!%p422_p10), %s1256_s28, 1 }
  0x15   : > { %425 = sbr.rel (%p422_p10) target bundleno = 1287 (0x507), region = 68  ;;  %s1565_s0 = sld [smem:[#allocation10_spill]] (!%p422_p10) }
  0x16   : > { %s1566_s1 = sld [smem:[#allocation11_spill]] (!%p422_p10)  ;;  %s467_s21 = sand.u32 (!%p422_p10), 1, %s1248_s26  }
  0x17   : > { %s1567_s2 = sld [smem:[#allocation12_spill]] (!%p422_p10)  ;;  %s886_s29 = scalar_lea.sflag (!%p422_p10), [#allocation4], %s467_s21 }
  0x1a   : > { %s1398_s22 = scalar_select %p479_p11, %s1256_s28, 1  ;;  %vm508_vm0 = vcmask 261120   ;;  %v1176_v7 = vld [vmem:[%s1543_s4 + $0x8] sm:$0xff]   ;;  %v1266_v9 = vmov 0.0   ;;  %v1178_v10 = vld [vmem:[%s1543_s4] sm:$0xff]   ;;  %vm1267_vm1 = vmmov 0  }
  0x1b   : > { %v1177_v8 = vld [vmem:[%s1545_s6 + $0x8] sm:$0xff]   ;;  %1077 = vmatprep.subr.bf16.mxu0 %v1266_v9  ;;  %1085 = vmatprep.subr.bf16.mxu1 %v1266_v9  ;;  %v1179_v11 = vld [vmem:[%s1545_s6] sm:$0xff]   ;;  %vm871_vm2 = vcmask 31744  }
  0x1c   : > { %s1031_s23 = sshll.u32 %s1398_s22, 3  ;;  %s1061_s24 = sshll.u32 %s1398_s22, 4  ;;  %1078 = vmatpush3.bf16.msra.mxu0 %v1176_v7  ;;  %1086 = vmatpush3.bf16.msra.mxu1 %v1177_v8  ;;  %v1036_v18 = vld [vmem:[%s1542_s3] ss:$0 sm:$0xff]  ;;  %v1180_v21 = vld [vmem:[%s1547_s8 + $0x8] sm:$0xff]  }
  0x1d   : > { %s482_s19 = scalar_lea.vmem %s1565_s0, %s1031_s23  ;;  %s1408_s17 = scalar_lea.vmem %s1566_s1, %s1061_s24  ;;  %1079 = vmatprep.subr.bf16.mxu0 %v1266_v9  ;;  %1087 = vmatprep.subr.bf16.mxu1 %v1266_v9  ;;  %v1035_v16 = vld [vmem:[%s1567_s2] ss:$0 sm:$0xff]  ;;  %v1182_v24 = vld [vmem:[%s1549_s10 + $0x8] sm:$0xff]  }
  0x1e   : > { %v505_v0 = vld [vmem:[%s482_s19] sm:$0xff]  ;;  %1081 = vmatprep.mubr.msk.bf16.mxu0 %vm1267_vm1, %v1266_v9  ;;  %1089 = vmatprep.mubr.msk.bf16.mxu1 %vm1267_vm1, %v1266_v9  ;;  %s1461_s19 = sshll.u32 %s467_s21, 3  ;;  %v1184_v48 = vld [vmem:[%s1408_s17 + $0x8] sm:$0xff]   ;;  %s1268_s0 = smov [#allocation3]  }
  0x1f   : > { %v509_v1 = vsel %vm508_vm0, %v505_v0, 0.0  ;;  %v1181_v23 = vld [vmem:[%s1547_s8] sm:$0xff]   ;;  %s469_s24 = scalar_lea.vmem [#allocation3], %s1461_s19  ;;  %s1192_s1 = sshll.u32 %s1268_s0, 4  ;;  %s1193_s1 = int_to_ptr.vmem [resolvable:$false] %s1192_s1 }
  0x20   : > { %510 = vadd.xlane.f32.xlu0 %v509_v1  ;;  %1080 = vmatpush3.bf16.msra.mxu0 %v1178_v10  ;;  %v1037_v25 = vld [vmem:[%s1544_s5] ss:$0 sm:$0xff]  ;;  %s906_s15 = sshll.u32 %s469_s24, 4  ;;  %s1194_s2 = scalar_lea.vmem %s1193_s1, 256  ;;  %s907_s15 = int_to_ptr.vmem [resolvable:$true] %s906_s15 }
  0x21   : > { %1088 = vmatpush3.bf16.msra.mxu1 %v1179_v11  ;;  %1093 = vmatprep.subr.bf16.mxu0 %v1266_v9  ;;  %v1041_v26 = vld [vmem:[%s1546_s7] ss:$0 sm:$0xff]  ;;  %s1188_s16 = scalar_lea.vmem %s907_s15, 128  ;;  %p1195_p1 = scmp.lt.s32.totalorder %s907_s15, %s1193_s1 }
  0x22   : > { %1101 = vmatprep.subr.bf16.mxu1 %v1266_v9  ;;  %v1183_v39 = vld [vmem:[%s1549_s10] sm:$0xff]   ;;  %p1189_p12 = scmp.ne.s32.totalorder %s907_s15, %s1188_s16  ;;  %p1196_p2 = scmp.lt.s32.totalorder %s1194_s2, %s1188_s16 }
  0x23   : > { %v1045_v40 = vld [vmem:[%s1548_s9] ss:$0 sm:$0xff] }
  0x24   : > { %v1185_v49 = vld [vmem:[%s1408_s17] sm:$0xff]   ;;  %s1058_s17 = sshll.u32 %s1256_s28, 7  ;;  %p1190_p13 = pnand %p1189_p12, %p1381_p4 }
  0x25   : > { %v1049_v50 = vld [vmem:[%s1550_s11] ss:$0 sm:$0xff]  ;;  %s904_s14 = scalar_lea.hbm %s1551_s12, %s1058_s17  ;;  %p1197_p3 = por %p1196_p2, %p1195_p1 }
  0x26   : > { %p1191_p0 = pneg %p1190_p13 }
  0x28   : > { %p1198_p5 = pnand %p1197_p3, %p1191_p0 }
  0xa9   : > { %v511_v2 = vpop.xlane.xlu0 %510 }
  0xaa   : > { %v513_v3 = vmul.f32 0.03125, %v511_v2 }
  0xac   : > { %v514_v4 = vsub.f32 %v505_v0, %v513_v3 }
  0xae   : > { %v515_v5 = vmul.f32 %v514_v4, %v514_v4 }
  0xb0   : > { %v516_v6 = vsel %vm508_vm0, %v515_v5, 0.0 }
  0xb1   : > { %517 = vadd.xlane.f32.xlu0 %v516_v6 }
 0x13a   : > { %v518_v12 = vpop.xlane.xlu0 %517 }
 0x13b   : > { %v519_v13 = vmul.f32 0.03125, %v518_v12 }
 0x13d   : > { %v520_v14 = vadd.f32 1e-05, %v519_v13 }
 0x13f   : > { %1186 = vrsqrt.f32 %v520_v14 }
 0x14c   : > { %v1187_v15 = vpop.eup %1186 }
 0x14d   : > { %v522_v17 = vmul.f32 %v1187_v15, %v514_v4 }
 0x14f   : > { %v529_v19 = vmul.f32 %v1035_v16, %v522_v17 }
 0x151   : > { %v536_v20 = vadd.f32 %v1036_v18, %v529_v19 }
 0x153   : > { %v541_v22 = vpack.c.bf16 %v536_v20, %v536_v20 }
 0x155   : > { %1082 = vmatmul.mubr.msk.bf16.vlgmr.msra.gmra.mxu0 %vm508_vm0, %v541_v22  ;;  %1090 = vmatmul.mubr.msk.bf16.vlgmr.msra.gmra.mxu1 %vm508_vm0, %v541_v22 }
 0x156   : > { %1094 = vmatpush3.bf16.msra.mxu0 %v1180_v21  ;;  %1097 = vmatprep.mubr.msk.bf16.mxu0 %vm1267_vm1, %v1266_v9 }
 0x157   : > { %1095 = vmatprep.subr.bf16.mxu0 %v1266_v9  ;;  %1105 = vmatprep.mubr.msk.bf16.mxu1 %vm1267_vm1, %v1266_v9 }
 0x158   : > { %1102 = vmatpush3.bf16.msra.mxu1 %v1182_v24 }
 0x159   : > { %1103 = vmatprep.subr.bf16.mxu1 %v1266_v9 }
 0x15a   : > { %1096 = vmatpush3.bf16.msra.mxu0 %v1181_v23 }
 0x15b   : > { %1109 = vmatprep.subr.bf16.mxu0 %v1266_v9 }
 0x15c   : > { %1104 = vmatpush3.bf16.msra.mxu1 %v1183_v39 }
 0x215   : > { %v598_v27 = vpop.f32.mrf.mxu0  ;;  %v662_v28 = vpop.f32.mrf.mxu1 }
 0x216   : > { %v599_v29 = vadd.f32 %v1037_v25, %v598_v27  ;;  %v663_v30 = vadd.f32 %v1041_v26, %v662_v28 }
 0x217   : > { %v1083_v31 = vpop.f32.mrf.mxu0  ;;  %v1091_v32 = vpop.f32.mrf.mxu1 }
 0x218   : > { %604 = vst [vmem:[%s469_s24] sm:$0xff] %v599_v29  ;;  %v668_v33 = vmax.f32 %v663_v30, 0.0 }
 0x219   : > { %v601_v34 = vpop.f32.mrf.mxu0  ;;  %v665_v35 = vpop.f32.mrf.mxu1 }
 0x21a   : > { %v673_v36 = vpack.c.bf16 %v668_v33, %v668_v33 }
 0x21b   : > { %v1084_v37 = vpop.f32.mrf.mxu0  ;;  %v1092_v38 = vpop.f32.mrf.mxu1 }
 0x21c   : > { %1098 = vmatmul.mubr.msk.bf16.vlgmr.msra.gmra.mxu0 %vm508_vm0, %v673_v36 }
 0x21d   : > { %1113 = vmatprep.mubr.msk.bf16.mxu0 %vm1267_vm1, %v1266_v9  ;;  %1110 = vmatpush3.bf16.msra.mxu0 %v1184_v48 }
 0x21e   : > { %1111 = vmatprep.subr.bf16.mxu0 %v1266_v9 }
 0x221   : > { %1112 = vmatpush3.bf16.msra.mxu0 %v1185_v49 }
 0x2dc   : > { %v730_v41 = vpop.f32.mrf.mxu0 }
 0x2dd   : > { %v731_v42 = vadd.f32 %v1045_v40, %v730_v41 }
 0x2de   : > { %v1099_v43 = vpop.f32.mrf.mxu0 }
 0x2df   : > { %v736_v44 = vmax.f32 %v731_v42, 0.0 }
 0x2e0   : > { %v733_v45 = vpop.f32.mrf.mxu0 }
 0x2e1   : > { %v741_v46 = vpack.c.bf16 %v736_v44, %v736_v44 }
 0x2e2   : > { %v1100_v47 = vpop.f32.mrf.mxu0 }
 0x2e3   : > { %1106 = vmatmul.mubr.msk.bf16.vlgmr.msra.gmra.mxu1 %vm508_vm0, %v741_v46 }
 0x3a3   : > { %v798_v51 = vpop.f32.mrf.mxu1 }
 0x3a4   : > { %v799_v52 = vadd.f32 %v1049_v50, %v798_v51 }
 0x3a5   : > { %v1107_v53 = vpop.f32.mrf.mxu1 }
 0x3a6   : > { %v804_v54 = vmax.f32 %v799_v52, 0.0 }
 0x3a7   : > { %v801_v55 = vpop.f32.mrf.mxu1 }
 0x3a8   : > { %805 = vst.msk [vmem:[#allocation2] sm:$0xff] %vm508_vm0, %v804_v54 }
 0x3a9   : > { %v1108_v56 = vpop.f32.mrf.mxu1 }
 0x3af   : > { %v806_v57 = vld [vmem:[#allocation2] sm:$0xff] }
 0x3b0   : > { %v811_v58 = vpack.c.bf16 %v806_v57, %v806_v57 }
 0x3b2   : > { %1114 = vmatmul.mubr.msk.bf16.vlgmr.msra.gmra.mxu0 %vm508_vm0, %v811_v58 }
 0x472   : > { %v862_v59 = vpop.f32.mrf.mxu0 }
 0x473   : > { %vm868_vm3 = vcmp.lt.f32.partialorder %v862_v59, 0.0 }
 0x474   : > { %v1115_v60 = vpop.f32.mrf.mxu0  ;;  %v1056_v61 = vsel %vm868_vm3, 1.0, %v1266_v9 }
 0x475   : > { %v872_v62 = vsel %vm871_vm2, %v1056_v61, 0.0 }
 0x476   : > { %873 = vadd.xlane.f32.xlu1 %v872_v62  ;;  %v865_v63 = vpop.f32.mrf.mxu0 }
 0x478   : > { %v1116_v0 = vpop.f32.mrf.mxu0 }
 0x479   : > { %1201 = shalt.err (!%p1198_p5)
}
 0x47a   : > { %s1202_s28 = scalar_lea.hbm %s904_s14, 128  ;;  %s1206_s24 = scalar_lea.hbm %s1551_s12, 256 }
 0x47b   : > { %p1203_p6 = scmp.ne.s32.totalorder %s904_s14, %s1202_s28  ;;  %p1207_p10 = scmp.lt.s32.totalorder %s904_s14, %s1551_s12 }
 0x47c   : > { %p1208_p11 = scmp.lt.s32.totalorder %s1206_s24, %s1202_s28 }
 0x47d   : > { %p1204_p7 = pnand %p1203_p6, %p1381_p4 }
 0x47e   : > { %p1209_p12 = por %p1208_p11, %p1207_p10 }
 0x47f   : > { %p1205_p9 = pneg %p1204_p7 }
 0x481   : > { %p1210_p13 = pnand %p1209_p12, %p1205_p9 }
 0x483   : > { %1213 = shalt.err (!%p1210_p13)
}
 0x484   : > { %1117 = dma.vmem_to_hbm [thread:$0]  (%p1381_p4), %s907_s15, 128, %s904_s14, %s886_s29   ;;  %vm1269_vm5 = vmmov 1   ;;  %vm883_vm8 = vcmask 25600   ;;  %v1270_v2 = vmov 0  }
 0x485   : > { %s1034_s0 = sshll.u32 %s1398_s22, 1 }
 0x486   : > { %s497_s23 = scalar_lea.vmem %s1552_s13, %s1034_s0 }
 0x4ff   : > { %v874_v1 = vpop.xlane.xlu1 %873 }
 0x500   : > { %vm875_vm4 = vcmp.ge.f32.partialorder %v874_v1, 3.5 }
 0x501   : > { %vm876_vm6 = vmxor %vm875_vm4, %vm1269_vm5 }
 0x502   : > { %vm879_vm7 = vmand %vm868_vm3, %vm876_vm6 }
 0x503   : > { %vm880_vm9 = vmpackc.low %vm879_vm7, %vm879_vm7 }
 0x504   : > { %vm881_vm10 = vmpackc.even %vm880_vm9, %vm880_vm9 }
 0x505   : > { %v882_v3 = vsel %vm881_vm10, 16843009, %v1270_v2 }
 0x506   : > { %884 = vst.msk [vmem:[%s497_s23] sm:$0x3] %vm883_vm8, %v882_v3 }
 0x507 PF: > { %p1123_p4 = scmp.ge.s32.totalorder %s1264_s30, 2  ;;  %s921_s18 = sand.u32 1, %s1244_s25  }
 0x508   : > { %s922_s22 = scalar_lea.sflag [#allocation4], %s921_s18 }
 0x509   : > { %p1120_p0 = pnand %p1123_p4, %p1388_p8 }
 0x50b   : > { %p1121_p1 = pneg %p1120_p0 }
 0x50d   : > { %1239 = dma.done.wait (%p1121_p1), %s922_s22, 128  }
 0x50e   : > { %1241 = vsyncadd (%p1121_p1), %s922_s22, 4294967168  ;;  %s27_s30 = sadd.s32 1, %s1264_s30   ;;  %s1568_s15 = sld [smem:[#allocation6_spill]] }
 0x50f   : > { %p24_p2 = scmp.ge.s32.totalorder %s27_s30, 4   ;;  %s1569_s27 = sld [smem:[#allocation9_spill]] }
 0x510   : > { %s1570_s28 = sld [smem:[#allocation7_spill]]  ;;  %s1572_s25 = smov %s1248_s26 }
 0x511   : > { %s1571_s29 = sld [smem:[#allocation8_spill]]  ;;  %26 = sbr.rel (!%p24_p2) target bundleno = 8 (0x8), region = 122 }
 0x514   : > { %s1573_s26 = smov %s1568_s15 }
 0x516   :  { %937 = vsyncpa [#allocation4], 1 }
 0x517   :  { %939 = vsyncpa [#allocation4 + $0x1], 1 }

// kernel: _lambda_.40
= control target key start
LH: loop header
LB: loop body
LE: loop exit
PB: predicated region body
PF: predicated region fallthrough
CT: control target
= control target key end

     0   :  { %s1517_s0 = inlined_call_operand.vmem [shape: f32[2,8,32], index: 0, kind: input, shape index: {}]   ;;  %s1518_s1 = inlined_call_operand.vmem [shape: bf16[2,32,64], index: 1, kind: input, shape index: {}]   ;;  %s1519_s2 = inlined_call_operand.vmem [shape: f32[1,32], index: 2, kind: input, shape index: {}]   ;;  %s1520_s3 = inlined_call_operand.vmem [shape: f32[1,32], index: 3, kind: input, shape index: {}]   ;;  %s1521_s4 = inlined_call_operand.vmem [shape: bf16[32,128], index: 4, kind: input, shape index: {}]   ;;  %s1522_s5 = inlined_call_operand.vmem [shape: f32[1,128], index: 5, kind: input, shape index: {}]   ;;  %s1523_s6 = inlined_call_operand.vmem [shape: bf16[32,32], index: 6, kind: input, shape index: {}]   ;;  %s1524_s7 = inlined_call_operand.vmem [shape: f32[1,32], index: 7, kind: input, shape index: {}]   ;;  %s1525_s8 = inlined_call_operand.vmem [shape: bf16[32,32], index: 8, kind: input, shape index: {}]   ;;  %s1526_s9 = inlined_call_operand.vmem [shape: f32[1,32], index: 9, kind: input, shape index: {}]   ;;  %s1527_s10 = inlined_call_operand.vmem [shape: bf16[32,32], index: 10, kind: input, shape index: {}]   ;;  %s1528_s11 = inlined_call_operand.vmem [shape: f32[1,32], index: 11, kind: input, shape index: {}]   ;;  %s1529_s12 = inlined_call_operand.hbm [shape: f32[2,8,128], index: 12, kind: output, shape index: {0}]   ;;  %s1530_s13 = inlined_call_operand.vmem [shape: f32[2,8,64], index: 13, kind: output, shape index: {1}]  }
   0x1   :  { %1535 = sst [smem:[#allocation10_spill]] %s1517_s0 }
   0x2   :  { %1536 = sst [smem:[#allocation11_spill]] %s1518_s1 }
   0x3   :  { %1537 = sst [smem:[#allocation12_spill]] %s1519_s2 }
   0x4   :  { %19 = vsyncpa [#allocation4], 0 }
   0x5   :  { %21 = vsyncpa [#allocation4 + $0x1], 0  ;;  %s1319_s25 = smov 0   ;;  %s1321_s26 = smov 0  }
   0x6   :  { %s1323_s27 = smov 0   ;;  %s1325_s28 = smov 0  }
   0x7   :  { %s1327_s29 = smov 0   ;;  %s1329_s30 = smov 0  }
   0x8 LB: > { %1538 = sst [smem:[#allocation6_spill]] %s1232_s27  ;;  %s1008_s14 = sadd.s32 4294967295, %s1244_s30   ;;  %s1244_s30 = sphi %s1329_s30, %s27_s30   ;;  %s1240_s29 = sphi %s1327_s29, %s1551_s29   ;;  %s1236_s28 = sphi %s1325_s28, %s1550_s28   ;;  %s1232_s27 = sphi %s1323_s27, %s1549_s27   ;;  %s1228_s26 = sphi %s1321_s26, %s1553_s26   ;;  %s1224_s25 = sphi %s1319_s25, %s1552_s25  }
   0x9   : > { %1539 = sst [smem:[#allocation7_spill]] %s1240_s29  ;;  %s1009_s15 = sadd.s32 4294967294, %s1244_s30  }
   0xa   : > { %s39_s16 = sadd.s32 1, %s1240_s29  ;;  %s310_s17 = sadd.s32 1, %s1232_s27 }
   0xb   : > { %p41_p0 = scmp.ge.s32.totalorder %s39_s16, 2  ;;  %p320_p1 = scmp.ne.s32.totalorder %s1232_s27, %s1228_s26 }
   0xc   : > { %p321_p2 = scmp.eq.s32.totalorder %s1008_s14, 1  ;;  %p326_p3 = scmp.ne.s32.totalorder %s1228_s26, %s1224_s25 }
   0xd   : > { %s1555_s16 = smov (%p41_p0, %s39_s16), 0  ;;  %p327_p5 = scmp.eq.s32.totalorder %s1009_s15, 1 }
   0xe   : > { %1540 = sst [smem:[#allocation8_spill]] %s1555_s16  ;;  %p1359_p4 = por %p321_p2, %p320_p1 }
   0xf   : > { %s307_s19 = ssub.s32 %s1240_s29, %s1555_s16  ;;  %p1012_p6 = scmp.ge.s32.totalorder %s1244_s30, 1 }
  0x10   : > { %p308_p7 = scmp.eq.s32.totalorder %s307_s19, 0  ;;  %p1366_p8 = por %p327_p5, %p326_p3 }
  0x11   : > { %p421_p9 = scmp.lt.s32.totalorder %s1244_s30, 3 }
  0x12   : > { %s1372_s21 = scalar_select %p308_p7, %s1232_s27, %s310_s17  }
  0x13   : > { %p422_p10 = pnand %p1012_p6, %p421_p9 }
  0x14   : > { %1543 = sst [smem:[#allocation9_spill]] %s1372_s21  ;;  %p479_p11 = scmp.lt.s32.totalorder (!%p422_p10), %s1236_s28, 1 }
  0x15   : > { %425 = sbr.rel (%p422_p10) target bundleno = 1145 (0x479), region = 68  ;;  %s1544_s0 = sld [smem:[#allocation10_spill]] (!%p422_p10) }
  0x16   : > { %s1545_s1 = sld [smem:[#allocation11_spill]] (!%p422_p10)  ;;  %s467_s14 = sand.u32 (!%p422_p10), 1, %s1228_s26  }
  0x17   : > { %s1546_s2 = sld [smem:[#allocation12_spill]] (!%p422_p10)  ;;  %s1441_s15 = sshll.u32 (!%p422_p10), %s467_s14, 3 }
  0x18   : > { %s469_s27 = scalar_lea.vmem (!%p422_p10), [#allocation3], %s1441_s15  ;;  %s869_s21 = scalar_lea.sflag (!%p422_p10), [#allocation4], %s467_s14 }
  0x19   : > { %s889_s16 = sshll.u32 (!%p422_p10), %s469_s27, 4  ;;  %s890_s16 = int_to_ptr.vmem [resolvable:$true] %s889_s16 }
  0x1a   : > { %s1376_s22 = scalar_select %p479_p11, %s1236_s28, 1  ;;  %vm506_vm0 = vcmask 261120   ;;  %v1156_v7 = vld [vmem:[%s1521_s4 + $0x8] sm:$0xff]   ;;  %v1246_v9 = vmov 0.0   ;;  %v1158_v10 = vld [vmem:[%s1521_s4] sm:$0xff]   ;;  %vm1247_vm1 = vmmov 0  }
  0x1b   : > { %v1157_v8 = vld [vmem:[%s1523_s6 + $0x8] sm:$0xff]   ;;  %1059 = vmatprep.subr.bf16.mxu0 %v1246_v9  ;;  %1067 = vmatprep.subr.bf16.mxu1 %v1246_v9  ;;  %v1159_v11 = vld [vmem:[%s1523_s6] sm:$0xff]  }
  0x1c   : > { %s1534_s23 = sshll.u32 %s1376_s22, 3  ;;  %s1043_s24 = sshll.u32 %s1376_s22, 4  ;;  %1060 = vmatpush3.bf16.msra.mxu0 %v1156_v7  ;;  %1068 = vmatpush3.bf16.msra.mxu1 %v1157_v8  ;;  %v1019_v18 = vld [vmem:[%s1520_s3] ss:$0 sm:$0xff]  ;;  %v1160_v21 = vld [vmem:[%s1525_s8 + $0x8] sm:$0xff]  }
  0x1d   : > { %s482_s19 = scalar_lea.vmem %s1544_s0, %s1534_s23  ;;  %s1388_s29 = scalar_lea.vmem %s1545_s1, %s1043_s24  ;;  %1061 = vmatprep.subr.bf16.mxu0 %v1246_v9  ;;  %1069 = vmatprep.subr.bf16.mxu1 %v1246_v9  ;;  %v1018_v16 = vld [vmem:[%s1546_s2] ss:$0 sm:$0xff]  ;;  %v1162_v24 = vld [vmem:[%s1527_s10 + $0x8] sm:$0xff]  }
  0x1e   : > { %v503_v0 = vld [vmem:[%s482_s19] sm:$0xff]  ;;  %1063 = vmatprep.mubr.msk.bf16.mxu0 %vm1247_vm1, %v1246_v9  ;;  %1071 = vmatprep.mubr.msk.bf16.mxu1 %vm1247_vm1, %v1246_v9  ;;  %v1164_v48 = vld [vmem:[%s1388_s29 + $0x8] sm:$0xff]   ;;  %s1168_s23 = scalar_lea.vmem %s890_s16, 128  ;;  %s1248_s0 = smov [#allocation3]  }
  0x1f   : > { %v507_v1 = vsel %vm506_vm0, %v503_v0, 0.0  ;;  %v1161_v23 = vld [vmem:[%s1525_s8] sm:$0xff]   ;;  %p1169_p12 = scmp.ne.s32.totalorder %s890_s16, %s1168_s23  ;;  %s1172_s1 = sshll.u32 %s1248_s0, 4  ;;  %s1173_s1 = int_to_ptr.vmem [resolvable:$false] %s1172_s1 }
  0x20   : > { %508 = vadd.xlane.f32.xlu0 %v507_v1  ;;  %1062 = vmatpush3.bf16.msra.mxu0 %v1158_v10  ;;  %v1020_v25 = vld [vmem:[%s1522_s5] ss:$0 sm:$0xff]  ;;  %s1174_s2 = scalar_lea.vmem %s1173_s1, 256  ;;  %p1175_p1 = scmp.lt.s32.totalorder %s890_s16, %s1173_s1 }
  0x21   : > { %1070 = vmatpush3.bf16.msra.mxu1 %v1159_v11  ;;  %1075 = vmatprep.subr.bf16.mxu0 %v1246_v9  ;;  %v1024_v26 = vld [vmem:[%s1524_s7] ss:$0 sm:$0xff]  ;;  %p1170_p13 = pnand %p1169_p12, %p1359_p4  ;;  %p1176_p2 = scmp.lt.s32.totalorder %s1174_s2, %s1168_s23 }
  0x22   : > { %1083 = vmatprep.subr.bf16.mxu1 %v1246_v9  ;;  %v1163_v39 = vld [vmem:[%s1527_s10] sm:$0xff]  }
  0x23   : > { %v1028_v40 = vld [vmem:[%s1526_s9] ss:$0 sm:$0xff]  ;;  %p1171_p0 = pneg %p1170_p13  ;;  %p1177_p3 = por %p1176_p2, %p1175_p1 }
  0x24   : > { %v1165_v49 = vld [vmem:[%s1388_s29] sm:$0xff]   ;;  %s1040_s29 = sshll.u32 %s1236_s28, 7 }
  0x25   : > { %v1032_v50 = vld [vmem:[%s1528_s11] ss:$0 sm:$0xff]  ;;  %s887_s17 = scalar_lea.hbm %s1529_s12, %s1040_s29  ;;  %p1178_p5 = pnand %p1177_p3, %p1171_p0 }
  0xa9   : > { %v509_v2 = vpop.xlane.xlu0 %508 }
  0xaa   : > { %v511_v3 = vmul.f32 0.03125, %v509_v2 }
  0xac   : > { %v512_v4 = vsub.f32 %v503_v0, %v511_v3 }
  0xae   : > { %v513_v5 = vmul.f32 %v512_v4, %v512_v4 }
  0xb0   : > { %v514_v6 = vsel %vm506_vm0, %v513_v5, 0.0 }
  0xb1   : > { %515 = vadd.xlane.f32.xlu0 %v514_v6 }
 0x13a   : > { %v516_v12 = vpop.xlane.xlu0 %515 }
 0x13b   : > { %v517_v13 = vmul.f32 0.03125, %v516_v12 }
 0x13d   : > { %v518_v14 = vadd.f32 1e-05, %v517_v13 }
 0x13f   : > { %1166 = vrsqrt.f32 %v518_v14 }
 0x14c   : > { %v1167_v15 = vpop.eup %1166 }
 0x14d   : > { %v520_v17 = vmul.f32 %v1167_v15, %v512_v4 }
 0x14f   : > { %v527_v19 = vmul.f32 %v1018_v16, %v520_v17 }
 0x151   : > { %v534_v20 = vadd.f32 %v1019_v18, %v527_v19 }
 0x153   : > { %v539_v22 = vpack.c.bf16 %v534_v20, %v534_v20 }
 0x155   : > { %1064 = vmatmul.mubr.msk.bf16.vlgmr.msra.gmra.mxu0 %vm506_vm0, %v539_v22  ;;  %1072 = vmatmul.mubr.msk.bf16.vlgmr.msra.gmra.mxu1 %vm506_vm0, %v539_v22 }
 0x156   : > { %1076 = vmatpush3.bf16.msra.mxu0 %v1160_v21  ;;  %1079 = vmatprep.mubr.msk.bf16.mxu0 %vm1247_vm1, %v1246_v9 }
 0x157   : > { %1077 = vmatprep.subr.bf16.mxu0 %v1246_v9  ;;  %1087 = vmatprep.mubr.msk.bf16.mxu1 %vm1247_vm1, %v1246_v9 }
 0x158   : > { %1084 = vmatpush3.bf16.msra.mxu1 %v1162_v24 }
 0x159   : > { %1085 = vmatprep.subr.bf16.mxu1 %v1246_v9 }
 0x15a   : > { %1078 = vmatpush3.bf16.msra.mxu0 %v1161_v23 }
 0x15b   : > { %1091 = vmatprep.subr.bf16.mxu0 %v1246_v9 }
 0x15c   : > { %1086 = vmatpush3.bf16.msra.mxu1 %v1163_v39 }
 0x215   : > { %v596_v27 = vpop.f32.mrf.mxu0  ;;  %v660_v28 = vpop.f32.mrf.mxu1 }
 0x216   : > { %v597_v29 = vadd.f32 %v1020_v25, %v596_v27  ;;  %v661_v30 = vadd.f32 %v1024_v26, %v660_v28 }
 0x217   : > { %v1065_v31 = vpop.f32.mrf.mxu0  ;;  %v1073_v32 = vpop.f32.mrf.mxu1 }
 0x218   : > { %602 = vst [vmem:[%s469_s27] sm:$0xff] %v597_v29  ;;  %v666_v33 = vmax.f32 %v661_v30, 0.0 }
 0x219   : > { %v599_v34 = vpop.f32.mrf.mxu0  ;;  %v663_v35 = vpop.f32.mrf.mxu1 }
 0x21a   : > { %v671_v36 = vpack.c.bf16 %v666_v33, %v666_v33 }
 0x21b   : > { %v1066_v37 = vpop.f32.mrf.mxu0  ;;  %v1074_v38 = vpop.f32.mrf.mxu1 }
 0x21c   : > { %1080 = vmatmul.mubr.msk.bf16.vlgmr.msra.gmra.mxu0 %vm506_vm0, %v671_v36 }
 0x21d   : > { %1095 = vmatprep.mubr.msk.bf16.mxu0 %vm1247_vm1, %v1246_v9  ;;  %1092 = vmatpush3.bf16.msra.mxu0 %v1164_v48 }
 0x21e   : > { %1093 = vmatprep.subr.bf16.mxu0 %v1246_v9 }
 0x221   : > { %1094 = vmatpush3.bf16.msra.mxu0 %v1165_v49 }
 0x2dc   : > { %v728_v41 = vpop.f32.mrf.mxu0 }
 0x2dd   : > { %v729_v42 = vadd.f32 %v1028_v40, %v728_v41 }
 0x2de   : > { %v1081_v43 = vpop.f32.mrf.mxu0 }
 0x2df   : > { %v734_v44 = vmax.f32 %v729_v42, 0.0 }
 0x2e0   : > { %v731_v45 = vpop.f32.mrf.mxu0 }
 0x2e1   : > { %v739_v46 = vpack.c.bf16 %v734_v44, %v734_v44 }
 0x2e2   : > { %v1082_v47 = vpop.f32.mrf.mxu0 }
 0x2e3   : > { %1088 = vmatmul.mubr.msk.bf16.vlgmr.msra.gmra.mxu1 %vm506_vm0, %v739_v46 }
 0x3a3   : > { %v796_v51 = vpop.f32.mrf.mxu1 }
 0x3a4   : > { %v797_v52 = vadd.f32 %v1032_v50, %v796_v51 }
 0x3a5   : > { %v1089_v53 = vpop.f32.mrf.mxu1 }
 0x3a6   : > { %v802_v54 = vmax.f32 %v797_v52, 0.0 }
 0x3a7   : > { %v799_v55 = vpop.f32.mrf.mxu1 }
 0x3a8   : > { %803 = vst.msk [vmem:[#allocation2] sm:$0xff] %vm506_vm0, %v802_v54 }
 0x3a9   : > { %v1090_v56 = vpop.f32.mrf.mxu1 }
 0x3af   : > { %v804_v57 = vld [vmem:[#allocation2] sm:$0xff] }
 0x3b0   : > { %v809_v58 = vpack.c.bf16 %v804_v57, %v804_v57 }
 0x3b2   : > { %1096 = vmatmul.mubr.msk.bf16.vlgmr.msra.gmra.mxu0 %vm506_vm0, %v809_v58 }
 0x3b3   : > { %1181 = shalt.err (!%p1178_p5)
}
 0x3b4   : > { %s1182_s28 = scalar_lea.hbm %s887_s17, 128  ;;  %s1186_s27 = scalar_lea.hbm %s1529_s12, 256 }
 0x3b5   : > { %p1183_p6 = scmp.ne.s32.totalorder %s887_s17, %s1182_s28  ;;  %p1187_p10 = scmp.lt.s32.totalorder %s887_s17, %s1529_s12 }
 0x3b6   : > { %p1188_p11 = scmp.lt.s32.totalorder %s1186_s27, %s1182_s28 }
 0x3b7   : > { %p1184_p7 = pnand %p1183_p6, %p1359_p4 }
 0x3b8   : > { %p1189_p12 = por %p1188_p11, %p1187_p10 }
 0x3b9   : > { %p1185_p9 = pneg %p1184_p7 }
 0x3bb   : > { %p1190_p13 = pnand %p1189_p12, %p1185_p9 }
 0x3bd   : > { %1193 = shalt.err (!%p1190_p13)
}
 0x3be   : > { %1099 = dma.vmem_to_hbm [thread:$0]  (%p1359_p4), %s890_s16, 128, %s887_s17, %s869_s21   ;;  %vm866_vm2 = vcmask 523264  }
 0x3bf   : > { %s1547_s0 = sshll.u32 %s1376_s22, 3 }
 0x3c0   : > { %s497_s23 = scalar_lea.vmem %s1530_s13, %s1547_s0 }
 0x472   : > { %v860_v59 = vpop.f32.mrf.mxu0 }
 0x473   : > { %867 = vst.msk [vmem:[%s497_s23] sm:$0xff] %vm866_vm2, %v860_v59 }
 0x474   : > { %v1097_v60 = vpop.f32.mrf.mxu0 }
 0x476   : > { %v863_v61 = vpop.f32.mrf.mxu0 }
 0x478   : > { %v1098_v62 = vpop.f32.mrf.mxu0 }
 0x479 PF: > { %p1105_p0 = scmp.ge.s32.totalorder %s1244_s30, 2  ;;  %s904_s19 = sand.u32 1, %s1224_s25  }
 0x47a   : > { %s905_s18 = scalar_lea.sflag [#allocation4], %s904_s19 }
 0x47b   : > { %p1102_p1 = pnand %p1105_p0, %p1366_p8 }
 0x47d   : > { %p1103_p4 = pneg %p1102_p1 }
 0x47f   : > { %1219 = dma.done.wait (%p1103_p4), %s905_s18, 128  }
 0x480   : > { %1221 = vsyncadd (%p1103_p4), %s905_s18, 4294967168  ;;  %s27_s30 = sadd.s32 1, %s1244_s30   ;;  %s1548_s22 = sld [smem:[#allocation6_spill]] }
 0x481   : > { %p24_p2 = scmp.ge.s32.totalorder %s27_s30, 4   ;;  %s1549_s27 = sld [smem:[#allocation9_spill]] }
 0x482   : > { %s1550_s28 = sld [smem:[#allocation7_spill]]  ;;  %s1552_s25 = smov %s1228_s26 }
 0x483   : > { %s1551_s29 = sld [smem:[#allocation8_spill]]  ;;  %26 = sbr.rel (!%p24_p2) target bundleno = 8 (0x8), region = 122 }
 0x486   : > { %s1553_s26 = smov %s1548_s22 }
 0x488   :  { %920 = vsyncpa [#allocation4], 1 }
 0x489   :  { %922 = vsyncpa [#allocation4 + $0x1], 1 }

// kernel: _lambda_.35
= control target key start
LH: loop header
LB: loop body
LE: loop exit
PB: predicated region body
PF: predicated region fallthrough
CT: control target
= control target key end

     0   :  { %s3153_s28 = smov 0   ;;  %s3155_s29 = smov 0   ;;  %s3579_s0 = inlined_call_operand.vmem [shape: f32[2,8,32], index: 0, kind: input, shape index: {}]   ;;  %s3580_s1 = inlined_call_operand.vmem [shape: bf16[2,4,32], index: 1, kind: input, shape index: {}]   ;;  %s3581_s2 = inlined_call_operand.vmem [shape: bf16[2,4,32], index: 2, kind: input, shape index: {}]   ;;  %s3582_s3 = inlined_call_operand.vmem [shape: s8[2,8,4], index: 3, kind: input, shape index: {}]   ;;  %s3583_s4 = inlined_call_operand.vmem [shape: bf16[32,96], index: 4, kind: input, shape index: {}]   ;;  %s3584_s5 = inlined_call_operand.vmem [shape: f32[1,96], index: 5, kind: input, shape index: {}]   ;;  %s3585_s6 = inlined_call_operand.vmem [shape: bf16[32,32], index: 6, kind: input, shape index: {}]   ;;  %s3586_s7 = inlined_call_operand.vmem [shape: f32[1,32], index: 7, kind: input, shape index: {}]   ;;  %s3587_s8 = inlined_call_operand.vmem [shape: f32[1,32], index: 8, kind: input, shape index: {}]   ;;  %s3588_s9 = inlined_call_operand.vmem [shape: f32[1,32], index: 9, kind: input, shape index: {}]   ;;  %s3589_s10 = inlined_call_operand.vmem [shape: bf16[32,96], index: 10, kind: input, shape index: {}]   ;;  %s3590_s11 = inlined_call_operand.vmem [shape: f32[1,96], index: 11, kind: input, shape index: {}]   ;;  %s3591_s12 = inlined_call_operand.vmem [shape: bf16[32,32], index: 12, kind: input, shape index: {}]   ;;  %s3592_s13 = inlined_call_operand.vmem [shape: f32[1,32], index: 13, kind: input, shape index: {}]   ;;  %s3593_s14 = inlined_call_operand.vmem [shape: f32[1,32], index: 14, kind: input, shape index: {}]   ;;  %s3594_s15 = inlined_call_operand.vmem [shape: f32[1,32], index: 15, kind: input, shape index: {}]   ;;  %s3595_s16 = inlined_call_operand.vmem [shape: bf16[32,64], index: 16, kind: input, shape index: {}]   ;;  %s3596_s17 = inlined_call_operand.vmem [shape: f32[1,64], index: 17, kind: input, shape index: {}]   ;;  %s3597_s18 = inlined_call_operand.vmem [shape: bf16[64,32], index: 18, kind: input, shape index: {}]   ;;  %s3598_s19 = inlined_call_operand.vmem [shape: f32[1,32], index: 19, kind: input, shape index: {}]   ;;  %s3599_s20 = inlined_call_operand.vmem [shape: f32[1,32], index: 20, kind: input, shape index: {}]   ;;  %s3600_s21 = inlined_call_operand.vmem [shape: f32[1,32], index: 21, kind: input, shape index: {}]   ;;  %s3601_s22 = inlined_call_operand.vmem [shape: f32[2,8,32], index: 22, kind: output, shape index: {}]  }
   0x1   :  { %3610 = sst [smem:[#allocation6_spill]] %s3579_s0 }
   0x2   :  { %3611 = sst [smem:[#allocation7_spill]] %s3580_s1 }
   0x3   :  { %3612 = sst [smem:[#allocation8_spill]] %s3581_s2 }
   0x4   :  { %3613 = sst [smem:[#allocation9_spill]] %s3582_s3  ;;  %s3151_s3 = smov 0  }
   0x5   :  { %3614 = sst [smem:[#allocation10_spill]] %s3583_s4 }
   0x6   :  { %3615 = sst [smem:[#allocation11_spill]] %s3584_s5 }
   0x7   :  { %3616 = sst [smem:[#allocation12_spill]] %s3585_s6 }
   0x8 LB: > { %s44_s30 = sadd.s32 1, %s3012_s28  ;;  %p2605_p0 = scmp.ge.s32.totalorder %s3016_s29, 1  ;;  %s3016_s29 = sphi %s3155_s29, %s32_s29   ;;  %s3012_s28 = sphi %s3153_s28, %s3631_s28   ;;  %s3008_s3 = sphi %s3151_s3, %s3630_s3  }
   0x9   : > { %p46_p1 = scmp.ge.s32.totalorder %s44_s30, 2  ;;  %p665_p2 = scmp.lt.s32.totalorder %s3016_s29, 3 }
   0xb   : > { %s3633_s30 = smov (%p46_p1, %s44_s30), 0  ;;  %p666_p3 = pnand %p2605_p0, %p665_p2 }
   0xc   : > { %s3617_s23 = sld [smem:[#allocation10_spill]] (!%p666_p3)  ;;  %s3018_s24 = smov (!%p666_p3), 96  }
   0xd   : > { %669 = sbr.rel (%p666_p3) target bundleno = 4094 (0xffe), region = 108  ;;  %p746_p4 = scmp.lt.s32.totalorder (!%p666_p3), %s3008_s3, 1 }
   0xe   : > { %s3618_s0 = sld [smem:[#allocation11_spill]] (!%p666_p3)  ;;  %s3021_s6 = smov (!%p666_p3), 120  }
   0xf   : > { %s3619_s25 = sld [smem:[#allocation6_spill]] (!%p666_p3)  ;;  %s3605_s27 = smov (!%p666_p3), 64  }
  0x10   : > { %s3624_s4 = smov (!%p666_p3), 104  }
  0x12   : > { %v3172_v0 = vld [vmem:[%s3617_s23 + $0x8] sm:$0xff]   ;;  %v3177_v1 = vld [vmem:[%s3617_s23] sm:$0xff]   ;;  %v3019_v2 = vmov 0.0   ;;  %vm3020_vm0 = vmmov 0   ;;  %s3635_s3 = smov (!%p746_p4, %s3008_s3), 1  ;;  %vm805_vm1 = vcmask 261120  }
  0x13   : > { %888 = vrot.lane.b32.xlu0 %v3172_v0, %s3018_s24  ;;  %2724 = vmatprep.subr.bf16.mxu0 %v3019_v2  ;;  %v2934_v3 = vld [vmem:[%s3617_s23 + $0x8] sm:$0xff]   ;;  %v2935_v4 = vld [vmem:[%s3617_s23] sm:$0xff]   ;;  %s3604_s1 = sshll.u32 %s3635_s3, 3  ;;  %s3220_s2 = sshll.u32 %s3635_s3, 1  ;;  %vm859_vm2 = vcmask 64512   ;;  %vm1046_vm3 = vcmask 31744  }
  0x14   : > { %2728 = vmatprep.mubr.msk.bf16.mxu0 %vm3020_vm0, %v3019_v2  ;;  %2732 = vmatprep.subr.bf16.mxu1 %v3019_v2  ;;  %v3196_v5 = vld [vmem:[%s3618_s0] ss:$0 sm:$0xff]  ;;  %s3620_s0 = sld [smem:[#allocation7_spill]]  ;;  %860 = vst.msk [vmem:[#allocation5] sm:$0xff] %vm859_vm2, %v3019_v2  ;;  %861 = vst.msk [vmem:[#allocation5 + $0x8] sm:$0xff] %vm859_vm2, %v3019_v2  ;;  %vm850_vm4 = vcmask 7168  }
  0x15   : > { %2725 = vmatpush3.bf16.msra.mxu0 %v2934_v3  ;;  %2736 = vmatprep.mubr.msk.bf16.mxu1 %vm3020_vm0, %v3019_v2  ;;  %s749_s26 = scalar_lea.vmem %s3619_s25, %s3604_s1  ;;  %862 = vst.msk [vmem:[#allocation5 + $0x10] sm:$0xff] %vm859_vm2, %v3019_v2  ;;  %863 = vst.msk [vmem:[#allocation5 + $0x18] sm:$0xff] %vm859_vm2, %v3019_v2  ;;  %s3022_s25 = smov 112   ;;  %v3025_v48 = vmov -inf   ;;  %v3026_v49 = vmov 0   ;;  %vm1082_vm5 = vcmask 1041408  }
  0x16   : > { %2726 = vmatprep.subr.bf16.mxu0 %v3019_v2  ;;  %892 = vrot.lane.b32.xlu1 %v3196_v5, %s3018_s24  ;;  %v3211_v6 = vld [vmem:[%s749_s26] sm:$0xff]  ;;  %s3609_s26 = smov 104   ;;  %851 = vst.msk [vmem:[#allocation3] sm:$0xff] %vm850_vm4, %v3025_v48  ;;  %852 = vst.msk [vmem:[#allocation3 + $0x8] sm:$0xff] %vm850_vm4, %v3025_v48  ;;  %vm1590_vm6 = vcmask 130048   ;;  %vm1592_vm7 = vcmask 195584  }
  0x17   : > { %886 = vrot.lane.b32.xlu0 %v3177_v1, %s3018_s24  ;;  %v785_v7 = vpack.c.bf16 %v3211_v6, %v3211_v6  ;;  %853 = vst.msk [vmem:[#allocation3 + $0x10] sm:$0xff] %vm850_vm4, %v3025_v48  ;;  %854 = vst.msk [vmem:[#allocation3 + $0x18] sm:$0xff] %vm850_vm4, %v3025_v48  ;;  %2930 = vset.pattern.permute.xlu1 %v3026_v49  ;;  %vm1825_vm8 = vcmask 1043456   ;;  %vm2420_vm9 = vcmask 523264  }
  0x18   : > { %855 = vst.msk [vmem:[#allocation4] sm:$0xff] %vm850_vm4, %v3019_v2  ;;  %856 = vst.msk [vmem:[#allocation4 + $0x8] sm:$0xff] %vm850_vm4, %v3019_v2  ;;  %2931 = vset.pattern.permute.xlu0 %v3026_v49 }
  0x19   : > { %2727 = vmatpush3.bf16.msra.mxu0 %v2935_v4  ;;  %857 = vst.msk [vmem:[#allocation4 + $0x10] sm:$0xff] %vm850_vm4, %v3019_v2  ;;  %858 = vst.msk [vmem:[#allocation4 + $0x18] sm:$0xff] %vm850_vm4, %v3019_v2 }
  0x1a   : > { %2740 = vmatprep.subr.bf16.mxu0 %v3019_v2  ;;  %s756_s5 = scalar_lea.vmem %s3620_s0, %s3220_s2  ;;  %s3622_s0 = sld [smem:[#allocation9_spill]] }
  0x1b   : > { %v864_v10 = vld [vmem:[%s756_s5] sm:$0x3]  ;;  %s3621_s5 = sld [smem:[#allocation8_spill]] }
  0x1c   : > { %2729 = vmatmul.mubr.msk.bf16.vlgmr.msra.gmra.mxu0 %vm805_vm1, %v785_v7 }
  0x1d   : > { %2744 = vmatprep.mubr.msk.bf16.mxu0 %vm3020_vm0, %v3019_v2  ;;  %v3312_v7 = vld [vmem:[#allocation3] sm:$0xff] }
  0x21   : > { %s763_s1 = scalar_lea.vmem %s3621_s5, %s3220_s2  ;;  %s770_s5 = scalar_lea.vmem %s3622_s0, %s3220_s2 }
  0x22   : > { %v865_v37 = vld [vmem:[%s763_s1] sm:$0x3]  ;;  %s3623_s1 = sld [smem:[#allocation12_spill]]  ;;  %s3608_s0 = smov 8  }
  0x23   : > { %v991_v38 = vld [vmem:[%s770_s5] sm:$0x3]  ;;  %s3607_s2 = smov 16  }
  0x24   : > { %v992_v39 = vunpack.c.0.s8 %v991_v38 }
  0x26   : > { %v993_v40 = vcvt.s32.f32 %v992_v39 }
  0x28   : > { %v994_v41 = vmul.f32 -1e+30, %v993_v40 }
  0x85   : > { %v889_v8 = vpop.permute.xlu0 %888 }
  0x86   : > { %2733 = vmatpush3.bf16.msra.mxu1 %v889_v8 }
  0x87   : > { %2734 = vmatprep.subr.bf16.mxu1 %v3019_v2 }
  0x88   : > { %v893_v18 = vpop.permute.xlu1 %892 }
  0x89   : > { %v887_v9 = vpop.permute.xlu0 %886 }
  0x8a   : > { %2735 = vmatpush3.bf16.msra.mxu1 %v887_v9 }
  0x8b   : > { %2748 = vmatprep.subr.bf16.mxu1 %v3019_v2 }
  0x8d   : > { %2737 = vmatmul.mubr.msk.bf16.vlgmr.msra.gmra.mxu1 %vm805_vm1, %v864_v10 }
  0x8e   : > { %2750 = vmatprep.mubr.msk.bf16.mxu1 %vm3020_vm0, %v3019_v2 }
  0xdc   : > { %v843_v11 = vpop.f32.mrf.mxu0 }
  0xdd   : > { %v844_v12 = vadd.f32 %v3196_v5, %v843_v11 }
  0xde   : > { %v2730_v13 = vpop.f32.mrf.mxu0 }
  0xdf   : > { %849 = vst.msk [vmem:[#allocation2] sm:$0xff] %vm805_vm1, %v844_v12 }
  0xe0   : > { %v846_v14 = vpop.f32.mrf.mxu0 }
  0xe2   : > { %v2731_v15 = vpop.f32.mrf.mxu0 }
  0xe3   : > { %v1182_v15 = vld [vmem:[#allocation3 + $0x8] sm:$0xff] }
  0xe6   : > { %v995_v16 = vld [vmem:[#allocation2] sm:$0xff] }
  0xe7   : > { %v996_v17 = vpack.c.bf16 %v995_v16, %v995_v16 }
  0xe9   : > { %1130 = vrot.lane.b32.xlu0 %v996_v17, %s3021_s6 }
  0xed   : > { %1267 = vrot.lane.b32.xlu0 %v996_v17, %s3022_s25 }
  0xf1   : > { %1402 = vrot.lane.b32.xlu0 %v996_v17, %s3609_s26 }
  0xf5   : > { %939 = vrot.lane.b32.xlu0 %v3177_v1, %s3605_s27 }
 0x14d   : > { %v933_v19 = vpop.f32.mrf.mxu1 }
 0x14e   : > { %v934_v20 = vadd.f32 %v933_v19, %v893_v18  ;;  %v3325_v19 = vld [vmem:[#allocation3 + $0x10] sm:$0xff] }
 0x14f   : > { %v2738_v21 = vpop.f32.mrf.mxu1 }
 0x150   : > { %v997_v22 = vpack.c.bf16 %v934_v20, %v934_v20 }
 0x151   : > { %v936_v23 = vpop.f32.mrf.mxu1 }
 0x152   : > { %1133 = vrot.lane.b32.xlu1 %v997_v22, %s3021_s6  ;;  %v1003_v24 = vsel %vm859_vm2, %v997_v22, 0 }
 0x153   : > { %v2739_v25 = vpop.f32.mrf.mxu1  ;;  %2749 = vmatpush3.bf16.xpose.msra.mxu1 %v1003_v24  ;;  %v1453_v24 = vld [vmem:[#allocation3 + $0x18] sm:$0xff] }
 0x154   : > { %2760 = vmatprep.subr.bf16.mxu1 %v3019_v2 }
 0x156   : > { %1269 = vrot.lane.b32.xlu1 %v997_v22, %s3022_s25 }
 0x15a   : > { %1404 = vrot.lane.b32.xlu1 %v997_v22, %s3609_s26  ;;  %2751 = vmatmul.mubr.msk.bf16.vlgmr.msra.gmra.mxu1 %vm859_vm2, %v996_v17 }
 0x15b   : > { %2762 = vmatprep.mubr.msk.bf16.mxu1 %vm3020_vm0, %v3019_v2  ;;  %v1131_v26 = vpop.permute.xlu0 %1130 }
 0x15e   : > { %941 = vrot.lane.b32.xlu1 %v3172_v0, %s3605_s27 }
 0x15f   : > { %v1268_v30 = vpop.permute.xlu0 %1267 }
 0x163   : > { %v1403_v33 = vpop.permute.xlu0 %1402 }
 0x167   : > { %v940_v35 = vpop.permute.xlu0 %939 }
 0x1c4   : > { %v1134_v27 = vpop.permute.xlu1 %1133 }
 0x1c5   : > { %v1139_v28 = vsel %vm859_vm2, %v1134_v27, 0 }
 0x1c6   : > { %2761 = vmatpush3.bf16.xpose.msra.mxu1 %v1139_v28 }
 0x1c7   : > { %2772 = vmatprep.subr.bf16.mxu1 %v3019_v2 }
 0x1c8   : > { %v1270_v29 = vpop.permute.xlu1 %1269 }
 0x1c9   : > { %v1275_v32 = vsel %vm859_vm2, %v1270_v29, 0 }
 0x1cc   : > { %v1405_v31 = vpop.permute.xlu1 %1404 }
 0x1cd   : > { %2763 = vmatmul.mubr.msk.bf16.vlgmr.msra.gmra.mxu1 %vm859_vm2, %v1131_v26  ;;  %v1410_v36 = vsel %vm859_vm2, %v1405_v31, 0 }
 0x1ce   : > { %2773 = vmatpush3.bf16.xpose.msra.mxu1 %v1275_v32  ;;  %2774 = vmatprep.mubr.msk.bf16.mxu1 %vm3020_vm0, %v3019_v2 }
 0x1cf   : > { %2784 = vmatprep.subr.bf16.mxu1 %v3019_v2 }
 0x1d0   : > { %v942_v34 = vpop.permute.xlu1 %941 }
 0x1d1   : > { %2741 = vmatpush3.bf16.msra.mxu0 %v942_v34 }
 0x1d2   : > { %2742 = vmatprep.subr.bf16.mxu0 %v3019_v2 }
 0x1d5   : > { %2775 = vmatmul.mubr.msk.bf16.vlgmr.msra.gmra.mxu1 %vm859_vm2, %v1268_v30  ;;  %2743 = vmatpush3.bf16.msra.mxu0 %v940_v35 }
 0x1d6   : > { %2785 = vmatpush3.bf16.xpose.msra.mxu1 %v1410_v36  ;;  %2786 = vmatprep.mubr.msk.bf16.mxu1 %vm3020_vm0, %v3019_v2 }
 0x1d7   : > { %2754 = vmatprep.subr.bf16.mxu0 %v3019_v2  ;;  %2796 = vmatprep.subr.bf16.mxu1 %v3019_v2 }
 0x1d8   : > { %2745 = vmatmul.mubr.msk.bf16.vlgmr.msra.gmra.mxu0 %vm805_vm1, %v865_v37 }
 0x1d9   : > { %2756 = vmatprep.mubr.msk.bf16.mxu0 %vm3020_vm0, %v3019_v2 }
 0x1dd   : > { %2787 = vmatmul.mubr.msk.bf16.vlgmr.msra.gmra.mxu1 %vm859_vm2, %v1403_v33 }
 0x1de   : > { %2800 = vmatprep.mubr.msk.bf16.mxu1 %vm3020_vm0, %v3019_v2 }
 0x21a   : > { %v1039_v42 = vpop.f32.mrf.mxu1 }
 0x21b   : > { %v3284_v43 = vadd.f32 %v1039_v42, %v994_v41 }
 0x21c   : > { %v2752_v44 = vpop.f32.mrf.mxu1 }
 0x21d   : > { %v1047_v45 = vsel %vm1046_vm3, %v3284_v43, -inf }
 0x21e   : > { %1048 = vmax.xlane.f32.xlu1 %v1047_v45  ;;  %v1042_v46 = vpop.f32.mrf.mxu1 }
 0x220   : > { %v2753_v47 = vpop.f32.mrf.mxu1 }
 0x28d   : > { %v1175_v50 = vpop.f32.mrf.mxu1 }
 0x28e   : > { %v3300_v51 = vadd.f32 %v1175_v50, %v994_v41 }
 0x28f   : > { %v2764_v52 = vpop.f32.mrf.mxu1 }
 0x290   : > { %v1183_v53 = vsel %vm1046_vm3, %v3300_v51, -inf }
 0x291   : > { %1184 = vmax.xlane.f32.xlu0 %v1183_v53  ;;  %v1178_v54 = vpop.f32.mrf.mxu1 }
 0x293   : > { %v2765_v55 = vpop.f32.mrf.mxu1 }
 0x295   : > { %v1311_v56 = vpop.f32.mrf.mxu1 }
 0x296   : > { %v3304_v57 = vadd.f32 %v1311_v56, %v994_v41 }
 0x297   : > { %v2776_v58 = vpop.f32.mrf.mxu1 }
 0x298   : > { %v1319_v59 = vsel %vm1046_vm3, %v3304_v57, -inf  ;;  %v985_v11 = vpop.f32.mrf.mxu0 }
 0x299   : > { %1320 = vmax.xlane.f32.xlu0 %v1319_v59  ;;  %v1314_v60 = vpop.f32.mrf.mxu1 }
 0x29a   : > { %v2746_v12 = vpop.f32.mrf.mxu0 }
 0x29b   : > { %v2777_v61 = vpop.f32.mrf.mxu1  ;;  %v1199_v12 = vld [vmem:[#allocation4 + $0x8] sm:$0xff] }
 0x29c   : > { %v988_v13 = vpop.f32.mrf.mxu0 }
 0x29d   : > { %v1446_v62 = vpop.f32.mrf.mxu1 }
 0x29e   : > { %v3308_v63 = vadd.f32 %v1446_v62, %v994_v41  ;;  %v2747_v14 = vpop.f32.mrf.mxu0 }
 0x29f   : > { %v2788_v0 = vpop.f32.mrf.mxu1 }
 0x2a0   : > { %v1454_v1 = vsel %vm1046_vm3, %v3308_v63, -inf }
 0x2a1   : > { %1455 = vmax.xlane.f32.xlu1 %v1454_v1  ;;  %v1449_v3 = vpop.f32.mrf.mxu1 }
 0x2a3   : > { %v2789_v4 = vpop.f32.mrf.mxu1 }
 0x2a7   : > { %v1049_v8 = vpop.xlane.xlu1 %1048 }
 0x2a8   : > { %v3315_v9 = vmax.f32 %v3312_v7, %v1049_v8 }
 0x2aa   : > { %v1051_v10 = vsub.f32 %v3312_v7, %v3315_v9  ;;  %1128 = vst.msk [vmem:[#allocation3] sm:$0xff] %vm850_vm4, %v3315_v9  ;;  %v1062_v7 = vld [vmem:[#allocation4] sm:$0xff] }
 0x2ac   : > { %v1052_v13 = vmul.f32 1.442695, %v1051_v10 }
 0x2af   : > { %945 = vrot.lane.b32.xlu0 %v3196_v5, %s3605_s27  ;;  %s3606_s27 = smov 24  }
 0x2b2   : > { %1056 = vperm.xlu1 %2930, %v3315_v9  }
 0x31a   : > { %v1185_v16 = vpop.xlane.xlu0 %1184 }
 0x31b   : > { %v1186_v17 = vmax.f32 %v1182_v15, %v1185_v16 }
 0x31d   : > { %v1187_v18 = vsub.f32 %v1182_v15, %v1186_v17  ;;  %1266 = vst.msk [vmem:[#allocation3 + $0x8] sm:$0xff] %vm850_vm4, %v1186_v17  ;;  %1192 = vperm.xlu1 %2930, %v1186_v17   ;;  %v1335_v17 = vld [vmem:[#allocation4 + $0x10] sm:$0xff] }
 0x31f   : > { %v1188_v52 = vmul.f32 1.442695, %v1187_v18 }
 0x322   : > { %v1321_v20 = vpop.xlane.xlu0 %1320 }
 0x323   : > { %v3328_v21 = vmax.f32 %v3325_v19, %v1321_v20 }
 0x325   : > { %v1323_v5 = vsub.f32 %v3325_v19, %v3328_v21  ;;  %1401 = vst.msk [vmem:[#allocation3 + $0x10] sm:$0xff] %vm850_vm4, %v3328_v21  ;;  %1328 = vperm.xlu0 %2931, %v3328_v21  }
 0x326   : > { %v946_v22 = vpop.permute.xlu0 %945 }
 0x327   : > { %v986_v23 = vadd.f32 %v985_v11, %v946_v22 }
 0x329   : > { %v1078_v25 = vpack.c.bf16 %v986_v23, %v986_v23 }
 0x32a   : > { %v1456_v26 = vpop.xlane.xlu1 %1455 }
 0x32b   : > { %v1457_v27 = vmax.f32 %v1453_v24, %v1456_v26  ;;  %v1084_v28 = vsel %vm1082_vm5, %v1078_v25, 0  ;;  %1351 = vrot.lane.b32.xlu0 %v1078_v25, %s3022_s25 }
 0x32c   : > { %2755 = vmatpush3.bf16.msra.mxu0 %v1084_v28 }
 0x32d   : > { %v1458_v29 = vsub.f32 %v1453_v24, %v1457_v27  ;;  %1536 = vst.msk [vmem:[#allocation3 + $0x18] sm:$0xff] %vm850_vm4, %v1457_v27  ;;  %1463 = vperm.xlu1 %2930, %v1457_v27   ;;  %2766 = vmatprep.subr.bf16.mxu0 %v3019_v2 }
 0x32e   : > { %v1057_v30 = vpop.permute.xlu1 %1056 }
 0x32f   : > { %v1059_v31 = vsub.f32 %v3284_v43, %v1057_v30  ;;  %v1459_v55 = vmul.f32 1.442695, %v1458_v29 }
 0x331   : > { %v1060_v32 = vmul.f32 1.442695, %v1059_v31  ;;  %1216 = vrot.lane.b32.xlu1 %v1078_v25, %s3021_s6 }
 0x333   : > { %2948 = vpow2.f32 %v1060_v32 }
 0x335   : > { %1486 = vrot.lane.b32.xlu1 %v1078_v25, %s3609_s26  ;;  %s3030_s26 = smov 88  }
 0x340   : > { %v2949_v33 = vpop.eup %2948 }
 0x341   : > { %v1077_v34 = vpack.c.bf16 %v2949_v33, %v2949_v33  ;;  %v1064_v60 = vsel %vm1046_vm3, %v2949_v33, 0.0 }
 0x343   : > { %2757 = vmatmul.mubr.msk.bf16.vlgmr.msra.gmra.mxu0 %vm1046_vm3, %v1077_v34  ;;  %v1207_v34 = vld [vmem:[#allocation5 + $0x8] sm:$0xff] }
 0x344   : > { %2768 = vmatprep.mubr.msk.bf16.mxu0 %vm3020_vm0, %v3019_v2 }
 0x398   : > { %v1193_v35 = vpop.permute.xlu1 %1192 }
 0x399   : > { %v1195_v36 = vsub.f32 %v3300_v51, %v1193_v35 }
 0x39b   : > { %v1196_v37 = vmul.f32 1.442695, %v1195_v36 }
 0x39d   : > { %2950 = vpow2.f32 %v1196_v37 }
 0x3a0   : > { %v1329_v38 = vpop.permute.xlu0 %1328 }
 0x3a1   : > { %v1331_v39 = vsub.f32 %v3304_v57, %v1329_v38 }
 0x3a3   : > { %v1332_v40 = vmul.f32 1.442695, %v1331_v39 }
 0x3a4   : > { %v1352_v47 = vpop.permute.xlu0 %1351 }
 0x3a5   : > { %2952 = vpow2.f32 %v1332_v40  ;;  %v1357_v50 = vsel %vm1082_vm5, %v1352_v47, 0  ;;  %v1343_v40 = vld [vmem:[#allocation5 + $0x10] sm:$0xff] }
 0x3a8   : > { %v1464_v41 = vpop.permute.xlu1 %1463 }
 0x3a9   : > { %v1466_v42 = vsub.f32 %v3308_v63, %v1464_v41  ;;  %v1324_v63 = vmul.f32 1.442695, %v1323_v5  ;;  %v1470_v5 = vld [vmem:[#allocation4 + $0x18] sm:$0xff] }
 0x3aa   : > { %v2951_v43 = vpop.eup %2950 }
 0x3ab   : > { %v1467_v44 = vmul.f32 1.442695, %v1466_v42  ;;  %v1201_v45 = vsel %vm1046_vm3, %v2951_v43, 0.0  ;;  %v1214_v49 = vpack.c.bf16 %v2951_v43, %v2951_v43 }
 0x3ac   : > { %1202 = vadd.xlane.f32.xlu0 %v1201_v45  ;;  %v1217_v46 = vpop.permute.xlu1 %1216 }
 0x3ad   : > { %2954 = vpow2.f32 %v1467_v44  ;;  %v1222_v48 = vsel %vm1082_vm5, %v1217_v46, 0 }
 0x3ae   : > { %2767 = vmatpush3.bf16.msra.mxu0 %v1222_v48  ;;  %2956 = vpow2.f32 %v1188_v52  ;;  %v1478_v48 = vld [vmem:[#allocation5 + $0x18] sm:$0xff] }
 0x3af   : > { %2778 = vmatprep.subr.bf16.mxu0 %v3019_v2  ;;  %2958 = vpow2.f32 %v1459_v55 }
 0x3b0   : > { %v1487_v54 = vpop.permute.xlu1 %1486  ;;  %2960 = vpow2.f32 %v1324_v63 }
 0x3b1   : > { %2769 = vmatmul.mubr.msk.bf16.vlgmr.msra.gmra.mxu0 %vm1046_vm3, %v1214_v49  ;;  %v1492_v57 = vsel %vm1082_vm5, %v1487_v54, 0  ;;  %2962 = vpow2.f32 %v1052_v13 }
 0x3b2   : > { %v2953_v51 = vpop.eup %2952  ;;  %2779 = vmatpush3.bf16.msra.mxu0 %v1357_v50  ;;  %2780 = vmatprep.mubr.msk.bf16.mxu0 %vm3020_vm0, %v3019_v2 }
 0x3b3   : > { %v1337_v53 = vsel %vm1046_vm3, %v2953_v51, 0.0  ;;  %2790 = vmatprep.subr.bf16.mxu0 %v3019_v2  ;;  %v1350_v56 = vpack.c.bf16 %v2953_v51, %v2953_v51 }
 0x3b4   : > { %1338 = vadd.xlane.f32.xlu1 %v1337_v53 }
 0x3b9   : > { %2781 = vmatmul.mubr.msk.bf16.vlgmr.msra.gmra.mxu0 %vm1046_vm3, %v1350_v56 }
 0x3ba   : > { %v2955_v58 = vpop.eup %2954  ;;  %2791 = vmatpush3.bf16.msra.mxu0 %v1492_v57  ;;  %2792 = vmatprep.mubr.msk.bf16.mxu0 %vm3020_vm0, %v3019_v2 }
 0x3bb   : > { %v1472_v59 = vsel %vm1046_vm3, %v2955_v58, 0.0  ;;  %2804 = vmatprep.subr.bf16.mxu0 %v3019_v2  ;;  %v1485_v61 = vpack.c.bf16 %v2955_v58, %v2955_v58  ;;  %v2957_v62 = vpop.eup %2956  ;;  %v2936_v58 = vld [vmem:[%s3623_s1 + $0x8] sm:$0xff]  }
 0x3bc   : > { %1473 = vadd.xlane.f32.xlu0 %v1472_v59  ;;  %v2959_v0 = vpop.eup %2958  ;;  %v1200_v14 = vmul.f32 %v2957_v62, %v1199_v12  ;;  %2797 = vmatpush3.bf16.msra.mxu1 %v2936_v58 }
 0x3bd   : > { %v2961_v1 = vpop.eup %2960  ;;  %v1471_v22 = vmul.f32 %v2959_v0, %v1470_v5  ;;  %2798 = vmatprep.subr.bf16.mxu1 %v3019_v2 }
 0x3be   : > { %v1336_v18 = vmul.f32 %v2961_v1, %v1335_v17  ;;  %v2963_v23 = vpop.eup %2962 }
 0x3bf   : > { %v1063_v25 = vmul.f32 %v2963_v23, %v1062_v7 }
 0x3c0   : > { %1065 = vadd.xlane.f32.xlu0 %v1064_v60 }
 0x3c1   : > { %2793 = vmatmul.mubr.msk.bf16.vlgmr.msra.gmra.mxu0 %vm1046_vm3, %v1485_v61 }
 0x3c2   : > { %2808 = vmatprep.mubr.msk.bf16.mxu0 %vm3020_vm0, %v3019_v2 }
 0x3c5   : > { %1210 = vperm.xlu1 %2930, %v2957_v62   ;;  %v2937_v62 = vld [vmem:[%s3623_s1] sm:$0xff]  }
 0x3c6   : > { %2799 = vmatpush3.bf16.msra.mxu1 %v2937_v62 }
 0x3c7   : > { %2812 = vmatprep.subr.bf16.mxu1 %v3019_v2 }
 0x3c9   : > { %1481 = vperm.xlu1 %2930, %v2959_v0  }
 0x3d6   : > { %1346 = vperm.xlu0 %2931, %v2961_v1  }
 0x403   : > { %v3370_v3 = vpop.f32.mrf.mxu0 }
 0x405   : > { %v2758_v4 = vpop.f32.mrf.mxu0 }
 0x406   : > { %v1070_v4 = vld [vmem:[#allocation5] sm:$0xff] }
 0x407   : > { %v1123_v8 = vpop.f32.mrf.mxu0 }
 0x409   : > { %v2759_v11 = vpop.f32.mrf.mxu0 }
 0x435   : > { %v1203_v15 = vpop.xlane.xlu0 %1202 }
 0x436   : > { %v1204_v16 = vadd.f32 %v1203_v15, %v1200_v14 }
 0x438   : > { %1205 = vst.msk [vmem:[#allocation4 + $0x8] sm:$0xff] %vm850_vm4, %v1204_v16 }
 0x43d   : > { %v1339_v19 = vpop.xlane.xlu1 %1338 }
 0x43e   : > { %v1340_v20 = vadd.f32 %v1339_v19, %v1336_v18 }
 0x43f   : > { %v1551_v21 = vld [vmem:[#allocation4 + $0x8] sm:$0xff] }
 0x440   : > { %1341 = vst.msk [vmem:[#allocation4 + $0x10] sm:$0xff] %vm850_vm4, %v1340_v20  ;;  %2964 = vrcp.f32 %v1551_v21 }
 0x441   : > { %v1211_v35 = vpop.permute.xlu1 %1210 }
 0x442   : > { %v1213_v36 = vmul.f32 %v1211_v35, %v1207_v34  ;;  %v2938_v34 = vld [vmem:[%s3589_s10 + $0x8] sm:$0xff]  }
 0x443   : > { %2805 = vmatpush3.bf16.msra.mxu0 %v2938_v34 }
 0x444   : > { %2806 = vmatprep.subr.bf16.mxu0 %v3019_v2 }
 0x445   : > { %v1474_v24 = vpop.xlane.xlu0 %1473  ;;  %v1482_v49 = vpop.permute.xlu1 %1481 }
 0x446   : > { %v1475_v9 = vadd.f32 %v1474_v24, %v1471_v22  ;;  %v1484_v52 = vmul.f32 %v1482_v49, %v1478_v48  ;;  %v2628_v24 = vld [vmem:[%s3586_s7] ss:$0 sm:$0xff] }
 0x447   : > { %v1560_v10 = vld [vmem:[#allocation4 + $0x10] sm:$0xff] }
 0x448   : > { %1476 = vst.msk [vmem:[#allocation4 + $0x18] sm:$0xff] %vm850_vm4, %v1475_v9  ;;  %2966 = vrcp.f32 %v1560_v10 }
 0x449   : > { %v1066_v26 = vpop.xlane.xlu0 %1065 }
 0x44a   : > { %v1067_v27 = vadd.f32 %v1066_v26, %v1063_v25 }
 0x44c   : > { %1069 = vst.msk [vmem:[#allocation4] sm:$0xff] %vm850_vm4, %v1067_v27 }
 0x44d   : > { %v2965_v28 = vpop.eup %2964 }
 0x44e   : > { %1555 = vperm.xlu1 %2930, %v2965_v28  }
 0x44f   : > { %v1569_v29 = vld [vmem:[#allocation4 + $0x18] sm:$0xff] }
 0x450   : > { %2968 = vrcp.f32 %v1569_v29 }
 0x451   : > { %v1347_v41 = vpop.permute.xlu0 %1346 }
 0x452   : > { %v1349_v44 = vmul.f32 %v1347_v41, %v1343_v40  ;;  %v2633_v41 = vld [vmem:[%s3588_s9] ss:$0 sm:$0xff] }
 0x453   : > { %v1542_v30 = vld [vmem:[#allocation4] sm:$0xff] }
 0x454   : > { %2970 = vrcp.f32 %v1542_v30 }
 0x455   : > { %v2967_v31 = vpop.eup %2966 }
 0x456   : > { %1564 = vperm.xlu0 %2931, %v2967_v31  }
 0x45a   : > { %1073 = vperm.xlu0 %2931, %v2963_v23  }
 0x45d   : > { %v2969_v32 = vpop.eup %2968 }
 0x45e   : > { %1573 = vperm.xlu1 %2930, %v2969_v32  }
 0x461   : > { %v2971_v33 = vpop.eup %2970 }
 0x462   : > { %1546 = vperm.xlu1 %2930, %v2971_v33  }
 0x471   : > { %v1258_v37 = vpop.f32.mrf.mxu0 }
 0x472   : > { %v1264_v38 = vadd.f32 %v1258_v37, %v1213_v36 }
 0x473   : > { %v2770_v39 = vpop.f32.mrf.mxu0 }
 0x474   : > { %1265 = vst.msk [vmem:[#allocation5 + $0x8] sm:$0xff] %vm859_vm2, %v1264_v38  ;;  %v2632_v39 = vld [vmem:[%s3587_s8] ss:$0 sm:$0xff] }
 0x475   : > { %v1261_v42 = vpop.f32.mrf.mxu0 }
 0x477   : > { %v2771_v43 = vpop.f32.mrf.mxu0 }
 0x479   : > { %v1393_v45 = vpop.f32.mrf.mxu0 }
 0x47a   : > { %v1399_v46 = vadd.f32 %v1393_v45, %v1349_v44  ;;  %v2634_v45 = vld [vmem:[%s3590_s11] ss:$0 sm:$0xff] }
 0x47b   : > { %v2782_v47 = vpop.f32.mrf.mxu0  ;;  %v1550_v60 = vld [vmem:[#allocation5 + $0x8] sm:$0xff] }
 0x47c   : > { %1400 = vst.msk [vmem:[#allocation5 + $0x10] sm:$0xff] %vm859_vm2, %v1399_v46 }
 0x47d   : > { %v1396_v50 = vpop.f32.mrf.mxu0 }
 0x47f   : > { %v2783_v51 = vpop.f32.mrf.mxu0 }
 0x481   : > { %v1528_v53 = vpop.f32.mrf.mxu0 }
 0x482   : > { %v1534_v54 = vadd.f32 %v1528_v53, %v1484_v52 }
 0x483   : > { %v2794_v55 = vpop.f32.mrf.mxu0  ;;  %v1559_v0 = vld [vmem:[#allocation5 + $0x10] sm:$0xff] }
 0x484   : > { %1535 = vst.msk [vmem:[#allocation5 + $0x18] sm:$0xff] %vm859_vm2, %v1534_v54 }
 0x485   : > { %v1531_v56 = vpop.f32.mrf.mxu0 }
 0x487   : > { %v2795_v57 = vpop.f32.mrf.mxu0 }
 0x48b   : > { %v1568_v14 = vld [vmem:[#allocation5 + $0x18] sm:$0xff] }
 0x4c9   : > { %v1556_v59 = vpop.permute.xlu1 %1555 }
 0x4ca   : > { %v1558_v61 = vmul.f32 %v1556_v59, %v1550_v60 }
 0x4cc   : > { %1578 = vrot.lane.b32.xlu0 %v1558_v61, %s3608_s0  ;;  %s3031_s0 = smov 80  }
 0x4d1   : > { %v1565_v63 = vpop.permute.xlu0 %1564 }
 0x4d2   : > { %v1567_v1 = vmul.f32 %v1565_v63, %v1559_v0 }
 0x4d4   : > { %1582 = vrot.lane.b32.xlu1 %v1567_v1, %s3607_s2  ;;  %s3625_s2 = smov 64  }
 0x4d5   : > { %v1074_v8 = vpop.permute.xlu0 %1073 }
 0x4d6   : > { %v1076_v11 = vmul.f32 %v1074_v8, %v1070_v4 }
 0x4d8   : > { %v1126_v12 = vadd.f32 %v3370_v3, %v1076_v11 }
 0x4d9   : > { %v1574_v13 = vpop.permute.xlu1 %1573 }
 0x4da   : > { %1127 = vst.msk [vmem:[#allocation5] sm:$0xff] %vm859_vm2, %v1126_v12  ;;  %v1576_v15 = vmul.f32 %v1574_v13, %v1568_v14 }
 0x4dc   : > { %1586 = vrot.lane.b32.xlu0 %v1576_v15, %s3606_s27  ;;  %s3032_s27 = smov 72  }
 0x4dd   : > { %v1547_v16 = vpop.permute.xlu1 %1546 }
 0x4e1   : > { %v1541_v17 = vld [vmem:[#allocation5] sm:$0xff] }
 0x4e2   : > { %v1549_v19 = vmul.f32 %v1547_v16, %v1541_v17 }
 0x53e   : > { %v1579_v18 = vpop.permute.xlu0 %1578 }
 0x53f   : > { %v1589_v21 = vsel %vm859_vm2, %v1549_v19, %v1579_v18 }
 0x546   : > { %v1583_v20 = vpop.permute.xlu1 %1582 }
 0x547   : > { %v1591_v5 = vsel %vm1590_vm6, %v1589_v21, %v1583_v20 }
 0x54e   : > { %v1587_v3 = vpop.permute.xlu0 %1586 }
 0x54f   : > { %v1593_v22 = vsel %vm1592_vm7, %v1591_v5, %v1587_v3 }
 0x550   : > { %v1598_v23 = vpack.c.bf16 %v1593_v22, %v1593_v22 }
 0x552   : > { %2801 = vmatmul.mubr.msk.bf16.vlgmr.msra.gmra.mxu1 %vm805_vm1, %v1598_v23 }
 0x553   : > { %2814 = vmatprep.mubr.msk.bf16.mxu1 %vm3020_vm0, %v3019_v2 }
 0x612   : > { %v1655_v7 = vpop.f32.mrf.mxu1 }
 0x613   : > { %v1656_v9 = vadd.f32 %v2628_v24, %v1655_v7 }
 0x614   : > { %v2802_v10 = vpop.f32.mrf.mxu1 }
 0x615   : > { %v1661_v25 = vadd.f32 %v1656_v9, %v3211_v6  ;;  %v2939_v6 = vld [vmem:[%s3589_s10] sm:$0xff]  }
 0x616   : > { %v1658_v26 = vpop.f32.mrf.mxu1  ;;  %2807 = vmatpush3.bf16.msra.mxu0 %v2939_v6 }
 0x617   : > { %v1664_v27 = vsel %vm805_vm1, %v1661_v25, 0.0  ;;  %2818 = vmatprep.subr.bf16.mxu0 %v3019_v2 }
 0x618   : > { %1665 = vadd.xlane.f32.xlu1 %v1664_v27  ;;  %v2803_v28 = vpop.f32.mrf.mxu1 }
 0x6a1   : > { %v1666_v29 = vpop.xlane.xlu1 %1665 }
 0x6a2   : > { %v1668_v30 = vmul.f32 0.03125, %v1666_v29 }
 0x6a4   : > { %v1669_v31 = vsub.f32 %v1661_v25, %v1668_v30 }
 0x6a6   : > { %v1670_v32 = vmul.f32 %v1669_v31, %v1669_v31 }
 0x6a8   : > { %v1671_v33 = vsel %vm805_vm1, %v1670_v32, 0.0 }
 0x6a9   : > { %1672 = vadd.xlane.f32.xlu0 %v1671_v33 }
 0x732   : > { %v1673_v35 = vpop.xlane.xlu0 %1672 }
 0x733   : > { %v1674_v36 = vmul.f32 0.03125, %v1673_v35 }
 0x735   : > { %v1675_v37 = vadd.f32 1e-05, %v1674_v36 }
 0x737   : > { %2972 = vrsqrt.f32 %v1675_v37 }
 0x744   : > { %v2973_v38 = vpop.eup %2972 }
 0x745   : > { %v1677_v40 = vmul.f32 %v2973_v38, %v1669_v31 }
 0x747   : > { %v1684_v42 = vmul.f32 %v2632_v39, %v1677_v40 }
 0x749   : > { %v3421_v43 = vadd.f32 %v2633_v41, %v1684_v42 }
 0x74b   : > { %v1696_v44 = vpack.c.bf16 %v3421_v43, %v3421_v43 }
 0x74d   : > { %2809 = vmatmul.mubr.msk.bf16.vlgmr.msra.gmra.mxu0 %vm805_vm1, %v1696_v44 }
 0x74e   : > { %2820 = vmatprep.mubr.msk.bf16.mxu0 %vm3020_vm0, %v3019_v2 }
 0x80d   : > { %v1753_v46 = vpop.f32.mrf.mxu0 }
 0x80e   : > { %v1754_v47 = vadd.f32 %v2634_v45, %v1753_v46 }
 0x80f   : > { %v2810_v48 = vpop.f32.mrf.mxu0 }
 0x810   : > { %v3431_v49 = vpack.c.bf16 %v1754_v47, %v1754_v47 }
 0x811   : > { %v1756_v50 = vpop.f32.mrf.mxu0 }
 0x812   : > { %1872 = vrot.lane.b32.xlu1 %v3431_v49, %s3030_s26  ;;  %1761 = vrot.lane.b32.xlu0 %v3431_v49, %s3018_s24  ;;  %s3033_s24 = smov 48  }
 0x813   : > { %v2811_v51 = vpop.f32.mrf.mxu0 }
 0x816   : > { %1870 = vrot.lane.b32.xlu1 %v3431_v49, %s3021_s6  ;;  %1982 = vrot.lane.b32.xlu0 %v3431_v49, %s3031_s0  ;;  %s3034_s6 = smov 40   ;;  %s3626_s0 = smov 8  }
 0x81a   : > { %1980 = vrot.lane.b32.xlu1 %v3431_v49, %s3022_s25  ;;  %2092 = vrot.lane.b32.xlu0 %v3431_v49, %s3032_s27  ;;  %s3035_s25 = smov 56  }
 0x81e   : > { %2090 = vrot.lane.b32.xlu1 %v3431_v49, %s3624_s4 }
 0x822   : > { %1820 = vrot.lane.b32.xlu1 %v3431_v49, %s3625_s2  ;;  %s3627_s2 = smov 16  }
 0x884   : > { %v1873_v52 = vpop.permute.xlu1 %1872  ;;  %v1762_v53 = vpop.permute.xlu0 %1761 }
 0x885   : > { %v1767_v54 = vsel %vm859_vm2, %v1762_v53, 0  ;;  %v1878_v57 = vsel %vm859_vm2, %v1873_v52, 0 }
 0x886   : > { %2813 = vmatpush3.bf16.xpose.msra.mxu1 %v1767_v54 }
 0x887   : > { %2824 = vmatprep.subr.bf16.mxu1 %v3019_v2 }
 0x888   : > { %v1871_v55 = vpop.permute.xlu1 %1870  ;;  %v1983_v59 = vpop.permute.xlu0 %1982 }
 0x889   : > { %v1988_v61 = vsel %vm859_vm2, %v1983_v59, 0  ;;  %v2940_v59 = vld [vmem:[%s3591_s12 + $0x8] sm:$0xff]  }
 0x88c   : > { %v1981_v56 = vpop.permute.xlu1 %1980  ;;  %v2093_v63 = vpop.permute.xlu0 %2092 }
 0x88d   : > { %2815 = vmatmul.mubr.msk.bf16.vlgmr.msra.gmra.mxu1 %vm859_vm2, %v3431_v49  ;;  %v2098_v0 = vsel %vm859_vm2, %v2093_v63, 0 }
 0x88e   : > { %2825 = vmatpush3.bf16.xpose.msra.mxu1 %v1878_v57  ;;  %2826 = vmatprep.mubr.msk.bf16.mxu1 %vm3020_vm0, %v3019_v2 }
 0x88f   : > { %2836 = vmatprep.subr.bf16.mxu1 %v3019_v2 }
 0x890   : > { %v2091_v58 = vpop.permute.xlu1 %2090 }
 0x894   : > { %v1821_v60 = vpop.permute.xlu1 %1820 }
 0x895   : > { %v1827_v62 = vsel %vm1825_vm8, %v1821_v60, 0  ;;  %2827 = vmatmul.mubr.msk.bf16.vlgmr.msra.gmra.mxu1 %vm859_vm2, %v1871_v55 }
 0x896   : > { %2819 = vmatpush3.bf16.msra.mxu0 %v1827_v62  ;;  %2837 = vmatpush3.bf16.xpose.msra.mxu1 %v1988_v61 }
 0x897   : > { %2838 = vmatprep.mubr.msk.bf16.mxu1 %vm3020_vm0, %v3019_v2  ;;  %2848 = vmatprep.subr.bf16.mxu1 %v3019_v2 }
 0x898   : > { %2830 = vmatprep.subr.bf16.mxu0 %v3019_v2 }
 0x89d   : > { %2839 = vmatmul.mubr.msk.bf16.vlgmr.msra.gmra.mxu1 %vm859_vm2, %v1981_v56 }
 0x89e   : > { %2849 = vmatpush3.bf16.xpose.msra.mxu1 %v2098_v0  ;;  %2850 = vmatprep.mubr.msk.bf16.mxu1 %vm3020_vm0, %v3019_v2 }
 0x89f   : > { %2860 = vmatprep.subr.bf16.mxu1 %v3019_v2 }
 0x8a5   : > { %2851 = vmatmul.mubr.msk.bf16.vlgmr.msra.gmra.mxu1 %vm859_vm2, %v2091_v58 }
 0x8a6   : > { %2864 = vmatprep.mubr.msk.bf16.mxu1 %vm3020_vm0, %v3019_v2  ;;  %2861 = vmatpush3.bf16.msra.mxu1 %v2940_v59 }
 0x8a7   : > { %2862 = vmatprep.subr.bf16.mxu1 %v3019_v2 }
 0x94d   : > { %v1803_v1 = vpop.f32.mrf.mxu1 }
 0x94e   : > { %v1809_v4 = vsel %vm859_vm2, %v1803_v1, -inf }
 0x94f   : > { %1810 = vmax.xlane.f32.xlu0 %v1809_v4  ;;  %v2816_v8 = vpop.f32.mrf.mxu1  ;;  %v2941_v4 = vld [vmem:[%s3591_s12] sm:$0xff]  }
 0x950   : > { %2863 = vmatpush3.bf16.msra.mxu1 %v2941_v4 }
 0x951   : > { %v1806_v11 = vpop.f32.mrf.mxu1  ;;  %2876 = vmatprep.subr.bf16.mxu1 %v3019_v2 }
 0x953   : > { %v2817_v12 = vpop.f32.mrf.mxu1 }
 0x955   : > { %v1914_v13 = vpop.f32.mrf.mxu1 }
 0x956   : > { %v1920_v14 = vsel %vm859_vm2, %v1914_v13, -inf }
 0x957   : > { %1921 = vmax.xlane.f32.xlu1 %v1920_v14  ;;  %v2828_v15 = vpop.f32.mrf.mxu1 }
 0x959   : > { %v1917_v16 = vpop.f32.mrf.mxu1 }
 0x95b   : > { %v2829_v17 = vpop.f32.mrf.mxu1 }
 0x95d   : > { %v2024_v18 = vpop.f32.mrf.mxu1 }
 0x95e   : > { %v2030_v19 = vsel %vm859_vm2, %v2024_v18, -inf }
 0x95f   : > { %2031 = vmax.xlane.f32.xlu0 %v2030_v19  ;;  %v2840_v20 = vpop.f32.mrf.mxu1 }
 0x961   : > { %v2027_v21 = vpop.f32.mrf.mxu1 }
 0x963   : > { %v2841_v5 = vpop.f32.mrf.mxu1 }
 0x965   : > { %v2134_v3 = vpop.f32.mrf.mxu1 }
 0x966   : > { %v2140_v22 = vsel %vm859_vm2, %v2134_v3, -inf }
 0x967   : > { %2141 = vmax.xlane.f32.xlu0 %v2140_v22  ;;  %v2852_v23 = vpop.f32.mrf.mxu1 }
 0x968   : > { %2041 = vrot.lane.b32.xlu1 %v3431_v49, %s3033_s24  ;;  %s3628_s24 = smov 24  }
 0x969   : > { %v2137_v24 = vpop.f32.mrf.mxu1 }
 0x96b   : > { %v2853_v7 = vpop.f32.mrf.mxu1 }
 0x96c   : > { %2151 = vrot.lane.b32.xlu1 %v3431_v49, %s3034_s6 }
 0x97d   : > { %1931 = vrot.lane.b32.xlu0 %v3431_v49, %s3035_s25 }
 0x9d8   : > { %v1811_v9 = vpop.xlane.xlu0 %1810 }
 0x9d9   : > { %v1812_v10 = vsub.f32 %v1803_v1, %v1811_v9 }
 0x9db   : > { %v1813_v25 = vmul.f32 1.442695, %v1812_v10 }
 0x9dd   : > { %2974 = vpow2.f32 %v1813_v25 }
 0x9e0   : > { %v1922_v26 = vpop.xlane.xlu1 %1921 }
 0x9e1   : > { %v1923_v27 = vsub.f32 %v1914_v13, %v1922_v26 }
 0x9e3   : > { %v1924_v28 = vmul.f32 1.442695, %v1923_v27 }
 0x9e4   : > { %v2042_v40 = vpop.permute.xlu1 %2041 }
 0x9e5   : > { %2976 = vpow2.f32 %v1924_v28  ;;  %v2047_v42 = vsel %vm1825_vm8, %v2042_v40, 0  ;;  %v2646_v28 = vld [vmem:[%s3592_s13] ss:$0 sm:$0xff]  ;;  %v2942_v40 = vld [vmem:[%s3595_s16 + $0x8] sm:$0xff]  }
 0x9e8   : > { %v2032_v29 = vpop.xlane.xlu0 %2031  ;;  %v2152_v46 = vpop.permute.xlu1 %2151 }
 0x9e9   : > { %v2033_v30 = vsub.f32 %v2024_v18, %v2032_v29  ;;  %v2157_v48 = vsel %vm1825_vm8, %v2152_v46, 0 }
 0x9ea   : > { %v2975_v31 = vpop.eup %2974 }
 0x9eb   : > { %v2034_v32 = vmul.f32 1.442695, %v2033_v30  ;;  %v1819_v33 = vpack.c.bf16 %v2975_v31, %v2975_v31  ;;  %v1815_v51 = vsel %vm859_vm2, %v2975_v31, 0.0 }
 0x9ed   : > { %2978 = vpow2.f32 %v2034_v32  ;;  %2821 = vmatmul.mubr.msk.bf16.vlgmr.msra.gmra.mxu0 %vm859_vm2, %v1819_v33 }
 0x9ee   : > { %2832 = vmatprep.mubr.msk.bf16.mxu0 %vm3020_vm0, %v3019_v2 }
 0x9f0   : > { %v2142_v34 = vpop.xlane.xlu0 %2141 }
 0x9f1   : > { %v2143_v6 = vsub.f32 %v2134_v3, %v2142_v34 }
 0x9f2   : > { %v2977_v35 = vpop.eup %2976 }
 0x9f3   : > { %v2144_v36 = vmul.f32 1.442695, %v2143_v6  ;;  %v1926_v37 = vsel %vm859_vm2, %v2977_v35, 0.0  ;;  %v1930_v41 = vpack.c.bf16 %v2977_v35, %v2977_v35 }
 0x9f4   : > { %1927 = vadd.xlane.f32.xlu0 %v1926_v37  ;;  %v1932_v38 = vpop.permute.xlu0 %1931 }
 0x9f5   : > { %2980 = vpow2.f32 %v2144_v36  ;;  %v1937_v39 = vsel %vm1825_vm8, %v1932_v38, 0 }
 0x9f6   : > { %2831 = vmatpush3.bf16.msra.mxu0 %v1937_v39 }
 0x9f7   : > { %2842 = vmatprep.subr.bf16.mxu0 %v3019_v2 }
 0x9f9   : > { %2833 = vmatmul.mubr.msk.bf16.vlgmr.msra.gmra.mxu0 %vm859_vm2, %v1930_v41  ;;  %v2944_v41 = vld [vmem:[%s3597_s18 + $0x18] sm:$0xff]  }
 0x9fa   : > { %v2979_v44 = vpop.eup %2978  ;;  %2843 = vmatpush3.bf16.msra.mxu0 %v2047_v42  ;;  %2844 = vmatprep.mubr.msk.bf16.mxu0 %vm3020_vm0, %v3019_v2  ;;  %v2945_v42 = vld [vmem:[%s3597_s18 + $0x10] sm:$0xff]  }
 0x9fb   : > { %v2036_v45 = vsel %vm859_vm2, %v2979_v44, 0.0  ;;  %2854 = vmatprep.subr.bf16.mxu0 %v3019_v2  ;;  %v2040_v47 = vpack.c.bf16 %v2979_v44, %v2979_v44 }
 0x9fc   : > { %2037 = vadd.xlane.f32.xlu1 %v2036_v45 }
 0xa01   : > { %2845 = vmatmul.mubr.msk.bf16.vlgmr.msra.gmra.mxu0 %vm859_vm2, %v2040_v47 }
 0xa02   : > { %v2981_v49 = vpop.eup %2980  ;;  %2855 = vmatpush3.bf16.msra.mxu0 %v2157_v48  ;;  %2856 = vmatprep.mubr.msk.bf16.mxu0 %vm3020_vm0, %v3019_v2  ;;  %v2650_v48 = vld [vmem:[%s3593_s14] ss:$0 sm:$0xff] }
 0xa03   : > { %v2146_v50 = vsel %vm859_vm2, %v2981_v49, 0.0  ;;  %2868 = vmatprep.subr.bf16.mxu0 %v3019_v2  ;;  %v2150_v52 = vpack.c.bf16 %v2981_v49, %v2981_v49 }
 0xa04   : > { %2147 = vadd.xlane.f32.xlu0 %v2146_v50  ;;  %v2651_v50 = vld [vmem:[%s3594_s15] ss:$0 sm:$0xff] }
 0xa08   : > { %1816 = vadd.xlane.f32.xlu0 %v1815_v51 }
 0xa09   : > { %2857 = vmatmul.mubr.msk.bf16.vlgmr.msra.gmra.mxu0 %vm859_vm2, %v2150_v52 }
 0xa0a   : > { %2872 = vmatprep.mubr.msk.bf16.mxu0 %vm3020_vm0, %v3019_v2  ;;  %2869 = vmatpush3.bf16.msra.mxu0 %v2942_v40 }
 0xa0b   : > { %2870 = vmatprep.subr.bf16.mxu0 %v3019_v2 }
 0xa7d   : > { %v1928_v53 = vpop.xlane.xlu0 %1927 }
 0xa7e   : > { %2982 = vrcp.f32 %v1928_v53 }
 0xa85   : > { %v2038_v56 = vpop.xlane.xlu1 %2037 }
 0xa86   : > { %2984 = vrcp.f32 %v2038_v56  ;;  %v2652_v56 = vld [vmem:[%s3596_s17] ss:$0 sm:$0xff] }
 0xa8b   : > { %v2983_v60 = vpop.eup %2982 }
 0xa8d   : > { %v2148_v61 = vpop.xlane.xlu0 %2147 }
 0xa8e   : > { %2986 = vrcp.f32 %v2148_v61 }
 0xa91   : > { %v1817_v3 = vpop.xlane.xlu0 %1816 }
 0xa92   : > { %2988 = vrcp.f32 %v1817_v3  ;;  %v2662_v3 = vld [vmem:[%s3599_s20] ss:$0 sm:$0xff] }
 0xa93   : > { %v2985_v11 = vpop.eup %2984 }
 0xa9b   : > { %v2987_v17 = vpop.eup %2986 }
 0xa9f   : > { %v2989_v22 = vpop.eup %2988 }
 0xaad   : > { %v1863_v54 = vpop.f32.mrf.mxu0 }
 0xaae   : > { %v1869_v24 = vmul.f32 %v2989_v22, %v1863_v54  ;;  %v2946_v54 = vld [vmem:[%s3597_s18 + $0x8] sm:$0xff]  }
 0xaaf   : > { %v2822_v55 = vpop.f32.mrf.mxu0 }
 0xab0   : > { %v2947_v55 = vld [vmem:[%s3597_s18] sm:$0xff]  }
 0xab1   : > { %v1866_v57 = vpop.f32.mrf.mxu0 }
 0xab3   : > { %v2823_v58 = vpop.f32.mrf.mxu0 }
 0xab9   : > { %v1973_v62 = vpop.f32.mrf.mxu0 }
 0xaba   : > { %v1979_v63 = vmul.f32 %v2983_v60, %v1973_v62 }
 0xabb   : > { %v2834_v0 = vpop.f32.mrf.mxu0 }
 0xabc   : > { %2201 = vrot.lane.b32.xlu1 %v1979_v63, %s3626_s0 }
 0xabd   : > { %v1976_v1 = vpop.f32.mrf.mxu0 }
 0xabf   : > { %v2835_v8 = vpop.f32.mrf.mxu0 }
 0xac1   : > { %v2083_v12 = vpop.f32.mrf.mxu0 }
 0xac2   : > { %v2089_v13 = vmul.f32 %v2985_v11, %v2083_v12 }
 0xac3   : > { %v2846_v14 = vpop.f32.mrf.mxu0 }
 0xac4   : > { %2205 = vrot.lane.b32.xlu0 %v2089_v13, %s3627_s2 }
 0xac5   : > { %v2086_v15 = vpop.f32.mrf.mxu0 }
 0xac7   : > { %v2847_v16 = vpop.f32.mrf.mxu0 }
 0xac9   : > { %v2193_v18 = vpop.f32.mrf.mxu0 }
 0xaca   : > { %v2199_v19 = vmul.f32 %v2987_v17, %v2193_v18 }
 0xacb   : > { %v2858_v20 = vpop.f32.mrf.mxu0 }
 0xacc   : > { %2209 = vrot.lane.b32.xlu1 %v2199_v19, %s3628_s24  ;;  %s3629_s24 = sshll.u32 %s3635_s3, 3 }
 0xacd   : > { %v2196_v21 = vpop.f32.mrf.mxu0  ;;  %s774_s5 = scalar_lea.vmem %s3601_s22, %s3629_s24 }
 0xacf   : > { %v2859_v5 = vpop.f32.mrf.mxu0 }
 0xb2e   : > { %v2202_v23 = vpop.permute.xlu1 %2201 }
 0xb2f   : > { %v2212_v9 = vsel %vm859_vm2, %v1869_v24, %v2202_v23  ;;  %v2663_v23 = vld [vmem:[%s3600_s21] ss:$0 sm:$0xff] }
 0xb36   : > { %v2206_v7 = vpop.permute.xlu0 %2205 }
 0xb37   : > { %v2213_v10 = vsel %vm1590_vm6, %v2212_v9, %v2206_v7 }
 0xb3e   : > { %v2210_v25 = vpop.permute.xlu1 %2209 }
 0xb3f   : > { %v2214_v26 = vsel %vm1592_vm7, %v2213_v10, %v2210_v25 }
 0xb40   : > { %v2219_v27 = vpack.c.bf16 %v2214_v26, %v2214_v26 }
 0xb42   : > { %2865 = vmatmul.mubr.msk.bf16.vlgmr.msra.gmra.mxu1 %vm805_vm1, %v2219_v27 }
 0xb43   : > { %2884 = vmatprep.mubr.msk.bf16.mxu1 %vm3020_vm0, %v3019_v2  ;;  %2877 = vmatpush3.bf16.msra.mxu1 %v2944_v41 }
 0xb44   : > { %2878 = vmatprep.subr.bf16.mxu1 %v3019_v2 }
 0xb47   : > { %2879 = vmatpush3.bf16.msra.mxu1 %v2945_v42 }
 0xb48   : > { %2880 = vmatprep.subr.bf16.mxu1 %v3019_v2 }
 0xb4b   : > { %2881 = vmatpush3.bf16.msra.mxu1 %v2946_v54 }
 0xb4c   : > { %2882 = vmatprep.subr.bf16.mxu1 %v3019_v2  ;;  %v2656_v2 = vld [vmem:[%s3598_s19] ss:$0 sm:$0xff] }
 0xb4f   : > { %2883 = vmatpush3.bf16.msra.mxu1 %v2947_v55 }
 0xc02   : > { %v2276_v29 = vpop.f32.mrf.mxu1 }
 0xc03   : > { %v2277_v30 = vadd.f32 %v2646_v28, %v2276_v29 }
 0xc04   : > { %v2866_v31 = vpop.f32.mrf.mxu1 }
 0xc05   : > { %v2282_v32 = vadd.f32 %v2277_v30, %v3421_v43  ;;  %v2943_v43 = vld [vmem:[%s3595_s16] sm:$0xff]  }
 0xc06   : > { %v2279_v33 = vpop.f32.mrf.mxu1  ;;  %2871 = vmatpush3.bf16.msra.mxu0 %v2943_v43 }
 0xc07   : > { %v2285_v34 = vsel %vm805_vm1, %v2282_v32, 0.0 }
 0xc08   : > { %2286 = vadd.xlane.f32.xlu1 %v2285_v34  ;;  %v2867_v6 = vpop.f32.mrf.mxu1 }
 0xc91   : > { %v2287_v35 = vpop.xlane.xlu1 %2286 }
 0xc92   : > { %v2288_v36 = vmul.f32 0.03125, %v2287_v35 }
 0xc94   : > { %v2289_v37 = vsub.f32 %v2282_v32, %v2288_v36 }
 0xc96   : > { %v2290_v38 = vmul.f32 %v2289_v37, %v2289_v37 }
 0xc98   : > { %v2291_v39 = vsel %vm805_vm1, %v2290_v38, 0.0 }
 0xc99   : > { %2292 = vadd.xlane.f32.xlu0 %v2291_v39 }
 0xd22   : > { %v2293_v44 = vpop.xlane.xlu0 %2292 }
 0xd23   : > { %v2294_v45 = vmul.f32 0.03125, %v2293_v44 }
 0xd25   : > { %v2295_v46 = vadd.f32 1e-05, %v2294_v45 }
 0xd27   : > { %2990 = vrsqrt.f32 %v2295_v46 }
 0xd34   : > { %v2991_v47 = vpop.eup %2990 }
 0xd35   : > { %v2297_v49 = vmul.f32 %v2991_v47, %v2289_v37 }
 0xd37   : > { %v2304_v51 = vmul.f32 %v2650_v48, %v2297_v49 }
 0xd39   : > { %v2311_v52 = vadd.f32 %v2651_v50, %v2304_v51 }
 0xd3b   : > { %v2316_v53 = vpack.c.bf16 %v2311_v52, %v2311_v52 }
 0xd3d   : > { %2873 = vmatmul.mubr.msk.bf16.vlgmr.msra.gmra.mxu0 %vm805_vm1, %v2316_v53 }
 0xdfd   : > { %v2373_v57 = vpop.f32.mrf.mxu0 }
 0xdfe   : > { %v2374_v58 = vadd.f32 %v2652_v56, %v2373_v57 }
 0xdff   : > { %v2874_v59 = vpop.f32.mrf.mxu0 }
 0xe00   : > { %v2379_v60 = vmax.f32 %v2374_v58, 0.0 }
 0xe01   : > { %v2376_v61 = vpop.f32.mrf.mxu0 }
 0xe02   : > { %v2388_v62 = vpack.c.bf16 %v2379_v60, %v2379_v60 }
 0xe03   : > { %v2875_v63 = vpop.f32.mrf.mxu0 }
 0xe04   : > { %2885 = vmatmul.mubr.msk.bf16.vlgmr.msra.gmra.mxu1 %vm2420_vm9, %v2388_v62 }
 0xec4   : > { %v2458_v0 = vpop.f32.mrf.mxu1 }
 0xec5   : > { %v2459_v1 = vadd.f32 %v2656_v2, %v2458_v0 }
 0xec6   : > { %v2886_v4 = vpop.f32.mrf.mxu1 }
 0xec7   : > { %v2464_v8 = vadd.f32 %v2459_v1, %v2311_v52 }
 0xec8   : > { %v2461_v11 = vpop.f32.mrf.mxu1 }
 0xec9   : > { %v2467_v12 = vsel %vm805_vm1, %v2464_v8, 0.0 }
 0xeca   : > { %2468 = vadd.xlane.f32.xlu0 %v2467_v12  ;;  %v2887_v13 = vpop.f32.mrf.mxu1 }
 0xf53   : > { %v2469_v14 = vpop.xlane.xlu0 %2468 }
 0xf54   : > { %v2470_v15 = vmul.f32 0.03125, %v2469_v14 }
 0xf56   : > { %v2471_v16 = vsub.f32 %v2464_v8, %v2470_v15 }
 0xf58   : > { %v2472_v17 = vmul.f32 %v2471_v16, %v2471_v16 }
 0xf5a   : > { %v2473_v18 = vsel %vm805_vm1, %v2472_v17, 0.0 }
 0xf5b   : > { %2474 = vadd.xlane.f32.xlu1 %v2473_v18 }
 0xfe4   : > { %v2475_v19 = vpop.xlane.xlu1 %2474 }
 0xfe5   : > { %v2476_v20 = vmul.f32 0.03125, %v2475_v19 }
 0xfe7   : > { %v2477_v21 = vadd.f32 1e-05, %v2476_v20 }
 0xfe9   : > { %2992 = vrsqrt.f32 %v2477_v21 }
 0xff6   : > { %v2993_v5 = vpop.eup %2992 }
 0xff7   : > { %v2479_v22 = vmul.f32 %v2993_v5, %v2471_v16 }
 0xff9   : > { %v2486_v24 = vmul.f32 %v2662_v3, %v2479_v22 }
 0xffb   : > { %v2493_v7 = vadd.f32 %v2663_v23, %v2486_v24 }
 0xffd   : > { %2494 = vst.msk [vmem:[%s774_s5] sm:$0xff] %vm805_vm1, %v2493_v7 }
 0xffe PF: > { %s32_s29 = sadd.s32 1, %s3016_s29   ;;  %s3630_s3 = smov %s3012_s28 }
 0xfff   : > { %p29_p5 = scmp.ge.s32.totalorder %s32_s29, 4   ;;  %s3631_s28 = smov %s3633_s30 }
0x1001   :  { %31 = sbr.rel (!%p29_p5) target bundleno = 8 (0x8), region = 164 }

// kernel: _lambda_.41
= control target key start
LH: loop header
LB: loop body
LE: loop exit
PB: predicated region body
PF: predicated region fallthrough
CT: control target
= control target key end

     0   :  { %vm71_vm0 = vcmask 1043456   ;;  %vm46_vm1 = vcmask 64512   ;;  %s1640_s0 = inlined_call_operand.vmem [shape: f32[16,8,8], index: 0, kind: input, shape index: {}]   ;;  %s1641_s1 = inlined_call_operand.vmem [shape: f32[32,8], index: 1, kind: input, shape index: {}]   ;;  %s1642_s2 = inlined_call_operand.vmem [shape: f32[8,32], index: 2, kind: input, shape index: {}]   ;;  %s1643_s3 = inlined_call_operand.hbm [shape: f32[16,32,32], index: 3, kind: output, shape index: {}]  }
   0x1   :  { %v20_v0 = vld [vmem:[%s1642_s2] sm:$0xff]  ;;  %v22_v2 = vld [vmem:[%s1640_s0 + $0x8] sm:$0xff]  ;;  %v23_v5 = vld [vmem:[%s1640_s0 + $0x10] sm:$0xff] }
   0x2   :  { %v21_v1 = vld [vmem:[%s1640_s0] sm:$0xff]  ;;  %v45_v3 = vpack.c.bf16 %v20_v0, %v20_v0  ;;  %v24_v6 = vld [vmem:[%s1640_s0 + $0x18] sm:$0xff]  ;;  %v26_v8 = vld [vmem:[%s1640_s0 + $0x28] sm:$0xff] }
   0x3   :  { %v37_v4 = vpack.c.bf16 %v22_v2, %v21_v1  ;;  %v25_v7 = vld [vmem:[%s1640_s0 + $0x20] sm:$0xff]  ;;  %v38_v10 = vpack.c.bf16 %v24_v6, %v23_v5 }
   0x4   :  { %1335 = vmatprep.subr.msk.bf16.mxu0 %vm71_vm0, %v45_v3  ;;  %v73_v9 = vsel %vm71_vm0, %v45_v3, 0  ;;  %v39_v11 = vpack.c.bf16 %v26_v8, %v25_v7 }
   0x5   :  { %1223 = vmatprep.mubr.msk.bf16.mxu0 %vm46_vm1, %v37_v4  ;;  %1222 = vmatpush3.bf16.msra.mxu0 %v73_v9 }
   0x6   :  { %8 = vsyncpa [#allocation3], 0  ;;  %v27_v12 = vld [vmem:[%s1640_s0 + $0x30] sm:$0xff]  ;;  %v28_v13 = vld [vmem:[%s1640_s0 + $0x38] sm:$0xff]  ;;  %vm233_vm2 = vcmask 261120  }
   0x7   :  { %v29_v14 = vld [vmem:[%s1640_s0 + $0x40] sm:$0xff]  ;;  %v30_v15 = vld [vmem:[%s1640_s0 + $0x48] sm:$0xff]  ;;  %v40_v16 = vpack.c.bf16 %v28_v13, %v27_v12  ;;  %v31_v18 = vld [vmem:[%s1640_s0 + $0x50] sm:$0xff] }
   0x8   :  { %1224 = vmatmul.mubr.msk.bf16.vlgmr.msra.gmra.mxu0 %vm46_vm1, %v38_v10  ;;  %v41_v17 = vpack.c.bf16 %v30_v15, %v29_v14  ;;  %v32_v19 = vld [vmem:[%s1640_s0 + $0x58] sm:$0xff]  ;;  %v33_v20 = vld [vmem:[%s1640_s0 + $0x60] sm:$0xff]  ;;  %v34_v21 = vld [vmem:[%s1640_s0 + $0x68] sm:$0xff] }
   0x9   :  { %1227 = vmatprep.mubr.msk.bf16.mxu0 %vm46_vm1, %v39_v11  ;;  %v42_v22 = vpack.c.bf16 %v32_v19, %v31_v18  ;;  %v43_v23 = vpack.c.bf16 %v34_v21, %v33_v20  ;;  %v35_v24 = vld [vmem:[%s1640_s0 + $0x70] sm:$0xff]  ;;  %v36_v25 = vld [vmem:[%s1640_s0 + $0x78] sm:$0xff]  ;;  %v16_v27 = vld [vmem:[%s1641_s1] sm:$0xff] }
   0xa   :  { %v44_v26 = vpack.c.bf16 %v36_v25, %v35_v24  ;;  %v17_v28 = vld [vmem:[%s1641_s1 + $0x8] sm:$0xff]  ;;  %v18_v32 = vld [vmem:[%s1641_s1 + $0x10] sm:$0xff]  ;;  %v19_v33 = vld [vmem:[%s1641_s1 + $0x18] sm:$0xff]  ;;  %s1377_s1 = smov [#allocation2]  }
   0xb   :  { %v1467_v29 = vpack.c.bf16 %v17_v28, %v16_v27  ;;  %v1481_v37 = vpack.c.bf16 %v19_v33, %v18_v32  ;;  %s1113_s24 = sshll.u32 %s1377_s1, 4  ;;  %s1114_s24 = int_to_ptr.vmem [resolvable:$true] %s1113_s24 }
   0xc   :  { %s1355_s25 = scalar_lea.vmem %s1114_s24, 8192  ;;  %p1360_p1 = scmp.lt.s32.totalorder %s1114_s24, %s1114_s24 }
   0xd   :  { %1241 = vmatprep.mubr.msk.bf16.mxu1 %vm46_vm1, %v1467_v29  ;;  %p1356_p0 = scmp.ne.s32.totalorder %s1114_s24, %s1355_s25  ;;  %p1361_p2 = scmp.lt.s32.totalorder %s1355_s25, %s1355_s25 }
   0xf   :  { %p1362_p3 = por %p1361_p2, %p1360_p1 }
  0x10   :  { %1228 = vmatmul.mubr.msk.bf16.gmra.mxu0 %vm46_vm1, %v40_v16 }
  0x11   :  { %1231 = vmatprep.mubr.msk.bf16.mxu0 %vm46_vm1, %v41_v17  ;;  %p1363_p4 = pnand %p1362_p3, %p1356_p0 }
  0x18   :  { %1232 = vmatmul.mubr.msk.bf16.gmra.mxu0 %vm46_vm1, %v42_v22 }
  0x19   :  { %1235 = vmatprep.mubr.msk.bf16.mxu0 %vm46_vm1, %v43_v23 }
  0x20   :  { %1236 = vmatmul.mubr.msk.bf16.gmra.mxu0 %vm46_vm1, %v44_v26 }
  0x21   :  { %1265 = vmatprep.mubr.msk.bf16.mxu0 %vm46_vm1, %v1467_v29 }
  0xc8   :  { %v1225_v30 = vpop.f32.mrf.mxu0 }
  0xc9   :  { %v296_v41 = vpack.c.bf16 %v1225_v30, %v1225_v30 }
  0xca   :  { %v109_v31 = vpop.f32.mrf.mxu0 }
  0xcb   :  { %v174_v34 = vpack.c.bf16 %v109_v31, %v109_v31  ;;  %v298_v51 = vsel %vm71_vm0, %v296_v41, 0 }
  0xcc   :  { %v1226_v35 = vpop.f32.mrf.mxu0 }
  0xcd   :  { %1336 = vmatprep.subr.msk.bf16.mxu1 %vm71_vm0, %v174_v34  ;;  %v182_v36 = vsel %vm71_vm0, %v174_v34, 0  ;;  %v354_v52 = vpack.c.bf16 %v1226_v35, %v1226_v35 }
  0xce   :  { %v112_v38 = vpop.f32.mrf.mxu0  ;;  %1240 = vmatpush3.bf16.msra.mxu1 %v182_v36 }
  0xcf   :  { %v238_v39 = vpack.c.bf16 %v112_v38, %v112_v38  ;;  %v356_v60 = vsel %vm71_vm0, %v354_v52, 0 }
  0xd0   :  { %v1229_v40 = vpop.f32.mrf.mxu0 }
  0xd1   :  { %v240_v42 = vsel %vm71_vm0, %v238_v39, 0  ;;  %1242 = vmatmul.mubr.msk.bf16.vlgmr.msra.gmra.mxu1 %vm46_vm1, %v1481_v37  ;;  %1337 = vmatprep.subr.msk.bf16.mxu1 %vm71_vm0, %v238_v39  ;;  %v528_v44 = vpack.c.bf16 %v1229_v40, %v1229_v40 }
  0xd2   :  { %v125_v43 = vpop.f32.mrf.mxu0  ;;  %1246 = vmatpush3.bf16.msra.mxu1 %v240_v42  ;;  %1247 = vmatprep.mubr.msk.bf16.mxu1 %vm46_vm1, %v1467_v29 }
  0xd3   :  { %v412_v45 = vpack.c.bf16 %v125_v43, %v125_v43  ;;  %1338 = vmatprep.subr.msk.bf16.mxu1 %vm71_vm0, %v296_v41  ;;  %v530_v49 = vsel %vm71_vm0, %v528_v44, 0 }
  0xd4   :  { %v1230_v46 = vpop.f32.mrf.mxu0 }
  0xd5   :  { %v414_v47 = vsel %vm71_vm0, %v412_v45, 0  ;;  %1340 = vmatprep.subr.msk.bf16.mxu0 %vm71_vm0, %v412_v45  ;;  %v586_v2 = vpack.c.bf16 %v1230_v46, %v1230_v46 }
  0xd6   :  { %v128_v48 = vpop.f32.mrf.mxu0  ;;  %1264 = vmatpush3.bf16.msra.mxu0 %v414_v47 }
  0xd7   :  { %1342 = vmatprep.subr.msk.bf16.mxu0 %vm71_vm0, %v528_v44  ;;  %v470_v56 = vpack.c.bf16 %v128_v48, %v128_v48  ;;  %v588_v6 = vsel %vm71_vm0, %v586_v2, 0 }
  0xd8   :  { %v1233_v50 = vpop.f32.mrf.mxu0 }
  0xd9   :  { %1248 = vmatmul.mubr.msk.bf16.vlgmr.msra.gmra.mxu1 %vm46_vm1, %v1481_v37  ;;  %1266 = vmatmul.mubr.msk.bf16.vlgmr.msra.gmra.mxu0 %vm46_vm1, %v1481_v37  ;;  %v760_v58 = vpack.c.bf16 %v1233_v50, %v1233_v50  ;;  %v472_v63 = vsel %vm71_vm0, %v470_v56, 0 }
  0xda   :  { %1252 = vmatpush3.bf16.msra.mxu1 %v298_v51  ;;  %1276 = vmatpush3.bf16.msra.mxu0 %v530_v49  ;;  %v141_v53 = vpop.f32.mrf.mxu0 }
  0xdb   :  { %1339 = vmatprep.subr.msk.bf16.mxu1 %vm71_vm0, %v354_v52  ;;  %1253 = vmatprep.mubr.msk.bf16.mxu1 %vm46_vm1, %v1467_v29  ;;  %v644_v54 = vpack.c.bf16 %v141_v53, %v141_v53  ;;  %v762_v0 = vsel %vm71_vm0, %v760_v58, 0 }
  0xdc   :  { %1277 = vmatprep.mubr.msk.bf16.mxu0 %vm46_vm1, %v1467_v29  ;;  %v1234_v55 = vpop.f32.mrf.mxu0 }
  0xdd   :  { %1344 = vmatprep.subr.msk.bf16.mxu0 %vm71_vm0, %v644_v54  ;;  %v646_v59 = vsel %vm71_vm0, %v644_v54, 0  ;;  %v818_v10 = vpack.c.bf16 %v1234_v55, %v1234_v55 }
  0xde   :  { %v144_v57 = vpop.f32.mrf.mxu0 }
  0xdf   :  { %v702_v3 = vpack.c.bf16 %v144_v57, %v144_v57  ;;  %v820_v13 = vsel %vm71_vm0, %v818_v10, 0 }
  0xe0   :  { %v1237_v61 = vpop.f32.mrf.mxu0 }
  0xe1   :  { %1254 = vmatmul.mubr.msk.bf16.vlgmr.msra.gmra.mxu1 %vm46_vm1, %v1481_v37  ;;  %1278 = vmatmul.mubr.msk.bf16.vlgmr.msra.gmra.mxu0 %vm46_vm1, %v1481_v37  ;;  %v992_v4 = vpack.c.bf16 %v1237_v61, %v1237_v61  ;;  %v704_v7 = vsel %vm71_vm0, %v702_v3, 0 }
  0xe2   :  { %1258 = vmatpush3.bf16.msra.mxu1 %v356_v60  ;;  %1259 = vmatprep.mubr.msk.bf16.mxu1 %vm46_vm1, %v1467_v29  ;;  %v157_v62 = vpop.f32.mrf.mxu0 }
  0xe3   :  { %1341 = vmatprep.subr.msk.bf16.mxu1 %vm71_vm0, %v470_v56  ;;  %1288 = vmatpush3.bf16.msra.mxu0 %v646_v59  ;;  %v876_v1 = vpack.c.bf16 %v157_v62, %v157_v62  ;;  %v994_v8 = vsel %vm71_vm0, %v992_v4, 0 }
  0xe4   :  { %1289 = vmatprep.mubr.msk.bf16.mxu0 %vm46_vm1, %v1467_v29  ;;  %1346 = vmatprep.subr.msk.bf16.mxu0 %vm71_vm0, %v760_v58  ;;  %v1238_v9 = vpop.f32.mrf.mxu0 }
  0xe5   :  { %v878_v5 = vsel %vm71_vm0, %v876_v1, 0  ;;  %v1050_v15 = vpack.c.bf16 %v1238_v9, %v1238_v9 }
  0xe6   :  { %v160_v11 = vpop.f32.mrf.mxu0 }
  0xe7   :  { %v934_v12 = vpack.c.bf16 %v160_v11, %v160_v11  ;;  %v1052_v16 = vsel %vm71_vm0, %v1050_v15, 0 }
  0xe9   :  { %1260 = vmatmul.mubr.msk.bf16.vlgmr.msra.gmra.mxu1 %vm46_vm1, %v1481_v37  ;;  %1290 = vmatmul.mubr.msk.bf16.vlgmr.msra.gmra.mxu0 %vm46_vm1, %v1481_v37  ;;  %v936_v14 = vsel %vm71_vm0, %v934_v12, 0 }
  0xea   :  { %1270 = vmatpush3.bf16.msra.mxu1 %v472_v63  ;;  %1271 = vmatprep.mubr.msk.bf16.mxu1 %vm46_vm1, %v1467_v29 }
  0xeb   :  { %1343 = vmatprep.subr.msk.bf16.mxu1 %vm71_vm0, %v586_v2  ;;  %1300 = vmatpush3.bf16.msra.mxu0 %v762_v0 }
  0xec   :  { %1301 = vmatprep.mubr.msk.bf16.mxu0 %vm46_vm1, %v1467_v29  ;;  %1348 = vmatprep.subr.msk.bf16.mxu0 %vm71_vm0, %v876_v1 }
  0xf1   :  { %1272 = vmatmul.mubr.msk.bf16.vlgmr.msra.gmra.mxu1 %vm46_vm1, %v1481_v37  ;;  %1302 = vmatmul.mubr.msk.bf16.vlgmr.msra.gmra.mxu0 %vm46_vm1, %v1481_v37 }
  0xf2   :  { %1282 = vmatpush3.bf16.msra.mxu1 %v588_v6  ;;  %1283 = vmatprep.mubr.msk.bf16.mxu1 %vm46_vm1, %v1467_v29 }
  0xf3   :  { %1345 = vmatprep.subr.msk.bf16.mxu1 %vm71_vm0, %v702_v3  ;;  %1312 = vmatpush3.bf16.msra.mxu0 %v878_v5 }
  0xf4   :  { %1313 = vmatprep.mubr.msk.bf16.mxu0 %vm46_vm1, %v1467_v29  ;;  %1350 = vmatprep.subr.msk.bf16.mxu0 %vm71_vm0, %v992_v4 }
  0xf9   :  { %1284 = vmatmul.mubr.msk.bf16.vlgmr.msra.gmra.mxu1 %vm46_vm1, %v1481_v37  ;;  %1314 = vmatmul.mubr.msk.bf16.vlgmr.msra.gmra.mxu0 %vm46_vm1, %v1481_v37 }
  0xfa   :  { %1294 = vmatpush3.bf16.msra.mxu1 %v704_v7  ;;  %1295 = vmatprep.mubr.msk.bf16.mxu1 %vm46_vm1, %v1467_v29 }
  0xfb   :  { %1347 = vmatprep.subr.msk.bf16.mxu1 %vm71_vm0, %v818_v10  ;;  %1324 = vmatpush3.bf16.msra.mxu0 %v994_v8 }
  0xfc   :  { %1325 = vmatprep.mubr.msk.bf16.mxu0 %vm46_vm1, %v1467_v29 }
 0x101   :  { %1296 = vmatmul.mubr.msk.bf16.vlgmr.msra.gmra.mxu1 %vm46_vm1, %v1481_v37  ;;  %1326 = vmatmul.mubr.msk.bf16.vlgmr.msra.gmra.mxu0 %vm46_vm1, %v1481_v37 }
 0x102   :  { %1306 = vmatpush3.bf16.msra.mxu1 %v820_v13  ;;  %1307 = vmatprep.mubr.msk.bf16.mxu1 %vm46_vm1, %v1467_v29 }
 0x103   :  { %1349 = vmatprep.subr.msk.bf16.mxu1 %vm71_vm0, %v934_v12 }
 0x109   :  { %1308 = vmatmul.mubr.msk.bf16.vlgmr.msra.gmra.mxu1 %vm46_vm1, %v1481_v37 }
 0x10a   :  { %1318 = vmatpush3.bf16.msra.mxu1 %v936_v14  ;;  %1319 = vmatprep.mubr.msk.bf16.mxu1 %vm46_vm1, %v1467_v29 }
 0x10b   :  { %1351 = vmatprep.subr.msk.bf16.mxu1 %vm71_vm0, %v1050_v15 }
 0x111   :  { %1320 = vmatmul.mubr.msk.bf16.vlgmr.msra.gmra.mxu1 %vm46_vm1, %v1481_v37 }
 0x112   :  { %1330 = vmatpush3.bf16.msra.mxu1 %v1052_v16  ;;  %1331 = vmatprep.mubr.msk.bf16.mxu1 %vm46_vm1, %v1467_v29 }
 0x119   :  { %1332 = vmatmul.mubr.msk.bf16.vlgmr.msra.gmra.mxu1 %vm46_vm1, %v1481_v37 }
 0x191   :  { %v1243_v17 = vpop.f32.mrf.mxu1 }
 0x192   :  { %236 = vst.msk [vmem:[#allocation2 + $0x10] sm:$0xff] %vm233_vm2, %v1243_v17 }
 0x193   :  { %v218_v18 = vpop.f32.mrf.mxu1 }
 0x194   :  { %234 = vst.msk [vmem:[#allocation2] sm:$0xff] %vm233_vm2, %v218_v18 }
 0x195   :  { %v1244_v19 = vpop.f32.mrf.mxu1 }
 0x196   :  { %237 = vst.msk [vmem:[#allocation2 + $0x18] sm:$0xff] %vm233_vm2, %v1244_v19 }
 0x197   :  { %v221_v20 = vpop.f32.mrf.mxu1 }
 0x198   :  { %235 = vst.msk [vmem:[#allocation2 + $0x8] sm:$0xff] %vm233_vm2, %v221_v20 }
 0x199   :  { %v1249_v21 = vpop.f32.mrf.mxu1  ;;  %v1267_v22 = vpop.f32.mrf.mxu0 }
 0x19a   :  { %294 = vst.msk [vmem:[#allocation2 + $0x30] sm:$0xff] %vm233_vm2, %v1249_v21  ;;  %468 = vst.msk [vmem:[#allocation2 + $0x90] sm:$0xff] %vm233_vm2, %v1267_v22 }
 0x19b   :  { %v276_v23 = vpop.f32.mrf.mxu1  ;;  %v450_v24 = vpop.f32.mrf.mxu0 }
 0x19c   :  { %292 = vst.msk [vmem:[#allocation2 + $0x20] sm:$0xff] %vm233_vm2, %v276_v23  ;;  %466 = vst.msk [vmem:[#allocation2 + $0x80] sm:$0xff] %vm233_vm2, %v450_v24 }
 0x19d   :  { %v1250_v25 = vpop.f32.mrf.mxu1  ;;  %v1268_v26 = vpop.f32.mrf.mxu0 }
 0x19e   :  { %295 = vst.msk [vmem:[#allocation2 + $0x38] sm:$0xff] %vm233_vm2, %v1250_v25  ;;  %469 = vst.msk [vmem:[#allocation2 + $0x98] sm:$0xff] %vm233_vm2, %v1268_v26 }
 0x19f   :  { %v279_v27 = vpop.f32.mrf.mxu1  ;;  %v453_v28 = vpop.f32.mrf.mxu0 }
 0x1a0   :  { %293 = vst.msk [vmem:[#allocation2 + $0x28] sm:$0xff] %vm233_vm2, %v279_v27  ;;  %467 = vst.msk [vmem:[#allocation2 + $0x88] sm:$0xff] %vm233_vm2, %v453_v28 }
 0x1a1   :  { %v1255_v29 = vpop.f32.mrf.mxu1  ;;  %v1279_v30 = vpop.f32.mrf.mxu0 }
 0x1a2   :  { %352 = vst.msk [vmem:[#allocation2 + $0x50] sm:$0xff] %vm233_vm2, %v1255_v29  ;;  %584 = vst.msk [vmem:[#allocation2 + $0xd0] sm:$0xff] %vm233_vm2, %v1279_v30 }
 0x1a3   :  { %v334_v31 = vpop.f32.mrf.mxu1  ;;  %v566_v32 = vpop.f32.mrf.mxu0 }
 0x1a4   :  { %350 = vst.msk [vmem:[#allocation2 + $0x40] sm:$0xff] %vm233_vm2, %v334_v31  ;;  %582 = vst.msk [vmem:[#allocation2 + $0xc0] sm:$0xff] %vm233_vm2, %v566_v32 }
 0x1a5   :  { %v1256_v33 = vpop.f32.mrf.mxu1  ;;  %v1280_v34 = vpop.f32.mrf.mxu0 }
 0x1a6   :  { %353 = vst.msk [vmem:[#allocation2 + $0x58] sm:$0xff] %vm233_vm2, %v1256_v33  ;;  %585 = vst.msk [vmem:[#allocation2 + $0xd8] sm:$0xff] %vm233_vm2, %v1280_v34 }
 0x1a7   :  { %v337_v35 = vpop.f32.mrf.mxu1  ;;  %v569_v36 = vpop.f32.mrf.mxu0 }
 0x1a8   :  { %351 = vst.msk [vmem:[#allocation2 + $0x48] sm:$0xff] %vm233_vm2, %v337_v35  ;;  %583 = vst.msk [vmem:[#allocation2 + $0xc8] sm:$0xff] %vm233_vm2, %v569_v36 }
 0x1a9   :  { %v1261_v37 = vpop.f32.mrf.mxu1  ;;  %v1291_v38 = vpop.f32.mrf.mxu0 }
 0x1aa   :  { %410 = vst.msk [vmem:[#allocation2 + $0x70] sm:$0xff] %vm233_vm2, %v1261_v37  ;;  %700 = vst.msk [vmem:[#allocation2 + $0x110] sm:$0xff] %vm233_vm2, %v1291_v38 }
 0x1ab   :  { %v392_v39 = vpop.f32.mrf.mxu1  ;;  %v682_v40 = vpop.f32.mrf.mxu0 }
 0x1ac   :  { %408 = vst.msk [vmem:[#allocation2 + $0x60] sm:$0xff] %vm233_vm2, %v392_v39  ;;  %698 = vst.msk [vmem:[#allocation2 + $0x100] sm:$0xff] %vm233_vm2, %v682_v40 }
 0x1ad   :  { %v1262_v41 = vpop.f32.mrf.mxu1  ;;  %v1292_v42 = vpop.f32.mrf.mxu0 }
 0x1ae   :  { %411 = vst.msk [vmem:[#allocation2 + $0x78] sm:$0xff] %vm233_vm2, %v1262_v41  ;;  %701 = vst.msk [vmem:[#allocation2 + $0x118] sm:$0xff] %vm233_vm2, %v1292_v42 }
 0x1af   :  { %v395_v43 = vpop.f32.mrf.mxu1  ;;  %v685_v44 = vpop.f32.mrf.mxu0 }
 0x1b0   :  { %409 = vst.msk [vmem:[#allocation2 + $0x68] sm:$0xff] %vm233_vm2, %v395_v43  ;;  %699 = vst.msk [vmem:[#allocation2 + $0x108] sm:$0xff] %vm233_vm2, %v685_v44 }
 0x1b1   :  { %v1273_v45 = vpop.f32.mrf.mxu1  ;;  %v1303_v46 = vpop.f32.mrf.mxu0 }
 0x1b2   :  { %526 = vst.msk [vmem:[#allocation2 + $0xb0] sm:$0xff] %vm233_vm2, %v1273_v45  ;;  %816 = vst.msk [vmem:[#allocation2 + $0x150] sm:$0xff] %vm233_vm2, %v1303_v46 }
 0x1b3   :  { %v508_v47 = vpop.f32.mrf.mxu1  ;;  %v798_v48 = vpop.f32.mrf.mxu0 }
 0x1b4   :  { %524 = vst.msk [vmem:[#allocation2 + $0xa0] sm:$0xff] %vm233_vm2, %v508_v47  ;;  %814 = vst.msk [vmem:[#allocation2 + $0x140] sm:$0xff] %vm233_vm2, %v798_v48 }
 0x1b5   :  { %v1274_v49 = vpop.f32.mrf.mxu1  ;;  %v1304_v50 = vpop.f32.mrf.mxu0 }
 0x1b6   :  { %527 = vst.msk [vmem:[#allocation2 + $0xb8] sm:$0xff] %vm233_vm2, %v1274_v49  ;;  %817 = vst.msk [vmem:[#allocation2 + $0x158] sm:$0xff] %vm233_vm2, %v1304_v50 }
 0x1b7   :  { %v511_v51 = vpop.f32.mrf.mxu1  ;;  %v801_v52 = vpop.f32.mrf.mxu0 }
 0x1b8   :  { %525 = vst.msk [vmem:[#allocation2 + $0xa8] sm:$0xff] %vm233_vm2, %v511_v51  ;;  %815 = vst.msk [vmem:[#allocation2 + $0x148] sm:$0xff] %vm233_vm2, %v801_v52 }
 0x1b9   :  { %v1285_v53 = vpop.f32.mrf.mxu1  ;;  %v1315_v54 = vpop.f32.mrf.mxu0 }
 0x1ba   :  { %642 = vst.msk [vmem:[#allocation2 + $0xf0] sm:$0xff] %vm233_vm2, %v1285_v53  ;;  %932 = vst.msk [vmem:[#allocation2 + $0x190] sm:$0xff] %vm233_vm2, %v1315_v54 }
 0x1bb   :  { %v624_v55 = vpop.f32.mrf.mxu1  ;;  %v914_v56 = vpop.f32.mrf.mxu0 }
 0x1bc   :  { %640 = vst.msk [vmem:[#allocation2 + $0xe0] sm:$0xff] %vm233_vm2, %v624_v55  ;;  %930 = vst.msk [vmem:[#allocation2 + $0x180] sm:$0xff] %vm233_vm2, %v914_v56 }
 0x1bd   :  { %v1286_v57 = vpop.f32.mrf.mxu1  ;;  %v1316_v58 = vpop.f32.mrf.mxu0 }
 0x1be   :  { %643 = vst.msk [vmem:[#allocation2 + $0xf8] sm:$0xff] %vm233_vm2, %v1286_v57  ;;  %933 = vst.msk [vmem:[#allocation2 + $0x198] sm:$0xff] %vm233_vm2, %v1316_v58 }
 0x1bf   :  { %v627_v59 = vpop.f32.mrf.mxu1  ;;  %v917_v60 = vpop.f32.mrf.mxu0 }
 0x1c0   :  { %641 = vst.msk [vmem:[#allocation2 + $0xe8] sm:$0xff] %vm233_vm2, %v627_v59  ;;  %931 = vst.msk [vmem:[#allocation2 + $0x188] sm:$0xff] %vm233_vm2, %v917_v60 }
 0x1c1   :  { %v1297_v61 = vpop.f32.mrf.mxu1  ;;  %v1327_v62 = vpop.f32.mrf.mxu0 }
 0x1c2   :  { %758 = vst.msk [vmem:[#allocation2 + $0x130] sm:$0xff] %vm233_vm2, %v1297_v61  ;;  %1048 = vst.msk [vmem:[#allocation2 + $0x1d0] sm:$0xff] %vm233_vm2, %v1327_v62 }
 0x1c3   :  { %v740_v63 = vpop.f32.mrf.mxu1  ;;  %v1030_v0 = vpop.f32.mrf.mxu0 }
 0x1c4   :  { %756 = vst.msk [vmem:[#allocation2 + $0x120] sm:$0xff] %vm233_vm2, %v740_v63  ;;  %1046 = vst.msk [vmem:[#allocation2 + $0x1c0] sm:$0xff] %vm233_vm2, %v1030_v0 }
 0x1c5   :  { %v1298_v1 = vpop.f32.mrf.mxu1  ;;  %v1328_v2 = vpop.f32.mrf.mxu0 }
 0x1c6   :  { %759 = vst.msk [vmem:[#allocation2 + $0x138] sm:$0xff] %vm233_vm2, %v1298_v1  ;;  %1049 = vst.msk [vmem:[#allocation2 + $0x1d8] sm:$0xff] %vm233_vm2, %v1328_v2 }
 0x1c7   :  { %v743_v3 = vpop.f32.mrf.mxu1  ;;  %v1033_v4 = vpop.f32.mrf.mxu0 }
 0x1c8   :  { %757 = vst.msk [vmem:[#allocation2 + $0x128] sm:$0xff] %vm233_vm2, %v743_v3  ;;  %1047 = vst.msk [vmem:[#allocation2 + $0x1c8] sm:$0xff] %vm233_vm2, %v1033_v4 }
 0x1c9   :  { %v1309_v5 = vpop.f32.mrf.mxu1 }
 0x1ca   :  { %874 = vst.msk [vmem:[#allocation2 + $0x170] sm:$0xff] %vm233_vm2, %v1309_v5 }
 0x1cb   :  { %v856_v6 = vpop.f32.mrf.mxu1 }
 0x1cc   :  { %872 = vst.msk [vmem:[#allocation2 + $0x160] sm:$0xff] %vm233_vm2, %v856_v6 }
 0x1cd   :  { %v1310_v7 = vpop.f32.mrf.mxu1 }
 0x1ce   :  { %875 = vst.msk [vmem:[#allocation2 + $0x178] sm:$0xff] %vm233_vm2, %v1310_v7 }
 0x1cf   :  { %v859_v8 = vpop.f32.mrf.mxu1 }
 0x1d0   :  { %873 = vst.msk [vmem:[#allocation2 + $0x168] sm:$0xff] %vm233_vm2, %v859_v8 }
 0x1d1   :  { %v1321_v9 = vpop.f32.mrf.mxu1 }
 0x1d2   :  { %990 = vst.msk [vmem:[#allocation2 + $0x1b0] sm:$0xff] %vm233_vm2, %v1321_v9 }
 0x1d3   :  { %v972_v10 = vpop.f32.mrf.mxu1 }
 0x1d4   :  { %988 = vst.msk [vmem:[#allocation2 + $0x1a0] sm:$0xff] %vm233_vm2, %v972_v10 }
 0x1d5   :  { %v1322_v11 = vpop.f32.mrf.mxu1 }
 0x1d6   :  { %991 = vst.msk [vmem:[#allocation2 + $0x1b8] sm:$0xff] %vm233_vm2, %v1322_v11 }
 0x1d7   :  { %v975_v12 = vpop.f32.mrf.mxu1 }
 0x1d8   :  { %989 = vst.msk [vmem:[#allocation2 + $0x1a8] sm:$0xff] %vm233_vm2, %v975_v12 }
 0x1d9   :  { %v1333_v13 = vpop.f32.mrf.mxu1 }
 0x1da   :  { %1106 = vst.msk [vmem:[#allocation2 + $0x1f0] sm:$0xff] %vm233_vm2, %v1333_v13 }
 0x1db   :  { %v1088_v14 = vpop.f32.mrf.mxu1 }
 0x1dc   :  { %1104 = vst.msk [vmem:[#allocation2 + $0x1e0] sm:$0xff] %vm233_vm2, %v1088_v14 }
 0x1dd   :  { %v1334_v15 = vpop.f32.mrf.mxu1 }
 0x1de   :  { %1107 = vst.msk [vmem:[#allocation2 + $0x1f8] sm:$0xff] %vm233_vm2, %v1334_v15 }
 0x1df   :  { %v1091_v16 = vpop.f32.mrf.mxu1 }
 0x1e0   :  { %1105 = vst.msk [vmem:[#allocation2 + $0x1e8] sm:$0xff] %vm233_vm2, %v1091_v16 }
 0x1e1   :  { %1366 = shalt.err (!%p1363_p4)
}
 0x1e2   :  { %s1378_s26 = smov 128   ;;  %s1379_s27 = smov 8  }
 0x1e3   :  { %1119 = dma.vmem_to_hbm [thread:$0]  %s1114_s24, 8192, %s1643_s3, [#allocation3], %s1378_s26, %s1378_s26, %s1379_s27  }
 0x1e4   :  { %1375 = dma.done.wait [#allocation3], 8192  }
 0x1e5   :  { %1376 = vsyncadd [#allocation3], 4294959104 }
 0x1e6   :  { %1123 = vsyncpa [#allocation3], 1 }

</bundles_post_ra>
